<compile_context>
chip_gen: v5e
topology: v5e:2x2
jax: 0.10.0
libtpu: 0.0.40
codegen_flags: <defaults>
</compile_context>

<pallas_src>
import math

import jax
import jax.numpy as jnp
from jax import lax
from jax.experimental import pallas as pl
from jax.experimental.pallas import tpu as pltpu


def rem_policy_forward(x, params, *, nhead=8, eps=1e-5, block_b=None):
    """Fused REM_Policy forward pass (eval mode).

    Args:
      x: [B, S, F] float32 input sequences ("encodeds").
      params: dict of weights in "math" layout (y = x @ w):
          wq, wk, wv, wo : [L, F, F]     bq, bk, bv, bo : [L, 1, F]
          ln1_g, ln1_b, ln2_g, ln2_b : [L, 1, F]
          wff1 : [L, F, DFF]  bff1 : [L, 1, DFF]
          wff2 : [L, DFF, F]  bff2 : [L, 1, F]
          hw1 : [F, F//2]  hb1 : [1, F//2]  hw2 : [F//2, 1]  hb2 : [1, 1]
      nhead: number of attention heads (8 in the module).
      eps:   LayerNorm epsilon (PyTorch default 1e-5).
      block_b: sequences per grid step (auto-chosen if None).

    Returns:
      [B, S] crop probabilities (softmax over the sequence axis).
    """
    B, S, F = x.shape
    assert F % nhead == 0, "d_model must be divisible by nhead"
    hd = F // nhead
    nl = params["wq"].shape[0]
    dff = params["wff1"].shape[-1]          # dim_feedforward (= F // 2)
    hmid = params["hw1"].shape[-1]          # fc-head hidden (= F // 2)
    assert dff == hmid, "weight packing assumes dim_feedforward == F // 2"
    scale = 1.0 / math.sqrt(hd)

    # ---- batch tile choice -------------------------------------------------
    # ~256 rows per step fills the MXU M-dim on v6e/v7x (and is 128-aligned for
    # v5e); keep >=2 grid steps when possible so both v7x TensorCores get work;
    # keep the (Bt, S) output block sublane-aligned (Bt % 8 == 0) unless a single
    # block spans the whole (padded) batch.
    if block_b is None:
        block_b = max(1, 256 // S)
        if B > 1:
            block_b = min(block_b, max(1, B // 2))
    block_b = int(min(block_b, B))
    if block_b < B:
        block_b = max(8, (block_b // 8) * 8)
        block_b = min(block_b, B)
    grid_b = -(-B // block_b)
    Bp = grid_b * block_b
    if Bp != B:
        # Zero-padded sequences produce uniform (finite) softmax rows that are
        # sliced off below; they never contaminate real rows.
        x = jnp.pad(x, ((0, Bp - B), (0, 0), (0, 0)))

    # ---- wrapper-side weight packing: 20 params -> 5 VMEM-resident arrays ---
    attw = jnp.stack([params["wq"], params["wk"], params["wv"], params["wo"]],
                     axis=1)                                          # [L, 4, F, F]
    vecs_f = jnp.concatenate(
        [params["bq"], params["bk"], params["bv"], params["bo"],
         params["ln1_g"], params["ln1_b"], params["bff2"],
         params["ln2_g"], params["ln2_b"]], axis=1)                   # [L, 9, F]
    w_fd = jnp.concatenate([params["wff1"], params["hw1"][None]],
                           axis=0)                                    # [L+1, F, dff]
    w_df = params["wff2"]                                             # [L, dff, F]
    vecs_d = jnp.concatenate(
        [params["bff1"][:, 0, :],                                     # rows 0..L-1
         params["hb1"],                                               # row L
         params["hw2"].T], axis=0)                                    # row L+1
    # NOTE: fc-head scalar bias hb2 is constant across positions -> cancels in the
    # softmax over the sequence axis, so it is intentionally not passed in.
    weights = (attw, vecs_f, w_fd, w_df, vecs_d)

    def layer_norm(v, gamma, beta):
        mean = jnp.mean(v, axis=-1, keepdims=True)
        cen = v - mean
        var = jnp.mean(cen * cen, axis=-1, keepdims=True)
        return cen * lax.rsqrt(var + eps) * gamma + beta

    M = block_b * S  # rows per grid step for all position-wise matmuls

    # ---- the fused kernel: block_b full sequences per grid step -------------
    def kernel(x_ref, attw_ref, vecsf_ref, wfd_ref, wdf_ref, vecsd_ref, o_ref):
        # Flatten the Bt sequences into one [M, F] slab (free: S == sublane tile).
        h = x_ref[...].reshape(M, F)

        for l in range(nl):                       # num_layers = 2, static unroll
            vf = vecsf_ref[l]                     # [9, F]
            bq, bk, bv, bo = vf[0:1], vf[1:2], vf[2:3], vf[3:4]
            g1, b1 = vf[4:5], vf[5:6]
            bff2 = vf[6:7]
            g2, b2 = vf[7:8], vf[8:9]

            # --- multi-head self-attention: full-width QKV projections ---
            q = jnp.dot(h, attw_ref[l, 0], preferred_element_type=jnp.float32) + bq
            k = jnp.dot(h, attw_ref[l, 1], preferred_element_type=jnp.float32) + bk
            v = jnp.dot(h, attw_ref[l, 2], preferred_element_type=jnp.float32) + bv
            q3 = q.reshape(block_b, S, F)
            k3 = k.reshape(block_b, S, F)
            v3 = v.reshape(block_b, S, F)

            # Per-head scores/softmax/ctx, batched over the block_b sequences
            # (3-D einsums with a single leading batch dim).
            ctx_heads = []
            for hh in range(nhead):
                lo, hi = hh * hd, (hh + 1) * hd
                qh = q3[:, :, lo:hi]                              # [Bt, S, hd]
                kh = k3[:, :, lo:hi]
                vh = v3[:, :, lo:hi]
                s = jnp.einsum("bqd,bkd->bqk", qh, kh,
                               preferred_element_type=jnp.float32) * scale
                s = s - jnp.max(s, axis=-1, keepdims=True)
                p = jnp.exp(s)
                p = p * pl.reciprocal(jnp.sum(p, axis=-1, keepdims=True),
                                      approx=True)
                ctx_heads.append(jnp.einsum("bqk,bkd->bqd", p, vh,
                                            preferred_element_type=jnp.float32))
            ctx = jnp.concatenate(ctx_heads, axis=-1).reshape(M, F)

            # Single full-width out-projection (== concat(heads) @ Wo).
            attn = jnp.dot(ctx, attw_ref[l, 3],
                           preferred_element_type=jnp.float32) + bo
            h = layer_norm(h + attn, g1, b1)       # dropout = identity (eval)

            # --- feed-forward block (ReLU) ---
            ff = jnp.dot(h, wfd_ref[l], preferred_element_type=jnp.float32)
            ff = jnp.maximum(ff + vecsd_ref[l:l + 1], 0.0)
            ff = jnp.dot(ff, wdf_ref[l], preferred_element_type=jnp.float32) + bff2
            h = layer_norm(h + ff, g2, b2)

        # --- fc head: Linear -> ReLU -> <row, hw2>;  softmax over positions ---
        hid = jnp.dot(h, wfd_ref[nl], preferred_element_type=jnp.float32)
        hid = jnp.maximum(hid + vecsd_ref[nl:nl + 1], 0.0)        # [M, dff]
        w2row = vecsd_ref[nl + 1:nl + 2]                          # [1, dff]
        # N=1 matmul replaced by VPU multiply + lane reduction -> [Bt, S].
        logits = jnp.sum(hid.reshape(block_b, S, dff) * w2row, axis=-1)
        m = jnp.max(logits, axis=-1, keepdims=True)
        e = jnp.exp(logits - m)
        # Exact divide so the returned probabilities sum to 1 exactly.
        o_ref[...] = (e / jnp.sum(e, axis=-1, keepdims=True)).astype(o_ref.dtype)

    # Weights: whole-array blocks with constant index_maps -> stay VMEM-resident.
    def _const_spec(a):
        zeros = (0,) * a.ndim
        return pl.BlockSpec(a.shape, lambda b, _z=zeros: _z)

    in_specs = [pl.BlockSpec((block_b, S, F), lambda b: (b, 0, 0))]
    in_specs += [_const_spec(w) for w in weights]

    probs = pl.pallas_call(
        kernel,
        out_shape=jax.ShapeDtypeStruct((Bp, S), jnp.float32),
        grid=(grid_b,),
        in_specs=in_specs,
        out_specs=pl.BlockSpec((block_b, S), lambda b: (b, 0)),
        compiler_params=pltpu.CompilerParams(
            dimension_semantics=("parallel",),
            vmem_limit_bytes=32 * 1024 * 1024),
    )(x, *weights)

    return probs[:B]                                              # [B, S]


# ------------------------------------------------------------------------------
# Pure-JAX reference (same math, standard reshape-to-heads formulation)
# ------------------------------------------------------------------------------
def _reference(x, params, *, nhead=8, eps=1e-5):
    B, S, F = x.shape
    hd = F // nhead
    nl = params["wq"].shape[0]

    def layer_norm(v, g, b):
        m = v.mean(-1, keepdims=True)
        var = ((v - m) ** 2).mean(-1, keepdims=True)
        return (v - m) / jnp.sqrt(var + eps) * g + b

    h = x
    for l in range(nl):
        q = h @ params["wq"][l] + params["bq"][l]
        k = h @ params["wk"][l] + params["bk"][l]
        v = h @ params["wv"][l] + params["bv"][l]

        def heads(t):
            return t.reshape(B, S, nhead, hd).transpose(0, 2, 1, 3)

        qh, kh, vh = heads(q), heads(k), heads(v)
        scores = jnp.einsum("bhqd,bhkd->bhqk", qh, kh) / math.sqrt(hd)
        p = jax.nn.softmax(scores, axis=-1)
        ctx = jnp.einsum("bhqk,bhkd->bhqd", p, vh)
        ctx = ctx.transpose(0, 2, 1, 3).reshape(B, S, F)
        attn = ctx @ params["wo"][l] + params["bo"][l]
        h = layer_norm(h + attn, params["ln1_g"][l], params["ln1_b"][l])
        ff = jnp.maximum(h @ params["wff1"][l] + params["bff1"][l], 0.0)
        ff = ff @ params["wff2"][l] + params["bff2"][l]
        h = layer_norm(h + ff, params["ln2_g"][l], params["ln2_b"][l])

    hid = jnp.maximum(h @ params["hw1"] + params["hb1"], 0.0)
    logits = (hid @ params["hw2"] + params["hb2"])[..., 0]          # [B, S]
    return jax.nn.softmax(logits, axis=1)


if __name__ == "__main__":
    # Small shapes consistent with the module: feature_size=32 (multiple of
    # nhead=8 -> head_dim=4), dim_feedforward=16, num_layers=2, seq=8.
    # batch=16 so the batched grid still has 2 steps (block_b=8).
    B, S, F = 16, 8, 32
    NHEAD = 8
    NL = 2
    DFF = F // 2
    HMID = F // 2

    keys = iter(jax.random.split(jax.random.PRNGKey(0), 32))

    def rnd(shape, scl):
        return scl * jax.random.normal(next(keys), shape, dtype=jnp.float32)

    params = {
        "wq": rnd((NL, F, F), 1.0 / math.sqrt(F)),
        "wk": rnd((NL, F, F), 1.0 / math.sqrt(F)),
        "wv": rnd((NL, F, F), 1.0 / math.sqrt(F)),
        "wo": rnd((NL, F, F), 1.0 / math.sqrt(F)),
        "bq": rnd((NL, 1, F), 0.02),
        "bk": rnd((NL, 1, F), 0.02),
        "bv": rnd((NL, 1, F), 0.02),
        "bo": rnd((NL, 1, F), 0.02),
        "ln1_g": 1.0 + rnd((NL, 1, F), 0.05),
        "ln1_b": rnd((NL, 1, F), 0.05),
        "ln2_g": 1.0 + rnd((NL, 1, F), 0.05),
        "ln2_b": rnd((NL, 1, F), 0.05),
        "wff1": rnd((NL, F, DFF), 1.0 / math.sqrt(F)),
        "bff1": rnd((NL, 1, DFF), 0.02),
        "wff2": rnd((NL, DFF, F), 1.0 / math.sqrt(DFF)),
        "bff2": rnd((NL, 1, F), 0.02),
        "hw1": rnd((F, HMID), 1.0 / math.sqrt(F)),
        "hb1": rnd((1, HMID), 0.02),
        "hw2": rnd((HMID, 1), 1.0 / math.sqrt(HMID)),
        "hb2": rnd((1, 1), 0.02),
    }

    x = rnd((B, S, F), 1.0)

    out = rem_policy_forward(x, params, nhead=NHEAD)
    out = jax.block_until_ready(out)

    ref = _reference(x, params, nhead=NHEAD)

    assert out.shape == (B, S), out.shape
    assert bool(jnp.allclose(jnp.sum(out, axis=1), 1.0, atol=1e-4)), \
        "probabilities do not sum to 1"
    # Tolerance loosened slightly (2e-3) because the attention-softmax denominators
    # use the EUP approximate reciprocal.
    err = float(jnp.max(jnp.abs(out - ref)))
    assert err < 2e-3, f"mismatch vs reference: max abs err = {err}"

    print("KERNEL_OK")
</pallas_src>

<mosaic_0001>
module attributes {stable_mosaic.version = 11 : i64} {
  func.func @kernel(%arg0: i32, %arg1: memref<8x8x32xf32, #tpu.memory_space<vmem>>, %arg2: memref<2x4x32x32xf32, #tpu.memory_space<vmem>>, %arg3: memref<2x9x32xf32, #tpu.memory_space<vmem>>, %arg4: memref<3x32x16xf32, #tpu.memory_space<vmem>>, %arg5: memref<2x16x32xf32, #tpu.memory_space<vmem>>, %arg6: memref<4x16xf32, #tpu.memory_space<vmem>>, %arg7: memref<8x8xf32, #tpu.memory_space<vmem>>) attributes {dimension_semantics = [#tpu.dimension_semantics<parallel>], iteration_bounds = array<i64: 2>, scalar_prefetch = 0 : i64, scratch_operands = 0 : i64, tpu.core_type = #tpu.core_type<tc>, window_params = [{transform_indices = @transform_0, window_bounds = array<i64: 8, 8, 32>}, {pipeline_mode = #tpu.pipeline_mode<synchronous>, transform_indices = @transform_1, window_bounds = array<i64: 2, 4, 32, 32>}, {pipeline_mode = #tpu.pipeline_mode<synchronous>, transform_indices = @transform_2, window_bounds = array<i64: 2, 9, 32>}, {pipeline_mode = #tpu.pipeline_mode<synchronous>, transform_indices = @transform_3, window_bounds = array<i64: 3, 32, 16>}, {pipeline_mode = #tpu.pipeline_mode<synchronous>, transform_indices = @transform_4, window_bounds = array<i64: 2, 16, 32>}, {pipeline_mode = #tpu.pipeline_mode<synchronous>, transform_indices = @transform_5, window_bounds = array<i64: 4, 16>}, {transform_indices = @transform_6, window_bounds = array<i64: 8, 8>}]} {
    %c0 = arith.constant 0 : index
    %c0_0 = arith.constant 0 : index
    %c0_1 = arith.constant 0 : index
    %0 = vector.load %arg1[%c0, %c0_0, %c0_1] : memref<8x8x32xf32, #tpu.memory_space<vmem>>, vector<8x8x32xf32>
    %1 = vector.shape_cast %0 : vector<8x8x32xf32> to vector<64x32xf32>
    %c0_2 = arith.constant 0 : index
    %c0_3 = arith.constant 0 : index
    %c0_4 = arith.constant 0 : index
    %2 = vector.load %arg3[%c0_2, %c0_3, %c0_4] : memref<2x9x32xf32, #tpu.memory_space<vmem>>, vector<1x9x32xf32>
    %3 = vector.shape_cast %2 : vector<1x9x32xf32> to vector<9x32xf32>
    %4 = vector.extract_strided_slice %3 {offsets = [0, 0], sizes = [1, 32], strides = [1, 1]} : vector<9x32xf32> to vector<1x32xf32>
    %5 = vector.extract_strided_slice %3 {offsets = [1, 0], sizes = [1, 32], strides = [1, 1]} : vector<9x32xf32> to vector<1x32xf32>
    %6 = vector.extract_strided_slice %3 {offsets = [2, 0], sizes = [1, 32], strides = [1, 1]} : vector<9x32xf32> to vector<1x32xf32>
    %7 = vector.extract_strided_slice %3 {offsets = [3, 0], sizes = [1, 32], strides = [1, 1]} : vector<9x32xf32> to vector<1x32xf32>
    %8 = vector.extract_strided_slice %3 {offsets = [4, 0], sizes = [1, 32], strides = [1, 1]} : vector<9x32xf32> to vector<1x32xf32>
    %9 = vector.extract_strided_slice %3 {offsets = [5, 0], sizes = [1, 32], strides = [1, 1]} : vector<9x32xf32> to vector<1x32xf32>
    %10 = vector.extract_strided_slice %3 {offsets = [6, 0], sizes = [1, 32], strides = [1, 1]} : vector<9x32xf32> to vector<1x32xf32>
    %11 = vector.extract_strided_slice %3 {offsets = [7, 0], sizes = [1, 32], strides = [1, 1]} : vector<9x32xf32> to vector<1x32xf32>
    %12 = vector.extract_strided_slice %3 {offsets = [8, 0], sizes = [1, 32], strides = [1, 1]} : vector<9x32xf32> to vector<1x32xf32>
    %c0_5 = arith.constant 0 : index
    %c0_6 = arith.constant 0 : index
    %c0_7 = arith.constant 0 : index
    %c0_8 = arith.constant 0 : index
    %13 = vector.load %arg2[%c0_5, %c0_6, %c0_7, %c0_8] : memref<2x4x32x32xf32, #tpu.memory_space<vmem>>, vector<1x1x32x32xf32>
    %14 = vector.shape_cast %13 : vector<1x1x32x32xf32> to vector<32x32xf32>
    %cst = arith.constant dense<0.000000e+00> : vector<64x32xf32>
    %15 = tpu.matmul %1, %14, %cst {dimension_numbers = #tpu.dot_dimension_numbers<[1], [0], [0], [1], [0, 0, 1, 1], [], []>} : vector<64x32xf32>, vector<32x32xf32>, vector<64x32xf32> -> vector<64x32xf32>
    %16 = vector.broadcast %4 : vector<1x32xf32> to vector<64x32xf32>
    %17 = arith.addf %15, %16 : vector<64x32xf32>
    %c0_9 = arith.constant 0 : index
    %c1 = arith.constant 1 : index
    %c0_10 = arith.constant 0 : index
    %c0_11 = arith.constant 0 : index
    %18 = vector.load %arg2[%c0_9, %c1, %c0_10, %c0_11] : memref<2x4x32x32xf32, #tpu.memory_space<vmem>>, vector<1x1x32x32xf32>
    %19 = vector.shape_cast %18 : vector<1x1x32x32xf32> to vector<32x32xf32>
    %cst_12 = arith.constant dense<0.000000e+00> : vector<64x32xf32>
    %20 = tpu.matmul %1, %19, %cst_12 {dimension_numbers = #tpu.dot_dimension_numbers<[1], [0], [0], [1], [0, 0, 1, 1], [], []>} : vector<64x32xf32>, vector<32x32xf32>, vector<64x32xf32> -> vector<64x32xf32>
    %21 = vector.broadcast %5 : vector<1x32xf32> to vector<64x32xf32>
    %22 = arith.addf %20, %21 : vector<64x32xf32>
    %c0_13 = arith.constant 0 : index
    %c2 = arith.constant 2 : index
    %c0_14 = arith.constant 0 : index
    %c0_15 = arith.constant 0 : index
    %23 = vector.load %arg2[%c0_13, %c2, %c0_14, %c0_15] : memref<2x4x32x32xf32, #tpu.memory_space<vmem>>, vector<1x1x32x32xf32>
    %24 = vector.shape_cast %23 : vector<1x1x32x32xf32> to vector<32x32xf32>
    %cst_16 = arith.constant dense<0.000000e+00> : vector<64x32xf32>
    %25 = tpu.matmul %1, %24, %cst_16 {dimension_numbers = #tpu.dot_dimension_numbers<[1], [0], [0], [1], [0, 0, 1, 1], [], []>} : vector<64x32xf32>, vector<32x32xf32>, vector<64x32xf32> -> vector<64x32xf32>
    %26 = vector.broadcast %6 : vector<1x32xf32> to vector<64x32xf32>
    %27 = arith.addf %25, %26 : vector<64x32xf32>
    %28 = vector.shape_cast %17 : vector<64x32xf32> to vector<8x8x32xf32>
    %29 = vector.shape_cast %22 : vector<64x32xf32> to vector<8x8x32xf32>
    %30 = vector.shape_cast %27 : vector<64x32xf32> to vector<8x8x32xf32>
    %31 = vector.extract_strided_slice %28 {offsets = [0, 0, 0], sizes = [8, 8, 4], strides = [1, 1, 1]} : vector<8x8x32xf32> to vector<8x8x4xf32>
    %32 = vector.extract_strided_slice %29 {offsets = [0, 0, 0], sizes = [8, 8, 4], strides = [1, 1, 1]} : vector<8x8x32xf32> to vector<8x8x4xf32>
    %33 = vector.extract_strided_slice %30 {offsets = [0, 0, 0], sizes = [8, 8, 4], strides = [1, 1, 1]} : vector<8x8x32xf32> to vector<8x8x4xf32>
    "tpu.trace_start"() <{level = 10 : i32, message = "bqd,bkd->bqk"}> : () -> ()
    %cst_17 = arith.constant dense<0.000000e+00> : vector<8x8x8xf32>
    %34 = tpu.matmul %31, %32, %cst_17 {dimension_numbers = #tpu.dot_dimension_numbers<[2], [2], [1], [1], [0, 0, 0, 1, 1, 1], [0], [0]>} : vector<8x8x4xf32>, vector<8x8x4xf32>, vector<8x8x8xf32> -> vector<8x8x8xf32>
    "tpu.trace_stop"() : () -> ()
    %cst_18 = arith.constant 5.000000e-01 : f32
    %35 = vector.broadcast %cst_18 : f32 to vector<8x8x8xf32>
    %36 = arith.mulf %34, %35 : vector<8x8x8xf32>
    %cst_19 = arith.constant dense<0xFF800000> : vector<8x8xf32>
    %37 = vector.multi_reduction <maximumf>, %36, %cst_19 [2] : vector<8x8x8xf32> to vector<8x8xf32>
    %38 = vector.shape_cast %37 : vector<8x8xf32> to vector<8x8x1xf32>
    %39 = vector.broadcast %38 : vector<8x8x1xf32> to vector<8x8x8xf32>
    %40 = arith.subf %36, %39 : vector<8x8x8xf32>
    %41 = math.exp %40 : vector<8x8x8xf32>
    %cst_20 = arith.constant dense<0.000000e+00> : vector<8x8xf32>
    %42 = vector.multi_reduction <add>, %41, %cst_20 [2] : vector<8x8x8xf32> to vector<8x8xf32>
    %43 = vector.shape_cast %42 : vector<8x8xf32> to vector<8x8x1xf32>
    %44 = tpu.reciprocal %43 {approx = true} : vector<8x8x1xf32> -> vector<8x8x1xf32>
    %45 = vector.broadcast %44 : vector<8x8x1xf32> to vector<8x8x8xf32>
    %46 = arith.mulf %41, %45 : vector<8x8x8xf32>
    "tpu.trace_start"() <{level = 10 : i32, message = "bqk,bkd->bqd"}> : () -> ()
    %cst_21 = arith.constant dense<0.000000e+00> : vector<8x8x4xf32>
    %47 = tpu.matmul %46, %33, %cst_21 {dimension_numbers = #tpu.dot_dimension_numbers<[2], [1], [1], [2], [0, 0, 0, 1, 1, 2], [0], [0]>} : vector<8x8x8xf32>, vector<8x8x4xf32>, vector<8x8x4xf32> -> vector<8x8x4xf32>
    "tpu.trace_stop"() : () -> ()
    %48 = vector.extract_strided_slice %28 {offsets = [0, 0, 4], sizes = [8, 8, 4], strides = [1, 1, 1]} : vector<8x8x32xf32> to vector<8x8x4xf32>
    %49 = vector.extract_strided_slice %29 {offsets = [0, 0, 4], sizes = [8, 8, 4], strides = [1, 1, 1]} : vector<8x8x32xf32> to vector<8x8x4xf32>
    %50 = vector.extract_strided_slice %30 {offsets = [0, 0, 4], sizes = [8, 8, 4], strides = [1, 1, 1]} : vector<8x8x32xf32> to vector<8x8x4xf32>
    "tpu.trace_start"() <{level = 10 : i32, message = "bqd,bkd->bqk"}> : () -> ()
    %cst_22 = arith.constant dense<0.000000e+00> : vector<8x8x8xf32>
    %51 = tpu.matmul %48, %49, %cst_22 {dimension_numbers = #tpu.dot_dimension_numbers<[2], [2], [1], [1], [0, 0, 0, 1, 1, 1], [0], [0]>} : vector<8x8x4xf32>, vector<8x8x4xf32>, vector<8x8x8xf32> -> vector<8x8x8xf32>
    "tpu.trace_stop"() : () -> ()
    %cst_23 = arith.constant 5.000000e-01 : f32
    %52 = vector.broadcast %cst_23 : f32 to vector<8x8x8xf32>
    %53 = arith.mulf %51, %52 : vector<8x8x8xf32>
    %cst_24 = arith.constant dense<0xFF800000> : vector<8x8xf32>
    %54 = vector.multi_reduction <maximumf>, %53, %cst_24 [2] : vector<8x8x8xf32> to vector<8x8xf32>
    %55 = vector.shape_cast %54 : vector<8x8xf32> to vector<8x8x1xf32>
    %56 = vector.broadcast %55 : vector<8x8x1xf32> to vector<8x8x8xf32>
    %57 = arith.subf %53, %56 : vector<8x8x8xf32>
    %58 = math.exp %57 : vector<8x8x8xf32>
    %cst_25 = arith.constant dense<0.000000e+00> : vector<8x8xf32>
    %59 = vector.multi_reduction <add>, %58, %cst_25 [2] : vector<8x8x8xf32> to vector<8x8xf32>
    %60 = vector.shape_cast %59 : vector<8x8xf32> to vector<8x8x1xf32>
    %61 = tpu.reciprocal %60 {approx = true} : vector<8x8x1xf32> -> vector<8x8x1xf32>
    %62 = vector.broadcast %61 : vector<8x8x1xf32> to vector<8x8x8xf32>
    %63 = arith.mulf %58, %62 : vector<8x8x8xf32>
    "tpu.trace_start"() <{level = 10 : i32, message = "bqk,bkd->bqd"}> : () -> ()
    %cst_26 = arith.constant dense<0.000000e+00> : vector<8x8x4xf32>
    %64 = tpu.matmul %63, %50, %cst_26 {dimension_numbers = #tpu.dot_dimension_numbers<[2], [1], [1], [2], [0, 0, 0, 1, 1, 2], [0], [0]>} : vector<8x8x8xf32>, vector<8x8x4xf32>, vector<8x8x4xf32> -> vector<8x8x4xf32>
    "tpu.trace_stop"() : () -> ()
    %65 = vector.extract_strided_slice %28 {offsets = [0, 0, 8], sizes = [8, 8, 4], strides = [1, 1, 1]} : vector<8x8x32xf32> to vector<8x8x4xf32>
    %66 = vector.extract_strided_slice %29 {offsets = [0, 0, 8], sizes = [8, 8, 4], strides = [1, 1, 1]} : vector<8x8x32xf32> to vector<8x8x4xf32>
    %67 = vector.extract_strided_slice %30 {offsets = [0, 0, 8], sizes = [8, 8, 4], strides = [1, 1, 1]} : vector<8x8x32xf32> to vector<8x8x4xf32>
    "tpu.trace_start"() <{level = 10 : i32, message = "bqd,bkd->bqk"}> : () -> ()
    %cst_27 = arith.constant dense<0.000000e+00> : vector<8x8x8xf32>
    %68 = tpu.matmul %65, %66, %cst_27 {dimension_numbers = #tpu.dot_dimension_numbers<[2], [2], [1], [1], [0, 0, 0, 1, 1, 1], [0], [0]>} : vector<8x8x4xf32>, vector<8x8x4xf32>, vector<8x8x8xf32> -> vector<8x8x8xf32>
    "tpu.trace_stop"() : () -> ()
    %cst_28 = arith.constant 5.000000e-01 : f32
    %69 = vector.broadcast %cst_28 : f32 to vector<8x8x8xf32>
    %70 = arith.mulf %68, %69 : vector<8x8x8xf32>
    %cst_29 = arith.constant dense<0xFF800000> : vector<8x8xf32>
    %71 = vector.multi_reduction <maximumf>, %70, %cst_29 [2] : vector<8x8x8xf32> to vector<8x8xf32>
    %72 = vector.shape_cast %71 : vector<8x8xf32> to vector<8x8x1xf32>
    %73 = vector.broadcast %72 : vector<8x8x1xf32> to vector<8x8x8xf32>
    %74 = arith.subf %70, %73 : vector<8x8x8xf32>
    %75 = math.exp %74 : vector<8x8x8xf32>
    %cst_30 = arith.constant dense<0.000000e+00> : vector<8x8xf32>
    %76 = vector.multi_reduction <add>, %75, %cst_30 [2] : vector<8x8x8xf32> to vector<8x8xf32>
    %77 = vector.shape_cast %76 : vector<8x8xf32> to vector<8x8x1xf32>
    %78 = tpu.reciprocal %77 {approx = true} : vector<8x8x1xf32> -> vector<8x8x1xf32>
    %79 = vector.broadcast %78 : vector<8x8x1xf32> to vector<8x8x8xf32>
    %80 = arith.mulf %75, %79 : vector<8x8x8xf32>
    "tpu.trace_start"() <{level = 10 : i32, message = "bqk,bkd->bqd"}> : () -> ()
    %cst_31 = arith.constant dense<0.000000e+00> : vector<8x8x4xf32>
    %81 = tpu.matmul %80, %67, %cst_31 {dimension_numbers = #tpu.dot_dimension_numbers<[2], [1], [1], [2], [0, 0, 0, 1, 1, 2], [0], [0]>} : vector<8x8x8xf32>, vector<8x8x4xf32>, vector<8x8x4xf32> -> vector<8x8x4xf32>
    "tpu.trace_stop"() : () -> ()
    %82 = vector.extract_strided_slice %28 {offsets = [0, 0, 12], sizes = [8, 8, 4], strides = [1, 1, 1]} : vector<8x8x32xf32> to vector<8x8x4xf32>
    %83 = vector.extract_strided_slice %29 {offsets = [0, 0, 12], sizes = [8, 8, 4], strides = [1, 1, 1]} : vector<8x8x32xf32> to vector<8x8x4xf32>
    %84 = vector.extract_strided_slice %30 {offsets = [0, 0, 12], sizes = [8, 8, 4], strides = [1, 1, 1]} : vector<8x8x32xf32> to vector<8x8x4xf32>
    "tpu.trace_start"() <{level = 10 : i32, message = "bqd,bkd->bqk"}> : () -> ()
    %cst_32 = arith.constant dense<0.000000e+00> : vector<8x8x8xf32>
    %85 = tpu.matmul %82, %83, %cst_32 {dimension_numbers = #tpu.dot_dimension_numbers<[2], [2], [1], [1], [0, 0, 0, 1, 1, 1], [0], [0]>} : vector<8x8x4xf32>, vector<8x8x4xf32>, vector<8x8x8xf32> -> vector<8x8x8xf32>
    "tpu.trace_stop"() : () -> ()
    %cst_33 = arith.constant 5.000000e-01 : f32
    %86 = vector.broadcast %cst_33 : f32 to vector<8x8x8xf32>
    %87 = arith.mulf %85, %86 : vector<8x8x8xf32>
    %cst_34 = arith.constant dense<0xFF800000> : vector<8x8xf32>
    %88 = vector.multi_reduction <maximumf>, %87, %cst_34 [2] : vector<8x8x8xf32> to vector<8x8xf32>
    %89 = vector.shape_cast %88 : vector<8x8xf32> to vector<8x8x1xf32>
    %90 = vector.broadcast %89 : vector<8x8x1xf32> to vector<8x8x8xf32>
    %91 = arith.subf %87, %90 : vector<8x8x8xf32>
    %92 = math.exp %91 : vector<8x8x8xf32>
    %cst_35 = arith.constant dense<0.000000e+00> : vector<8x8xf32>
    %93 = vector.multi_reduction <add>, %92, %cst_35 [2] : vector<8x8x8xf32> to vector<8x8xf32>
    %94 = vector.shape_cast %93 : vector<8x8xf32> to vector<8x8x1xf32>
    %95 = tpu.reciprocal %94 {approx = true} : vector<8x8x1xf32> -> vector<8x8x1xf32>
    %96 = vector.broadcast %95 : vector<8x8x1xf32> to vector<8x8x8xf32>
    %97 = arith.mulf %92, %96 : vector<8x8x8xf32>
    "tpu.trace_start"() <{level = 10 : i32, message = "bqk,bkd->bqd"}> : () -> ()
    %cst_36 = arith.constant dense<0.000000e+00> : vector<8x8x4xf32>
    %98 = tpu.matmul %97, %84, %cst_36 {dimension_numbers = #tpu.dot_dimension_numbers<[2], [1], [1], [2], [0, 0, 0, 1, 1, 2], [0], [0]>} : vector<8x8x8xf32>, vector<8x8x4xf32>, vector<8x8x4xf32> -> vector<8x8x4xf32>
    "tpu.trace_stop"() : () -> ()
    %99 = vector.extract_strided_slice %28 {offsets = [0, 0, 16], sizes = [8, 8, 4], strides = [1, 1, 1]} : vector<8x8x32xf32> to vector<8x8x4xf32>
    %100 = vector.extract_strided_slice %29 {offsets = [0, 0, 16], sizes = [8, 8, 4], strides = [1, 1, 1]} : vector<8x8x32xf32> to vector<8x8x4xf32>
    %101 = vector.extract_strided_slice %30 {offsets = [0, 0, 16], sizes = [8, 8, 4], strides = [1, 1, 1]} : vector<8x8x32xf32> to vector<8x8x4xf32>
    "tpu.trace_start"() <{level = 10 : i32, message = "bqd,bkd->bqk"}> : () -> ()
    %cst_37 = arith.constant dense<0.000000e+00> : vector<8x8x8xf32>
    %102 = tpu.matmul %99, %100, %cst_37 {dimension_numbers = #tpu.dot_dimension_numbers<[2], [2], [1], [1], [0, 0, 0, 1, 1, 1], [0], [0]>} : vector<8x8x4xf32>, vector<8x8x4xf32>, vector<8x8x8xf32> -> vector<8x8x8xf32>
    "tpu.trace_stop"() : () -> ()
    %cst_38 = arith.constant 5.000000e-01 : f32
    %103 = vector.broadcast %cst_38 : f32 to vector<8x8x8xf32>
    %104 = arith.mulf %102, %103 : vector<8x8x8xf32>
    %cst_39 = arith.constant dense<0xFF800000> : vector<8x8xf32>
    %105 = vector.multi_reduction <maximumf>, %104, %cst_39 [2] : vector<8x8x8xf32> to vector<8x8xf32>
    %106 = vector.shape_cast %105 : vector<8x8xf32> to vector<8x8x1xf32>
    %107 = vector.broadcast %106 : vector<8x8x1xf32> to vector<8x8x8xf32>
    %108 = arith.subf %104, %107 : vector<8x8x8xf32>
    %109 = math.exp %108 : vector<8x8x8xf32>
    %cst_40 = arith.constant dense<0.000000e+00> : vector<8x8xf32>
    %110 = vector.multi_reduction <add>, %109, %cst_40 [2] : vector<8x8x8xf32> to vector<8x8xf32>
    %111 = vector.shape_cast %110 : vector<8x8xf32> to vector<8x8x1xf32>
    %112 = tpu.reciprocal %111 {approx = true} : vector<8x8x1xf32> -> vector<8x8x1xf32>
    %113 = vector.broadcast %112 : vector<8x8x1xf32> to vector<8x8x8xf32>
    %114 = arith.mulf %109, %113 : vector<8x8x8xf32>
    "tpu.trace_start"() <{level = 10 : i32, message = "bqk,bkd->bqd"}> : () -> ()
    %cst_41 = arith.constant dense<0.000000e+00> : vector<8x8x4xf32>
    %115 = tpu.matmul %114, %101, %cst_41 {dimension_numbers = #tpu.dot_dimension_numbers<[2], [1], [1], [2], [0, 0, 0, 1, 1, 2], [0], [0]>} : vector<8x8x8xf32>, vector<8x8x4xf32>, vector<8x8x4xf32> -> vector<8x8x4xf32>
    "tpu.trace_stop"() : () -> ()
    %116 = vector.extract_strided_slice %28 {offsets = [0, 0, 20], sizes = [8, 8, 4], strides = [1, 1, 1]} : vector<8x8x32xf32> to vector<8x8x4xf32>
    %117 = vector.extract_strided_slice %29 {offsets = [0, 0, 20], sizes = [8, 8, 4], strides = [1, 1, 1]} : vector<8x8x32xf32> to vector<8x8x4xf32>
    %118 = vector.extract_strided_slice %30 {offsets = [0, 0, 20], sizes = [8, 8, 4], strides = [1, 1, 1]} : vector<8x8x32xf32> to vector<8x8x4xf32>
    "tpu.trace_start"() <{level = 10 : i32, message = "bqd,bkd->bqk"}> : () -> ()
    %cst_42 = arith.constant dense<0.000000e+00> : vector<8x8x8xf32>
    %119 = tpu.matmul %116, %117, %cst_42 {dimension_numbers = #tpu.dot_dimension_numbers<[2], [2], [1], [1], [0, 0, 0, 1, 1, 1], [0], [0]>} : vector<8x8x4xf32>, vector<8x8x4xf32>, vector<8x8x8xf32> -> vector<8x8x8xf32>
    "tpu.trace_stop"() : () -> ()
    %cst_43 = arith.constant 5.000000e-01 : f32
    %120 = vector.broadcast %cst_43 : f32 to vector<8x8x8xf32>
    %121 = arith.mulf %119, %120 : vector<8x8x8xf32>
    %cst_44 = arith.constant dense<0xFF800000> : vector<8x8xf32>
    %122 = vector.multi_reduction <maximumf>, %121, %cst_44 [2] : vector<8x8x8xf32> to vector<8x8xf32>
    %123 = vector.shape_cast %122 : vector<8x8xf32> to vector<8x8x1xf32>
    %124 = vector.broadcast %123 : vector<8x8x1xf32> to vector<8x8x8xf32>
    %125 = arith.subf %121, %124 : vector<8x8x8xf32>
    %126 = math.exp %125 : vector<8x8x8xf32>
    %cst_45 = arith.constant dense<0.000000e+00> : vector<8x8xf32>
    %127 = vector.multi_reduction <add>, %126, %cst_45 [2] : vector<8x8x8xf32> to vector<8x8xf32>
    %128 = vector.shape_cast %127 : vector<8x8xf32> to vector<8x8x1xf32>
    %129 = tpu.reciprocal %128 {approx = true} : vector<8x8x1xf32> -> vector<8x8x1xf32>
    %130 = vector.broadcast %129 : vector<8x8x1xf32> to vector<8x8x8xf32>
    %131 = arith.mulf %126, %130 : vector<8x8x8xf32>
    "tpu.trace_start"() <{level = 10 : i32, message = "bqk,bkd->bqd"}> : () -> ()
    %cst_46 = arith.constant dense<0.000000e+00> : vector<8x8x4xf32>
    %132 = tpu.matmul %131, %118, %cst_46 {dimension_numbers = #tpu.dot_dimension_numbers<[2], [1], [1], [2], [0, 0, 0, 1, 1, 2], [0], [0]>} : vector<8x8x8xf32>, vector<8x8x4xf32>, vector<8x8x4xf32> -> vector<8x8x4xf32>
    "tpu.trace_stop"() : () -> ()
    %133 = vector.extract_strided_slice %28 {offsets = [0, 0, 24], sizes = [8, 8, 4], strides = [1, 1, 1]} : vector<8x8x32xf32> to vector<8x8x4xf32>
    %134 = vector.extract_strided_slice %29 {offsets = [0, 0, 24], sizes = [8, 8, 4], strides = [1, 1, 1]} : vector<8x8x32xf32> to vector<8x8x4xf32>
    %135 = vector.extract_strided_slice %30 {offsets = [0, 0, 24], sizes = [8, 8, 4], strides = [1, 1, 1]} : vector<8x8x32xf32> to vector<8x8x4xf32>
    "tpu.trace_start"() <{level = 10 : i32, message = "bqd,bkd->bqk"}> : () -> ()
    %cst_47 = arith.constant dense<0.000000e+00> : vector<8x8x8xf32>
    %136 = tpu.matmul %133, %134, %cst_47 {dimension_numbers = #tpu.dot_dimension_numbers<[2], [2], [1], [1], [0, 0, 0, 1, 1, 1], [0], [0]>} : vector<8x8x4xf32>, vector<8x8x4xf32>, vector<8x8x8xf32> -> vector<8x8x8xf32>
    "tpu.trace_stop"() : () -> ()
    %cst_48 = arith.constant 5.000000e-01 : f32
    %137 = vector.broadcast %cst_48 : f32 to vector<8x8x8xf32>
    %138 = arith.mulf %136, %137 : vector<8x8x8xf32>
    %cst_49 = arith.constant dense<0xFF800000> : vector<8x8xf32>
    %139 = vector.multi_reduction <maximumf>, %138, %cst_49 [2] : vector<8x8x8xf32> to vector<8x8xf32>
    %140 = vector.shape_cast %139 : vector<8x8xf32> to vector<8x8x1xf32>
    %141 = vector.broadcast %140 : vector<8x8x1xf32> to vector<8x8x8xf32>
    %142 = arith.subf %138, %141 : vector<8x8x8xf32>
    %143 = math.exp %142 : vector<8x8x8xf32>
    %cst_50 = arith.constant dense<0.000000e+00> : vector<8x8xf32>
    %144 = vector.multi_reduction <add>, %143, %cst_50 [2] : vector<8x8x8xf32> to vector<8x8xf32>
    %145 = vector.shape_cast %144 : vector<8x8xf32> to vector<8x8x1xf32>
    %146 = tpu.reciprocal %145 {approx = true} : vector<8x8x1xf32> -> vector<8x8x1xf32>
    %147 = vector.broadcast %146 : vector<8x8x1xf32> to vector<8x8x8xf32>
    %148 = arith.mulf %143, %147 : vector<8x8x8xf32>
    "tpu.trace_start"() <{level = 10 : i32, message = "bqk,bkd->bqd"}> : () -> ()
    %cst_51 = arith.constant dense<0.000000e+00> : vector<8x8x4xf32>
    %149 = tpu.matmul %148, %135, %cst_51 {dimension_numbers = #tpu.dot_dimension_numbers<[2], [1], [1], [2], [0, 0, 0, 1, 1, 2], [0], [0]>} : vector<8x8x8xf32>, vector<8x8x4xf32>, vector<8x8x4xf32> -> vector<8x8x4xf32>
    "tpu.trace_stop"() : () -> ()
    %150 = vector.extract_strided_slice %28 {offsets = [0, 0, 28], sizes = [8, 8, 4], strides = [1, 1, 1]} : vector<8x8x32xf32> to vector<8x8x4xf32>
    %151 = vector.extract_strided_slice %29 {offsets = [0, 0, 28], sizes = [8, 8, 4], strides = [1, 1, 1]} : vector<8x8x32xf32> to vector<8x8x4xf32>
    %152 = vector.extract_strided_slice %30 {offsets = [0, 0, 28], sizes = [8, 8, 4], strides = [1, 1, 1]} : vector<8x8x32xf32> to vector<8x8x4xf32>
    "tpu.trace_start"() <{level = 10 : i32, message = "bqd,bkd->bqk"}> : () -> ()
    %cst_52 = arith.constant dense<0.000000e+00> : vector<8x8x8xf32>
    %153 = tpu.matmul %150, %151, %cst_52 {dimension_numbers = #tpu.dot_dimension_numbers<[2], [2], [1], [1], [0, 0, 0, 1, 1, 1], [0], [0]>} : vector<8x8x4xf32>, vector<8x8x4xf32>, vector<8x8x8xf32> -> vector<8x8x8xf32>
    "tpu.trace_stop"() : () -> ()
    %cst_53 = arith.constant 5.000000e-01 : f32
    %154 = vector.broadcast %cst_53 : f32 to vector<8x8x8xf32>
    %155 = arith.mulf %153, %154 : vector<8x8x8xf32>
    %cst_54 = arith.constant dense<0xFF800000> : vector<8x8xf32>
    %156 = vector.multi_reduction <maximumf>, %155, %cst_54 [2] : vector<8x8x8xf32> to vector<8x8xf32>
    %157 = vector.shape_cast %156 : vector<8x8xf32> to vector<8x8x1xf32>
    %158 = vector.broadcast %157 : vector<8x8x1xf32> to vector<8x8x8xf32>
    %159 = arith.subf %155, %158 : vector<8x8x8xf32>
    %160 = math.exp %159 : vector<8x8x8xf32>
    %cst_55 = arith.constant dense<0.000000e+00> : vector<8x8xf32>
    %161 = vector.multi_reduction <add>, %160, %cst_55 [2] : vector<8x8x8xf32> to vector<8x8xf32>
    %162 = vector.shape_cast %161 : vector<8x8xf32> to vector<8x8x1xf32>
    %163 = tpu.reciprocal %162 {approx = true} : vector<8x8x1xf32> -> vector<8x8x1xf32>
    %164 = vector.broadcast %163 : vector<8x8x1xf32> to vector<8x8x8xf32>
    %165 = arith.mulf %160, %164 : vector<8x8x8xf32>
    "tpu.trace_start"() <{level = 10 : i32, message = "bqk,bkd->bqd"}> : () -> ()
    %cst_56 = arith.constant dense<0.000000e+00> : vector<8x8x4xf32>
    %166 = tpu.matmul %165, %152, %cst_56 {dimension_numbers = #tpu.dot_dimension_numbers<[2], [1], [1], [2], [0, 0, 0, 1, 1, 2], [0], [0]>} : vector<8x8x8xf32>, vector<8x8x4xf32>, vector<8x8x4xf32> -> vector<8x8x4xf32>
    "tpu.trace_stop"() : () -> ()
    %167 = tpu.concatenate %47, %64, %81, %98, %115, %132, %149, %166 in 2 : vector<8x8x4xf32>, vector<8x8x4xf32>, vector<8x8x4xf32>, vector<8x8x4xf32>, vector<8x8x4xf32>, vector<8x8x4xf32>, vector<8x8x4xf32>, vector<8x8x4xf32> -> vector<8x8x32xf32>
    %168 = vector.shape_cast %167 : vector<8x8x32xf32> to vector<64x32xf32>
    %c0_57 = arith.constant 0 : index
    %c3 = arith.constant 3 : index
    %c0_58 = arith.constant 0 : index
    %c0_59 = arith.constant 0 : index
    %169 = vector.load %arg2[%c0_57, %c3, %c0_58, %c0_59] : memref<2x4x32x32xf32, #tpu.memory_space<vmem>>, vector<1x1x32x32xf32>
    %170 = vector.shape_cast %169 : vector<1x1x32x32xf32> to vector<32x32xf32>
    %cst_60 = arith.constant dense<0.000000e+00> : vector<64x32xf32>
    %171 = tpu.matmul %168, %170, %cst_60 {dimension_numbers = #tpu.dot_dimension_numbers<[1], [0], [0], [1], [0, 0, 1, 1], [], []>} : vector<64x32xf32>, vector<32x32xf32>, vector<64x32xf32> -> vector<64x32xf32>
    %172 = vector.broadcast %7 : vector<1x32xf32> to vector<64x32xf32>
    %173 = arith.addf %171, %172 : vector<64x32xf32>
    %174 = arith.addf %1, %173 : vector<64x32xf32>
    %cst_61 = arith.constant dense<0.000000e+00> : vector<64xf32>
    %175 = vector.multi_reduction <add>, %174, %cst_61 [1] : vector<64x32xf32> to vector<64xf32>
    %176 = vector.shape_cast %175 : vector<64xf32> to vector<64x1xf32>
    %cst_62 = arith.constant 3.200000e+01 : f32
    %177 = vector.broadcast %cst_62 : f32 to vector<64x1xf32>
    %178 = arith.divf %176, %177 : vector<64x1xf32>
    %179 = vector.broadcast %178 : vector<64x1xf32> to vector<64x32xf32>
    %180 = arith.subf %174, %179 : vector<64x32xf32>
    %181 = arith.mulf %180, %180 : vector<64x32xf32>
    %cst_63 = arith.constant dense<0.000000e+00> : vector<64xf32>
    %182 = vector.multi_reduction <add>, %181, %cst_63 [1] : vector<64x32xf32> to vector<64xf32>
    %183 = vector.shape_cast %182 : vector<64xf32> to vector<64x1xf32>
    %cst_64 = arith.constant 3.200000e+01 : f32
    %184 = vector.broadcast %cst_64 : f32 to vector<64x1xf32>
    %185 = arith.divf %183, %184 : vector<64x1xf32>
    %cst_65 = arith.constant 9.99999974E-6 : f32
    %186 = vector.broadcast %cst_65 : f32 to vector<64x1xf32>
    %187 = arith.addf %185, %186 : vector<64x1xf32>
    %188 = math.rsqrt %187 : vector<64x1xf32>
    %189 = vector.broadcast %188 : vector<64x1xf32> to vector<64x32xf32>
    %190 = arith.mulf %180, %189 : vector<64x32xf32>
    %191 = vector.broadcast %8 : vector<1x32xf32> to vector<64x32xf32>
    %192 = arith.mulf %190, %191 : vector<64x32xf32>
    %193 = vector.broadcast %9 : vector<1x32xf32> to vector<64x32xf32>
    %194 = arith.addf %192, %193 : vector<64x32xf32>
    %c0_66 = arith.constant 0 : index
    %c0_67 = arith.constant 0 : index
    %c0_68 = arith.constant 0 : index
    %195 = vector.load %arg4[%c0_66, %c0_67, %c0_68] : memref<3x32x16xf32, #tpu.memory_space<vmem>>, vector<1x32x16xf32>
    %196 = vector.shape_cast %195 : vector<1x32x16xf32> to vector<32x16xf32>
    %cst_69 = arith.constant dense<0.000000e+00> : vector<64x16xf32>
    %197 = tpu.matmul %194, %196, %cst_69 {dimension_numbers = #tpu.dot_dimension_numbers<[1], [0], [0], [1], [0, 0, 1, 1], [], []>} : vector<64x32xf32>, vector<32x16xf32>, vector<64x16xf32> -> vector<64x16xf32>
    %c0_70 = arith.constant 0 : index
    %c0_71 = arith.constant 0 : index
    %198 = vector.load %arg6[%c0_70, %c0_71] : memref<4x16xf32, #tpu.memory_space<vmem>>, vector<1x16xf32>
    %199 = vector.broadcast %198 : vector<1x16xf32> to vector<64x16xf32>
    %200 = arith.addf %197, %199 : vector<64x16xf32>
    %cst_72 = arith.constant 0.000000e+00 : f32
    %201 = vector.broadcast %cst_72 : f32 to vector<64x16xf32>
    %202 = arith.maximumf %200, %201 : vector<64x16xf32>
    %c0_73 = arith.constant 0 : index
    %c0_74 = arith.constant 0 : index
    %c0_75 = arith.constant 0 : index
    %203 = vector.load %arg5[%c0_73, %c0_74, %c0_75] : memref<2x16x32xf32, #tpu.memory_space<vmem>>, vector<1x16x32xf32>
    %204 = vector.shape_cast %203 : vector<1x16x32xf32> to vector<16x32xf32>
    %cst_76 = arith.constant dense<0.000000e+00> : vector<64x32xf32>
    %205 = tpu.matmul %202, %204, %cst_76 {dimension_numbers = #tpu.dot_dimension_numbers<[1], [0], [0], [1], [0, 0, 1, 1], [], []>} : vector<64x16xf32>, vector<16x32xf32>, vector<64x32xf32> -> vector<64x32xf32>
    %206 = vector.broadcast %10 : vector<1x32xf32> to vector<64x32xf32>
    %207 = arith.addf %205, %206 : vector<64x32xf32>
    %208 = arith.addf %194, %207 : vector<64x32xf32>
    %cst_77 = arith.constant dense<0.000000e+00> : vector<64xf32>
    %209 = vector.multi_reduction <add>, %208, %cst_77 [1] : vector<64x32xf32> to vector<64xf32>
    %210 = vector.shape_cast %209 : vector<64xf32> to vector<64x1xf32>
    %cst_78 = arith.constant 3.200000e+01 : f32
    %211 = vector.broadcast %cst_78 : f32 to vector<64x1xf32>
    %212 = arith.divf %210, %211 : vector<64x1xf32>
    %213 = vector.broadcast %212 : vector<64x1xf32> to vector<64x32xf32>
    %214 = arith.subf %208, %213 : vector<64x32xf32>
    %215 = arith.mulf %214, %214 : vector<64x32xf32>
    %cst_79 = arith.constant dense<0.000000e+00> : vector<64xf32>
    %216 = vector.multi_reduction <add>, %215, %cst_79 [1] : vector<64x32xf32> to vector<64xf32>
    %217 = vector.shape_cast %216 : vector<64xf32> to vector<64x1xf32>
    %cst_80 = arith.constant 3.200000e+01 : f32
    %218 = vector.broadcast %cst_80 : f32 to vector<64x1xf32>
    %219 = arith.divf %217, %218 : vector<64x1xf32>
    %cst_81 = arith.constant 9.99999974E-6 : f32
    %220 = vector.broadcast %cst_81 : f32 to vector<64x1xf32>
    %221 = arith.addf %219, %220 : vector<64x1xf32>
    %222 = math.rsqrt %221 : vector<64x1xf32>
    %223 = vector.broadcast %222 : vector<64x1xf32> to vector<64x32xf32>
    %224 = arith.mulf %214, %223 : vector<64x32xf32>
    %225 = vector.broadcast %11 : vector<1x32xf32> to vector<64x32xf32>
    %226 = arith.mulf %224, %225 : vector<64x32xf32>
    %227 = vector.broadcast %12 : vector<1x32xf32> to vector<64x32xf32>
    %228 = arith.addf %226, %227 : vector<64x32xf32>
    %c1_82 = arith.constant 1 : index
    %c0_83 = arith.constant 0 : index
    %c0_84 = arith.constant 0 : index
    %229 = vector.load %arg3[%c1_82, %c0_83, %c0_84] : memref<2x9x32xf32, #tpu.memory_space<vmem>>, vector<1x9x32xf32>
    %230 = vector.shape_cast %229 : vector<1x9x32xf32> to vector<9x32xf32>
    %231 = vector.extract_strided_slice %230 {offsets = [0, 0], sizes = [1, 32], strides = [1, 1]} : vector<9x32xf32> to vector<1x32xf32>
    %232 = vector.extract_strided_slice %230 {offsets = [1, 0], sizes = [1, 32], strides = [1, 1]} : vector<9x32xf32> to vector<1x32xf32>
    %233 = vector.extract_strided_slice %230 {offsets = [2, 0], sizes = [1, 32], strides = [1, 1]} : vector<9x32xf32> to vector<1x32xf32>
    %234 = vector.extract_strided_slice %230 {offsets = [3, 0], sizes = [1, 32], strides = [1, 1]} : vector<9x32xf32> to vector<1x32xf32>
    %235 = vector.extract_strided_slice %230 {offsets = [4, 0], sizes = [1, 32], strides = [1, 1]} : vector<9x32xf32> to vector<1x32xf32>
    %236 = vector.extract_strided_slice %230 {offsets = [5, 0], sizes = [1, 32], strides = [1, 1]} : vector<9x32xf32> to vector<1x32xf32>
    %237 = vector.extract_strided_slice %230 {offsets = [6, 0], sizes = [1, 32], strides = [1, 1]} : vector<9x32xf32> to vector<1x32xf32>
    %238 = vector.extract_strided_slice %230 {offsets = [7, 0], sizes = [1, 32], strides = [1, 1]} : vector<9x32xf32> to vector<1x32xf32>
    %239 = vector.extract_strided_slice %230 {offsets = [8, 0], sizes = [1, 32], strides = [1, 1]} : vector<9x32xf32> to vector<1x32xf32>
    %c1_85 = arith.constant 1 : index
    %c0_86 = arith.constant 0 : index
    %c0_87 = arith.constant 0 : index
    %c0_88 = arith.constant 0 : index
    %240 = vector.load %arg2[%c1_85, %c0_86, %c0_87, %c0_88] : memref<2x4x32x32xf32, #tpu.memory_space<vmem>>, vector<1x1x32x32xf32>
    %241 = vector.shape_cast %240 : vector<1x1x32x32xf32> to vector<32x32xf32>
    %cst_89 = arith.constant dense<0.000000e+00> : vector<64x32xf32>
    %242 = tpu.matmul %228, %241, %cst_89 {dimension_numbers = #tpu.dot_dimension_numbers<[1], [0], [0], [1], [0, 0, 1, 1], [], []>} : vector<64x32xf32>, vector<32x32xf32>, vector<64x32xf32> -> vector<64x32xf32>
    %243 = vector.broadcast %231 : vector<1x32xf32> to vector<64x32xf32>
    %244 = arith.addf %242, %243 : vector<64x32xf32>
    %c1_90 = arith.constant 1 : index
    %c1_91 = arith.constant 1 : index
    %c0_92 = arith.constant 0 : index
    %c0_93 = arith.constant 0 : index
    %245 = vector.load %arg2[%c1_90, %c1_91, %c0_92, %c0_93] : memref<2x4x32x32xf32, #tpu.memory_space<vmem>>, vector<1x1x32x32xf32>
    %246 = vector.shape_cast %245 : vector<1x1x32x32xf32> to vector<32x32xf32>
    %cst_94 = arith.constant dense<0.000000e+00> : vector<64x32xf32>
    %247 = tpu.matmul %228, %246, %cst_94 {dimension_numbers = #tpu.dot_dimension_numbers<[1], [0], [0], [1], [0, 0, 1, 1], [], []>} : vector<64x32xf32>, vector<32x32xf32>, vector<64x32xf32> -> vector<64x32xf32>
    %248 = vector.broadcast %232 : vector<1x32xf32> to vector<64x32xf32>
    %249 = arith.addf %247, %248 : vector<64x32xf32>
    %c1_95 = arith.constant 1 : index
    %c2_96 = arith.constant 2 : index
    %c0_97 = arith.constant 0 : index
    %c0_98 = arith.constant 0 : index
    %250 = vector.load %arg2[%c1_95, %c2_96, %c0_97, %c0_98] : memref<2x4x32x32xf32, #tpu.memory_space<vmem>>, vector<1x1x32x32xf32>
    %251 = vector.shape_cast %250 : vector<1x1x32x32xf32> to vector<32x32xf32>
    %cst_99 = arith.constant dense<0.000000e+00> : vector<64x32xf32>
    %252 = tpu.matmul %228, %251, %cst_99 {dimension_numbers = #tpu.dot_dimension_numbers<[1], [0], [0], [1], [0, 0, 1, 1], [], []>} : vector<64x32xf32>, vector<32x32xf32>, vector<64x32xf32> -> vector<64x32xf32>
    %253 = vector.broadcast %233 : vector<1x32xf32> to vector<64x32xf32>
    %254 = arith.addf %252, %253 : vector<64x32xf32>
    %255 = vector.shape_cast %244 : vector<64x32xf32> to vector<8x8x32xf32>
    %256 = vector.shape_cast %249 : vector<64x32xf32> to vector<8x8x32xf32>
    %257 = vector.shape_cast %254 : vector<64x32xf32> to vector<8x8x32xf32>
    %258 = vector.extract_strided_slice %255 {offsets = [0, 0, 0], sizes = [8, 8, 4], strides = [1, 1, 1]} : vector<8x8x32xf32> to vector<8x8x4xf32>
    %259 = vector.extract_strided_slice %256 {offsets = [0, 0, 0], sizes = [8, 8, 4], strides = [1, 1, 1]} : vector<8x8x32xf32> to vector<8x8x4xf32>
    %260 = vector.extract_strided_slice %257 {offsets = [0, 0, 0], sizes = [8, 8, 4], strides = [1, 1, 1]} : vector<8x8x32xf32> to vector<8x8x4xf32>
    "tpu.trace_start"() <{level = 10 : i32, message = "bqd,bkd->bqk"}> : () -> ()
    %cst_100 = arith.constant dense<0.000000e+00> : vector<8x8x8xf32>
    %261 = tpu.matmul %258, %259, %cst_100 {dimension_numbers = #tpu.dot_dimension_numbers<[2], [2], [1], [1], [0, 0, 0, 1, 1, 1], [0], [0]>} : vector<8x8x4xf32>, vector<8x8x4xf32>, vector<8x8x8xf32> -> vector<8x8x8xf32>
    "tpu.trace_stop"() : () -> ()
    %cst_101 = arith.constant 5.000000e-01 : f32
    %262 = vector.broadcast %cst_101 : f32 to vector<8x8x8xf32>
    %263 = arith.mulf %261, %262 : vector<8x8x8xf32>
    %cst_102 = arith.constant dense<0xFF800000> : vector<8x8xf32>
    %264 = vector.multi_reduction <maximumf>, %263, %cst_102 [2] : vector<8x8x8xf32> to vector<8x8xf32>
    %265 = vector.shape_cast %264 : vector<8x8xf32> to vector<8x8x1xf32>
    %266 = vector.broadcast %265 : vector<8x8x1xf32> to vector<8x8x8xf32>
    %267 = arith.subf %263, %266 : vector<8x8x8xf32>
    %268 = math.exp %267 : vector<8x8x8xf32>
    %cst_103 = arith.constant dense<0.000000e+00> : vector<8x8xf32>
    %269 = vector.multi_reduction <add>, %268, %cst_103 [2] : vector<8x8x8xf32> to vector<8x8xf32>
    %270 = vector.shape_cast %269 : vector<8x8xf32> to vector<8x8x1xf32>
    %271 = tpu.reciprocal %270 {approx = true} : vector<8x8x1xf32> -> vector<8x8x1xf32>
    %272 = vector.broadcast %271 : vector<8x8x1xf32> to vector<8x8x8xf32>
    %273 = arith.mulf %268, %272 : vector<8x8x8xf32>
    "tpu.trace_start"() <{level = 10 : i32, message = "bqk,bkd->bqd"}> : () -> ()
    %cst_104 = arith.constant dense<0.000000e+00> : vector<8x8x4xf32>
    %274 = tpu.matmul %273, %260, %cst_104 {dimension_numbers = #tpu.dot_dimension_numbers<[2], [1], [1], [2], [0, 0, 0, 1, 1, 2], [0], [0]>} : vector<8x8x8xf32>, vector<8x8x4xf32>, vector<8x8x4xf32> -> vector<8x8x4xf32>
    "tpu.trace_stop"() : () -> ()
    %275 = vector.extract_strided_slice %255 {offsets = [0, 0, 4], sizes = [8, 8, 4], strides = [1, 1, 1]} : vector<8x8x32xf32> to vector<8x8x4xf32>
    %276 = vector.extract_strided_slice %256 {offsets = [0, 0, 4], sizes = [8, 8, 4], strides = [1, 1, 1]} : vector<8x8x32xf32> to vector<8x8x4xf32>
    %277 = vector.extract_strided_slice %257 {offsets = [0, 0, 4], sizes = [8, 8, 4], strides = [1, 1, 1]} : vector<8x8x32xf32> to vector<8x8x4xf32>
    "tpu.trace_start"() <{level = 10 : i32, message = "bqd,bkd->bqk"}> : () -> ()
    %cst_105 = arith.constant dense<0.000000e+00> : vector<8x8x8xf32>
    %278 = tpu.matmul %275, %276, %cst_105 {dimension_numbers = #tpu.dot_dimension_numbers<[2], [2], [1], [1], [0, 0, 0, 1, 1, 1], [0], [0]>} : vector<8x8x4xf32>, vector<8x8x4xf32>, vector<8x8x8xf32> -> vector<8x8x8xf32>
    "tpu.trace_stop"() : () -> ()
    %cst_106 = arith.constant 5.000000e-01 : f32
    %279 = vector.broadcast %cst_106 : f32 to vector<8x8x8xf32>
    %280 = arith.mulf %278, %279 : vector<8x8x8xf32>
    %cst_107 = arith.constant dense<0xFF800000> : vector<8x8xf32>
    %281 = vector.multi_reduction <maximumf>, %280, %cst_107 [2] : vector<8x8x8xf32> to vector<8x8xf32>
    %282 = vector.shape_cast %281 : vector<8x8xf32> to vector<8x8x1xf32>
    %283 = vector.broadcast %282 : vector<8x8x1xf32> to vector<8x8x8xf32>
    %284 = arith.subf %280, %283 : vector<8x8x8xf32>
    %285 = math.exp %284 : vector<8x8x8xf32>
    %cst_108 = arith.constant dense<0.000000e+00> : vector<8x8xf32>
    %286 = vector.multi_reduction <add>, %285, %cst_108 [2] : vector<8x8x8xf32> to vector<8x8xf32>
    %287 = vector.shape_cast %286 : vector<8x8xf32> to vector<8x8x1xf32>
    %288 = tpu.reciprocal %287 {approx = true} : vector<8x8x1xf32> -> vector<8x8x1xf32>
    %289 = vector.broadcast %288 : vector<8x8x1xf32> to vector<8x8x8xf32>
    %290 = arith.mulf %285, %289 : vector<8x8x8xf32>
    "tpu.trace_start"() <{level = 10 : i32, message = "bqk,bkd->bqd"}> : () -> ()
    %cst_109 = arith.constant dense<0.000000e+00> : vector<8x8x4xf32>
    %291 = tpu.matmul %290, %277, %cst_109 {dimension_numbers = #tpu.dot_dimension_numbers<[2], [1], [1], [2], [0, 0, 0, 1, 1, 2], [0], [0]>} : vector<8x8x8xf32>, vector<8x8x4xf32>, vector<8x8x4xf32> -> vector<8x8x4xf32>
    "tpu.trace_stop"() : () -> ()
    %292 = vector.extract_strided_slice %255 {offsets = [0, 0, 8], sizes = [8, 8, 4], strides = [1, 1, 1]} : vector<8x8x32xf32> to vector<8x8x4xf32>
    %293 = vector.extract_strided_slice %256 {offsets = [0, 0, 8], sizes = [8, 8, 4], strides = [1, 1, 1]} : vector<8x8x32xf32> to vector<8x8x4xf32>
    %294 = vector.extract_strided_slice %257 {offsets = [0, 0, 8], sizes = [8, 8, 4], strides = [1, 1, 1]} : vector<8x8x32xf32> to vector<8x8x4xf32>
    "tpu.trace_start"() <{level = 10 : i32, message = "bqd,bkd->bqk"}> : () -> ()
    %cst_110 = arith.constant dense<0.000000e+00> : vector<8x8x8xf32>
    %295 = tpu.matmul %292, %293, %cst_110 {dimension_numbers = #tpu.dot_dimension_numbers<[2], [2], [1], [1], [0, 0, 0, 1, 1, 1], [0], [0]>} : vector<8x8x4xf32>, vector<8x8x4xf32>, vector<8x8x8xf32> -> vector<8x8x8xf32>
    "tpu.trace_stop"() : () -> ()
    %cst_111 = arith.constant 5.000000e-01 : f32
    %296 = vector.broadcast %cst_111 : f32 to vector<8x8x8xf32>
    %297 = arith.mulf %295, %296 : vector<8x8x8xf32>
    %cst_112 = arith.constant dense<0xFF800000> : vector<8x8xf32>
    %298 = vector.multi_reduction <maximumf>, %297, %cst_112 [2] : vector<8x8x8xf32> to vector<8x8xf32>
    %299 = vector.shape_cast %298 : vector<8x8xf32> to vector<8x8x1xf32>
    %300 = vector.broadcast %299 : vector<8x8x1xf32> to vector<8x8x8xf32>
    %301 = arith.subf %297, %300 : vector<8x8x8xf32>
    %302 = math.exp %301 : vector<8x8x8xf32>
    %cst_113 = arith.constant dense<0.000000e+00> : vector<8x8xf32>
    %303 = vector.multi_reduction <add>, %302, %cst_113 [2] : vector<8x8x8xf32> to vector<8x8xf32>
    %304 = vector.shape_cast %303 : vector<8x8xf32> to vector<8x8x1xf32>
    %305 = tpu.reciprocal %304 {approx = true} : vector<8x8x1xf32> -> vector<8x8x1xf32>
    %306 = vector.broadcast %305 : vector<8x8x1xf32> to vector<8x8x8xf32>
    %307 = arith.mulf %302, %306 : vector<8x8x8xf32>
    "tpu.trace_start"() <{level = 10 : i32, message = "bqk,bkd->bqd"}> : () -> ()
    %cst_114 = arith.constant dense<0.000000e+00> : vector<8x8x4xf32>
    %308 = tpu.matmul %307, %294, %cst_114 {dimension_numbers = #tpu.dot_dimension_numbers<[2], [1], [1], [2], [0, 0, 0, 1, 1, 2], [0], [0]>} : vector<8x8x8xf32>, vector<8x8x4xf32>, vector<8x8x4xf32> -> vector<8x8x4xf32>
    "tpu.trace_stop"() : () -> ()
    %309 = vector.extract_strided_slice %255 {offsets = [0, 0, 12], sizes = [8, 8, 4], strides = [1, 1, 1]} : vector<8x8x32xf32> to vector<8x8x4xf32>
    %310 = vector.extract_strided_slice %256 {offsets = [0, 0, 12], sizes = [8, 8, 4], strides = [1, 1, 1]} : vector<8x8x32xf32> to vector<8x8x4xf32>
    %311 = vector.extract_strided_slice %257 {offsets = [0, 0, 12], sizes = [8, 8, 4], strides = [1, 1, 1]} : vector<8x8x32xf32> to vector<8x8x4xf32>
    "tpu.trace_start"() <{level = 10 : i32, message = "bqd,bkd->bqk"}> : () -> ()
    %cst_115 = arith.constant dense<0.000000e+00> : vector<8x8x8xf32>
    %312 = tpu.matmul %309, %310, %cst_115 {dimension_numbers = #tpu.dot_dimension_numbers<[2], [2], [1], [1], [0, 0, 0, 1, 1, 1], [0], [0]>} : vector<8x8x4xf32>, vector<8x8x4xf32>, vector<8x8x8xf32> -> vector<8x8x8xf32>
    "tpu.trace_stop"() : () -> ()
    %cst_116 = arith.constant 5.000000e-01 : f32
    %313 = vector.broadcast %cst_116 : f32 to vector<8x8x8xf32>
    %314 = arith.mulf %312, %313 : vector<8x8x8xf32>
    %cst_117 = arith.constant dense<0xFF800000> : vector<8x8xf32>
    %315 = vector.multi_reduction <maximumf>, %314, %cst_117 [2] : vector<8x8x8xf32> to vector<8x8xf32>
    %316 = vector.shape_cast %315 : vector<8x8xf32> to vector<8x8x1xf32>
    %317 = vector.broadcast %316 : vector<8x8x1xf32> to vector<8x8x8xf32>
    %318 = arith.subf %314, %317 : vector<8x8x8xf32>
    %319 = math.exp %318 : vector<8x8x8xf32>
    %cst_118 = arith.constant dense<0.000000e+00> : vector<8x8xf32>
    %320 = vector.multi_reduction <add>, %319, %cst_118 [2] : vector<8x8x8xf32> to vector<8x8xf32>
    %321 = vector.shape_cast %320 : vector<8x8xf32> to vector<8x8x1xf32>
    %322 = tpu.reciprocal %321 {approx = true} : vector<8x8x1xf32> -> vector<8x8x1xf32>
    %323 = vector.broadcast %322 : vector<8x8x1xf32> to vector<8x8x8xf32>
    %324 = arith.mulf %319, %323 : vector<8x8x8xf32>
    "tpu.trace_start"() <{level = 10 : i32, message = "bqk,bkd->bqd"}> : () -> ()
    %cst_119 = arith.constant dense<0.000000e+00> : vector<8x8x4xf32>
    %325 = tpu.matmul %324, %311, %cst_119 {dimension_numbers = #tpu.dot_dimension_numbers<[2], [1], [1], [2], [0, 0, 0, 1, 1, 2], [0], [0]>} : vector<8x8x8xf32>, vector<8x8x4xf32>, vector<8x8x4xf32> -> vector<8x8x4xf32>
    "tpu.trace_stop"() : () -> ()
    %326 = vector.extract_strided_slice %255 {offsets = [0, 0, 16], sizes = [8, 8, 4], strides = [1, 1, 1]} : vector<8x8x32xf32> to vector<8x8x4xf32>
    %327 = vector.extract_strided_slice %256 {offsets = [0, 0, 16], sizes = [8, 8, 4], strides = [1, 1, 1]} : vector<8x8x32xf32> to vector<8x8x4xf32>
    %328 = vector.extract_strided_slice %257 {offsets = [0, 0, 16], sizes = [8, 8, 4], strides = [1, 1, 1]} : vector<8x8x32xf32> to vector<8x8x4xf32>
    "tpu.trace_start"() <{level = 10 : i32, message = "bqd,bkd->bqk"}> : () -> ()
    %cst_120 = arith.constant dense<0.000000e+00> : vector<8x8x8xf32>
    %329 = tpu.matmul %326, %327, %cst_120 {dimension_numbers = #tpu.dot_dimension_numbers<[2], [2], [1], [1], [0, 0, 0, 1, 1, 1], [0], [0]>} : vector<8x8x4xf32>, vector<8x8x4xf32>, vector<8x8x8xf32> -> vector<8x8x8xf32>
    "tpu.trace_stop"() : () -> ()
    %cst_121 = arith.constant 5.000000e-01 : f32
    %330 = vector.broadcast %cst_121 : f32 to vector<8x8x8xf32>
    %331 = arith.mulf %329, %330 : vector<8x8x8xf32>
    %cst_122 = arith.constant dense<0xFF800000> : vector<8x8xf32>
    %332 = vector.multi_reduction <maximumf>, %331, %cst_122 [2] : vector<8x8x8xf32> to vector<8x8xf32>
    %333 = vector.shape_cast %332 : vector<8x8xf32> to vector<8x8x1xf32>
    %334 = vector.broadcast %333 : vector<8x8x1xf32> to vector<8x8x8xf32>
    %335 = arith.subf %331, %334 : vector<8x8x8xf32>
    %336 = math.exp %335 : vector<8x8x8xf32>
    %cst_123 = arith.constant dense<0.000000e+00> : vector<8x8xf32>
    %337 = vector.multi_reduction <add>, %336, %cst_123 [2] : vector<8x8x8xf32> to vector<8x8xf32>
    %338 = vector.shape_cast %337 : vector<8x8xf32> to vector<8x8x1xf32>
    %339 = tpu.reciprocal %338 {approx = true} : vector<8x8x1xf32> -> vector<8x8x1xf32>
    %340 = vector.broadcast %339 : vector<8x8x1xf32> to vector<8x8x8xf32>
    %341 = arith.mulf %336, %340 : vector<8x8x8xf32>
    "tpu.trace_start"() <{level = 10 : i32, message = "bqk,bkd->bqd"}> : () -> ()
    %cst_124 = arith.constant dense<0.000000e+00> : vector<8x8x4xf32>
    %342 = tpu.matmul %341, %328, %cst_124 {dimension_numbers = #tpu.dot_dimension_numbers<[2], [1], [1], [2], [0, 0, 0, 1, 1, 2], [0], [0]>} : vector<8x8x8xf32>, vector<8x8x4xf32>, vector<8x8x4xf32> -> vector<8x8x4xf32>
    "tpu.trace_stop"() : () -> ()
    %343 = vector.extract_strided_slice %255 {offsets = [0, 0, 20], sizes = [8, 8, 4], strides = [1, 1, 1]} : vector<8x8x32xf32> to vector<8x8x4xf32>
    %344 = vector.extract_strided_slice %256 {offsets = [0, 0, 20], sizes = [8, 8, 4], strides = [1, 1, 1]} : vector<8x8x32xf32> to vector<8x8x4xf32>
    %345 = vector.extract_strided_slice %257 {offsets = [0, 0, 20], sizes = [8, 8, 4], strides = [1, 1, 1]} : vector<8x8x32xf32> to vector<8x8x4xf32>
    "tpu.trace_start"() <{level = 10 : i32, message = "bqd,bkd->bqk"}> : () -> ()
    %cst_125 = arith.constant dense<0.000000e+00> : vector<8x8x8xf32>
    %346 = tpu.matmul %343, %344, %cst_125 {dimension_numbers = #tpu.dot_dimension_numbers<[2], [2], [1], [1], [0, 0, 0, 1, 1, 1], [0], [0]>} : vector<8x8x4xf32>, vector<8x8x4xf32>, vector<8x8x8xf32> -> vector<8x8x8xf32>
    "tpu.trace_stop"() : () -> ()
    %cst_126 = arith.constant 5.000000e-01 : f32
    %347 = vector.broadcast %cst_126 : f32 to vector<8x8x8xf32>
    %348 = arith.mulf %346, %347 : vector<8x8x8xf32>
    %cst_127 = arith.constant dense<0xFF800000> : vector<8x8xf32>
    %349 = vector.multi_reduction <maximumf>, %348, %cst_127 [2] : vector<8x8x8xf32> to vector<8x8xf32>
    %350 = vector.shape_cast %349 : vector<8x8xf32> to vector<8x8x1xf32>
    %351 = vector.broadcast %350 : vector<8x8x1xf32> to vector<8x8x8xf32>
    %352 = arith.subf %348, %351 : vector<8x8x8xf32>
    %353 = math.exp %352 : vector<8x8x8xf32>
    %cst_128 = arith.constant dense<0.000000e+00> : vector<8x8xf32>
    %354 = vector.multi_reduction <add>, %353, %cst_128 [2] : vector<8x8x8xf32> to vector<8x8xf32>
    %355 = vector.shape_cast %354 : vector<8x8xf32> to vector<8x8x1xf32>
    %356 = tpu.reciprocal %355 {approx = true} : vector<8x8x1xf32> -> vector<8x8x1xf32>
    %357 = vector.broadcast %356 : vector<8x8x1xf32> to vector<8x8x8xf32>
    %358 = arith.mulf %353, %357 : vector<8x8x8xf32>
    "tpu.trace_start"() <{level = 10 : i32, message = "bqk,bkd->bqd"}> : () -> ()
    %cst_129 = arith.constant dense<0.000000e+00> : vector<8x8x4xf32>
    %359 = tpu.matmul %358, %345, %cst_129 {dimension_numbers = #tpu.dot_dimension_numbers<[2], [1], [1], [2], [0, 0, 0, 1, 1, 2], [0], [0]>} : vector<8x8x8xf32>, vector<8x8x4xf32>, vector<8x8x4xf32> -> vector<8x8x4xf32>
    "tpu.trace_stop"() : () -> ()
    %360 = vector.extract_strided_slice %255 {offsets = [0, 0, 24], sizes = [8, 8, 4], strides = [1, 1, 1]} : vector<8x8x32xf32> to vector<8x8x4xf32>
    %361 = vector.extract_strided_slice %256 {offsets = [0, 0, 24], sizes = [8, 8, 4], strides = [1, 1, 1]} : vector<8x8x32xf32> to vector<8x8x4xf32>
    %362 = vector.extract_strided_slice %257 {offsets = [0, 0, 24], sizes = [8, 8, 4], strides = [1, 1, 1]} : vector<8x8x32xf32> to vector<8x8x4xf32>
    "tpu.trace_start"() <{level = 10 : i32, message = "bqd,bkd->bqk"}> : () -> ()
    %cst_130 = arith.constant dense<0.000000e+00> : vector<8x8x8xf32>
    %363 = tpu.matmul %360, %361, %cst_130 {dimension_numbers = #tpu.dot_dimension_numbers<[2], [2], [1], [1], [0, 0, 0, 1, 1, 1], [0], [0]>} : vector<8x8x4xf32>, vector<8x8x4xf32>, vector<8x8x8xf32> -> vector<8x8x8xf32>
    "tpu.trace_stop"() : () -> ()
    %cst_131 = arith.constant 5.000000e-01 : f32
    %364 = vector.broadcast %cst_131 : f32 to vector<8x8x8xf32>
    %365 = arith.mulf %363, %364 : vector<8x8x8xf32>
    %cst_132 = arith.constant dense<0xFF800000> : vector<8x8xf32>
    %366 = vector.multi_reduction <maximumf>, %365, %cst_132 [2] : vector<8x8x8xf32> to vector<8x8xf32>
    %367 = vector.shape_cast %366 : vector<8x8xf32> to vector<8x8x1xf32>
    %368 = vector.broadcast %367 : vector<8x8x1xf32> to vector<8x8x8xf32>
    %369 = arith.subf %365, %368 : vector<8x8x8xf32>
    %370 = math.exp %369 : vector<8x8x8xf32>
    %cst_133 = arith.constant dense<0.000000e+00> : vector<8x8xf32>
    %371 = vector.multi_reduction <add>, %370, %cst_133 [2] : vector<8x8x8xf32> to vector<8x8xf32>
    %372 = vector.shape_cast %371 : vector<8x8xf32> to vector<8x8x1xf32>
    %373 = tpu.reciprocal %372 {approx = true} : vector<8x8x1xf32> -> vector<8x8x1xf32>
    %374 = vector.broadcast %373 : vector<8x8x1xf32> to vector<8x8x8xf32>
    %375 = arith.mulf %370, %374 : vector<8x8x8xf32>
    "tpu.trace_start"() <{level = 10 : i32, message = "bqk,bkd->bqd"}> : () -> ()
    %cst_134 = arith.constant dense<0.000000e+00> : vector<8x8x4xf32>
    %376 = tpu.matmul %375, %362, %cst_134 {dimension_numbers = #tpu.dot_dimension_numbers<[2], [1], [1], [2], [0, 0, 0, 1, 1, 2], [0], [0]>} : vector<8x8x8xf32>, vector<8x8x4xf32>, vector<8x8x4xf32> -> vector<8x8x4xf32>
    "tpu.trace_stop"() : () -> ()
    %377 = vector.extract_strided_slice %255 {offsets = [0, 0, 28], sizes = [8, 8, 4], strides = [1, 1, 1]} : vector<8x8x32xf32> to vector<8x8x4xf32>
    %378 = vector.extract_strided_slice %256 {offsets = [0, 0, 28], sizes = [8, 8, 4], strides = [1, 1, 1]} : vector<8x8x32xf32> to vector<8x8x4xf32>
    %379 = vector.extract_strided_slice %257 {offsets = [0, 0, 28], sizes = [8, 8, 4], strides = [1, 1, 1]} : vector<8x8x32xf32> to vector<8x8x4xf32>
    "tpu.trace_start"() <{level = 10 : i32, message = "bqd,bkd->bqk"}> : () -> ()
    %cst_135 = arith.constant dense<0.000000e+00> : vector<8x8x8xf32>
    %380 = tpu.matmul %377, %378, %cst_135 {dimension_numbers = #tpu.dot_dimension_numbers<[2], [2], [1], [1], [0, 0, 0, 1, 1, 1], [0], [0]>} : vector<8x8x4xf32>, vector<8x8x4xf32>, vector<8x8x8xf32> -> vector<8x8x8xf32>
    "tpu.trace_stop"() : () -> ()
    %cst_136 = arith.constant 5.000000e-01 : f32
    %381 = vector.broadcast %cst_136 : f32 to vector<8x8x8xf32>
    %382 = arith.mulf %380, %381 : vector<8x8x8xf32>
    %cst_137 = arith.constant dense<0xFF800000> : vector<8x8xf32>
    %383 = vector.multi_reduction <maximumf>, %382, %cst_137 [2] : vector<8x8x8xf32> to vector<8x8xf32>
    %384 = vector.shape_cast %383 : vector<8x8xf32> to vector<8x8x1xf32>
    %385 = vector.broadcast %384 : vector<8x8x1xf32> to vector<8x8x8xf32>
    %386 = arith.subf %382, %385 : vector<8x8x8xf32>
    %387 = math.exp %386 : vector<8x8x8xf32>
    %cst_138 = arith.constant dense<0.000000e+00> : vector<8x8xf32>
    %388 = vector.multi_reduction <add>, %387, %cst_138 [2] : vector<8x8x8xf32> to vector<8x8xf32>
    %389 = vector.shape_cast %388 : vector<8x8xf32> to vector<8x8x1xf32>
    %390 = tpu.reciprocal %389 {approx = true} : vector<8x8x1xf32> -> vector<8x8x1xf32>
    %391 = vector.broadcast %390 : vector<8x8x1xf32> to vector<8x8x8xf32>
    %392 = arith.mulf %387, %391 : vector<8x8x8xf32>
    "tpu.trace_start"() <{level = 10 : i32, message = "bqk,bkd->bqd"}> : () -> ()
    %cst_139 = arith.constant dense<0.000000e+00> : vector<8x8x4xf32>
    %393 = tpu.matmul %392, %379, %cst_139 {dimension_numbers = #tpu.dot_dimension_numbers<[2], [1], [1], [2], [0, 0, 0, 1, 1, 2], [0], [0]>} : vector<8x8x8xf32>, vector<8x8x4xf32>, vector<8x8x4xf32> -> vector<8x8x4xf32>
    "tpu.trace_stop"() : () -> ()
    %394 = tpu.concatenate %274, %291, %308, %325, %342, %359, %376, %393 in 2 : vector<8x8x4xf32>, vector<8x8x4xf32>, vector<8x8x4xf32>, vector<8x8x4xf32>, vector<8x8x4xf32>, vector<8x8x4xf32>, vector<8x8x4xf32>, vector<8x8x4xf32> -> vector<8x8x32xf32>
    %395 = vector.shape_cast %394 : vector<8x8x32xf32> to vector<64x32xf32>
    %c1_140 = arith.constant 1 : index
    %c3_141 = arith.constant 3 : index
    %c0_142 = arith.constant 0 : index
    %c0_143 = arith.constant 0 : index
    %396 = vector.load %arg2[%c1_140, %c3_141, %c0_142, %c0_143] : memref<2x4x32x32xf32, #tpu.memory_space<vmem>>, vector<1x1x32x32xf32>
    %397 = vector.shape_cast %396 : vector<1x1x32x32xf32> to vector<32x32xf32>
    %cst_144 = arith.constant dense<0.000000e+00> : vector<64x32xf32>
    %398 = tpu.matmul %395, %397, %cst_144 {dimension_numbers = #tpu.dot_dimension_numbers<[1], [0], [0], [1], [0, 0, 1, 1], [], []>} : vector<64x32xf32>, vector<32x32xf32>, vector<64x32xf32> -> vector<64x32xf32>
    %399 = vector.broadcast %234 : vector<1x32xf32> to vector<64x32xf32>
    %400 = arith.addf %398, %399 : vector<64x32xf32>
    %401 = arith.addf %228, %400 : vector<64x32xf32>
    %cst_145 = arith.constant dense<0.000000e+00> : vector<64xf32>
    %402 = vector.multi_reduction <add>, %401, %cst_145 [1] : vector<64x32xf32> to vector<64xf32>
    %403 = vector.shape_cast %402 : vector<64xf32> to vector<64x1xf32>
    %cst_146 = arith.constant 3.200000e+01 : f32
    %404 = vector.broadcast %cst_146 : f32 to vector<64x1xf32>
    %405 = arith.divf %403, %404 : vector<64x1xf32>
    %406 = vector.broadcast %405 : vector<64x1xf32> to vector<64x32xf32>
    %407 = arith.subf %401, %406 : vector<64x32xf32>
    %408 = arith.mulf %407, %407 : vector<64x32xf32>
    %cst_147 = arith.constant dense<0.000000e+00> : vector<64xf32>
    %409 = vector.multi_reduction <add>, %408, %cst_147 [1] : vector<64x32xf32> to vector<64xf32>
    %410 = vector.shape_cast %409 : vector<64xf32> to vector<64x1xf32>
    %cst_148 = arith.constant 3.200000e+01 : f32
    %411 = vector.broadcast %cst_148 : f32 to vector<64x1xf32>
    %412 = arith.divf %410, %411 : vector<64x1xf32>
    %cst_149 = arith.constant 9.99999974E-6 : f32
    %413 = vector.broadcast %cst_149 : f32 to vector<64x1xf32>
    %414 = arith.addf %412, %413 : vector<64x1xf32>
    %415 = math.rsqrt %414 : vector<64x1xf32>
    %416 = vector.broadcast %415 : vector<64x1xf32> to vector<64x32xf32>
    %417 = arith.mulf %407, %416 : vector<64x32xf32>
    %418 = vector.broadcast %235 : vector<1x32xf32> to vector<64x32xf32>
    %419 = arith.mulf %417, %418 : vector<64x32xf32>
    %420 = vector.broadcast %236 : vector<1x32xf32> to vector<64x32xf32>
    %421 = arith.addf %419, %420 : vector<64x32xf32>
    %c1_150 = arith.constant 1 : index
    %c0_151 = arith.constant 0 : index
    %c0_152 = arith.constant 0 : index
    %422 = vector.load %arg4[%c1_150, %c0_151, %c0_152] : memref<3x32x16xf32, #tpu.memory_space<vmem>>, vector<1x32x16xf32>
    %423 = vector.shape_cast %422 : vector<1x32x16xf32> to vector<32x16xf32>
    %cst_153 = arith.constant dense<0.000000e+00> : vector<64x16xf32>
    %424 = tpu.matmul %421, %423, %cst_153 {dimension_numbers = #tpu.dot_dimension_numbers<[1], [0], [0], [1], [0, 0, 1, 1], [], []>} : vector<64x32xf32>, vector<32x16xf32>, vector<64x16xf32> -> vector<64x16xf32>
    %c1_154 = arith.constant 1 : index
    %c0_155 = arith.constant 0 : index
    %425 = vector.load %arg6[%c1_154, %c0_155] : memref<4x16xf32, #tpu.memory_space<vmem>>, vector<1x16xf32>
    %426 = vector.broadcast %425 : vector<1x16xf32> to vector<64x16xf32>
    %427 = arith.addf %424, %426 : vector<64x16xf32>
    %cst_156 = arith.constant 0.000000e+00 : f32
    %428 = vector.broadcast %cst_156 : f32 to vector<64x16xf32>
    %429 = arith.maximumf %427, %428 : vector<64x16xf32>
    %c1_157 = arith.constant 1 : index
    %c0_158 = arith.constant 0 : index
    %c0_159 = arith.constant 0 : index
    %430 = vector.load %arg5[%c1_157, %c0_158, %c0_159] : memref<2x16x32xf32, #tpu.memory_space<vmem>>, vector<1x16x32xf32>
    %431 = vector.shape_cast %430 : vector<1x16x32xf32> to vector<16x32xf32>
    %cst_160 = arith.constant dense<0.000000e+00> : vector<64x32xf32>
    %432 = tpu.matmul %429, %431, %cst_160 {dimension_numbers = #tpu.dot_dimension_numbers<[1], [0], [0], [1], [0, 0, 1, 1], [], []>} : vector<64x16xf32>, vector<16x32xf32>, vector<64x32xf32> -> vector<64x32xf32>
    %433 = vector.broadcast %237 : vector<1x32xf32> to vector<64x32xf32>
    %434 = arith.addf %432, %433 : vector<64x32xf32>
    %435 = arith.addf %421, %434 : vector<64x32xf32>
    %cst_161 = arith.constant dense<0.000000e+00> : vector<64xf32>
    %436 = vector.multi_reduction <add>, %435, %cst_161 [1] : vector<64x32xf32> to vector<64xf32>
    %437 = vector.shape_cast %436 : vector<64xf32> to vector<64x1xf32>
    %cst_162 = arith.constant 3.200000e+01 : f32
    %438 = vector.broadcast %cst_162 : f32 to vector<64x1xf32>
    %439 = arith.divf %437, %438 : vector<64x1xf32>
    %440 = vector.broadcast %439 : vector<64x1xf32> to vector<64x32xf32>
    %441 = arith.subf %435, %440 : vector<64x32xf32>
    %442 = arith.mulf %441, %441 : vector<64x32xf32>
    %cst_163 = arith.constant dense<0.000000e+00> : vector<64xf32>
    %443 = vector.multi_reduction <add>, %442, %cst_163 [1] : vector<64x32xf32> to vector<64xf32>
    %444 = vector.shape_cast %443 : vector<64xf32> to vector<64x1xf32>
    %cst_164 = arith.constant 3.200000e+01 : f32
    %445 = vector.broadcast %cst_164 : f32 to vector<64x1xf32>
    %446 = arith.divf %444, %445 : vector<64x1xf32>
    %cst_165 = arith.constant 9.99999974E-6 : f32
    %447 = vector.broadcast %cst_165 : f32 to vector<64x1xf32>
    %448 = arith.addf %446, %447 : vector<64x1xf32>
    %449 = math.rsqrt %448 : vector<64x1xf32>
    %450 = vector.broadcast %449 : vector<64x1xf32> to vector<64x32xf32>
    %451 = arith.mulf %441, %450 : vector<64x32xf32>
    %452 = vector.broadcast %238 : vector<1x32xf32> to vector<64x32xf32>
    %453 = arith.mulf %451, %452 : vector<64x32xf32>
    %454 = vector.broadcast %239 : vector<1x32xf32> to vector<64x32xf32>
    %455 = arith.addf %453, %454 : vector<64x32xf32>
    %c2_166 = arith.constant 2 : index
    %c0_167 = arith.constant 0 : index
    %c0_168 = arith.constant 0 : index
    %456 = vector.load %arg4[%c2_166, %c0_167, %c0_168] : memref<3x32x16xf32, #tpu.memory_space<vmem>>, vector<1x32x16xf32>
    %457 = vector.shape_cast %456 : vector<1x32x16xf32> to vector<32x16xf32>
    %cst_169 = arith.constant dense<0.000000e+00> : vector<64x16xf32>
    %458 = tpu.matmul %455, %457, %cst_169 {dimension_numbers = #tpu.dot_dimension_numbers<[1], [0], [0], [1], [0, 0, 1, 1], [], []>} : vector<64x32xf32>, vector<32x16xf32>, vector<64x16xf32> -> vector<64x16xf32>
    %c2_170 = arith.constant 2 : index
    %c0_171 = arith.constant 0 : index
    %459 = vector.load %arg6[%c2_170, %c0_171] : memref<4x16xf32, #tpu.memory_space<vmem>>, vector<1x16xf32>
    %460 = vector.broadcast %459 : vector<1x16xf32> to vector<64x16xf32>
    %461 = arith.addf %458, %460 : vector<64x16xf32>
    %cst_172 = arith.constant 0.000000e+00 : f32
    %462 = vector.broadcast %cst_172 : f32 to vector<64x16xf32>
    %463 = arith.maximumf %461, %462 : vector<64x16xf32>
    %c3_173 = arith.constant 3 : index
    %c0_174 = arith.constant 0 : index
    %464 = vector.load %arg6[%c3_173, %c0_174] : memref<4x16xf32, #tpu.memory_space<vmem>>, vector<1x16xf32>
    %465 = vector.shape_cast %463 : vector<64x16xf32> to vector<8x8x16xf32>
    %466 = vector.shape_cast %464 : vector<1x16xf32> to vector<1x1x16xf32>
    %467 = vector.broadcast %466 : vector<1x1x16xf32> to vector<8x8x16xf32>
    %468 = arith.mulf %465, %467 : vector<8x8x16xf32>
    %cst_175 = arith.constant dense<0.000000e+00> : vector<8x8xf32>
    %469 = vector.multi_reduction <add>, %468, %cst_175 [2] : vector<8x8x16xf32> to vector<8x8xf32>
    %cst_176 = arith.constant dense<0xFF800000> : vector<8xf32>
    %470 = vector.multi_reduction <maximumf>, %469, %cst_176 [1] : vector<8x8xf32> to vector<8xf32>
    %471 = vector.shape_cast %470 : vector<8xf32> to vector<8x1xf32>
    %472 = vector.broadcast %471 : vector<8x1xf32> to vector<8x8xf32>
    %473 = arith.subf %469, %472 : vector<8x8xf32>
    %474 = math.exp %473 : vector<8x8xf32>
    %cst_177 = arith.constant dense<0.000000e+00> : vector<8xf32>
    %475 = vector.multi_reduction <add>, %474, %cst_177 [1] : vector<8x8xf32> to vector<8xf32>
    %476 = vector.shape_cast %475 : vector<8xf32> to vector<8x1xf32>
    %477 = vector.broadcast %476 : vector<8x1xf32> to vector<8x8xf32>
    %478 = arith.divf %474, %477 : vector<8x8xf32>
    %c0_178 = arith.constant 0 : index
    %c0_179 = arith.constant 0 : index
    %479 = vector.load %arg7[%c0_178, %c0_179] : memref<8x8xf32, #tpu.memory_space<vmem>>, vector<8x8xf32>
    tpu.vector_store %arg7[%c0_178, %c0_179], %478 {strides = array<i32>} : memref<8x8xf32, #tpu.memory_space<vmem>>, vector<8x8xf32>,
    return
  }
  func.func @transform_0(%arg0: i32) -> (i32, i32, i32) {
    %c0_i32 = arith.constant 0 : i32
    %c0_i32_0 = arith.constant 0 : i32
    %c0_i32_1 = arith.constant 0 : i32
    return %arg0, %c0_i32, %c0_i32_0 : i32, i32, i32
  }
  func.func @transform_1(%arg0: i32) -> (i32, i32, i32, i32) {
    %c0_i32 = arith.constant 0 : i32
    %c0_i32_0 = arith.constant 0 : i32
    %c0_i32_1 = arith.constant 0 : i32
    %c0_i32_2 = arith.constant 0 : i32
    %c0_i32_3 = arith.constant 0 : i32
    return %c0_i32, %c0_i32_0, %c0_i32_1, %c0_i32_2 : i32, i32, i32, i32
  }
  func.func @transform_2(%arg0: i32) -> (i32, i32, i32) {
    %c0_i32 = arith.constant 0 : i32
    %c0_i32_0 = arith.constant 0 : i32
    %c0_i32_1 = arith.constant 0 : i32
    %c0_i32_2 = arith.constant 0 : i32
    return %c0_i32, %c0_i32_0, %c0_i32_1 : i32, i32, i32
  }
  func.func @transform_3(%arg0: i32) -> (i32, i32, i32) {
    %c0_i32 = arith.constant 0 : i32
    %c0_i32_0 = arith.constant 0 : i32
    %c0_i32_1 = arith.constant 0 : i32
    %c0_i32_2 = arith.constant 0 : i32
    return %c0_i32, %c0_i32_0, %c0_i32_1 : i32, i32, i32
  }
  func.func @transform_4(%arg0: i32) -> (i32, i32, i32) {
    %c0_i32 = arith.constant 0 : i32
    %c0_i32_0 = arith.constant 0 : i32
    %c0_i32_1 = arith.constant 0 : i32
    %c0_i32_2 = arith.constant 0 : i32
    return %c0_i32, %c0_i32_0, %c0_i32_1 : i32, i32, i32
  }
  func.func @transform_5(%arg0: i32) -> (i32, i32) {
    %c0_i32 = arith.constant 0 : i32
    %c0_i32_0 = arith.constant 0 : i32
    %c0_i32_1 = arith.constant 0 : i32
    return %c0_i32, %c0_i32_0 : i32, i32
  }
  func.func @transform_6(%arg0: i32) -> (i32, i32) {
    %c0_i32 = arith.constant 0 : i32
    %c0_i32_0 = arith.constant 0 : i32
    return %arg0, %c0_i32 : i32, i32
  }
}

</mosaic_0001>

<bundles_post_ra>
// kernel: tpu_custom_call.1
= control target key start
LH: loop header
LB: loop body
LE: loop exit
PB: predicated region body
PF: predicated region fallthrough
CT: control target
= control target key end

     0   :  { %11 = vsyncpa [#allocation3], 0  ;;  %s16603_s0 = inlined_call_operand.vmem [shape: f32[16,8,32], index: 0, kind: input, shape index: {}]   ;;  %s16604_s1 = inlined_call_operand.hbm [shape: f32[2,4,32,32], index: 1, kind: input, shape index: {}]   ;;  %s16605_s2 = inlined_call_operand.vmem [shape: f32[2,9,32], index: 2, kind: input, shape index: {}]   ;;  %s16606_s3 = inlined_call_operand.vmem [shape: f32[3,32,16], index: 3, kind: input, shape index: {}]   ;;  %s16607_s4 = inlined_call_operand.hbm [shape: f32[2,16,32], index: 4, kind: input, shape index: {}]   ;;  %s16608_s5 = inlined_call_operand.vmem [shape: f32[4,16], index: 5, kind: input, shape index: {}]   ;;  %s16609_s6 = inlined_call_operand.vmem [shape: f32[16,8], index: 6, kind: output, shape index: {}]  }
   0x1   :  { %12 = vsyncpa [#allocation5], 0  ;;  %s12935_s21 = smov 0  }
   0x2 LB: > { %s191_s24 = sshll.u32 %s16604_s1, 4  ;;  %s12944_s25 = sadd.s32 4294967295, %s12878_s21   ;;  %s12878_s21 = sphi %s12935_s21, %s18_s21   ;;  %s192_s24 = int_to_ptr.hbm [resolvable:$true] %s191_s24 }
   0x3   : > { %p11338_p0 = scmp.ge.s32.totalorder %s12878_s21, 1  ;;  %p180_p1 = scmp.lt.s32.totalorder %s12878_s21, 3 }
   0x4   : > { %p11863_p2 = scmp.eq.s32.totalorder %s12944_s25, 0  ;;  %s12880_s27 = smov [#allocation2]  }
   0x5   : > { %p12949_p3 = pnand %p11338_p0, %p180_p1  ;;  %s193_s28 = sshll.u32 %s12880_s27, 4  ;;  %s194_s28 = int_to_ptr.vmem [resolvable:$true] %s193_s28 }
   0x6   : > { %s211_s7 = sshll.u32 %s16607_s4, 4  ;;  %s12881_s8 = smov [#allocation4]   ;;  %s212_s7 = int_to_ptr.hbm [resolvable:$true] %s211_s7 }
   0x7   : > { %p11856_p4 = pneg %p12949_p3  ;;  %s213_s9 = sshll.u32 %s12881_s8, 4  ;;  %s214_s9 = int_to_ptr.vmem [resolvable:$true] %s213_s9 }
   0x8   : > { %s12882_s10 = smov 128   ;;  %s12883_s11 = smov 8  }
   0x9   : > { %p11857_p5 = pnand %p11863_p2, %p11856_p4  ;;  %241 = sbr.rel (%p12949_p3) target bundleno = 11014 (0x2b06), region = 44 }
   0xb   : > { %11859 = dma.hbm_to_vmem [thread:$0]  (!%p11857_p5), %s192_s24, 4096, %s194_s28, [#allocation3], %s12882_s10, %s12882_s10, %s12883_s11  }
   0xc   : > { %11862 = dma.hbm_to_vmem [thread:$0]  (!%p11857_p5), %s212_s7, 512, %s214_s9, [#allocation5], %s12882_s10, %s12882_s10, %s12883_s11  }
   0xe   : > { %12869 = dma.done.wait (%p11863_p2), [#allocation3], 4096  }
   0xf   : > { %12871 = vsyncadd (%p11863_p2), [#allocation3], 4294963200 }
  0x10   : > { %12873 = dma.done.wait (%p11863_p2), [#allocation5], 512  }
  0x11   : > { %12875 = vsyncadd (%p11863_p2), [#allocation5], 4294966784  ;;  %s11345_s12 = sshll.u32 %s12944_s25, 3  ;;  %v371_v0 = vld [vmem:[#allocation2 + $0x38] sm:$0xff]  ;;  %v370_v1 = vld [vmem:[#allocation2 + $0x30] sm:$0xff]  ;;  %vm301_vm0 = vcmask 261120  }
  0x12   : > { %p277_p6 = scmp.lt.s32.totalorder %s11345_s12, 15  ;;  %v299_v2 = vld [vmem:[#allocation2 + $0x18] sm:$0xff]  ;;  %385 = vmatpush.msra.mxu1 %v371_v0  ;;  %v298_v3 = vld [vmem:[#allocation2 + $0x10] sm:$0xff]  ;;  %v369_v4 = vld [vmem:[#allocation2 + $0x28] sm:$0xff]  ;;  %vm461_vm1 = vcmask 31744   ;;  %vm16620_vm2 = vcmask 64512  }
  0x13   : > { %338 = vmatpush.msra.mxu0 %v299_v2  ;;  %v297_v5 = vld [vmem:[#allocation2 + $0x8] sm:$0xff]  ;;  %v368_v6 = vld [vmem:[#allocation2 + $0x20] sm:$0xff]  ;;  %s12884_s19 = smov 124   ;;  %s12885_s20 = smov 120   ;;  %vm4895_vm3 = vcmask 97280   ;;  %vm4904_vm4 = vcmask 130048  }
  0x14   : > { %s16768_s12 = smov (!%p277_p6, %s11345_s12), 15  ;;  %386 = vmatpush.msra.mxu1 %v370_v1  ;;  %v296_v8 = vld [vmem:[#allocation2] sm:$0xff]  ;;  %s12886_s22 = smov 116   ;;  %vm4913_vm5 = vcmask 162816   ;;  %vm4922_vm6 = vcmask 195584   ;;  %vm4931_vm7 = vcmask 228352  }
  0x15   : > { %s11346_s13 = sshll.u32 %s16768_s12, 3  ;;  %339 = vmatpush.msra.mxu0 %v298_v3  ;;  %v13035_v16 = vld [vmem:[%s16605_s2] sm:$0xff]  ;;  %s12887_s23 = smov 112  }
  0x16   : > { %s12974_s16 = scalar_lea.vmem %s16603_s0, %s11346_s13  ;;  %387 = vmatpush.msra.mxu1 %v369_v4  ;;  %v372_v17 = vperm.slane %v13035_v16, 1  ;;  %v300_v18 = vperm.slane %v13035_v16, 0  ;;  %s12888_s24 = smov 108  }
  0x17   : > { %v12977_v7 = vld [vmem:[%s12974_s16] sm:$0xff]  ;;  %340 = vmatpush.msra.mxu0 %v297_v5  ;;  %v12984_v9 = vld [vmem:[%s12974_s16 + $0x8] sm:$0xff]  ;;  %v12991_v10 = vld [vmem:[%s12974_s16 + $0x10] sm:$0xff]  ;;  %s12889_s26 = smov 104   ;;  %s12890_s27 = smov 100  }
  0x18   : > { %388 = vmatpush.msra.mxu1 %v368_v6  ;;  %v12998_v11 = vld [vmem:[%s12974_s16 + $0x18] sm:$0xff]  ;;  %v13005_v12 = vld [vmem:[%s12974_s16 + $0x20] sm:$0xff]  ;;  %v13012_v13 = vld [vmem:[%s12974_s16 + $0x28] sm:$0xff]  ;;  %s12891_s28 = smov 4   ;;  %s12892_s29 = smov 8  }
  0x19   : > { %341 = vmatpush.msra.mxu0 %v296_v8  ;;  %11356 = vmatmul.msk.f32.vlgmr.msra.gmra.mxu1 %vm301_vm0, %v12977_v7  ;;  %v13019_v14 = vld [vmem:[%s12974_s16 + $0x30] sm:$0xff]  ;;  %v13026_v15 = vld [vmem:[%s12974_s16 + $0x38] sm:$0xff]  ;;  %s12893_s30 = smov 20   ;;  %s12894_s7 = smov 24  }
  0x1a   : > { %11348 = vmatmul.msk.f32.vlgmr.msra.gmra.mxu0 %vm301_vm0, %v12977_v7  ;;  %v418_v6 = vld [vmem:[#allocation2 + $0x58] sm:$0xff]  ;;  %v417_v8 = vld [vmem:[#allocation2 + $0x50] sm:$0xff]  ;;  %s12895_s8 = smov 16   ;;  %s12896_s9 = smov 12  }
  0x1b   : > { %432 = vmatpush.msra.mxu2 %v418_v6  ;;  %s12897_s10 = smov 28   ;;  %p282_p7 = scmp.lt.s32.totalorder %s12944_s25, 1 }
  0x1d   : > { %433 = vmatpush.msra.mxu2 %v417_v8  ;;  %s16770_s25 = smov (!%p282_p7, %s12944_s25), 1 }
  0x21   : > { %11357 = vmatmul.msk.f32.gmra.mxu1 %vm301_vm0, %v12984_v9 }
  0x22   : > { %11349 = vmatmul.msk.f32.gmra.mxu0 %vm301_vm0, %v12984_v9 }
  0x29   : > { %11358 = vmatmul.msk.f32.gmra.mxu1 %vm301_vm0, %v12991_v10 }
  0x2a   : > { %11350 = vmatmul.msk.f32.gmra.mxu0 %vm301_vm0, %v12991_v10 }
  0x31   : > { %11359 = vmatmul.msk.f32.gmra.mxu1 %vm301_vm0, %v12998_v11 }
  0x32   : > { %11351 = vmatmul.msk.f32.gmra.mxu0 %vm301_vm0, %v12998_v11 }
  0x39   : > { %11360 = vmatmul.msk.f32.gmra.mxu1 %vm301_vm0, %v13005_v12 }
  0x3a   : > { %11352 = vmatmul.msk.f32.gmra.mxu0 %vm301_vm0, %v13005_v12 }
  0x41   : > { %11361 = vmatmul.msk.f32.gmra.mxu1 %vm301_vm0, %v13012_v13 }
  0x42   : > { %11353 = vmatmul.msk.f32.gmra.mxu0 %vm301_vm0, %v13012_v13 }
  0x49   : > { %11362 = vmatmul.msk.f32.gmra.mxu1 %vm301_vm0, %v13019_v14 }
  0x4a   : > { %11354 = vmatmul.msk.f32.gmra.mxu0 %vm301_vm0, %v13019_v14 }
  0x51   : > { %11363 = vmatmul.msk.f32.gmra.mxu1 %vm301_vm0, %v13026_v15 }
  0x52   : > { %11355 = vmatmul.msk.f32.gmra.mxu0 %vm301_vm0, %v13026_v15 }
  0x96   : > { %v390_v19 = vpop.f32.mrf.mxu1 }
  0x97   : > { %v343_v20 = vpop.f32.mrf.mxu0  ;;  %v13039_v21 = vadd.f32 %v390_v19, %v372_v17  ;;  %v416_v19 = vld [vmem:[#allocation2 + $0x48] sm:$0xff] }
  0x98   : > { %v13041_v22 = vadd.f32 %v343_v20, %v300_v18  ;;  %v415_v20 = vld [vmem:[#allocation2 + $0x40] sm:$0xff]  ;;  %434 = vmatpush.msra.mxu2 %v416_v19 }
  0x99   : > { %11372 = vmatpush.xpose.msk.msra.mxu3 %vm461_vm1, %v13039_v21 }
  0x9a   : > { %435 = vmatpush.msra.mxu2 %v415_v20 }
  0x9b   : > { %11364 = vmatmul.msk.f32.vlgmr.msra.gmra.mxu2 %vm301_vm0, %v12977_v7 }
  0x9c   : > { %11373 = vmatmul.msk.f32.vlgmr.msra.gmra.mxu3 %vm461_vm1, %v13041_v22 }
  0x9e   : > { %v393_v23 = vpop.f32.mrf.mxu1 }
  0x9f   : > { %v346_v24 = vpop.f32.mrf.mxu0  ;;  %v13047_v25 = vadd.f32 %v393_v23, %v372_v17 }
  0xa0   : > { %v13049_v26 = vadd.f32 %v346_v24, %v300_v18 }
  0xa1   : > { %11374 = vmatpush.xpose.msk.msrb.mxu3 %vm461_vm1, %v13047_v25 }
  0xa3   : > { %11365 = vmatmul.msk.f32.gmra.mxu2 %vm301_vm0, %v12984_v9 }
  0xa4   : > { %11375 = vmatmul.msk.f32.vlgmr.msrb.gmra.mxu3 %vm461_vm1, %v13049_v26 }
  0xa6   : > { %v396_v27 = vpop.f32.mrf.mxu1 }
  0xa7   : > { %v349_v28 = vpop.f32.mrf.mxu0  ;;  %v13055_v29 = vadd.f32 %v396_v27, %v372_v17 }
  0xa8   : > { %v13057_v30 = vadd.f32 %v349_v28, %v300_v18 }
  0xa9   : > { %11376 = vmatpush.xpose.msk.msra.mxu3 %vm461_vm1, %v13055_v29 }
  0xab   : > { %11366 = vmatmul.msk.f32.gmra.mxu2 %vm301_vm0, %v12991_v10 }
  0xac   : > { %11377 = vmatmul.msk.f32.vlgmr.msra.gmra.mxu3 %vm461_vm1, %v13057_v30 }
  0xae   : > { %v399_v31 = vpop.f32.mrf.mxu1 }
  0xaf   : > { %v352_v32 = vpop.f32.mrf.mxu0  ;;  %v13063_v33 = vadd.f32 %v399_v31, %v372_v17 }
  0xb0   : > { %v13065_v34 = vadd.f32 %v352_v32, %v300_v18 }
  0xb1   : > { %11378 = vmatpush.xpose.msk.msrb.mxu3 %vm461_vm1, %v13063_v33 }
  0xb3   : > { %11367 = vmatmul.msk.f32.gmra.mxu2 %vm301_vm0, %v12998_v11 }
  0xb4   : > { %11379 = vmatmul.msk.f32.vlgmr.msrb.gmra.mxu3 %vm461_vm1, %v13065_v34 }
  0xb6   : > { %v402_v35 = vpop.f32.mrf.mxu1 }
  0xb7   : > { %v355_v36 = vpop.f32.mrf.mxu0  ;;  %v13071_v37 = vadd.f32 %v402_v35, %v372_v17 }
  0xb8   : > { %v13073_v38 = vadd.f32 %v355_v36, %v300_v18 }
  0xb9   : > { %11380 = vmatpush.xpose.msk.msra.mxu3 %vm461_vm1, %v13071_v37 }
  0xbb   : > { %11368 = vmatmul.msk.f32.gmra.mxu2 %vm301_vm0, %v13005_v12 }
  0xbc   : > { %11381 = vmatmul.msk.f32.vlgmr.msra.gmra.mxu3 %vm461_vm1, %v13073_v38 }
  0xbe   : > { %v405_v39 = vpop.f32.mrf.mxu1 }
  0xbf   : > { %v358_v40 = vpop.f32.mrf.mxu0  ;;  %v13079_v41 = vadd.f32 %v405_v39, %v372_v17 }
  0xc0   : > { %v13081_v42 = vadd.f32 %v358_v40, %v300_v18 }
  0xc1   : > { %11382 = vmatpush.xpose.msk.msrb.mxu3 %vm461_vm1, %v13079_v41 }
  0xc3   : > { %11369 = vmatmul.msk.f32.gmra.mxu2 %vm301_vm0, %v13012_v13 }
  0xc4   : > { %11383 = vmatmul.msk.f32.vlgmr.msrb.gmra.mxu3 %vm461_vm1, %v13081_v42 }
  0xc6   : > { %v408_v43 = vpop.f32.mrf.mxu1 }
  0xc7   : > { %v361_v44 = vpop.f32.mrf.mxu0  ;;  %v13087_v45 = vadd.f32 %v408_v43, %v372_v17 }
  0xc8   : > { %v13089_v46 = vadd.f32 %v361_v44, %v300_v18 }
  0xc9   : > { %11384 = vmatpush.xpose.msk.msra.mxu3 %vm461_vm1, %v13087_v45 }
  0xcb   : > { %11370 = vmatmul.msk.f32.gmra.mxu2 %vm301_vm0, %v13019_v14 }
  0xcc   : > { %11385 = vmatmul.msk.f32.vlgmr.msra.gmra.mxu3 %vm461_vm1, %v13089_v46 }
  0xce   : > { %v411_v47 = vpop.f32.mrf.mxu1 }
  0xcf   : > { %v364_v48 = vpop.f32.mrf.mxu0  ;;  %v13095_v49 = vadd.f32 %v411_v47, %v372_v17 }
  0xd0   : > { %v13097_v50 = vadd.f32 %v364_v48, %v300_v18 }
  0xd1   : > { %11386 = vmatpush.xpose.msk.msrb.mxu3 %vm461_vm1, %v13095_v49 }
  0xd3   : > { %11371 = vmatmul.msk.f32.gmra.mxu2 %vm301_vm0, %v13026_v15 }
  0xd4   : > { %11387 = vmatmul.msk.f32.vlgmr.msrb.gmra.mxu3 %vm461_vm1, %v13097_v50 }
 0x11f   : > { %v485_v51 = vpop.f32.mrf.mxu3 }
 0x120   : > { %v670_v52 = vmul.f32 0.5, %v485_v51 }
 0x122   : > { %v679_v53 = vsel %vm16620_vm2, %v670_v52, -inf }
 0x123   : > { %680 = vmax.xlane.f32.xlu0 %v679_v53 }
 0x127   : > { %v511_v54 = vpop.f32.mrf.mxu3 }
 0x128   : > { %v13104_v55 = vmul.f32 0.5, %v511_v54 }
 0x12a   : > { %v682_v56 = vsel %vm16620_vm2, %v13104_v55, -inf }
 0x12b   : > { %683 = vmax.xlane.f32.xlu2 %v682_v56 }
 0x12f   : > { %v537_v57 = vpop.f32.mrf.mxu3 }
 0x130   : > { %v13108_v58 = vmul.f32 0.5, %v537_v57 }
 0x132   : > { %v685_v59 = vsel %vm16620_vm2, %v13108_v58, -inf }
 0x133   : > { %686 = vmax.xlane.f32.xlu1 %v685_v59 }
 0x137   : > { %v563_v60 = vpop.f32.mrf.mxu3 }
 0x138   : > { %v673_v61 = vmul.f32 0.5, %v563_v60 }
 0x13a   : > { %v688_v62 = vsel %vm16620_vm2, %v673_v61, -inf }
 0x13b   : > { %689 = vmax.xlane.f32.xlu1 %v688_v62  ;;  %v419_v62 = vperm.slane %v13035_v16, 2 }
 0x13f   : > { %v589_v63 = vpop.f32.mrf.mxu3 }
 0x140   : > { %v674_v0 = vmul.f32 0.5, %v589_v63 }
 0x142   : > { %v691_v1 = vsel %vm16620_vm2, %v674_v0, -inf }
 0x143   : > { %692 = vmax.xlane.f32.xlu0 %v691_v1  ;;  %v437_v1 = vpop.f32.mrf.mxu2 }
 0x147   : > { %v615_v2 = vpop.f32.mrf.mxu3 }
 0x148   : > { %v675_v3 = vmul.f32 0.5, %v615_v2  ;;  %v13174_v2 = vadd.f32 %v437_v1, %v419_v62 }
 0x14a   : > { %v694_v4 = vsel %vm16620_vm2, %v675_v3, -inf  ;;  %785 = vmatpush.msra.mxu3 %v13174_v2 }
 0x14b   : > { %695 = vmax.xlane.f32.xlu2 %v694_v4  ;;  %v440_v4 = vpop.f32.mrf.mxu2 }
 0x14f   : > { %v641_v5 = vpop.f32.mrf.mxu3 }
 0x150   : > { %v13115_v17 = vmul.f32 0.5, %v641_v5  ;;  %v13181_v5 = vadd.f32 %v440_v4, %v419_v62 }
 0x152   : > { %v697_v18 = vsel %vm16620_vm2, %v13115_v17, -inf  ;;  %808 = vmatpush.msrb.mxu0 %v13181_v5 }
 0x153   : > { %698 = vmax.xlane.f32.xlu0 %v697_v18  ;;  %v443_v6 = vpop.f32.mrf.mxu2 }
 0x154   : > { %v13184_v8 = vadd.f32 %v443_v6, %v419_v62 }
 0x156   : > { %831 = vmatpush.msrb.mxu1 %v13184_v8 }
 0x157   : > { %v667_v23 = vpop.f32.mrf.mxu3 }
 0x158   : > { %v677_v24 = vmul.f32 0.5, %v667_v23 }
 0x15a   : > { %v700_v27 = vsel %vm16620_vm2, %v677_v24, -inf }
 0x15b   : > { %701 = vmax.xlane.f32.xlu1 %v700_v27  ;;  %v446_v20 = vpop.f32.mrf.mxu2 }
 0x15c   : > { %v13189_v23 = vadd.f32 %v446_v20, %v419_v62 }
 0x15e   : > { %854 = vmatpush.msrb.mxu2 %v13189_v23 }
 0x163   : > { %1065 = vrot.lane.b32.xlu2 %v13071_v37, %s12884_s19  ;;  %v449_v27 = vpop.f32.mrf.mxu2 }
 0x167   : > { %951 = vrot.lane.b32.xlu0 %v13041_v22, %s12884_s19 }
 0x16b   : > { %1037 = vrot.lane.b32.xlu2 %v13063_v33, %s12884_s19 }
 0x16f   : > { %1063 = vrot.lane.b32.xlu0 %v13073_v38, %s12884_s19 }
 0x174   : > { %953 = vrot.lane.b32.xlu1 %v13039_v21, %s12884_s19 }
 0x196   : > { %v681_v7 = vpop.xlane.xlu0 %680 }
 0x197   : > { %v703_v9 = vsub.f32 %v670_v52, %v681_v7 }
 0x199   : > { %v711_v10 = vmul.f32 1.442695, %v703_v9  ;;  %v13196_v9 = vadd.f32 %v449_v27, %v419_v62 }
 0x19b   : > { %12184 = vpow2.f32 %v711_v10  ;;  %877 = vmatpush.msrb.mxu3 %v13196_v9 }
 0x19e   : > { %v684_v35 = vpop.xlane.xlu2 %683 }
 0x1a1   : > { %v13146_v11 = vpop.eup %12184 }
 0x1a2   : > { %v727_v28 = vsel %vm16620_vm2, %v13146_v11, 0.0 }
 0x1a3   : > { %728 = vadd.xlane.f32.xlu2 %v727_v28 }
 0x1a6   : > { %v687_v12 = vpop.xlane.xlu1 %686 }
 0x1a7   : > { %v705_v18 = vsub.f32 %v13108_v58, %v687_v12  ;;  %v452_v12 = vpop.f32.mrf.mxu2 }
 0x1ae   : > { %v690_v31 = vpop.xlane.xlu1 %689 }
 0x1af   : > { %v706_v32 = vsub.f32 %v673_v61, %v690_v31  ;;  %v13207_v31 = vadd.f32 %v452_v12, %v419_v62 }
 0x1b1   : > { %v717_v13 = vmul.f32 1.442695, %v706_v32  ;;  %900 = vmatpush.msra.mxu0 %v13207_v31  ;;  %v455_v32 = vpop.f32.mrf.mxu2 }
 0x1b3   : > { %12186 = vpow2.f32 %v717_v13  ;;  %v13212_v13 = vadd.f32 %v455_v32, %v419_v62 }
 0x1b5   : > { %923 = vmatpush.msra.mxu1 %v13212_v13 }
 0x1b6   : > { %v693_v14 = vpop.xlane.xlu0 %692 }
 0x1b7   : > { %v707_v36 = vsub.f32 %v674_v0, %v693_v14 }
 0x1b9   : > { %v13150_v39 = vpop.eup %12186  ;;  %v719_v15 = vmul.f32 1.442695, %v707_v36  ;;  %v458_v14 = vpop.f32.mrf.mxu2 }
 0x1ba   : > { %v736_v40 = vsel %vm16620_vm2, %v13150_v39, 0.0  ;;  %v13219_v36 = vadd.f32 %v458_v14, %v419_v62 }
 0x1bb   : > { %12188 = vpow2.f32 %v719_v15  ;;  %737 = vadd.xlane.f32.xlu2 %v736_v40 }
 0x1bc   : > { %946 = vmatpush.msra.mxu2 %v13219_v36 }
 0x1be   : > { %v696_v43 = vpop.xlane.xlu2 %695 }
 0x1bf   : > { %v708_v44 = vsub.f32 %v675_v3, %v696_v43 }
 0x1c1   : > { %v13154_v47 = vpop.eup %12188  ;;  %v721_v48 = vmul.f32 1.442695, %v708_v44 }
 0x1c2   : > { %v739_v51 = vsel %vm16620_vm2, %v13154_v47, 0.0 }
 0x1c3   : > { %12190 = vpow2.f32 %v721_v48  ;;  %740 = vadd.xlane.f32.xlu0 %v739_v51  ;;  %v13235_v51 = vpack.i.bf16 %v13196_v9, %v13174_v2 }
 0x1c6   : > { %v699_v54 = vpop.xlane.xlu0 %698  ;;  %v1066_v28 = vpop.permute.xlu2 %1065 }
 0x1c7   : > { %v709_v59 = vsub.f32 %v13115_v17, %v699_v54  ;;  %v704_v17 = vsub.f32 %v13104_v55, %v684_v35 }
 0x1c9   : > { %v13158_v52 = vpop.eup %12190  ;;  %v723_v61 = vmul.f32 1.442695, %v709_v59  ;;  %v713_v19 = vmul.f32 1.442695, %v704_v17 }
 0x1ca   : > { %v742_v53 = vsel %vm16620_vm2, %v13158_v52, 0.0 }
 0x1cb   : > { %743 = vadd.xlane.f32.xlu1 %v742_v53 }
 0x1ce   : > { %v702_v56 = vpop.xlane.xlu1 %701  ;;  %v1038_v35 = vpop.permute.xlu2 %1037 }
 0x1cf   : > { %v710_v57 = vsub.f32 %v677_v24, %v702_v56  ;;  %v715_v24 = vmul.f32 1.442695, %v705_v18 }
 0x1d1   : > { %v725_v60 = vmul.f32 1.442695, %v710_v57 }
 0x1d3   : > { %12192 = vpow2.f32 %v725_v60  ;;  %1149 = vrot.lane.b32.xlu2 %v13095_v49, %s12884_s19 }
 0x1d4   : > { %12194 = vpow2.f32 %v723_v61 }
 0x1d5   : > { %12196 = vpow2.f32 %v713_v19 }
 0x1d6   : > { %12198 = vpow2.f32 %v715_v24 }
 0x1d7   : > { %1035 = vrot.lane.b32.xlu0 %v13065_v34, %s12884_s19 }
 0x1d9   : > { %v13168_v63 = vpop.eup %12192  ;;  %v952_v48 = vpop.permute.xlu0 %951 }
 0x1da   : > { %v748_v0 = vsel %vm16620_vm2, %v13168_v63, 0.0  ;;  %v13177_v3 = vpop.eup %12194 }
 0x1db   : > { %1147 = vrot.lane.b32.xlu2 %v13097_v50, %s12884_s19  ;;  %749 = vadd.xlane.f32.xlu1 %v748_v0  ;;  %v745_v16 = vsel %vm16620_vm2, %v13177_v3, 0.0  ;;  %v13194_v7 = vpop.eup %12196  ;;  %v13252_v0 = vpack.i.bf16 %v13219_v36, %v13189_v23 }
 0x1dc   : > { %v13199_v55 = vpop.eup %12198  ;;  %v730_v58 = vsel %vm16620_vm2, %v13194_v7, 0.0 }
 0x1dd   : > { %v733_v10 = vsel %vm16620_vm2, %v13199_v55, 0.0 }
 0x1e3   : > { %746 = vadd.xlane.f32.xlu1 %v745_v16 }
 0x1e6   : > { %v954_v44 = vpop.permute.xlu1 %953 }
 0x1fc   : > { %981 = vrot.lane.b32.xlu1 %v13047_v25, %s12884_s19 }
 0x201   : > { %731 = vadd.xlane.f32.xlu0 %v730_v58 }
 0x204   : > { %734 = vadd.xlane.f32.xlu2 %v733_v10  ;;  %1007 = vrot.lane.b32.xlu1 %v13057_v30, %s12884_s19 }
 0x20c   : > { %1121 = vrot.lane.b32.xlu1 %v13087_v45, %s12884_s19 }
 0x214   : > { %1487 = vrot.lane.b32.xlu1 %v13041_v22, %s12885_s20 }
 0x215   : > { %979 = vrot.lane.b32.xlu0 %v13049_v26, %s12884_s19 }
 0x216   : > { %v729_v15 = vpop.xlane.xlu2 %728 }
 0x217   : > { %12200 = vrcp.f32 %v729_v15 }
 0x21c   : > { %1009 = vrot.lane.b32.xlu2 %v13055_v29, %s12884_s19 }
 0x21d   : > { %v12201_v40 = vpop.eup %12200  ;;  %1093 = vrot.lane.b32.xlu0 %v13079_v41, %s12884_s19 }
 0x21e   : > { %v759_v43 = vmul.f32 %v12201_v40, %v13146_v11  ;;  %v1064_v11 = vpop.permute.xlu0 %1063 }
 0x220   : > { %11388 = vmatmul.msk.f32.vlgmr.msra.gmra.mxu3 %vm16620_vm2, %v759_v43 }
 0x221   : > { %11396 = vmatpush.xpose.msk.msra.mxu3 %vm461_vm1, %v954_v44 }
 0x224   : > { %1119 = vrot.lane.b32.xlu2 %v13089_v46, %s12884_s19 }
 0x225   : > { %1091 = vrot.lane.b32.xlu0 %v13081_v42, %s12884_s19 }
 0x22c   : > { %1489 = vrot.lane.b32.xlu2 %v13039_v21, %s12885_s20 }
 0x22d   : > { %11896 = vrot.lane.b32.xlu0 %v13235_v51, %s12884_s19 }
 0x22e   : > { %v738_v53 = vpop.xlane.xlu2 %737 }
 0x22f   : > { %12202 = vrcp.f32 %v738_v53 }
 0x234   : > { %11901 = vrot.lane.b32.xlu2 %v13252_v0, %s12884_s19 }
 0x235   : > { %v12203_v54 = vpop.eup %12202  ;;  %1601 = vrot.lane.b32.xlu0 %v13071_v37, %s12885_s20 }
 0x236   : > { %v741_v56 = vpop.xlane.xlu0 %740  ;;  %v762_v57 = vmul.f32 %v12203_v54, %v13150_v39  ;;  %v1150_v1 = vpop.permute.xlu2 %1149 }
 0x237   : > { %12204 = vrcp.f32 %v741_v56 }
 0x238   : > { %11391 = vmatmul.msk.f32.vlgmr.msrb.gmra.mxu2 %vm16620_vm2, %v762_v57 }
 0x239   : > { %11402 = vmatpush.xpose.msk.msrb.mxu2 %vm461_vm1, %v1038_v35 }
 0x23d   : > { %v12205_v59 = vpop.eup %12204 }
 0x23e   : > { %v763_v60 = vmul.f32 %v12205_v59, %v13154_v47  ;;  %v744_v61 = vpop.xlane.xlu1 %743  ;;  %v1148_v4 = vpop.permute.xlu2 %1147 }
 0x240   : > { %11392 = vmatmul.msk.f32.vlgmr.msrb.gmra.mxu3 %vm16620_vm2, %v763_v60 }
 0x241   : > { %11404 = vmatpush.xpose.msk.msrb.mxu3 %vm461_vm1, %v1066_v28 }
 0x248   : > { %11397 = vmatmul.msk.f32.vlgmr.msra.gmra.mxu3 %vm461_vm1, %v952_v48 }
 0x249   : > { %v1036_v16 = vpop.permute.xlu0 %1035 }
 0x24e   : > { %v750_v62 = vpop.xlane.xlu1 %749 }
 0x24f   : > { %12206 = vrcp.f32 %v750_v62 }
 0x250   : > { %11405 = vmatmul.msk.f32.vlgmr.msrb.gmra.mxu3 %vm461_vm1, %v1064_v11 }
 0x255   : > { %v12207_v39 = vpop.eup %12206 }
 0x256   : > { %v766_v47 = vmul.f32 %v12207_v39, %v13168_v63  ;;  %v747_v6 = vpop.xlane.xlu1 %746 }
 0x258   : > { %11395 = vmatmul.msk.f32.vlgmr.msra.gmra.mxu2 %vm16620_vm2, %v766_v47 }
 0x259   : > { %11410 = vmatpush.xpose.msk.msra.mxu2 %vm461_vm1, %v1150_v1 }
 0x260   : > { %11403 = vmatmul.msk.f32.vlgmr.msrb.gmra.mxu2 %vm461_vm1, %v1036_v16 }
 0x268   : > { %11411 = vmatmul.msk.f32.vlgmr.msra.gmra.mxu2 %vm461_vm1, %v1148_v4 }
 0x26e   : > { %v982_v18 = vpop.permute.xlu1 %981 }
 0x274   : > { %v732_v17 = vpop.xlane.xlu0 %731 }
 0x275   : > { %12208 = vrcp.f32 %v732_v17 }
 0x276   : > { %v1008_v27 = vpop.permute.xlu1 %1007 }
 0x277   : > { %v735_v19 = vpop.xlane.xlu2 %734 }
 0x278   : > { %12210 = vrcp.f32 %v735_v19 }
 0x279   : > { %12212 = vrcp.f32 %v744_v61 }
 0x27a   : > { %12214 = vrcp.f32 %v747_v6 }
 0x27b   : > { %v12209_v20 = vpop.eup %12208 }
 0x27c   : > { %v760_v63 = vmul.f32 %v12209_v20, %v13194_v7 }
 0x27e   : > { %v12211_v24 = vpop.eup %12210  ;;  %11389 = vmatmul.msk.f32.vlgmr.msrb.gmra.mxu0 %vm16620_vm2, %v760_v63  ;;  %v1122_v14 = vpop.permute.xlu1 %1121 }
 0x27f   : > { %11398 = vmatpush.xpose.msk.msrb.mxu0 %vm461_vm1, %v982_v18  ;;  %v1010_v58 = vpop.permute.xlu2 %1009  ;;  %v761_v10 = vmul.f32 %v12211_v24, %v13199_v55  ;;  %v12213_v28 = vpop.eup %12212 }
 0x280   : > { %v12215_v12 = vpop.eup %12214  ;;  %v764_v32 = vmul.f32 %v12213_v28, %v13158_v52 }
 0x281   : > { %11390 = vmatmul.msk.f32.vlgmr.msrb.gmra.mxu1 %vm16620_vm2, %v761_v10  ;;  %v765_v7 = vmul.f32 %v12215_v12, %v13177_v3 }
 0x282   : > { %11400 = vmatpush.xpose.msk.msrb.mxu1 %vm461_vm1, %v1010_v58 }
 0x286   : > { %11393 = vmatmul.msk.f32.vlgmr.msra.gmra.mxu0 %vm16620_vm2, %v764_v32 }
 0x287   : > { %v980_v35 = vpop.permute.xlu0 %979  ;;  %v1120_v40 = vpop.permute.xlu2 %1119 }
 0x289   : > { %11394 = vmatmul.msk.f32.vlgmr.msra.gmra.mxu1 %vm16620_vm2, %v765_v7 }
 0x28a   : > { %11408 = vmatpush.xpose.msk.msra.mxu1 %vm461_vm1, %v1122_v14 }
 0x28e   : > { %11399 = vmatmul.msk.f32.vlgmr.msrb.gmra.mxu0 %vm461_vm1, %v980_v35 }
 0x28f   : > { %v1094_v55 = vpop.permute.xlu0 %1093  ;;  %v13278_v44 = vpop.permute.xlu2 %1489 }
 0x290   : > { %11406 = vmatpush.xpose.msk.msra.mxu0 %vm461_vm1, %v1094_v55 }
 0x291   : > { %11401 = vmatmul.msk.f32.vlgmr.msrb.gmra.mxu1 %vm461_vm1, %v1008_v27 }
 0x297   : > { %v1092_v15 = vpop.permute.xlu0 %1091  ;;  %v11902_v48 = vpop.permute.xlu2 %11901 }
 0x298   : > { %11407 = vmatmul.msk.f32.vlgmr.msra.gmra.mxu0 %vm461_vm1, %v1092_v15  ;;  %v11904_v11 = vunpack.i.h.bf16 %v11902_v48  ;;  %v11903_v53 = vunpack.i.l.bf16 %v11902_v48 }
 0x299   : > { %11409 = vmatmul.msk.f32.vlgmr.msra.gmra.mxu1 %vm461_vm1, %v1120_v40 }
 0x29a   : > { %1374 = vmatpush.msrb.mxu2 %v11903_v53 }
 0x29c   : > { %1482 = vmatpush.msra.mxu2 %v11904_v11 }
 0x29f   : > { %v11897_v52 = vpop.permute.xlu0 %11896 }
 0x2a0   : > { %v11899_v3 = vunpack.i.h.bf16 %v11897_v52  ;;  %v11898_v43 = vunpack.i.l.bf16 %v11897_v52 }
 0x2a2   : > { %1293 = vmatpush.msra.mxu3 %v11898_v43 }
 0x2a3   : > { %v13280_v54 = vpop.f32.mrf.mxu3 }
 0x2a4   : > { %1401 = vmatpush.msrb.mxu3 %v11899_v3  ;;  %16623 = vst [vmem:[#allocation8_spill] sm:$0xff] %v13280_v54 }
 0x2a7   : > { %v13309_v3 = vpop.permute.xlu0 %1601 }
 0x2bb   : > { %v13285_v61 = vpop.f32.mrf.mxu2 }
 0x2bc   : > { %16625 = vst [vmem:[#allocation10_spill] sm:$0xff] %v13285_v61 }
 0x2c3   : > { %v13282_v56 = vpop.f32.mrf.mxu3 }
 0x2c4   : > { %16624 = vst [vmem:[#allocation9_spill] sm:$0xff] %v13282_v56 }
 0x2cb   : > { %v976_v57 = vpop.f32.mrf.mxu3 }
 0x2cc   : > { %v1175_v59 = vmul.f32 0.5, %v976_v57 }
 0x2ce   : > { %v1183_v60 = vsel %vm16620_vm2, %v1175_v59, -inf }
 0x2cf   : > { %1184 = vmax.xlane.f32.xlu0 %v1183_v60 }
 0x2d3   : > { %v1088_v24 = vpop.f32.mrf.mxu3 }
 0x2d4   : > { %v1179_v10 = vmul.f32 0.5, %v1088_v24 }
 0x2d6   : > { %v1195_v32 = vsel %vm16620_vm2, %v1179_v10, -inf }
 0x2db   : > { %v13287_v62 = vpop.f32.mrf.mxu2 }
 0x2dc   : > { %16626 = vst [vmem:[#allocation11_spill] sm:$0xff] %v13287_v62 }
 0x2e3   : > { %v1060_v39 = vpop.f32.mrf.mxu2 }
 0x2e4   : > { %v1178_v47 = vmul.f32 0.5, %v1060_v39 }
 0x2e6   : > { %v1192_v1 = vsel %vm16620_vm2, %v1178_v47, -inf }
 0x2e7   : > { %1193 = vmax.xlane.f32.xlu2 %v1192_v1 }
 0x2eb   : > { %v1172_v28 = vpop.f32.mrf.mxu2 }
 0x2ec   : > { %v1182_v12 = vmul.f32 0.5, %v1172_v28 }
 0x2ee   : > { %v1204_v35 = vsel %vm16620_vm2, %v1182_v12, -inf }
 0x2fb   : > { %v13290_v16 = vpop.f32.mrf.mxu0 }
 0x2fc   : > { %16627 = vst [vmem:[#allocation12_spill] sm:$0xff] %v13290_v16 }
 0x2fe   : > { %v13292_v4 = vpop.f32.mrf.mxu1 }
 0x2ff   : > { %16628 = vst [vmem:[#allocation13_spill] sm:$0xff] %v13292_v4  ;;  %1599 = vrot.lane.b32.xlu2 %v13073_v38, %s12885_s20 }
 0x303   : > { %v13296_v6 = vpop.f32.mrf.mxu0 }
 0x304   : > { %16629 = vst [vmem:[#allocation14_spill] sm:$0xff] %v13296_v6 }
 0x306   : > { %v13298_v17 = vpop.f32.mrf.mxu1 }
 0x307   : > { %16630 = vst [vmem:[#allocation15_spill] sm:$0xff] %v13298_v17 }
 0x30b   : > { %v1004_v18 = vpop.f32.mrf.mxu0 }
 0x30c   : > { %v1176_v19 = vmul.f32 0.5, %v1004_v18 }
 0x30e   : > { %v1032_v20 = vpop.f32.mrf.mxu1  ;;  %v1186_v63 = vsel %vm16620_vm2, %v1176_v19, -inf }
 0x30f   : > { %v1177_v27 = vmul.f32 0.5, %v1032_v20  ;;  %1187 = vmax.xlane.f32.xlu1 %v1186_v63  ;;  %v13325_v20 = vpop.permute.xlu1 %1487 }
 0x311   : > { %v1189_v58 = vsel %vm16620_vm2, %v1177_v27, -inf }
 0x312   : > { %1190 = vmax.xlane.f32.xlu0 %v1189_v58 }
 0x315   : > { %v1116_v7 = vpop.f32.mrf.mxu0 }
 0x316   : > { %v1180_v14 = vmul.f32 0.5, %v1116_v7  ;;  %v1144_v15 = vpop.f32.mrf.mxu1 }
 0x317   : > { %1196 = vmax.xlane.f32.xlu1 %v1195_v32  ;;  %v13305_v40 = vmul.f32 0.5, %v1144_v15 }
 0x318   : > { %v1198_v55 = vsel %vm16620_vm2, %v1180_v14, -inf }
 0x319   : > { %v1201_v52 = vsel %vm16620_vm2, %v13305_v40, -inf }
 0x31a   : > { %1205 = vmax.xlane.f32.xlu0 %v1204_v35 }
 0x31f   : > { %1199 = vmax.xlane.f32.xlu1 %v1198_v55 }
 0x327   : > { %1202 = vmax.xlane.f32.xlu1 %v1201_v52 }
 0x340   : > { %1573 = vrot.lane.b32.xlu1 %v13063_v33, %s12885_s20 }
 0x342   : > { %v1185_v43 = vpop.xlane.xlu0 %1184 }
 0x343   : > { %v1207_v48 = vsub.f32 %v1175_v59, %v1185_v43 }
 0x345   : > { %v1215_v11 = vmul.f32 1.442695, %v1207_v48 }
 0x347   : > { %12216 = vpow2.f32 %v1215_v11 }
 0x348   : > { %1571 = vrot.lane.b32.xlu1 %v13065_v34, %s12885_s20 }
 0x34d   : > { %v13315_v53 = vpop.eup %12216 }
 0x34e   : > { %v1231_v57 = vsel %vm16620_vm2, %v13315_v53, 0.0 }
 0x34f   : > { %1232 = vadd.xlane.f32.xlu2 %v1231_v57 }
 0x350   : > { %1685 = vrot.lane.b32.xlu1 %v13095_v49, %s12885_s20 }
 0x35a   : > { %v1194_v60 = vpop.xlane.xlu2 %1193 }
 0x35b   : > { %v1210_v39 = vsub.f32 %v1178_v47, %v1194_v60 }
 0x35d   : > { %v1221_v1 = vmul.f32 1.442695, %v1210_v39 }
 0x35f   : > { %12218 = vpow2.f32 %v1221_v1 }
 0x365   : > { %v13321_v18 = vpop.eup %12218 }
 0x366   : > { %v1240_v59 = vsel %vm16620_vm2, %v13321_v18, 0.0 }
 0x37a   : > { %1241 = vadd.xlane.f32.xlu1 %v1240_v59 }
 0x382   : > { %v1188_v63 = vpop.xlane.xlu1 %1187 }
 0x383   : > { %v1208_v24 = vsub.f32 %v1176_v19, %v1188_v63 }
 0x385   : > { %v1217_v58 = vmul.f32 1.442695, %v1208_v24  ;;  %v1191_v28 = vpop.xlane.xlu0 %1190 }
 0x386   : > { %v1209_v32 = vsub.f32 %v1177_v27, %v1191_v28  ;;  %v13363_v28 = vpop.permute.xlu2 %1599 }
 0x387   : > { %12220 = vpow2.f32 %v1217_v58  ;;  %v13355_v58 = vpack.i.bf16 %v13184_v8, %v13181_v5 }
 0x388   : > { %v1219_v7 = vmul.f32 1.442695, %v1209_v32 }
 0x38a   : > { %12222 = vpow2.f32 %v1219_v7  ;;  %v1197_v35 = vpop.xlane.xlu1 %1196 }
 0x38b   : > { %v1211_v47 = vsub.f32 %v1179_v10, %v1197_v35 }
 0x38d   : > { %v13327_v55 = vpop.eup %12220  ;;  %v1223_v15 = vmul.f32 1.442695, %v1211_v47  ;;  %v1206_v48 = vpop.xlane.xlu0 %1205 }
 0x38e   : > { %v1234_v52 = vsel %vm16620_vm2, %v13327_v55, 0.0  ;;  %v1214_v10 = vsub.f32 %v1182_v12, %v1206_v48  ;;  %v13349_v12 = vpack.i.bf16 %v13212_v13, %v13207_v31 }
 0x38f   : > { %12224 = vpow2.f32 %v1223_v15  ;;  %1235 = vadd.xlane.f32.xlu2 %v1234_v52 }
 0x390   : > { %v13331_v43 = vpop.eup %12222  ;;  %v1229_v1 = vmul.f32 1.442695, %v1214_v10 }
 0x391   : > { %v1237_v19 = vsel %vm16620_vm2, %v13331_v43, 0.0 }
 0x392   : > { %1238 = vadd.xlane.f32.xlu1 %v1237_v19  ;;  %v1200_v27 = vpop.xlane.xlu1 %1199 }
 0x393   : > { %v1212_v11 = vsub.f32 %v1180_v14, %v1200_v27 }
 0x395   : > { %v13335_v57 = vpop.eup %12224  ;;  %v1225_v60 = vmul.f32 1.442695, %v1212_v11 }
 0x396   : > { %v1243_v39 = vsel %vm16620_vm2, %v13335_v57, 0.0 }
 0x397   : > { %12226 = vpow2.f32 %v1225_v60  ;;  %1244 = vadd.xlane.f32.xlu2 %v1243_v39 }
 0x398   : > { %12228 = vpow2.f32 %v1229_v1 }
 0x39a   : > { %v1203_v35 = vpop.xlane.xlu1 %1202 }
 0x39b   : > { %v1213_v52 = vsub.f32 %v13305_v40, %v1203_v35 }
 0x39d   : > { %v13339_v59 = vpop.eup %12226  ;;  %v1227_v19 = vmul.f32 1.442695, %v1213_v52 }
 0x39e   : > { %v1246_v63 = vsel %vm16620_vm2, %v13339_v59, 0.0  ;;  %v13343_v24 = vpop.eup %12228 }
 0x39f   : > { %1247 = vadd.xlane.f32.xlu0 %v1246_v63  ;;  %v1252_v14 = vsel %vm16620_vm2, %v13343_v24, 0.0 }
 0x3a7   : > { %1253 = vadd.xlane.f32.xlu0 %v1252_v14 }
 0x3ab   : > { %11911 = vrot.lane.b32.xlu1 %v13349_v12, %s12884_s19 }
 0x3af   : > { %11906 = vrot.lane.b32.xlu2 %v13355_v58, %s12884_s19 }
 0x3b2   : > { %v1574_v15 = vpop.permute.xlu1 %1573 }
 0x3b3   : > { %1629 = vrot.lane.b32.xlu1 %v13079_v41, %s12885_s20 }
 0x3b7   : > { %1517 = vrot.lane.b32.xlu2 %v13047_v25, %s12885_s20 }
 0x3bb   : > { %1657 = vrot.lane.b32.xlu1 %v13087_v45, %s12885_s20  ;;  %1683 = vrot.lane.b32.xlu0 %v13097_v50, %s12885_s20 }
 0x3bf   : > { %1515 = vrot.lane.b32.xlu2 %v13049_v26, %s12885_s20 }
 0x3c2   : > { %v1233_v32 = vpop.xlane.xlu2 %1232 }
 0x3c3   : > { %12230 = vrcp.f32 %v1233_v32  ;;  %2017 = vrot.lane.b32.xlu1 %v13039_v21, %s12886_s22 }
 0x3c4   : > { %12232 = vpow2.f32 %v1227_v19 }
 0x3c7   : > { %1545 = vrot.lane.b32.xlu2 %v13055_v29, %s12885_s20 }
 0x3c9   : > { %v12231_v7 = vpop.eup %12230 }
 0x3ca   : > { %v1263_v47 = vmul.f32 %v12231_v7, %v13315_v53  ;;  %v13386_v53 = vpop.permute.xlu1 %1571  ;;  %v13390_v48 = vpop.eup %12232 }
 0x3cb   : > { %11921 = vrot.lane.b32.xlu1 %v13252_v0, %s12885_s20 }
 0x3cc   : > { %11412 = vmatmul.msk.f32.vlgmr.msra.gmra.mxu3 %vm16620_vm2, %v1263_v47 }
 0x3cd   : > { %11420 = vmatpush.xpose.msk.msra.mxu3 %vm461_vm1, %v13278_v44  ;;  %v1249_v44 = vsel %vm16620_vm2, %v13390_v48, 0.0 }
 0x3cf   : > { %1543 = vrot.lane.b32.xlu2 %v13057_v30, %s12885_s20 }
 0x3d2   : > { %v1686_v27 = vpop.permute.xlu1 %1685 }
 0x3d7   : > { %1655 = vrot.lane.b32.xlu2 %v13089_v46, %s12885_s20 }
 0x3df   : > { %2015 = vrot.lane.b32.xlu2 %v13041_v22, %s12886_s22 }
 0x3e5   : > { %1250 = vadd.xlane.f32.xlu0 %v1249_v44 }
 0x3e7   : > { %2127 = vrot.lane.b32.xlu2 %v13073_v38, %s12886_s22 }
 0x3ed   : > { %v1242_v40 = vpop.xlane.xlu1 %1241 }
 0x3ee   : > { %12234 = vrcp.f32 %v1242_v40 }
 0x3ef   : > { %2101 = vrot.lane.b32.xlu2 %v13063_v33, %s12886_s22 }
 0x3f4   : > { %v12235_v11 = vpop.eup %12234 }
 0x3f5   : > { %v1266_v10 = vmul.f32 %v12235_v11, %v13321_v18 }
 0x3f7   : > { %2099 = vrot.lane.b32.xlu2 %v13065_v34, %s12886_s22  ;;  %11415 = vmatmul.msk.f32.vlgmr.msrb.gmra.mxu2 %vm16620_vm2, %v1266_v10 }
 0x3f8   : > { %11426 = vmatpush.xpose.msk.msrb.mxu2 %vm461_vm1, %v1574_v15 }
 0x3f9   : > { %1627 = vrot.lane.b32.xlu0 %v13081_v42, %s12885_s20 }
 0x401   : > { %11916 = vrot.lane.b32.xlu0 %v13235_v51, %s12885_s20 }
 0x402   : > { %v1236_v60 = vpop.xlane.xlu2 %1235 }
 0x403   : > { %12236 = vrcp.f32 %v1236_v60 }
 0x405   : > { %v1239_v39 = vpop.xlane.xlu1 %1238 }
 0x409   : > { %2129 = vrot.lane.b32.xlu0 %v13071_v37, %s12886_s22  ;;  %v12237_v1 = vpop.eup %12236 }
 0x40a   : > { %v1245_v18 = vpop.xlane.xlu2 %1244  ;;  %v1264_v52 = vmul.f32 %v12237_v1, %v13327_v55 }
 0x40b   : > { %12238 = vrcp.f32 %v1245_v18 }
 0x40c   : > { %12240 = vrcp.f32 %v1239_v39 }
 0x411   : > { %v12239_v63 = vpop.eup %12238  ;;  %11926 = vrot.lane.b32.xlu0 %v13355_v58, %s12885_s20 }
 0x412   : > { %v12241_v14 = vpop.eup %12240  ;;  %v1267_v32 = vmul.f32 %v12239_v63, %v13335_v57  ;;  %v11907_v7 = vpop.permute.xlu2 %11906 }
 0x413   : > { %v1248_v35 = vpop.xlane.xlu0 %1247  ;;  %v11909_v47 = vunpack.i.h.bf16 %v11907_v7  ;;  %v11908_v15 = vunpack.i.l.bf16 %v11907_v7  ;;  %v1265_v19 = vmul.f32 %v12241_v14, %v13331_v43 }
 0x414   : > { %11416 = vmatmul.msk.f32.vlgmr.msrb.gmra.mxu3 %vm16620_vm2, %v1267_v32  ;;  %12242 = vrcp.f32 %v1248_v35 }
 0x415   : > { %11428 = vmatpush.xpose.msk.msrb.mxu3 %vm461_vm1, %v13309_v3  ;;  %1320 = vmatpush.msrb.mxu0 %v11908_v15 }
 0x416   : > { %1347 = vmatpush.msrb.mxu1 %v11909_v47  ;;  %11413 = vmatmul.msk.f32.vlgmr.msrb.gmra.mxu0 %vm16620_vm2, %v1264_v52 }
 0x417   : > { %11414 = vmatmul.msk.f32.vlgmr.msrb.gmra.mxu1 %vm16620_vm2, %v1265_v19 }
 0x41a   : > { %v1518_v57 = vpop.permute.xlu2 %1517  ;;  %v12243_v40 = vpop.eup %12242 }
 0x41b   : > { %v1254_v44 = vpop.xlane.xlu0 %1253  ;;  %v1268_v10 = vmul.f32 %v12243_v40, %v13339_v59 }
 0x41c   : > { %12244 = vrcp.f32 %v1254_v44  ;;  %11421 = vmatmul.msk.f32.vlgmr.msra.gmra.mxu3 %vm461_vm1, %v13325_v20 }
 0x41d   : > { %v11912_v55 = vpop.permute.xlu1 %11911 }
 0x41e   : > { %v11914_v11 = vunpack.i.h.bf16 %v11912_v55  ;;  %v11913_v43 = vunpack.i.l.bf16 %v11912_v55 }
 0x420   : > { %1428 = vmatpush.msra.mxu0 %v11913_v43  ;;  %1455 = vmatpush.msra.mxu1 %v11914_v11 }
 0x421   : > { %11417 = vmatmul.msk.f32.vlgmr.msra.gmra.mxu0 %vm16620_vm2, %v1268_v10 }
 0x422   : > { %v12245_v3 = vpop.eup %12244  ;;  %11422 = vmatpush.xpose.msk.msrb.mxu0 %vm461_vm1, %v1518_v57  ;;  %v1516_v39 = vpop.permute.xlu2 %1515 }
 0x423   : > { %v1270_v60 = vmul.f32 %v12245_v3, %v13343_v24 }
 0x424   : > { %11429 = vmatmul.msk.f32.vlgmr.msrb.gmra.mxu3 %vm461_vm1, %v13363_v28 }
 0x425   : > { %11419 = vmatmul.msk.f32.vlgmr.msra.gmra.mxu2 %vm16620_vm2, %v1270_v60  ;;  %v1630_v20 = vpop.permute.xlu1 %1629 }
 0x426   : > { %11434 = vmatpush.xpose.msk.msra.mxu2 %vm461_vm1, %v1686_v27  ;;  %11430 = vmatpush.xpose.msk.msra.mxu0 %vm461_vm1, %v1630_v20 }
 0x429   : > { %11423 = vmatmul.msk.f32.vlgmr.msrb.gmra.mxu0 %vm461_vm1, %v1516_v39 }
 0x42a   : > { %v1546_v59 = vpop.permute.xlu2 %1545 }
 0x42b   : > { %11424 = vmatpush.xpose.msk.msrb.mxu1 %vm461_vm1, %v1546_v59 }
 0x42d   : > { %11427 = vmatmul.msk.f32.vlgmr.msrb.gmra.mxu2 %vm461_vm1, %v13386_v53  ;;  %v1658_v24 = vpop.permute.xlu1 %1657  ;;  %v1684_v18 = vpop.permute.xlu0 %1683 }
 0x432   : > { %v1544_v53 = vpop.permute.xlu2 %1543 }
 0x435   : > { %11435 = vmatmul.msk.f32.vlgmr.msra.gmra.mxu2 %vm461_vm1, %v1684_v18  ;;  %v13435_v1 = vpop.permute.xlu1 %2017 }
 0x43a   : > { %v1656_v47 = vpop.permute.xlu2 %1655 }
 0x43d   : > { %v11922_v28 = vpop.permute.xlu1 %11921 }
 0x43e   : > { %v11924_v63 = vunpack.i.h.bf16 %v11922_v28  ;;  %v11923_v27 = vunpack.i.l.bf16 %v11922_v28 }
 0x440   : > { %1906 = vmatpush.msrb.mxu2 %v11923_v27 }
 0x442   : > { %2010 = vmatpush.msra.mxu2 %v11924_v63 }
 0x44f   : > { %v13445_v55 = vpop.f32.mrf.mxu3 }
 0x458   : > { %v1251_v14 = vpop.xlane.xlu0 %1250 }
 0x459   : > { %12246 = vrcp.f32 %v1251_v14 }
 0x45f   : > { %v12247_v32 = vpop.eup %12246 }
 0x460   : > { %v1269_v7 = vmul.f32 %v12247_v32, %v13390_v48 }
 0x462   : > { %11418 = vmatmul.msk.f32.vlgmr.msra.gmra.mxu1 %vm16620_vm2, %v1269_v7 }
 0x463   : > { %11432 = vmatpush.xpose.msk.msra.mxu1 %vm461_vm1, %v1658_v24 }
 0x46a   : > { %11425 = vmatmul.msk.f32.vlgmr.msrb.gmra.mxu1 %vm461_vm1, %v1544_v53 }
 0x46b   : > { %v1628_v35 = vpop.permute.xlu0 %1627 }
 0x46c   : > { %11431 = vmatmul.msk.f32.vlgmr.msra.gmra.mxu0 %vm461_vm1, %v1628_v35 }
 0x472   : > { %11433 = vmatmul.msk.f32.vlgmr.msra.gmra.mxu1 %vm461_vm1, %v1656_v47 }
 0x473   : > { %v11917_v15 = vpop.permute.xlu0 %11916 }
 0x474   : > { %v11919_v52 = vunpack.i.h.bf16 %v11917_v15  ;;  %v11918_v19 = vunpack.i.l.bf16 %v11917_v15 }
 0x476   : > { %1828 = vmatpush.msra.mxu3 %v11918_v19 }
 0x478   : > { %1932 = vmatpush.msrb.mxu3 %v11919_v52 }
 0x47a   : > { %v13453_v3 = vpop.f32.mrf.mxu2 }
 0x47b   : > { %v13443_v57 = vpop.permute.xlu0 %2129  ;;  %16633 = vst [vmem:[#allocation18_spill] sm:$0xff] %v13453_v3 }
 0x483   : > { %v11927_v48 = vpop.permute.xlu0 %11926 }
 0x484   : > { %v11929_v44 = vunpack.i.h.bf16 %v11927_v48  ;;  %v11928_v40 = vunpack.i.l.bf16 %v11927_v48 }
 0x486   : > { %1854 = vmatpush.msrb.mxu0 %v11928_v40  ;;  %1880 = vmatpush.msrb.mxu1 %v11929_v44 }
 0x493   : > { %v13447_v11 = vpop.f32.mrf.mxu0 }
 0x494   : > { %v13465_v32 = vpop.f32.mrf.mxu1 }
 0x495   : > { %16635 = vst [vmem:[#allocation20_spill] sm:$0xff] %v13465_v32 }
 0x497   : > { %v13449_v43 = vpop.f32.mrf.mxu3 }
 0x498   : > { %16631 = vst [vmem:[#allocation16_spill] sm:$0xff] %v13449_v43 }
 0x49e   : > { %v13451_v10 = vpop.f32.mrf.mxu0 }
 0x49f   : > { %16632 = vst [vmem:[#allocation17_spill] sm:$0xff] %v13451_v10  ;;  %v1512_v60 = vpop.f32.mrf.mxu3 }
 0x4a0   : > { %v1711_v39 = vmul.f32 0.5, %v1512_v60 }
 0x4a2   : > { %v1719_v20 = vsel %vm16620_vm2, %v1711_v39, -inf }
 0x4a3   : > { %1720 = vmax.xlane.f32.xlu1 %v1719_v20 }
 0x4a6   : > { %v1540_v59 = vpop.f32.mrf.mxu0 }
 0x4a7   : > { %v1712_v24 = vmul.f32 0.5, %v1540_v59  ;;  %v1624_v48 = vpop.f32.mrf.mxu3 }
 0x4a8   : > { %v13456_v18 = vpop.f32.mrf.mxu2  ;;  %v1715_v40 = vmul.f32 0.5, %v1624_v48 }
 0x4a9   : > { %16634 = vst [vmem:[#allocation19_spill] sm:$0xff] %v13456_v18  ;;  %v1722_v28 = vsel %vm16620_vm2, %v1712_v24, -inf }
 0x4aa   : > { %1723 = vmax.xlane.f32.xlu2 %v1722_v28  ;;  %v1731_v28 = vsel %vm16620_vm2, %v1715_v40, -inf }
 0x4b0   : > { %v1596_v63 = vpop.f32.mrf.mxu2 }
 0x4b1   : > { %v13459_v27 = vmul.f32 0.5, %v1596_v63 }
 0x4b3   : > { %v1728_v14 = vsel %vm16620_vm2, %v13459_v27, -inf }
 0x4b4   : > { %1729 = vmax.xlane.f32.xlu0 %v1728_v14 }
 0x4b8   : > { %v1708_v59 = vpop.f32.mrf.mxu2 }
 0x4b9   : > { %v1718_v63 = vmul.f32 0.5, %v1708_v59 }
 0x4bb   : > { %v1740_v14 = vsel %vm16620_vm2, %v1718_v63, -inf }
 0x4c8   : > { %2211 = vrot.lane.b32.xlu0 %v13097_v50, %s12886_s22 }
 0x4df   : > { %v13467_v7 = vpop.f32.mrf.mxu1 }
 0x4e0   : > { %16636 = vst [vmem:[#allocation21_spill] sm:$0xff] %v13467_v7 }
 0x4e7   : > { %v1568_v53 = vpop.f32.mrf.mxu1 }
 0x4e8   : > { %v1713_v35 = vmul.f32 0.5, %v1568_v53  ;;  %v13474_v53 = vpop.permute.xlu2 %2015 }
 0x4e9   : > { %v1652_v47 = vpop.f32.mrf.mxu0 }
 0x4ea   : > { %v1716_v15 = vmul.f32 0.5, %v1652_v47  ;;  %v1725_v52 = vsel %vm16620_vm2, %v1713_v35, -inf }
 0x4eb   : > { %1726 = vmax.xlane.f32.xlu1 %v1725_v52 }
 0x4ec   : > { %v1734_v19 = vsel %vm16620_vm2, %v1716_v15, -inf }
 0x4ed   : > { %1735 = vmax.xlane.f32.xlu2 %v1734_v19 }
 0x4ef   : > { %v1680_v44 = vpop.f32.mrf.mxu1 }
 0x4f0   : > { %v1717_v60 = vmul.f32 0.5, %v1680_v44  ;;  %v13476_v47 = vpop.permute.xlu2 %2127 }
 0x4f2   : > { %v1737_v20 = vsel %vm16620_vm2, %v1717_v60, -inf }
 0x4f3   : > { %1738 = vmax.xlane.f32.xlu1 %v1737_v20 }
 0x4f5   : > { %1732 = vmax.xlane.f32.xlu2 %v1731_v28 }
 0x4f8   : > { %v13482_v19 = vpop.permute.xlu2 %2101 }
 0x4fb   : > { %1741 = vmax.xlane.f32.xlu1 %v1740_v14 }
 0x500   : > { %v13486_v59 = vpop.permute.xlu2 %2099 }
 0x50d   : > { %2043 = vrot.lane.b32.xlu2 %v13049_v26, %s12886_s22 }
 0x514   : > { %2213 = vrot.lane.b32.xlu1 %v13095_v49, %s12886_s22 }
 0x516   : > { %v1721_v52 = vpop.xlane.xlu1 %1720 }
 0x517   : > { %v1743_v48 = vsub.f32 %v1711_v39, %v1721_v52 }
 0x519   : > { %v1751_v44 = vmul.f32 1.442695, %v1743_v48 }
 0x51b   : > { %12248 = vpow2.f32 %v1751_v44 }
 0x51d   : > { %v1724_v14 = vpop.xlane.xlu2 %1723 }
 0x51e   : > { %v1744_v62 = vsub.f32 %v1712_v24, %v1724_v14 }
 0x520   : > { %v1753_v17 = vmul.f32 1.442695, %v1744_v62 }
 0x521   : > { %v13484_v20 = vpop.eup %12248 }
 0x522   : > { %v1767_v28 = vsel %vm16620_vm2, %v13484_v20, 0.0  ;;  %12250 = vpow2.f32 %v1753_v17 }
 0x523   : > { %1768 = vadd.xlane.f32.xlu0 %v1767_v28 }
 0x528   : > { %v13492_v6 = vpop.eup %12250 }
 0x529   : > { %v1770_v39 = vsel %vm16620_vm2, %v13492_v6, 0.0 }
 0x537   : > { %11931 = vrot.lane.b32.xlu0 %v13349_v12, %s12885_s20 }
 0x53e   : > { %1771 = vadd.xlane.f32.xlu1 %v1770_v39 }
 0x557   : > { %2045 = vrot.lane.b32.xlu1 %v13047_v25, %s12886_s22 }
 0x55e   : > { %v1727_v52 = vpop.xlane.xlu1 %1726 }
 0x55f   : > { %v1745_v48 = vsub.f32 %v1713_v35, %v1727_v52  ;;  %2157 = vrot.lane.b32.xlu1 %v13079_v41, %s12886_s22 }
 0x560   : > { %v1736_v24 = vpop.xlane.xlu2 %1735 }
 0x561   : > { %v1755_v62 = vmul.f32 1.442695, %v1745_v48  ;;  %v1748_v17 = vsub.f32 %v1716_v15, %v1736_v24 }
 0x563   : > { %12252 = vpow2.f32 %v1755_v62  ;;  %v1761_v44 = vmul.f32 1.442695, %v1748_v17 }
 0x565   : > { %12254 = vpow2.f32 %v1761_v44 }
 0x566   : > { %v1739_v28 = vpop.xlane.xlu1 %1738 }
 0x567   : > { %2155 = vrot.lane.b32.xlu1 %v13081_v42, %s12886_s22  ;;  %v1749_v61 = vsub.f32 %v1717_v60, %v1739_v28 }
 0x568   : > { %v1733_v14 = vpop.xlane.xlu2 %1732 }
 0x569   : > { %v13502_v39 = vpop.eup %12252  ;;  %v1747_v56 = vsub.f32 %v1715_v40, %v1733_v14  ;;  %v1763_v48 = vmul.f32 1.442695, %v1749_v61  ;;  %v1730_v40 = vpop.xlane.xlu0 %1729 }
 0x56a   : > { %v1773_v35 = vsel %vm16620_vm2, %v13502_v39, 0.0  ;;  %v1746_v44 = vsub.f32 %v13459_v27, %v1730_v40 }
 0x56b   : > { %v13506_v52 = vpop.eup %12254  ;;  %v1759_v4 = vmul.f32 1.442695, %v1747_v56  ;;  %1774 = vadd.xlane.f32.xlu2 %v1773_v35 }
 0x56c   : > { %v1782_v15 = vsel %vm16620_vm2, %v13506_v52, 0.0  ;;  %v1757_v28 = vmul.f32 1.442695, %v1746_v44 }
 0x56d   : > { %12256 = vpow2.f32 %v1759_v4  ;;  %1783 = vadd.xlane.f32.xlu0 %v1782_v15 }
 0x56e   : > { %v1742_v24 = vpop.xlane.xlu1 %1741  ;;  %12258 = vpow2.f32 %v1763_v48 }
 0x56f   : > { %v1750_v62 = vsub.f32 %v1718_v63, %v1742_v24  ;;  %2183 = vrot.lane.b32.xlu1 %v13089_v46, %s12886_s22 }
 0x571   : > { %v1765_v60 = vmul.f32 1.442695, %v1750_v62  ;;  %v13525_v15 = vpop.permute.xlu0 %2211 }
 0x573   : > { %v12257_v17 = vpop.eup %12256  ;;  %12260 = vpow2.f32 %v1765_v60 }
 0x574   : > { %v1779_v56 = vsel %vm16620_vm2, %v12257_v17, 0.0  ;;  %v12259_v61 = vpop.eup %12258  ;;  %12262 = vpow2.f32 %v1757_v28 }
 0x575   : > { %1780 = vadd.xlane.f32.xlu2 %v1779_v56  ;;  %v1785_v14 = vsel %vm16620_vm2, %v12259_v61, 0.0 }
 0x577   : > { %2545 = vrot.lane.b32.xlu1 %v13039_v21, %s12887_s23 }
 0x579   : > { %v13516_v4 = vpop.eup %12260 }
 0x57a   : > { %v1788_v63 = vsel %vm16620_vm2, %v13516_v4, 0.0  ;;  %v13521_v27 = vpop.eup %12262 }
 0x57b   : > { %1789 = vadd.xlane.f32.xlu0 %v1788_v63  ;;  %v1776_v35 = vsel %vm16620_vm2, %v13521_v27, 0.0 }
 0x57d   : > { %1786 = vadd.xlane.f32.xlu2 %v1785_v14  ;;  %v2044_v14 = vpop.permute.xlu2 %2043 }
 0x585   : > { %1777 = vadd.xlane.f32.xlu2 %v1776_v35 }
 0x586   : > { %v2214_v40 = vpop.permute.xlu1 %2213 }
 0x58f   : > { %2073 = vrot.lane.b32.xlu0 %v13055_v29, %s12886_s22 }
 0x596   : > { %v1769_v48 = vpop.xlane.xlu0 %1768 }
 0x597   : > { %12264 = vrcp.f32 %v1769_v48  ;;  %2071 = vrot.lane.b32.xlu0 %v13057_v30, %s12886_s22 }
 0x59d   : > { %v12265_v24 = vpop.eup %12264  ;;  %2543 = vrot.lane.b32.xlu2 %v13041_v22, %s12887_s23 }
 0x59e   : > { %v1799_v62 = vmul.f32 %v12265_v24, %v13484_v20 }
 0x59f   : > { %2185 = vrot.lane.b32.xlu0 %v13087_v45, %s12886_s22 }
 0x5a0   : > { %11436 = vmatmul.msk.f32.vlgmr.msra.gmra.mxu3 %vm16620_vm2, %v1799_v62 }
 0x5a1   : > { %11444 = vmatpush.xpose.msk.msra.mxu3 %vm461_vm1, %v13435_v1 }
 0x5a7   : > { %11936 = vrot.lane.b32.xlu0 %v13235_v51, %s12886_s22 }
 0x5a9   : > { %v11932_v60 = vpop.permute.xlu0 %11931 }
 0x5aa   : > { %v11934_v44 = vunpack.i.h.bf16 %v11932_v60  ;;  %v11933_v56 = vunpack.i.l.bf16 %v11932_v60 }
 0x5ac   : > { %1958 = vmatpush.msra.mxu0 %v11933_v56  ;;  %1984 = vmatpush.msra.mxu1 %v11934_v44 }
 0x5af   : > { %2657 = vrot.lane.b32.xlu0 %v13071_v37, %s12887_s23 }
 0x5b1   : > { %v1772_v20 = vpop.xlane.xlu1 %1771 }
 0x5b2   : > { %12266 = vrcp.f32 %v1772_v20 }
 0x5b7   : > { %11941 = vrot.lane.b32.xlu0 %v13252_v0, %s12886_s22 }
 0x5b8   : > { %v12267_v28 = vpop.eup %12266 }
 0x5b9   : > { %v1800_v1 = vmul.f32 %v12267_v28, %v13492_v6 }
 0x5bb   : > { %11437 = vmatmul.msk.f32.vlgmr.msrb.gmra.mxu0 %vm16620_vm2, %v1800_v1 }
 0x5c9   : > { %v2046_v63 = vpop.permute.xlu1 %2045 }
 0x5ca   : > { %11446 = vmatpush.xpose.msk.msrb.mxu0 %vm461_vm1, %v2046_v63 }
 0x5d1   : > { %v2158_v6 = vpop.permute.xlu1 %2157 }
 0x5de   : > { %v1775_v35 = vpop.xlane.xlu2 %1774 }
 0x5df   : > { %12268 = vrcp.f32 %v1775_v35  ;;  %v2156_v35 = vpop.permute.xlu1 %2155 }
 0x5e0   : > { %v1784_v48 = vpop.xlane.xlu0 %1783 }
 0x5e1   : > { %12270 = vrcp.f32 %v1784_v48 }
 0x5e5   : > { %v12269_v24 = vpop.eup %12268 }
 0x5e6   : > { %v1801_v62 = vmul.f32 %v12269_v24, %v13502_v39 }
 0x5e7   : > { %v12271_v60 = vpop.eup %12270 }
 0x5e8   : > { %v1804_v44 = vmul.f32 %v12271_v60, %v13506_v52  ;;  %11438 = vmatmul.msk.f32.vlgmr.msrb.gmra.mxu1 %vm16620_vm2, %v1801_v62  ;;  %v1781_v0 = vpop.xlane.xlu2 %1780 }
 0x5e9   : > { %12272 = vrcp.f32 %v1781_v0 }
 0x5ea   : > { %11441 = vmatmul.msk.f32.vlgmr.msra.gmra.mxu0 %vm16620_vm2, %v1804_v44 }
 0x5eb   : > { %11454 = vmatpush.xpose.msk.msra.mxu0 %vm461_vm1, %v2158_v6 }
 0x5ee   : > { %v1790_v63 = vpop.xlane.xlu0 %1789 }
 0x5ef   : > { %v12273_v56 = vpop.eup %12272 }
 0x5f0   : > { %v1803_v20 = vmul.f32 %v12273_v56, %v12257_v17  ;;  %v1787_v28 = vpop.xlane.xlu2 %1786 }
 0x5f1   : > { %12274 = vrcp.f32 %v1787_v28 }
 0x5f2   : > { %11440 = vmatmul.msk.f32.vlgmr.msrb.gmra.mxu3 %vm16620_vm2, %v1803_v20  ;;  %11447 = vmatmul.msk.f32.vlgmr.msrb.gmra.mxu0 %vm461_vm1, %v2044_v14 }
 0x5f3   : > { %11452 = vmatpush.xpose.msk.msrb.mxu3 %vm461_vm1, %v13443_v57 }
 0x5f7   : > { %v12275_v39 = vpop.eup %12274 }
 0x5f8   : > { %v1805_v52 = vmul.f32 %v12275_v39, %v12259_v61  ;;  %v1778_v1 = vpop.xlane.xlu2 %1777 }
 0x5f9   : > { %12276 = vrcp.f32 %v1778_v1 }
 0x5fa   : > { %11442 = vmatmul.msk.f32.vlgmr.msra.gmra.mxu1 %vm16620_vm2, %v1805_v52  ;;  %11445 = vmatmul.msk.f32.vlgmr.msra.gmra.mxu3 %vm461_vm1, %v13474_v53  ;;  %12278 = vrcp.f32 %v1790_v63 }
 0x5fb   : > { %11455 = vmatmul.msk.f32.vlgmr.msra.gmra.mxu0 %vm461_vm1, %v2156_v35 }
 0x5ff   : > { %v12277_v17 = vpop.eup %12276 }
 0x600   : > { %v1802_v14 = vmul.f32 %v12277_v17, %v13521_v27  ;;  %v12279_v57 = vpop.eup %12278 }
 0x601   : > { %v2074_v48 = vpop.permute.xlu0 %2073  ;;  %v1806_v53 = vmul.f32 %v12279_v57, %v13516_v4 }
 0x602   : > { %11439 = vmatmul.msk.f32.vlgmr.msrb.gmra.mxu2 %vm16620_vm2, %v1802_v14  ;;  %11448 = vmatpush.xpose.msk.msrb.mxu1 %vm461_vm1, %v2074_v48 }
 0x603   : > { %11450 = vmatpush.xpose.msk.msrb.mxu2 %vm461_vm1, %v13482_v19  ;;  %11453 = vmatmul.msk.f32.vlgmr.msrb.gmra.mxu3 %vm461_vm1, %v13476_v47  ;;  %v2184_v19 = vpop.permute.xlu1 %2183 }
 0x609   : > { %v2072_v61 = vpop.permute.xlu0 %2071 }
 0x60a   : > { %11443 = vmatmul.msk.f32.vlgmr.msra.gmra.mxu2 %vm16620_vm2, %v1806_v53  ;;  %11449 = vmatmul.msk.f32.vlgmr.msrb.gmra.mxu1 %vm461_vm1, %v2072_v61 }
 0x60b   : > { %11458 = vmatpush.xpose.msk.msra.mxu2 %vm461_vm1, %v2214_v40 }
 0x611   : > { %v2186_v27 = vpop.permute.xlu0 %2185 }
 0x612   : > { %11451 = vmatmul.msk.f32.vlgmr.msrb.gmra.mxu2 %vm461_vm1, %v13486_v59  ;;  %11456 = vmatpush.xpose.msk.msra.mxu1 %vm461_vm1, %v2186_v27 }
 0x615   : > { %11457 = vmatmul.msk.f32.vlgmr.msra.gmra.mxu1 %vm461_vm1, %v2184_v19 }
 0x619   : > { %v11937_v47 = vpop.permute.xlu0 %11936 }
 0x61a   : > { %v11939_v24 = vunpack.i.h.bf16 %v11937_v47  ;;  %v11938_v62 = vunpack.i.l.bf16 %v11937_v47  ;;  %11459 = vmatmul.msk.f32.vlgmr.msra.gmra.mxu2 %vm461_vm1, %v13525_v15 }
 0x61c   : > { %2356 = vmatpush.msra.mxu3 %v11938_v62 }
 0x61e   : > { %2460 = vmatpush.msrb.mxu3 %v11939_v24 }
 0x621   : > { %v13578_v4 = vpop.permute.xlu0 %2657 }
 0x623   : > { %v13584_v6 = vpop.f32.mrf.mxu3 }
 0x629   : > { %v11942_v40 = vpop.permute.xlu0 %11941 }
 0x62a   : > { %v11944_v60 = vunpack.i.h.bf16 %v11942_v40  ;;  %v11943_v44 = vunpack.i.l.bf16 %v11942_v40 }
 0x62c   : > { %2434 = vmatpush.msrb.mxu2 %v11943_v44 }
 0x62e   : > { %2538 = vmatpush.msra.mxu2 %v11944_v60 }
 0x638   : > { %v13580_v59 = vpop.f32.mrf.mxu0 }
 0x665   : > { %v13589_v39 = vpop.f32.mrf.mxu1 }
 0x667   : > { %v13582_v0 = vpop.f32.mrf.mxu0 }
 0x668   : > { %16637 = vst [vmem:[#allocation22_spill] sm:$0xff] %v13582_v0 }
 0x66f   : > { %v2068_v56 = vpop.f32.mrf.mxu0 }
 0x670   : > { %v2240_v20 = vmul.f32 0.5, %v2068_v56 }
 0x672   : > { %v2250_v28 = vsel %vm16620_vm2, %v2240_v20, -inf }
 0x673   : > { %2251 = vmax.xlane.f32.xlu0 %v2250_v28 }
 0x675   : > { %v13587_v15 = vpop.f32.mrf.mxu3 }
 0x676   : > { %16638 = vst [vmem:[#allocation23_spill] sm:$0xff] %v13587_v15 }
 0x677   : > { %v13592_v17 = vpop.f32.mrf.mxu1 }
 0x678   : > { %v2180_v52 = vpop.f32.mrf.mxu0  ;;  %16639 = vst [vmem:[#allocation24_spill] sm:$0xff] %v13592_v17 }
 0x679   : > { %v2244_v1 = vmul.f32 0.5, %v2180_v52 }
 0x67b   : > { %v2262_v63 = vsel %vm16620_vm2, %v2244_v1, -inf }
 0x67c   : > { %2263 = vmax.xlane.f32.xlu2 %v2262_v63 }
 0x67d   : > { %v2040_v35 = vpop.f32.mrf.mxu3 }
 0x67e   : > { %v2239_v14 = vmul.f32 0.5, %v2040_v35 }
 0x680   : > { %v2247_v48 = vsel %vm16620_vm2, %v2239_v14, -inf }
 0x684   : > { %2248 = vmax.xlane.f32.xlu2 %v2247_v48 }
 0x685   : > { %v13605_v60 = vpop.f32.mrf.mxu2 }
 0x686   : > { %v2152_v57 = vpop.f32.mrf.mxu3  ;;  %16640 = vst [vmem:[#allocation25_spill] sm:$0xff] %v13605_v60 }
 0x687   : > { %v13595_v53 = vmul.f32 0.5, %v2152_v57  ;;  %v2096_v61 = vpop.f32.mrf.mxu1 }
 0x688   : > { %v2241_v27 = vmul.f32 0.5, %v2096_v61  ;;  %v13619_v61 = vpop.permute.xlu2 %2543 }
 0x689   : > { %v2259_v19 = vsel %vm16620_vm2, %v13595_v53, -inf }
 0x68a   : > { %2260 = vmax.xlane.f32.xlu0 %v2259_v19  ;;  %v2253_v47 = vsel %vm16620_vm2, %v2241_v27, -inf }
 0x68b   : > { %2254 = vmax.xlane.f32.xlu1 %v2253_v47 }
 0x68d   : > { %v13607_v44 = vpop.f32.mrf.mxu2 }
 0x68e   : > { %16641 = vst [vmem:[#allocation26_spill] sm:$0xff] %v13607_v44 }
 0x692   : > { %v2208_v24 = vpop.f32.mrf.mxu1 }
 0x693   : > { %v2245_v62 = vmul.f32 0.5, %v2208_v24 }
 0x695   : > { %v2265_v40 = vsel %vm16620_vm2, %v2245_v62, -inf  ;;  %v2124_v56 = vpop.f32.mrf.mxu2 }
 0x696   : > { %2266 = vmax.xlane.f32.xlu1 %v2265_v40  ;;  %v13615_v35 = vmul.f32 0.5, %v2124_v56  ;;  %v13625_v56 = vpop.permute.xlu1 %2545 }
 0x698   : > { %v2256_v48 = vsel %vm16620_vm2, %v13615_v35, -inf }
 0x69c   : > { %2629 = vrot.lane.b32.xlu2 %v13063_v33, %s12887_s23 }
 0x69d   : > { %v2236_v28 = vpop.f32.mrf.mxu2 }
 0x69e   : > { %2655 = vrot.lane.b32.xlu0 %v13073_v38, %s12887_s23  ;;  %v13611_v52 = vmul.f32 0.5, %v2236_v28 }
 0x6a0   : > { %v2268_v63 = vsel %vm16620_vm2, %v13611_v52, -inf }
 0x6af   : > { %11946 = vrot.lane.b32.xlu1 %v13355_v58, %s12886_s22 }
 0x6c5   : > { %2269 = vmax.xlane.f32.xlu2 %v2268_v63 }
 0x6d9   : > { %2257 = vmax.xlane.f32.xlu1 %v2256_v48 }
 0x6e6   : > { %v2252_v57 = vpop.xlane.xlu0 %2251 }
 0x6e7   : > { %v2272_v19 = vsub.f32 %v2240_v20, %v2252_v57 }
 0x6e9   : > { %v2281_v47 = vmul.f32 1.442695, %v2272_v19 }
 0x6eb   : > { %12280 = vpow2.f32 %v2281_v47 }
 0x6ef   : > { %v2264_v58 = vpop.xlane.xlu2 %2263 }
 0x6f0   : > { %v2276_v24 = vsub.f32 %v2244_v1, %v2264_v58 }
 0x6f1   : > { %v13621_v40 = vpop.eup %12280 }
 0x6f2   : > { %v2289_v28 = vmul.f32 1.442695, %v2276_v24  ;;  %v2298_v63 = vsel %vm16620_vm2, %v13621_v40, 0.0 }
 0x6f3   : > { %2299 = vadd.xlane.f32.xlu2 %v2298_v63 }
 0x6f4   : > { %12282 = vpow2.f32 %v2289_v28 }
 0x6f7   : > { %v2249_v20 = vpop.xlane.xlu2 %2248 }
 0x6f8   : > { %v2271_v1 = vsub.f32 %v2239_v14, %v2249_v20 }
 0x6fa   : > { %v13627_v16 = vpop.eup %12282  ;;  %v2279_v58 = vmul.f32 1.442695, %v2271_v1 }
 0x6fb   : > { %v2310_v48 = vsel %vm16620_vm2, %v13627_v16, 0.0 }
 0x6fc   : > { %2311 = vadd.xlane.f32.xlu1 %v2310_v48 }
 0x6fe   : > { %v2255_v57 = vpop.xlane.xlu1 %2254 }
 0x6ff   : > { %v2273_v19 = vsub.f32 %v2241_v27, %v2255_v57 }
 0x701   : > { %v2283_v47 = vmul.f32 1.442695, %v2273_v19  ;;  %v2261_v19 = vpop.xlane.xlu0 %2260 }
 0x702   : > { %v2275_v1 = vsub.f32 %v13595_v53, %v2261_v19 }
 0x703   : > { %12284 = vpow2.f32 %v2283_v47 }
 0x704   : > { %12286 = vpow2.f32 %v2279_v58  ;;  %v2287_v47 = vmul.f32 1.442695, %v2275_v1  ;;  %v13656_v58 = vpack.i.bf16 %v13181_v5, %v13189_v23 }
 0x709   : > { %v13631_v24 = vpop.eup %12284  ;;  %v2267_v63 = vpop.xlane.xlu1 %2266 }
 0x70a   : > { %v2277_v28 = vsub.f32 %v2245_v62, %v2267_v63  ;;  %v2301_v54 = vsel %vm16620_vm2, %v13631_v24, 0.0  ;;  %v13637_v44 = vpop.eup %12286 }
 0x70b   : > { %2302 = vadd.xlane.f32.xlu0 %v2301_v54  ;;  %11951 = vrot.lane.b32.xlu2 %v13349_v12, %s12886_s22  ;;  %v2295_v14 = vsel %vm16620_vm2, %v13637_v44, 0.0 }
 0x70c   : > { %v2291_v48 = vmul.f32 1.442695, %v2277_v28  ;;  %v13668_v28 = vpop.permute.xlu2 %2629 }
 0x70e   : > { %12288 = vpow2.f32 %v2291_v48 }
 0x70f   : > { %12290 = vpow2.f32 %v2287_v47 }
 0x710   : > { %v2656_v7 = vpop.permute.xlu0 %2655 }
 0x713   : > { %2739 = vrot.lane.b32.xlu2 %v13097_v50, %s12887_s23  ;;  %2296 = vadd.xlane.f32.xlu0 %v2295_v14 }
 0x714   : > { %v13643_v27 = vpop.eup %12288 }
 0x715   : > { %v2313_v62 = vsel %vm16620_vm2, %v13643_v27, 0.0  ;;  %v13662_v53 = vpop.eup %12290 }
 0x716   : > { %2314 = vadd.xlane.f32.xlu1 %v2313_v62  ;;  %v2307_v63 = vsel %vm16620_vm2, %v13662_v53, 0.0 }
 0x721   : > { %v11947_v54 = vpop.permute.xlu1 %11946 }
 0x722   : > { %v11949_v20 = vunpack.i.h.bf16 %v11947_v54  ;;  %v11948_v57 = vunpack.i.l.bf16 %v11947_v54 }
 0x724   : > { %2382 = vmatpush.msrb.mxu0 %v11948_v57  ;;  %2408 = vmatpush.msrb.mxu1 %v11949_v20 }
 0x727   : > { %2627 = vrot.lane.b32.xlu0 %v13065_v34, %s12887_s23 }
 0x72f   : > { %3071 = vrot.lane.b32.xlu1 %v13041_v22, %s12888_s24  ;;  %2741 = vrot.lane.b32.xlu0 %v13095_v49, %s12887_s23 }
 0x737   : > { %11961 = vrot.lane.b32.xlu1 %v13656_v58, %s12887_s23  ;;  %2573 = vrot.lane.b32.xlu0 %v13047_v25, %s12887_s23 }
 0x738   : > { %v2270_v48 = vpop.xlane.xlu2 %2269 }
 0x739   : > { %v2278_v14 = vsub.f32 %v13611_v52, %v2270_v48 }
 0x73b   : > { %v2293_v62 = vmul.f32 1.442695, %v2278_v14 }
 0x73c   : > { %2308 = vadd.xlane.f32.xlu2 %v2307_v63 }
 0x73d   : > { %12292 = vpow2.f32 %v2293_v62 }
 0x73f   : > { %2601 = vrot.lane.b32.xlu0 %v13055_v29, %s12887_s23 }
 0x743   : > { %v13679_v54 = vpop.eup %12292 }
 0x744   : > { %v2316_v20 = vsel %vm16620_vm2, %v13679_v54, 0.0 }
 0x747   : > { %2599 = vrot.lane.b32.xlu0 %v13057_v30, %s12887_s23 }
 0x74c   : > { %v2258_v19 = vpop.xlane.xlu1 %2257 }
 0x74d   : > { %v2274_v52 = vsub.f32 %v13615_v35, %v2258_v19 }
 0x74f   : > { %2713 = vrot.lane.b32.xlu0 %v13087_v45, %s12887_s23  ;;  %v2285_v48 = vmul.f32 1.442695, %v2274_v52 }
 0x754   : > { %2571 = vrot.lane.b32.xlu2 %v13049_v26, %s12887_s23 }
 0x757   : > { %3073 = vrot.lane.b32.xlu0 %v13039_v21, %s12888_s24 }
 0x761   : > { %2317 = vadd.xlane.f32.xlu1 %v2316_v20 }
 0x766   : > { %v2300_v57 = vpop.xlane.xlu2 %2299 }
 0x767   : > { %12294 = vrcp.f32 %v2300_v57 }
 0x76d   : > { %v12295_v1 = vpop.eup %12294 }
 0x76e   : > { %v2328_v47 = vmul.f32 %v12295_v1, %v13621_v40  ;;  %v11952_v63 = vpop.permute.xlu2 %11951 }
 0x76f   : > { %v2312_v14 = vpop.xlane.xlu1 %2311  ;;  %v11954_v62 = vunpack.i.h.bf16 %v11952_v63  ;;  %v11953_v18 = vunpack.i.l.bf16 %v11952_v63 }
 0x770   : > { %12296 = vrcp.f32 %v2312_v14  ;;  %11461 = vmatmul.msk.f32.vlgmr.msrb.gmra.mxu0 %vm16620_vm2, %v2328_v47 }
 0x771   : > { %2486 = vmatpush.msra.mxu0 %v11953_v18  ;;  %2512 = vmatpush.msra.mxu1 %v11954_v62  ;;  %12298 = vpow2.f32 %v2285_v48 }
 0x776   : > { %v12297_v20 = vpop.eup %12296 }
 0x777   : > { %v2332_v57 = vmul.f32 %v12297_v20, %v13627_v16  ;;  %v12299_v17 = vpop.eup %12298 }
 0x778   : > { %v2304_v35 = vsel %vm16620_vm2, %v12299_v17, 0.0 }
 0x779   : > { %11465 = vmatmul.msk.f32.vlgmr.msra.gmra.mxu0 %vm16620_vm2, %v2332_v57 }
 0x77a   : > { %3183 = vrot.lane.b32.xlu1 %v13073_v38, %s12888_s24 }
 0x77d   : > { %2305 = vadd.xlane.f32.xlu2 %v2304_v35 }
 0x77e   : > { %v2303_v40 = vpop.xlane.xlu0 %2302 }
 0x77f   : > { %12300 = vrcp.f32 %v2303_v40 }
 0x785   : > { %v12301_v19 = vpop.eup %12300 }
 0x786   : > { %v2329_v18 = vmul.f32 %v12301_v19, %v13631_v24  ;;  %v2297_v52 = vpop.xlane.xlu0 %2296  ;;  %v13719_v19 = vpack.i.bf16 %v13184_v8, %v13219_v36 }
 0x787   : > { %12302 = vrcp.f32 %v2297_v52 }
 0x788   : > { %11462 = vmatmul.msk.f32.vlgmr.msrb.gmra.mxu1 %vm16620_vm2, %v2329_v18 }
 0x789   : > { %v2315_v1 = vpop.xlane.xlu1 %2314 }
 0x78a   : > { %12304 = vrcp.f32 %v2315_v1 }
 0x78d   : > { %v12303_v16 = vpop.eup %12302 }
 0x78e   : > { %v2327_v47 = vmul.f32 %v12303_v16, %v13637_v44  ;;  %v2740_v44 = vpop.permute.xlu2 %2739 }
 0x790   : > { %v12305_v63 = vpop.eup %12304  ;;  %11460 = vmatmul.msk.f32.vlgmr.msra.gmra.mxu3 %vm16620_vm2, %v2327_v47 }
 0x791   : > { %v2333_v48 = vmul.f32 %v12305_v63, %v13643_v27  ;;  %11468 = vmatpush.xpose.msk.msra.mxu3 %vm461_vm1, %v13625_v56 }
 0x793   : > { %11466 = vmatmul.msk.f32.vlgmr.msra.gmra.mxu1 %vm16620_vm2, %v2333_v48 }
 0x795   : > { %2685 = vrot.lane.b32.xlu2 %v13079_v41, %s12887_s23 }
 0x799   : > { %v2628_v24 = vpop.permute.xlu0 %2627 }
 0x79d   : > { %2683 = vrot.lane.b32.xlu2 %v13081_v42, %s12887_s23 }
 0x7a1   : > { %v2742_v14 = vpop.permute.xlu0 %2741 }
 0x7a5   : > { %2711 = vrot.lane.b32.xlu2 %v13089_v46, %s12887_s23 }
 0x7a9   : > { %v2574_v62 = vpop.permute.xlu0 %2573 }
 0x7aa   : > { %11470 = vmatpush.xpose.msk.msrb.mxu0 %vm461_vm1, %v2574_v62 }
 0x7ad   : > { %11956 = vrot.lane.b32.xlu2 %v13235_v51, %s12887_s23 }
 0x7af   : > { %v2309_v56 = vpop.xlane.xlu2 %2308 }
 0x7b0   : > { %12306 = vrcp.f32 %v2309_v56 }
 0x7b1   : > { %v2602_v27 = vpop.permute.xlu0 %2601 }
 0x7b2   : > { %11472 = vmatpush.xpose.msk.msrb.mxu1 %vm461_vm1, %v2602_v27 }
 0x7b5   : > { %3185 = vrot.lane.b32.xlu2 %v13071_v37, %s12888_s24 }
 0x7b6   : > { %v12307_v20 = vpop.eup %12306 }
 0x7b7   : > { %v2331_v57 = vmul.f32 %v12307_v20, %v13662_v53  ;;  %v2572_v35 = vpop.permute.xlu2 %2571  ;;  %v13727_v53 = vpop.permute.xlu1 %3071 }
 0x7b8   : > { %11471 = vmatmul.msk.f32.vlgmr.msrb.gmra.mxu0 %vm461_vm1, %v2572_v35 }
 0x7b9   : > { %v2600_v40 = vpop.permute.xlu0 %2599  ;;  %11464 = vmatmul.msk.f32.vlgmr.msrb.gmra.mxu3 %vm16620_vm2, %v2331_v57 }
 0x7ba   : > { %11476 = vmatpush.xpose.msk.msrb.mxu3 %vm461_vm1, %v13578_v4  ;;  %11473 = vmatmul.msk.f32.vlgmr.msrb.gmra.mxu1 %vm461_vm1, %v2600_v40 }
 0x7bd   : > { %11966 = vrot.lane.b32.xlu2 %v13719_v19, %s12887_s23 }
 0x7bf   : > { %v11962_v4 = vpop.permute.xlu1 %11961 }
 0x7c0   : > { %v11964_v47 = vunpack.i.h.bf16 %v11962_v4  ;;  %v11963_v56 = vunpack.i.l.bf16 %v11962_v4 }
 0x7c1   : > { %v2714_v18 = vpop.permute.xlu0 %2713  ;;  %11469 = vmatmul.msk.f32.vlgmr.msra.gmra.mxu3 %vm461_vm1, %v13619_v61 }
 0x7c2   : > { %11480 = vmatpush.xpose.msk.msra.mxu1 %vm461_vm1, %v2714_v18 }
 0x7c9   : > { %11477 = vmatmul.msk.f32.vlgmr.msrb.gmra.mxu3 %vm461_vm1, %v2656_v7 }
 0x7d4   : > { %v2318_v1 = vpop.xlane.xlu1 %2317 }
 0x7f0   : > { %v2306_v52 = vpop.xlane.xlu2 %2305 }
 0x7f1   : > { %12308 = vrcp.f32 %v2306_v52 }
 0x7f2   : > { %12310 = vrcp.f32 %v2318_v1 }
 0x7f7   : > { %v12309_v16 = vpop.eup %12308 }
 0x7f8   : > { %v2330_v63 = vmul.f32 %v12309_v16, %v12299_v17  ;;  %v2686_v48 = vpop.permute.xlu2 %2685  ;;  %v12311_v7 = vpop.eup %12310 }
 0x7f9   : > { %11478 = vmatpush.xpose.msk.msra.mxu0 %vm461_vm1, %v2686_v48  ;;  %v2334_v61 = vmul.f32 %v12311_v7, %v13679_v54 }
 0x7fa   : > { %11463 = vmatmul.msk.f32.vlgmr.msrb.gmra.mxu2 %vm16620_vm2, %v2330_v63 }
 0x7fb   : > { %11474 = vmatpush.xpose.msk.msrb.mxu2 %vm461_vm1, %v13668_v28 }
 0x7fd   : > { %2910 = vmatpush.msrb.mxu0 %v11964_v47 }
 0x800   : > { %v2684_v62 = vpop.permute.xlu2 %2683 }
 0x801   : > { %11479 = vmatmul.msk.f32.vlgmr.msra.gmra.mxu0 %vm461_vm1, %v2684_v62 }
 0x802   : > { %11467 = vmatmul.msk.f32.vlgmr.msra.gmra.mxu2 %vm16620_vm2, %v2334_v61 }
 0x803   : > { %11482 = vmatpush.xpose.msk.msra.mxu2 %vm461_vm1, %v2742_v14  ;;  %v13742_v14 = vpop.f32.mrf.mxu0 }
 0x805   : > { %v13744_v18 = vpop.f32.mrf.mxu1 }
 0x808   : > { %v2712_v17 = vpop.permute.xlu2 %2711 }
 0x809   : > { %11481 = vmatmul.msk.f32.vlgmr.msra.gmra.mxu1 %vm461_vm1, %v2712_v17 }
 0x80a   : > { %11475 = vmatmul.msk.f32.vlgmr.msrb.gmra.mxu2 %vm461_vm1, %v2628_v24 }
 0x80b   : > { %2962 = vmatpush.msrb.mxu2 %v11963_v56  ;;  %v13746_v24 = vpop.f32.mrf.mxu0 }
 0x80c   : > { %16642 = vst [vmem:[#allocation27_spill] sm:$0xff] %v13746_v24 }
 0x810   : > { %v11957_v27 = vpop.permute.xlu2 %11956  ;;  %v13748_v4 = vpop.f32.mrf.mxu1 }
 0x811   : > { %v11959_v20 = vunpack.i.h.bf16 %v11957_v27  ;;  %v11958_v28 = vunpack.i.l.bf16 %v11957_v27  ;;  %16643 = vst [vmem:[#allocation28_spill] sm:$0xff] %v13748_v4  ;;  %v13772_v4 = vpop.permute.xlu1 %3183 }
 0x812   : > { %11483 = vmatmul.msk.f32.vlgmr.msra.gmra.mxu2 %vm461_vm1, %v2740_v44 }
 0x813   : > { %2884 = vmatpush.msra.mxu3 %v11958_v28  ;;  %v13750_v52 = vpop.f32.mrf.mxu3 }
 0x815   : > { %2988 = vmatpush.msrb.mxu3 %v11959_v20 }
 0x818   : > { %v13740_v54 = vpop.permute.xlu2 %3185 }
 0x820   : > { %v11967_v57 = vpop.permute.xlu2 %11966 }
 0x821   : > { %v11969_v35 = vunpack.i.h.bf16 %v11967_v57  ;;  %v11968_v40 = vunpack.i.l.bf16 %v11967_v57 }
 0x823   : > { %2936 = vmatpush.msrb.mxu1 %v11969_v35  ;;  %3066 = vmatpush.msra.mxu2 %v11968_v40 }
 0x835   : > { %v2596_v44 = vpop.f32.mrf.mxu0 }
 0x836   : > { %v2768_v1 = vmul.f32 0.5, %v2596_v44 }
 0x837   : > { %v2624_v47 = vpop.f32.mrf.mxu1 }
 0x838   : > { %v2778_v16 = vsel %vm16620_vm2, %v2768_v1, -inf  ;;  %v2769_v63 = vmul.f32 0.5, %v2624_v47 }
 0x839   : > { %2779 = vmax.xlane.f32.xlu1 %v2778_v16 }
 0x83a   : > { %v2781_v7 = vsel %vm16620_vm2, %v2769_v63, -inf }
 0x83c   : > { %v13753_v48 = vpop.f32.mrf.mxu3 }
 0x83d   : > { %16644 = vst [vmem:[#allocation29_spill] sm:$0xff] %v13753_v48 }
 0x841   : > { %2782 = vmax.xlane.f32.xlu1 %v2781_v7 }
 0x844   : > { %v2568_v61 = vpop.f32.mrf.mxu3 }
 0x845   : > { %v2767_v35 = vmul.f32 0.5, %v2568_v61 }
 0x847   : > { %v2775_v44 = vsel %vm16620_vm2, %v2767_v35, -inf }
 0x84c   : > { %v2680_v62 = vpop.f32.mrf.mxu3 }
 0x84d   : > { %v2771_v17 = vmul.f32 0.5, %v2680_v62 }
 0x84f   : > { %v2787_v56 = vsel %vm16620_vm2, %v2771_v17, -inf }
 0x850   : > { %2788 = vmax.xlane.f32.xlu0 %v2787_v56 }
 0x87d   : > { %v13757_v27 = vpop.f32.mrf.mxu2 }
 0x87e   : > { %16645 = vst [vmem:[#allocation30_spill] sm:$0xff] %v13757_v27  ;;  %v2708_v20 = vpop.f32.mrf.mxu0 }
 0x87f   : > { %v2772_v28 = vmul.f32 0.5, %v2708_v20 }
 0x881   : > { %v2790_v57 = vsel %vm16620_vm2, %v2772_v28, -inf }
 0x882   : > { %2791 = vmax.xlane.f32.xlu1 %v2790_v57 }
 0x885   : > { %v13760_v40 = vpop.f32.mrf.mxu2 }
 0x886   : > { %16646 = vst [vmem:[#allocation31_spill] sm:$0xff] %v13760_v40  ;;  %v2736_v16 = vpop.f32.mrf.mxu1 }
 0x887   : > { %v13763_v47 = vmul.f32 0.5, %v2736_v16 }
 0x889   : > { %v2793_v20 = vsel %vm16620_vm2, %v13763_v47, -inf }
 0x88a   : > { %2776 = vmax.xlane.f32.xlu1 %v2775_v44 }
 0x88d   : > { %v2652_v7 = vpop.f32.mrf.mxu2 }
 0x88e   : > { %v13765_v62 = vmul.f32 0.5, %v2652_v7 }
 0x890   : > { %v2784_v56 = vsel %vm16620_vm2, %v13765_v62, -inf }
 0x891   : > { %2785 = vmax.xlane.f32.xlu2 %v2784_v56 }
 0x892   : > { %2794 = vmax.xlane.f32.xlu1 %v2793_v20 }
 0x895   : > { %v2764_v61 = vpop.f32.mrf.mxu2 }
 0x896   : > { %v2774_v57 = vmul.f32 0.5, %v2764_v61 }
 0x898   : > { %v2796_v40 = vsel %vm16620_vm2, %v2774_v57, -inf }
 0x89a   : > { %2797 = vmax.xlane.f32.xlu1 %v2796_v40 }
 0x8a9   : > { %11971 = vrot.lane.b32.xlu2 %v13349_v12, %s12887_s23 }
 0x8ac   : > { %v2780_v44 = vpop.xlane.xlu1 %2779 }
 0x8ad   : > { %v2800_v16 = vsub.f32 %v2768_v1, %v2780_v44 }
 0x8af   : > { %v2809_v7 = vmul.f32 1.442695, %v2800_v16 }
 0x8b1   : > { %12312 = vpow2.f32 %v2809_v7  ;;  %3101 = vrot.lane.b32.xlu2 %v13047_v25, %s12888_s24 }
 0x8b4   : > { %v2783_v56 = vpop.xlane.xlu1 %2782 }
 0x8b5   : > { %v2801_v10 = vsub.f32 %v2769_v63, %v2783_v56 }
 0x8b7   : > { %v12313_v20 = vpop.eup %12312  ;;  %v2811_v24 = vmul.f32 1.442695, %v2801_v10  ;;  %v13788_v10 = vpop.permute.xlu0 %3073 }
 0x8b8   : > { %v2826_v61 = vsel %vm16620_vm2, %v12313_v20, 0.0 }
 0x8b9   : > { %12314 = vpow2.f32 %v2811_v24  ;;  %3269 = vrot.lane.b32.xlu2 %v13095_v49, %s12888_s24  ;;  %2827 = vadd.xlane.f32.xlu0 %v2826_v61 }
 0x8bf   : > { %v12315_v40 = vpop.eup %12314 }
 0x8c0   : > { %v2829_v0 = vsel %vm16620_vm2, %v12315_v40, 0.0 }
 0x8c1   : > { %3099 = vrot.lane.b32.xlu2 %v13049_v26, %s12888_s24  ;;  %2830 = vadd.xlane.f32.xlu1 %v2829_v0 }
 0x8c3   : > { %v2789_v24 = vpop.xlane.xlu0 %2788 }
 0x8c4   : > { %v2803_v1 = vsub.f32 %v2771_v17, %v2789_v24 }
 0x8c6   : > { %v2815_v63 = vmul.f32 1.442695, %v2803_v1 }
 0x8c8   : > { %12316 = vpow2.f32 %v2815_v63 }
 0x8c9   : > { %3129 = vrot.lane.b32.xlu2 %v13055_v29, %s12888_s24 }
 0x8ce   : > { %v13790_v15 = vpop.eup %12316 }
 0x8cf   : > { %v2835_v17 = vsel %vm16620_vm2, %v13790_v15, 0.0 }
 0x8da   : > { %3155 = vrot.lane.b32.xlu1 %v13065_v34, %s12888_s24 }
 0x8f5   : > { %v2792_v44 = vpop.xlane.xlu1 %2791 }
 0x8f6   : > { %v2804_v16 = vsub.f32 %v2772_v28, %v2792_v44 }
 0x8f8   : > { %v2817_v7 = vmul.f32 1.442695, %v2804_v16 }
 0x8fa   : > { %12318 = vpow2.f32 %v2817_v7 }
 0x8fd   : > { %v2777_v56 = vpop.xlane.xlu1 %2776 }
 0x8fe   : > { %v2799_v61 = vsub.f32 %v2767_v35, %v2777_v56 }
 0x900   : > { %v13792_v0 = vpop.eup %12318  ;;  %v2807_v43 = vmul.f32 1.442695, %v2799_v61 }
 0x901   : > { %v2838_v48 = vsel %vm16620_vm2, %v13792_v0, 0.0 }
 0x902   : > { %12320 = vpow2.f32 %v2807_v43  ;;  %2839 = vadd.xlane.f32.xlu0 %v2838_v48 }
 0x904   : > { %v2786_v24 = vpop.xlane.xlu2 %2785  ;;  %2836 = vadd.xlane.f32.xlu1 %v2835_v17 }
 0x905   : > { %v2795_v28 = vpop.xlane.xlu1 %2794 }
 0x908   : > { %v13798_v1 = vpop.eup %12320 }
 0x909   : > { %v2823_v35 = vsel %vm16620_vm2, %v13798_v1, 0.0 }
 0x90a   : > { %2824 = vadd.xlane.f32.xlu0 %v2823_v35 }
 0x90c   : > { %v11972_v63 = vpop.permute.xlu2 %11971 }
 0x90d   : > { %v11974_v44 = vunpack.i.h.bf16 %v11972_v63  ;;  %v11973_v16 = vunpack.i.l.bf16 %v11972_v63  ;;  %v2798_v7 = vpop.xlane.xlu1 %2797 }
 0x90e   : > { %v2806_v56 = vsub.f32 %v2774_v57, %v2798_v7 }
 0x90f   : > { %3014 = vmatpush.msra.mxu0 %v11973_v16  ;;  %3040 = vmatpush.msra.mxu1 %v11974_v44 }
 0x910   : > { %v2821_v43 = vmul.f32 1.442695, %v2806_v56  ;;  %v2802_v56 = vsub.f32 %v13765_v62, %v2786_v24 }
 0x912   : > { %12322 = vpow2.f32 %v2821_v43  ;;  %v2805_v43 = vsub.f32 %v13763_v47, %v2795_v28 }
 0x914   : > { %v3102_v17 = vpop.permute.xlu2 %3101  ;;  %v2819_v27 = vmul.f32 1.442695, %v2805_v43 }
 0x918   : > { %v13802_v48 = vpop.eup %12322 }
 0x919   : > { %v2844_v61 = vsel %vm16620_vm2, %v13802_v48, 0.0 }
 0x91a   : > { %2845 = vadd.xlane.f32.xlu2 %v2844_v61  ;;  %v2813_v61 = vmul.f32 1.442695, %v2802_v56 }
 0x91c   : > { %v13810_v35 = vpop.permute.xlu2 %3269 }
 0x91d   : > { %3267 = vrot.lane.b32.xlu1 %v13097_v50, %s12888_s24 }
 0x91e   : > { %3157 = vrot.lane.b32.xlu0 %v13063_v33, %s12888_s24 }
 0x924   : > { %v3100_v44 = vpop.permute.xlu2 %3099 }
 0x92c   : > { %v2828_v57 = vpop.xlane.xlu0 %2827 }
 0x92d   : > { %12324 = vrcp.f32 %v2828_v57 }
 0x932   : > { %3127 = vrot.lane.b32.xlu2 %v13057_v30, %s12888_s24 }
 0x933   : > { %v12325_v63 = vpop.eup %12324 }
 0x934   : > { %v2856_v16 = vmul.f32 %v12325_v63, %v12313_v20  ;;  %v2831_v7 = vpop.xlane.xlu1 %2830  ;;  %v3130_v20 = vpop.permute.xlu2 %3129 }
 0x935   : > { %12326 = vrcp.f32 %v2831_v7 }
 0x936   : > { %11485 = vmatmul.msk.f32.vlgmr.msrb.gmra.mxu0 %vm16620_vm2, %v2856_v16  ;;  %12328 = vpow2.f32 %v2813_v61 }
 0x937   : > { %11494 = vmatpush.xpose.msk.msrb.mxu0 %vm461_vm1, %v3102_v17  ;;  %12330 = vpow2.f32 %v2819_v27 }
 0x93a   : > { %3239 = vrot.lane.b32.xlu2 %v13089_v46, %s12888_s24 }
 0x93b   : > { %v12327_v57 = vpop.eup %12326 }
 0x93c   : > { %v2857_v60 = vmul.f32 %v12327_v57, %v12315_v40  ;;  %v12329_v47 = vpop.eup %12328 }
 0x93d   : > { %v12331_v62 = vpop.eup %12330  ;;  %v2832_v24 = vsel %vm16620_vm2, %v12329_v47, 0.0 }
 0x93e   : > { %11486 = vmatmul.msk.f32.vlgmr.msrb.gmra.mxu1 %vm16620_vm2, %v2857_v60  ;;  %v2841_v28 = vsel %vm16620_vm2, %v12331_v62, 0.0 }
 0x93f   : > { %11496 = vmatpush.xpose.msk.msrb.mxu1 %vm461_vm1, %v3130_v20 }
 0x942   : > { %11976 = vrot.lane.b32.xlu2 %v13235_v51, %s12888_s24 }
 0x947   : > { %2833 = vadd.xlane.f32.xlu1 %v2832_v24 }
 0x948   : > { %2842 = vadd.xlane.f32.xlu0 %v2841_v28 }
 0x94a   : > { %3713 = vrot.lane.b32.xlu2 %v13071_v37, %s12889_s26 }
 0x952   : > { %11981 = vrot.lane.b32.xlu2 %v13656_v58, %s12888_s24  ;;  %v3156_v58 = vpop.permute.xlu1 %3155 }
 0x95a   : > { %11986 = vrot.lane.b32.xlu2 %v13719_v19, %s12888_s24 }
 0x95c   : > { %3211 = vrot.lane.b32.xlu0 %v13081_v42, %s12888_s24 }
 0x960   : > { %3213 = vrot.lane.b32.xlu1 %v13079_v41, %s12888_s24 }
 0x962   : > { %3683 = vrot.lane.b32.xlu2 %v13065_v34, %s12889_s26 }
 0x964   : > { %3599 = vrot.lane.b32.xlu0 %v13041_v22, %s12889_s26 }
 0x968   : > { %3241 = vrot.lane.b32.xlu1 %v13087_v45, %s12888_s24 }
 0x96c   : > { %11991 = vrot.lane.b32.xlu0 %v13349_v12, %s12888_s24 }
 0x970   : > { %3601 = vrot.lane.b32.xlu1 %v13039_v21, %s12889_s26 }
 0x974   : > { %3627 = vrot.lane.b32.xlu0 %v13049_v26, %s12889_s26 }
 0x975   : > { %v2840_v60 = vpop.xlane.xlu0 %2839 }
 0x976   : > { %12332 = vrcp.f32 %v2840_v60 }
 0x977   : > { %v2837_v12 = vpop.xlane.xlu1 %2836 }
 0x978   : > { %3711 = vrot.lane.b32.xlu1 %v13073_v38, %s12889_s26 }
 0x97c   : > { %v12333_v19 = vpop.eup %12332 }
 0x97d   : > { %v2860_v27 = vmul.f32 %v12333_v19, %v13792_v0  ;;  %v2825_v40 = vpop.xlane.xlu0 %2824 }
 0x97e   : > { %12334 = vrcp.f32 %v2825_v40 }
 0x97f   : > { %11489 = vmatmul.msk.f32.vlgmr.msra.gmra.mxu0 %vm16620_vm2, %v2860_v27  ;;  %12336 = vrcp.f32 %v2837_v12 }
 0x980   : > { %3685 = vrot.lane.b32.xlu1 %v13063_v33, %s12889_s26 }
 0x984   : > { %v12335_v17 = vpop.eup %12334 }
 0x985   : > { %v2855_v63 = vmul.f32 %v12335_v17, %v13798_v1  ;;  %v12337_v0 = vpop.eup %12336 }
 0x986   : > { %v2859_v16 = vmul.f32 %v12337_v0, %v13790_v15 }
 0x987   : > { %11484 = vmatmul.msk.f32.vlgmr.msra.gmra.mxu3 %vm16620_vm2, %v2855_v63  ;;  %11495 = vmatmul.msk.f32.vlgmr.msrb.gmra.mxu0 %vm461_vm1, %v3100_v44 }
 0x988   : > { %11492 = vmatpush.xpose.msk.msra.mxu3 %vm461_vm1, %v13788_v10  ;;  %3629 = vrot.lane.b32.xlu1 %v13047_v25, %s12889_s26 }
 0x98d   : > { %v2846_v7 = vpop.xlane.xlu2 %2845 }
 0x98f   : > { %11488 = vmatmul.msk.f32.vlgmr.msrb.gmra.mxu3 %vm16620_vm2, %v2859_v16  ;;  %v3268_v43 = vpop.permute.xlu1 %3267 }
 0x990   : > { %11500 = vmatpush.xpose.msk.msrb.mxu3 %vm461_vm1, %v13740_v54  ;;  %3797 = vrot.lane.b32.xlu1 %v13095_v49, %s12889_s26  ;;  %v3158_v61 = vpop.permute.xlu0 %3157 }
 0x995   : > { %v3128_v1 = vpop.permute.xlu2 %3127 }
 0x997   : > { %11493 = vmatmul.msk.f32.vlgmr.msra.gmra.mxu3 %vm461_vm1, %v13727_v53 }
 0x99d   : > { %v3240_v10 = vpop.permute.xlu2 %3239 }
 0x99f   : > { %11501 = vmatmul.msk.f32.vlgmr.msrb.gmra.mxu3 %vm461_vm1, %v13772_v4 }
 0x9a5   : > { %v11977_v44 = vpop.permute.xlu2 %11976 }
 0x9a6   : > { %v11979_v56 = vunpack.i.h.bf16 %v11977_v44  ;;  %v11978_v15 = vunpack.i.l.bf16 %v11977_v44 }
 0x9a8   : > { %3412 = vmatpush.msra.mxu3 %v11978_v15 }
 0x9aa   : > { %3516 = vmatpush.msrb.mxu3 %v11979_v56 }
 0x9ad   : > { %v13871_v53 = vpop.permute.xlu2 %3713 }
 0x9b5   : > { %v11982_v27 = vpop.permute.xlu2 %11981 }
 0x9b6   : > { %v11984_v40 = vunpack.i.h.bf16 %v11982_v27  ;;  %v11983_v12 = vunpack.i.l.bf16 %v11982_v27 }
 0x9ba   : > { %v2834_v57 = vpop.xlane.xlu1 %2833 }
 0x9bb   : > { %12338 = vrcp.f32 %v2834_v57  ;;  %v2843_v54 = vpop.xlane.xlu0 %2842  ;;  %v13894_v57 = vpop.f32.mrf.mxu1 }
 0x9bc   : > { %12340 = vrcp.f32 %v2843_v54  ;;  %16648 = vst [vmem:[#allocation33_spill] sm:$0xff] %v13894_v57 }
 0x9bd   : > { %12342 = vrcp.f32 %v2846_v7 }
 0x9c1   : > { %v12339_v20 = vpop.eup %12338 }
 0x9c2   : > { %v12341_v24 = vpop.eup %12340  ;;  %v2858_v28 = vmul.f32 %v12339_v20, %v12329_v47 }
 0x9c3   : > { %v2861_v60 = vmul.f32 %v12341_v24, %v12331_v62  ;;  %v12343_v4 = vpop.eup %12342 }
 0x9c4   : > { %11487 = vmatmul.msk.f32.vlgmr.msrb.gmra.mxu2 %vm16620_vm2, %v2858_v28  ;;  %v2862_v19 = vmul.f32 %v12343_v4, %v13802_v48  ;;  %v11987_v48 = vpop.permute.xlu2 %11986 }
 0x9c5   : > { %11498 = vmatpush.xpose.msk.msrb.mxu2 %vm461_vm1, %v3158_v61  ;;  %11490 = vmatmul.msk.f32.vlgmr.msra.gmra.mxu1 %vm16620_vm2, %v2861_v60  ;;  %v11989_v63 = vunpack.i.h.bf16 %v11987_v48 }
 0x9cc   : > { %11491 = vmatmul.msk.f32.vlgmr.msra.gmra.mxu2 %vm16620_vm2, %v2862_v19 }
 0x9cd   : > { %11506 = vmatpush.xpose.msk.msra.mxu2 %vm461_vm1, %v13810_v35  ;;  %11497 = vmatmul.msk.f32.vlgmr.msrb.gmra.mxu1 %vm461_vm1, %v3128_v1  ;;  %v11988_v35 = vunpack.i.l.bf16 %v11987_v48  ;;  %v13889_v1 = vpop.f32.mrf.mxu0 }
 0x9ce   : > { %v3212_v47 = vpop.permute.xlu0 %3211 }
 0x9d2   : > { %v3214_v62 = vpop.permute.xlu1 %3213 }
 0x9d3   : > { %11502 = vmatpush.xpose.msk.msra.mxu0 %vm461_vm1, %v3214_v62 }
 0x9d4   : > { %11499 = vmatmul.msk.f32.vlgmr.msrb.gmra.mxu2 %vm461_vm1, %v3156_v58 }
 0x9d5   : > { %3490 = vmatpush.msrb.mxu2 %v11983_v12 }
 0x9d6   : > { %v13883_v17 = vpop.permute.xlu0 %3599  ;;  %11503 = vmatmul.msk.f32.vlgmr.msra.gmra.mxu0 %vm461_vm1, %v3212_v47 }
 0x9d7   : > { %3438 = vmatpush.msrb.mxu0 %v11984_v40 }
 0x9da   : > { %v3242_v0 = vpop.permute.xlu1 %3241 }
 0x9db   : > { %11504 = vmatpush.xpose.msk.msra.mxu1 %vm461_vm1, %v3242_v0 }
 0x9dc   : > { %11507 = vmatmul.msk.f32.vlgmr.msra.gmra.mxu2 %vm461_vm1, %v3268_v43 }
 0x9dd   : > { %3594 = vmatpush.msra.mxu2 %v11988_v35 }
 0x9de   : > { %v11992_v16 = vpop.permute.xlu0 %11991  ;;  %11505 = vmatmul.msk.f32.vlgmr.msra.gmra.mxu1 %vm461_vm1, %v3240_v10 }
 0x9df   : > { %3464 = vmatpush.msrb.mxu1 %v11989_v63  ;;  %v11994_v58 = vunpack.i.h.bf16 %v11992_v16  ;;  %v11993_v7 = vunpack.i.l.bf16 %v11992_v16 }
 0x9e1   : > { %3542 = vmatpush.msra.mxu0 %v11993_v7  ;;  %3568 = vmatpush.msra.mxu1 %v11994_v58 }
 0x9e2   : > { %v13904_v28 = vpop.permute.xlu1 %3601 }
 0x9ea   : > { %v13909_v12 = vpop.permute.xlu1 %3711 }
 0x9fc   : > { %v13891_v44 = vpop.f32.mrf.mxu0 }
 0x9fd   : > { %16647 = vst [vmem:[#allocation32_spill] sm:$0xff] %v13891_v44 }
 0xa04   : > { %v3124_v56 = vpop.f32.mrf.mxu0 }
 0xa05   : > { %v3296_v15 = vmul.f32 0.5, %v3124_v56 }
 0xa07   : > { %v3306_v61 = vsel %vm16620_vm2, %v3296_v15, -inf }
 0xa08   : > { %3307 = vmax.xlane.f32.xlu1 %v3306_v61  ;;  %v13918_v61 = vpop.permute.xlu1 %3685 }
 0xa0a   : > { %v13896_v43 = vpop.f32.mrf.mxu3 }
 0xa12   : > { %v13900_v10 = vpop.f32.mrf.mxu3 }
 0xa13   : > { %16650 = vst [vmem:[#allocation35_spill] sm:$0xff] %v13900_v10 }
 0xa1a   : > { %v3096_v19 = vpop.f32.mrf.mxu3 }
 0xa1b   : > { %v3295_v47 = vmul.f32 0.5, %v3096_v19 }
 0xa1d   : > { %v3303_v48 = vsel %vm16620_vm2, %v3295_v47, -inf }
 0xa42   : > { %v13898_v54 = vpop.f32.mrf.mxu1 }
 0xa43   : > { %16649 = vst [vmem:[#allocation34_spill] sm:$0xff] %v13898_v54 }
 0xa47   : > { %v13902_v20 = vpop.f32.mrf.mxu2 }
 0xa48   : > { %16651 = vst [vmem:[#allocation36_spill] sm:$0xff] %v13902_v20  ;;  %v13934_v20 = vpop.permute.xlu2 %3683 }
 0xa4a   : > { %v3152_v24 = vpop.f32.mrf.mxu1 }
 0xa4b   : > { %v3297_v60 = vmul.f32 0.5, %v3152_v24  ;;  %v3208_v24 = vpop.f32.mrf.mxu3 }
 0xa4d   : > { %v3309_v4 = vsel %vm16620_vm2, %v3297_v60, -inf }
 0xa4e   : > { %3310 = vmax.xlane.f32.xlu1 %v3309_v4  ;;  %v3299_v4 = vmul.f32 0.5, %v3208_v24 }
 0xa4f   : > { %v13907_v27 = vpop.f32.mrf.mxu2 }
 0xa50   : > { %16652 = vst [vmem:[#allocation37_spill] sm:$0xff] %v13907_v27  ;;  %v3315_v19 = vsel %vm16620_vm2, %v3299_v4, -inf }
 0xa53   : > { %v3236_v40 = vpop.f32.mrf.mxu0 }
 0xa54   : > { %v3300_v62 = vmul.f32 0.5, %v3236_v40 }
 0xa56   : > { %3304 = vmax.xlane.f32.xlu1 %v3303_v48  ;;  %v3318_v63 = vsel %vm16620_vm2, %v3300_v62, -inf  ;;  %v13921_v48 = vpop.permute.xlu1 %3629 }
 0xa57   : > { %v3180_v0 = vpop.f32.mrf.mxu2  ;;  %3319 = vmax.xlane.f32.xlu0 %v3318_v63 }
 0xa58   : > { %v13913_v35 = vmul.f32 0.5, %v3180_v0 }
 0xa5a   : > { %v3312_v7 = vsel %vm16620_vm2, %v13913_v35, -inf }
 0xa5b   : > { %v3264_v16 = vpop.f32.mrf.mxu1 }
 0xa5c   : > { %v3301_v58 = vmul.f32 0.5, %v3264_v16 }
 0xa5e   : > { %v3321_v56 = vsel %vm16620_vm2, %v3301_v58, -inf  ;;  %v13927_v16 = vpop.permute.xlu1 %3797 }
 0xa5f   : > { %3313 = vmax.xlane.f32.xlu0 %v3312_v7  ;;  %3322 = vmax.xlane.f32.xlu2 %v3321_v56  ;;  %v3292_v40 = vpop.f32.mrf.mxu2 }
 0xa60   : > { %v13923_v63 = vmul.f32 0.5, %v3292_v40 }
 0xa62   : > { %v3324_v0 = vsel %vm16620_vm2, %v13923_v63, -inf }
 0xa67   : > { %3316 = vmax.xlane.f32.xlu2 %v3315_v19  ;;  %v13932_v19 = vpop.permute.xlu0 %3627 }
 0xa6f   : > { %3325 = vmax.xlane.f32.xlu2 %v3324_v0 }
 0xa7b   : > { %v3308_v27 = vpop.xlane.xlu1 %3307 }
 0xa7c   : > { %v3328_v54 = vsub.f32 %v3296_v15, %v3308_v27 }
 0xa7e   : > { %v3337_v44 = vmul.f32 1.442695, %v3328_v54 }
 0xa80   : > { %12344 = vpow2.f32 %v3337_v44 }
 0xa86   : > { %v12345_v7 = vpop.eup %12344 }
 0xa87   : > { %3657 = vrot.lane.b32.xlu2 %v13055_v29, %s12889_s26  ;;  %v3354_v56 = vsel %vm16620_vm2, %v12345_v7, 0.0 }
 0xa88   : > { %3355 = vadd.xlane.f32.xlu0 %v3354_v56 }
 0xac1   : > { %v3311_v24 = vpop.xlane.xlu1 %3310 }
 0xac2   : > { %v3329_v40 = vsub.f32 %v3297_v60, %v3311_v24 }
 0xac4   : > { %v3339_v10 = vmul.f32 1.442695, %v3329_v40 }
 0xac6   : > { %12346 = vpow2.f32 %v3339_v10 }
 0xac9   : > { %v3305_v0 = vpop.xlane.xlu1 %3304 }
 0xaca   : > { %v3327_v57 = vsub.f32 %v3295_v47, %v3305_v0  ;;  %v3320_v15 = vpop.xlane.xlu0 %3319 }
 0xacb   : > { %v3332_v54 = vsub.f32 %v3300_v62, %v3320_v15 }
 0xacc   : > { %v13936_v44 = vpop.eup %12346  ;;  %v3335_v27 = vmul.f32 1.442695, %v3327_v57 }
 0xacd   : > { %v3345_v3 = vmul.f32 1.442695, %v3332_v54  ;;  %v3357_v32 = vsel %vm16620_vm2, %v13936_v44, 0.0 }
 0xace   : > { %12348 = vpow2.f32 %v3335_v27  ;;  %3358 = vadd.xlane.f32.xlu2 %v3357_v32 }
 0xacf   : > { %12350 = vpow2.f32 %v3345_v3 }
 0xad2   : > { %v3323_v56 = vpop.xlane.xlu2 %3322 }
 0xad3   : > { %v3333_v60 = vsub.f32 %v3301_v58, %v3323_v56  ;;  %v12000_v56 = vpack.i.bf16 %v13189_v23, %v13181_v5 }
 0xad4   : > { %v13940_v24 = vpop.eup %12348 }
 0xad5   : > { %v13942_v10 = vpop.eup %12350  ;;  %v3347_v40 = vmul.f32 1.442695, %v3333_v60  ;;  %v3351_v47 = vsel %vm16620_vm2, %v13940_v24, 0.0 }
 0xad6   : > { %3352 = vadd.xlane.f32.xlu1 %v3351_v47  ;;  %v3366_v57 = vsel %vm16620_vm2, %v13942_v10, 0.0 }
 0xad7   : > { %3367 = vadd.xlane.f32.xlu0 %v3366_v57  ;;  %12352 = vpow2.f32 %v3347_v40 }
 0xada   : > { %v3317_v62 = vpop.xlane.xlu2 %3316 }
 0xadb   : > { %v3331_v0 = vsub.f32 %v3299_v4, %v3317_v62  ;;  %v3314_v4 = vpop.xlane.xlu0 %3313 }
 0xadc   : > { %v3330_v62 = vsub.f32 %v13913_v35, %v3314_v4  ;;  %v12010_v35 = vpack.i.bf16 %v13212_v13, %v13219_v36 }
 0xadd   : > { %v3343_v32 = vmul.f32 1.442695, %v3331_v0  ;;  %v13948_v3 = vpop.eup %12352 }
 0xade   : > { %v3369_v58 = vsel %vm16620_vm2, %v13948_v3, 0.0 }
 0xadf   : > { %12354 = vpow2.f32 %v3343_v32  ;;  %3370 = vadd.xlane.f32.xlu0 %v3369_v58  ;;  %v3341_v32 = vmul.f32 1.442695, %v3330_v62 }
 0xae2   : > { %v3326_v47 = vpop.xlane.xlu2 %3325 }
 0xae5   : > { %v13952_v15 = vpop.eup %12354 }
 0xae6   : > { %3655 = vrot.lane.b32.xlu2 %v13057_v30, %s12889_s26  ;;  %v3363_v54 = vsel %vm16620_vm2, %v13952_v15, 0.0 }
 0xae7   : > { %3364 = vadd.xlane.f32.xlu0 %v3363_v54 }
 0xaee   : > { %3767 = vrot.lane.b32.xlu2 %v13089_v46, %s12889_s26 }
 0xaef   : > { %3795 = vrot.lane.b32.xlu1 %v13097_v50, %s12889_s26 }
 0xaf6   : > { %4127 = vrot.lane.b32.xlu2 %v13041_v22, %s12890_s27  ;;  %v3334_v22 = vsub.f32 %v13923_v63, %v3326_v47 }
 0xaf8   : > { %v3349_v57 = vmul.f32 1.442695, %v3334_v22 }
 0xafb   : > { %v3356_v27 = vpop.xlane.xlu0 %3355  ;;  %3741 = vrot.lane.b32.xlu0 %v13079_v41, %s12889_s26 }
 0xafc   : > { %12356 = vrcp.f32 %v3356_v27  ;;  %v12005_v27 = vpack.i.bf16 %v13207_v31, %v13184_v8 }
 0xafd   : > { %12358 = vpow2.f32 %v3349_v57 }
 0xafe   : > { %12001 = vrot.lane.b32.xlu2 %v12000_v56, %s12889_s26  ;;  %12360 = vpow2.f32 %v3341_v32 }
 0xb02   : > { %v12357_v60 = vpop.eup %12356 }
 0xb03   : > { %v3384_v40 = vmul.f32 %v12357_v60, %v12345_v7  ;;  %v13974_v0 = vpop.eup %12358 }
 0xb04   : > { %v3372_v58 = vsel %vm16620_vm2, %v13974_v0, 0.0  ;;  %v12361_v7 = vpop.eup %12360 }
 0xb05   : > { %11509 = vmatmul.msk.f32.vlgmr.msrb.gmra.mxu0 %vm16620_vm2, %v3384_v40  ;;  %v3360_v54 = vsel %vm16620_vm2, %v12361_v7, 0.0 }
 0xb06   : > { %11518 = vmatpush.xpose.msk.msrb.mxu0 %vm461_vm1, %v13921_v48  ;;  %v3658_v48 = vpop.permute.xlu2 %3657 }
 0xb19   : > { %3373 = vadd.xlane.f32.xlu1 %v3372_v58 }
 0xb25   : > { %3361 = vadd.xlane.f32.xlu0 %v3360_v54 }
 0xb32   : > { %3769 = vrot.lane.b32.xlu1 %v13087_v45, %s12889_s26 }
 0xb39   : > { %3739 = vrot.lane.b32.xlu0 %v13081_v42, %s12889_s26 }
 0xb3a   : > { %11996 = vrot.lane.b32.xlu1 %v13235_v51, %s12889_s26 }
 0xb41   : > { %v3359_v63 = vpop.xlane.xlu2 %3358  ;;  %4129 = vrot.lane.b32.xlu0 %v13039_v21, %s12890_s27 }
 0xb42   : > { %12362 = vrcp.f32 %v3359_v63  ;;  %12011 = vrot.lane.b32.xlu1 %v12010_v35, %s12889_s26 }
 0xb48   : > { %v12363_v4 = vpop.eup %12362 }
 0xb49   : > { %v3385_v56 = vmul.f32 %v12363_v4, %v13936_v44  ;;  %v3353_v60 = vpop.xlane.xlu1 %3352  ;;  %12006 = vrot.lane.b32.xlu0 %v12005_v27, %s12889_s26  ;;  %v3656_v21 = vpop.permute.xlu2 %3655 }
 0xb4a   : > { %12364 = vrcp.f32 %v3353_v60  ;;  %v3368_v51 = vpop.xlane.xlu0 %3367 }
 0xb4b   : > { %12366 = vrcp.f32 %v3368_v51  ;;  %11510 = vmatmul.msk.f32.vlgmr.msrb.gmra.mxu1 %vm16620_vm2, %v3385_v56 }
 0xb4c   : > { %11520 = vmatpush.xpose.msk.msrb.mxu1 %vm461_vm1, %v3658_v48 }
 0xb50   : > { %v12365_v40 = vpop.eup %12364 }
 0xb51   : > { %v12367_v47 = vpop.eup %12366  ;;  %v3383_v22 = vmul.f32 %v12365_v40, %v13940_v24  ;;  %4155 = vrot.lane.b32.xlu0 %v13049_v26, %s12890_s27  ;;  %v3768_v62 = vpop.permute.xlu2 %3767 }
 0xb52   : > { %v3388_v57 = vmul.f32 %v12367_v47, %v13942_v10  ;;  %v3371_v44 = vpop.xlane.xlu0 %3370 }
 0xb53   : > { %11508 = vmatmul.msk.f32.vlgmr.msra.gmra.mxu3 %vm16620_vm2, %v3383_v22  ;;  %12368 = vrcp.f32 %v3371_v44 }
 0xb54   : > { %11516 = vmatpush.xpose.msk.msra.mxu3 %vm461_vm1, %v13904_v28  ;;  %11513 = vmatmul.msk.f32.vlgmr.msra.gmra.mxu0 %vm16620_vm2, %v3388_v57 }
 0xb59   : > { %v12369_v32 = vpop.eup %12368  ;;  %v14008_v26 = vpop.permute.xlu2 %4127 }
 0xb5a   : > { %v3389_v58 = vmul.f32 %v12369_v32, %v13948_v3  ;;  %v3365_v54 = vpop.xlane.xlu0 %3364 }
 0xb5b   : > { %12370 = vrcp.f32 %v3365_v54 }
 0xb5c   : > { %11519 = vmatmul.msk.f32.vlgmr.msrb.gmra.mxu0 %vm461_vm1, %v13932_v19  ;;  %11514 = vmatmul.msk.f32.vlgmr.msra.gmra.mxu1 %vm16620_vm2, %v3389_v58 }
 0xb61   : > { %v12371_v24 = vpop.eup %12370  ;;  %v12002_v28 = vpop.permute.xlu2 %12001 }
 0xb62   : > { %v3387_v10 = vmul.f32 %v12371_v24, %v13952_v15  ;;  %v12003_v3 = vunpack.i.l.bf16 %v12002_v28  ;;  %v3796_v15 = vpop.permute.xlu1 %3795 }
 0xb64   : > { %11512 = vmatmul.msk.f32.vlgmr.msrb.gmra.mxu3 %vm16620_vm2, %v3387_v10  ;;  %11521 = vmatmul.msk.f32.vlgmr.msrb.gmra.mxu1 %vm461_vm1, %v3656_v21 }
 0xb65   : > { %11524 = vmatpush.xpose.msk.msrb.mxu3 %vm461_vm1, %v13871_v53 }
 0xb6c   : > { %11517 = vmatmul.msk.f32.vlgmr.msra.gmra.mxu3 %vm461_vm1, %v13883_v17 }
 0xb6d   : > { %v3742_v19 = vpop.permute.xlu0 %3741 }
 0xb6e   : > { %11526 = vmatpush.xpose.msk.msra.mxu0 %vm461_vm1, %v3742_v19 }
 0xb72   : > { %3966 = vmatpush.msrb.mxu0 %v12003_v3 }
 0xb74   : > { %11525 = vmatmul.msk.f32.vlgmr.msrb.gmra.mxu3 %vm461_vm1, %v13909_v12 }
 0xb82   : > { %v14035_v57 = vpop.f32.mrf.mxu0 }
 0xb8c   : > { %v3374_v35 = vpop.xlane.xlu1 %3373 }
 0xb98   : > { %v3362_v48 = vpop.xlane.xlu0 %3361 }
 0xb99   : > { %12372 = vrcp.f32 %v3362_v48 }
 0xb9a   : > { %12374 = vrcp.f32 %v3374_v35 }
 0xb9f   : > { %v12373_v63 = vpop.eup %12372 }
 0xba0   : > { %v3386_v4 = vmul.f32 %v12373_v63, %v12361_v7  ;;  %v12375_v17 = vpop.eup %12374 }
 0xba1   : > { %v3390_v12 = vmul.f32 %v12375_v17, %v13974_v0 }
 0xba2   : > { %11511 = vmatmul.msk.f32.vlgmr.msrb.gmra.mxu2 %vm16620_vm2, %v3386_v4 }
 0xba3   : > { %11522 = vmatpush.xpose.msk.msrb.mxu2 %vm461_vm1, %v13918_v61  ;;  %v12004_v61 = vunpack.i.h.bf16 %v12002_v28 }
 0xba4   : > { %v3770_v53 = vpop.permute.xlu1 %3769 }
 0xba5   : > { %11528 = vmatpush.xpose.msk.msra.mxu1 %vm461_vm1, %v3770_v53 }
 0xba8   : > { %11529 = vmatmul.msk.f32.vlgmr.msra.gmra.mxu1 %vm461_vm1, %v3768_v62 }
 0xbaa   : > { %11515 = vmatmul.msk.f32.vlgmr.msra.gmra.mxu2 %vm16620_vm2, %v3390_v12 }
 0xbab   : > { %11530 = vmatpush.xpose.msk.msra.mxu2 %vm461_vm1, %v13927_v16  ;;  %v3740_v27 = vpop.permute.xlu0 %3739 }
 0xbac   : > { %v11997_v7 = vpop.permute.xlu1 %11996  ;;  %11527 = vmatmul.msk.f32.vlgmr.msra.gmra.mxu0 %vm461_vm1, %v3740_v27 }
 0xbad   : > { %v11999_v56 = vunpack.i.h.bf16 %v11997_v7  ;;  %v11998_v60 = vunpack.i.l.bf16 %v11997_v7 }
 0xbaf   : > { %3940 = vmatpush.msra.mxu3 %v11998_v60 }
 0xbb1   : > { %4044 = vmatpush.msrb.mxu3 %v11999_v56 }
 0xbb2   : > { %11523 = vmatmul.msk.f32.vlgmr.msrb.gmra.mxu2 %vm461_vm1, %v13934_v20 }
 0xbb3   : > { %4018 = vmatpush.msrb.mxu2 %v12004_v61  ;;  %v14032_v51 = vpop.permute.xlu0 %4129 }
 0xbb4   : > { %v12012_v0 = vpop.permute.xlu1 %12011 }
 0xbb5   : > { %v12013_v21 = vunpack.i.l.bf16 %v12012_v0  ;;  %v12014_v22 = vunpack.i.h.bf16 %v12012_v0 }
 0xbba   : > { %11531 = vmatmul.msk.f32.vlgmr.msra.gmra.mxu2 %vm461_vm1, %v3796_v15 }
 0xbbb   : > { %4122 = vmatpush.msra.mxu2 %v12013_v21  ;;  %v12007_v16 = vpop.permute.xlu0 %12006 }
 0xbbc   : > { %v12009_v40 = vunpack.i.h.bf16 %v12007_v16  ;;  %v12008_v47 = vunpack.i.l.bf16 %v12007_v16 }
 0xbbe   : > { %3992 = vmatpush.msrb.mxu1 %v12008_v47  ;;  %4070 = vmatpush.msra.mxu0 %v12009_v40 }
 0xbc0   : > { %4096 = vmatpush.msra.mxu1 %v12014_v22 }
 0xbc8   : > { %v14039_v20 = vpop.f32.mrf.mxu1 }
 0xbd1   : > { %v14037_v44 = vpop.f32.mrf.mxu0 }
 0xbd6   : > { %v14044_v24 = vpop.f32.mrf.mxu3 }
 0xbd9   : > { %v3652_v62 = vpop.f32.mrf.mxu0  ;;  %v14041_v32 = vpop.f32.mrf.mxu1 }
 0xbda   : > { %v3824_v58 = vmul.f32 0.5, %v3652_v62 }
 0xbdc   : > { %v3834_v54 = vsel %vm16620_vm2, %v3824_v58, -inf }
 0xbdd   : > { %3835 = vmax.xlane.f32.xlu2 %v3834_v54 }
 0xbe1   : > { %v3680_v10 = vpop.f32.mrf.mxu1 }
 0xbe2   : > { %v3825_v28 = vmul.f32 0.5, %v3680_v10 }
 0xbe4   : > { %v3837_v3 = vsel %vm16620_vm2, %v3825_v28, -inf }
 0xbe5   : > { %3838 = vmax.xlane.f32.xlu1 %v3837_v3  ;;  %v14065_v3 = vpop.permute.xlu0 %4155 }
 0xbe7   : > { %v14047_v19 = vpop.f32.mrf.mxu3 }
 0xbef   : > { %v3624_v15 = vpop.f32.mrf.mxu3 }
 0xbf0   : > { %v3823_v48 = vmul.f32 0.5, %v3624_v15 }
 0xbf2   : > { %v3831_v35 = vsel %vm16620_vm2, %v3823_v48, -inf }
 0xbf3   : > { %3832 = vmax.xlane.f32.xlu0 %v3831_v35 }
 0xbf7   : > { %v3736_v12 = vpop.f32.mrf.mxu3 }
 0xbf8   : > { %v3827_v56 = vmul.f32 0.5, %v3736_v12 }
 0xbfa   : > { %v3843_v0 = vsel %vm16620_vm2, %v3827_v56, -inf }
 0xc25   : > { %v3792_v63 = vpop.f32.mrf.mxu1  ;;  %v14050_v4 = vpop.f32.mrf.mxu2 }
 0xc26   : > { %v3829_v53 = vmul.f32 0.5, %v3792_v63 }
 0xc28   : > { %v3849_v17 = vsel %vm16620_vm2, %v3829_v53, -inf }
 0xc29   : > { %3850 = vmax.xlane.f32.xlu1 %v3849_v17  ;;  %v3764_v27 = vpop.f32.mrf.mxu0 }
 0xc2a   : > { %v3828_v7 = vmul.f32 0.5, %v3764_v27 }
 0xc2c   : > { %v3846_v60 = vsel %vm16620_vm2, %v3828_v7, -inf }
 0xc2d   : > { %3847 = vmax.xlane.f32.xlu2 %v3846_v60  ;;  %v14054_v61 = vpop.f32.mrf.mxu2 }
 0xc31   : > { %3844 = vmax.xlane.f32.xlu1 %v3843_v0 }
 0xc35   : > { %v3708_v21 = vpop.f32.mrf.mxu2 }
 0xc36   : > { %v3826_v16 = vmul.f32 0.5, %v3708_v21 }
 0xc38   : > { %v3840_v40 = vsel %vm16620_vm2, %v3826_v16, -inf }
 0xc39   : > { %3841 = vmax.xlane.f32.xlu0 %v3840_v40 }
 0xc3d   : > { %v3820_v47 = vpop.f32.mrf.mxu2 }
 0xc3e   : > { %v3830_v22 = vmul.f32 0.5, %v3820_v47 }
 0xc40   : > { %v3852_v62 = vsel %vm16620_vm2, %v3830_v22, -inf }
 0xc41   : > { %3853 = vmax.xlane.f32.xlu0 %v3852_v62 }
 0xc45   : > { %4157 = vrot.lane.b32.xlu2 %v13047_v25, %s12890_s27 }
 0xc4a   : > { %4211 = vrot.lane.b32.xlu1 %v13065_v34, %s12890_s27 }
 0xc50   : > { %v3836_v54 = vpop.xlane.xlu2 %3835 }
 0xc51   : > { %v3856_v10 = vsub.f32 %v3824_v58, %v3836_v54 }
 0xc53   : > { %v3865_v35 = vmul.f32 1.442695, %v3856_v10 }
 0xc55   : > { %4213 = vrot.lane.b32.xlu0 %v13063_v33, %s12890_s27  ;;  %12376 = vpow2.f32 %v3865_v35 }
 0xc58   : > { %v3839_v15 = vpop.xlane.xlu1 %3838 }
 0xc59   : > { %v3857_v63 = vsub.f32 %v3825_v28, %v3839_v15 }
 0xc5b   : > { %v3867_v17 = vmul.f32 1.442695, %v3857_v63  ;;  %v12377_v25 = vpop.eup %12376 }
 0xc5c   : > { %v3882_v34 = vsel %vm16620_vm2, %v12377_v25, 0.0 }
 0xc5d   : > { %12378 = vpow2.f32 %v3867_v17 }
 0xc63   : > { %v14068_v0 = vpop.eup %12378 }
 0xc64   : > { %v3885_v58 = vsel %vm16620_vm2, %v14068_v0, 0.0 }
 0xc66   : > { %v3833_v12 = vpop.xlane.xlu0 %3832 }
 0xc67   : > { %v3855_v27 = vsub.f32 %v3823_v48, %v3833_v12 }
 0xc69   : > { %v3863_v60 = vmul.f32 1.442695, %v3855_v27 }
 0xc6b   : > { %12380 = vpow2.f32 %v3863_v60 }
 0xc6e   : > { %3883 = vadd.xlane.f32.xlu2 %v3882_v34 }
 0xc71   : > { %v14070_v33 = vpop.eup %12380 }
 0xc72   : > { %v3879_v28 = vsel %vm16620_vm2, %v14070_v33, 0.0 }
 0xc74   : > { %3886 = vadd.xlane.f32.xlu1 %v3885_v58 }
 0xc76   : > { %3880 = vadd.xlane.f32.xlu2 %v3879_v28 }
 0xc9c   : > { %v3851_v48 = vpop.xlane.xlu1 %3850 }
 0xc9d   : > { %v3861_v21 = vsub.f32 %v3829_v53, %v3851_v48 }
 0xc9f   : > { %v3875_v40 = vmul.f32 1.442695, %v3861_v21 }
 0xca0   : > { %v3848_v47 = vpop.xlane.xlu2 %3847 }
 0xca1   : > { %12382 = vpow2.f32 %v3875_v40  ;;  %v3860_v62 = vsub.f32 %v3828_v7, %v3848_v47 }
 0xca3   : > { %v3873_v54 = vmul.f32 1.442695, %v3860_v62 }
 0xca4   : > { %v3845_v10 = vpop.xlane.xlu1 %3844 }
 0xca5   : > { %v3859_v15 = vsub.f32 %v3827_v56, %v3845_v10  ;;  %12384 = vpow2.f32 %v3873_v54 }
 0xca7   : > { %v12383_v35 = vpop.eup %12382  ;;  %v3871_v63 = vmul.f32 1.442695, %v3859_v15 }
 0xca8   : > { %v3897_v17 = vsel %vm16620_vm2, %v12383_v35, 0.0 }
 0xca9   : > { %3898 = vadd.xlane.f32.xlu1 %v3897_v17  ;;  %12386 = vpow2.f32 %v3871_v63 }
 0xcab   : > { %v12385_v12 = vpop.eup %12384 }
 0xcac   : > { %v3842_v27 = vpop.xlane.xlu0 %3841  ;;  %v3894_v60 = vsel %vm16620_vm2, %v12385_v12, 0.0 }
 0xcad   : > { %v3858_v34 = vsub.f32 %v3826_v16, %v3842_v27  ;;  %3895 = vadd.xlane.f32.xlu0 %v3894_v60  ;;  %v4158_v16 = vpop.permute.xlu2 %4157 }
 0xcaf   : > { %v3869_v53 = vmul.f32 1.442695, %v3858_v34  ;;  %v12387_v58 = vpop.eup %12386 }
 0xcb0   : > { %v3891_v28 = vsel %vm16620_vm2, %v12387_v58, 0.0 }
 0xcb1   : > { %12388 = vpow2.f32 %v3869_v53 }
 0xcb4   : > { %v3854_v7 = vpop.xlane.xlu0 %3853 }
 0xcb5   : > { %v3862_v56 = vsub.f32 %v3830_v22, %v3854_v7  ;;  %3892 = vadd.xlane.f32.xlu0 %v3891_v28 }
 0xcb7   : > { %v12389_v48 = vpop.eup %12388  ;;  %v3877_v21 = vmul.f32 1.442695, %v3862_v56 }
 0xcb8   : > { %v3888_v40 = vsel %vm16620_vm2, %v12389_v48, 0.0 }
 0xcb9   : > { %12390 = vpow2.f32 %v3877_v21  ;;  %3889 = vadd.xlane.f32.xlu2 %v3888_v40 }
 0xcbf   : > { %v12391_v47 = vpop.eup %12390 }
 0xcc0   : > { %v3900_v62 = vsel %vm16620_vm2, %v12391_v47, 0.0 }
 0xcc1   : > { %3901 = vadd.xlane.f32.xlu2 %v3900_v62 }
 0xcc2   : > { %4183 = vrot.lane.b32.xlu1 %v13057_v30, %s12890_s27  ;;  %v4212_v30 = vpop.permute.xlu1 %4211 }
 0xcc9   : > { %4185 = vrot.lane.b32.xlu0 %v13055_v29, %s12890_s27 }
 0xcca   : > { %4269 = vrot.lane.b32.xlu1 %v13079_v41, %s12890_s27 }
 0xcd1   : > { %4239 = vrot.lane.b32.xlu0 %v13073_v38, %s12890_s27 }
 0xcd2   : > { %4323 = vrot.lane.b32.xlu1 %v13097_v50, %s12890_s27 }
 0xcd9   : > { %4241 = vrot.lane.b32.xlu2 %v13071_v37, %s12890_s27  ;;  %4325 = vrot.lane.b32.xlu0 %v13095_v49, %s12890_s27 }
 0xce1   : > { %v3884_v22 = vpop.xlane.xlu2 %3883  ;;  %4267 = vrot.lane.b32.xlu2 %v13081_v42, %s12890_s27  ;;  %4295 = vrot.lane.b32.xlu0 %v13089_v46, %s12890_s27 }
 0xce2   : > { %12392 = vrcp.f32 %v3884_v22 }
 0xce7   : > { %v3887_v29 = vpop.xlane.xlu1 %3886 }
 0xce8   : > { %12394 = vrcp.f32 %v3887_v29  ;;  %v12393_v38 = vpop.eup %12392 }
 0xce9   : > { %v3912_v41 = vmul.f32 %v12393_v38, %v12377_v25  ;;  %v3881_v50 = vpop.xlane.xlu2 %3880  ;;  %4297 = vrot.lane.b32.xlu2 %v13087_v45, %s12890_s27  ;;  %v4214_v25 = vpop.permute.xlu0 %4213 }
 0xcea   : > { %12396 = vrcp.f32 %v3881_v50 }
 0xceb   : > { %11533 = vmatmul.msk.f32.vlgmr.msrb.gmra.mxu0 %vm16620_vm2, %v3912_v41 }
 0xcec   : > { %11542 = vmatpush.xpose.msk.msrb.mxu0 %vm461_vm1, %v4158_v16 }
 0xcee   : > { %v12395_v37 = vpop.eup %12394 }
 0xcef   : > { %v3913_v42 = vmul.f32 %v12395_v37, %v14068_v0 }
 0xcf0   : > { %v12397_v49 = vpop.eup %12396 }
 0xcf1   : > { %11534 = vmatmul.msk.f32.vlgmr.msrb.gmra.mxu1 %vm16620_vm2, %v3913_v42  ;;  %v3911_v46 = vmul.f32 %v12397_v49, %v14070_v33 }
 0xcf3   : > { %11532 = vmatmul.msk.f32.vlgmr.msra.gmra.mxu3 %vm16620_vm2, %v3911_v46 }
 0xcf4   : > { %11540 = vmatpush.xpose.msk.msra.mxu3 %vm461_vm1, %v14032_v51 }
 0xd1c   : > { %v3899_v45 = vpop.xlane.xlu1 %3898 }
 0xd1d   : > { %12398 = vrcp.f32 %v3899_v45 }
 0xd20   : > { %v3896_v54 = vpop.xlane.xlu0 %3895 }
 0xd21   : > { %12400 = vrcp.f32 %v3896_v54 }
 0xd23   : > { %v12399_v10 = vpop.eup %12398 }
 0xd24   : > { %v3917_v15 = vmul.f32 %v12399_v10, %v12383_v35 }
 0xd26   : > { %11538 = vmatmul.msk.f32.vlgmr.msra.gmra.mxu1 %vm16620_vm2, %v3917_v15 }
 0xd27   : > { %v12401_v0 = vpop.eup %12400 }
 0xd28   : > { %v3916_v63 = vmul.f32 %v12401_v0, %v12385_v12  ;;  %v3893_v17 = vpop.xlane.xlu0 %3892 }
 0xd29   : > { %12402 = vrcp.f32 %v3893_v17 }
 0xd2a   : > { %11537 = vmatmul.msk.f32.vlgmr.msra.gmra.mxu0 %vm16620_vm2, %v3916_v63 }
 0xd2c   : > { %v3890_v33 = vpop.xlane.xlu2 %3889 }
 0xd2d   : > { %12404 = vrcp.f32 %v3890_v33 }
 0xd2f   : > { %v12403_v27 = vpop.eup %12402 }
 0xd30   : > { %v3915_v60 = vmul.f32 %v12403_v27, %v12387_v58 }
 0xd32   : > { %11536 = vmatmul.msk.f32.vlgmr.msrb.gmra.mxu3 %vm16620_vm2, %v3915_v60  ;;  %11543 = vmatmul.msk.f32.vlgmr.msrb.gmra.mxu0 %vm461_vm1, %v14065_v3 }
 0xd33   : > { %v12405_v51 = vpop.eup %12404 }
 0xd34   : > { %v4184_v34 = vpop.permute.xlu1 %4183  ;;  %v3914_v35 = vmul.f32 %v12405_v51, %v12389_v48  ;;  %v3902_v53 = vpop.xlane.xlu2 %3901 }
 0xd35   : > { %12406 = vrcp.f32 %v3902_v53 }
 0xd36   : > { %11535 = vmatmul.msk.f32.vlgmr.msrb.gmra.mxu2 %vm16620_vm2, %v3914_v35 }
 0xd37   : > { %11546 = vmatpush.xpose.msk.msrb.mxu2 %vm461_vm1, %v4214_v25 }
 0xd3a   : > { %11541 = vmatmul.msk.f32.vlgmr.msra.gmra.mxu3 %vm461_vm1, %v14008_v26 }
 0xd3b   : > { %v12407_v12 = vpop.eup %12406  ;;  %v4186_v7 = vpop.permute.xlu0 %4185 }
 0xd3c   : > { %v4270_v58 = vpop.permute.xlu1 %4269  ;;  %v3918_v28 = vmul.f32 %v12407_v12, %v12391_v47  ;;  %v4242_v56 = vpop.permute.xlu2 %4241  ;;  %11544 = vmatpush.xpose.msk.msrb.mxu1 %vm461_vm1, %v4186_v7 }
 0xd3d   : > { %11550 = vmatpush.xpose.msk.msra.mxu0 %vm461_vm1, %v4270_v58  ;;  %11548 = vmatpush.xpose.msk.msrb.mxu3 %vm461_vm1, %v4242_v56 }
 0xd3e   : > { %11539 = vmatmul.msk.f32.vlgmr.msra.gmra.mxu2 %vm16620_vm2, %v3918_v28 }
 0xd3f   : > { %11545 = vmatmul.msk.f32.vlgmr.msrb.gmra.mxu1 %vm461_vm1, %v4184_v34 }
 0xd43   : > { %v4240_v3 = vpop.permute.xlu0 %4239 }
 0xd44   : > { %v4268_v48 = vpop.permute.xlu2 %4267  ;;  %11549 = vmatmul.msk.f32.vlgmr.msrb.gmra.mxu3 %vm461_vm1, %v4240_v3  ;;  %v4324_v40 = vpop.permute.xlu1 %4323  ;;  %v12015_v3 = vpack.i.bf16 %v13181_v5, %v13174_v2 }
 0xd45   : > { %11551 = vmatmul.msk.f32.vlgmr.msra.gmra.mxu0 %vm461_vm1, %v4268_v48 }
 0xd46   : > { %11547 = vmatmul.msk.f32.vlgmr.msrb.gmra.mxu2 %vm461_vm1, %v4212_v30 }
 0xd4b   : > { %v4326_v26 = vpop.permute.xlu0 %4325 }
 0xd4c   : > { %v4298_v21 = vpop.permute.xlu2 %4297  ;;  %11554 = vmatpush.xpose.msk.msra.mxu2 %vm461_vm1, %v4326_v26 }
 0xd4d   : > { %11552 = vmatpush.xpose.msk.msra.mxu1 %vm461_vm1, %v4298_v21 }
 0xd4f   : > { %11555 = vmatmul.msk.f32.vlgmr.msra.gmra.mxu2 %vm461_vm1, %v4324_v40 }
 0xd53   : > { %v4296_v47 = vpop.permute.xlu0 %4295 }
 0xd54   : > { %11553 = vmatmul.msk.f32.vlgmr.msra.gmra.mxu1 %vm461_vm1, %v4296_v47 }
 0xd68   : > { %v14130_v62 = vpop.f32.mrf.mxu0 }
 0xd6e   : > { %v14134_v22 = vpop.f32.mrf.mxu1 }
 0xd76   : > { %v14136_v29 = vpop.f32.mrf.mxu3 }
 0xda3   : > { %v14139_v50 = vpop.f32.mrf.mxu1 }
 0xda7   : > { %v14132_v16 = vpop.f32.mrf.mxu0 }
 0xdaf   : > { %v4180_v30 = vpop.f32.mrf.mxu0 }
 0xdb0   : > { %v4352_v38 = vmul.f32 0.5, %v4180_v30 }
 0xdb2   : > { %v4362_v41 = vsel %vm16620_vm2, %v4352_v38, -inf }
 0xdb3   : > { %4363 = vmax.xlane.f32.xlu2 %v4362_v41 }
 0xdb5   : > { %v14141_v37 = vpop.f32.mrf.mxu3 }
 0xdb9   : > { %v14143_v42 = vpop.f32.mrf.mxu2 }
 0xdbc   : > { %v4208_v49 = vpop.f32.mrf.mxu1 }
 0xdbd   : > { %v4353_v46 = vmul.f32 0.5, %v4208_v49  ;;  %v4152_v25 = vpop.f32.mrf.mxu3 }
 0xdbe   : > { %v4351_v45 = vmul.f32 0.5, %v4152_v25 }
 0xdbf   : > { %v4365_v54 = vsel %vm16620_vm2, %v4353_v46, -inf }
 0xdc0   : > { %4366 = vmax.xlane.f32.xlu0 %v4365_v54  ;;  %v4359_v10 = vsel %vm16620_vm2, %v4351_v45, -inf }
 0xdc1   : > { %v14147_v15 = vpop.f32.mrf.mxu2  ;;  %4360 = vmax.xlane.f32.xlu1 %v4359_v10 }
 0xdc2   : > { %v4292_v0 = vpop.f32.mrf.mxu0 }
 0xdc3   : > { %v4356_v63 = vmul.f32 0.5, %v4292_v0 }
 0xdc5   : > { %v4374_v33 = vsel %vm16620_vm2, %v4356_v63, -inf }
 0xdc7   : > { %v4264_v17 = vpop.f32.mrf.mxu3 }
 0xdc8   : > { %v4355_v27 = vmul.f32 0.5, %v4264_v17  ;;  %4375 = vmax.xlane.f32.xlu0 %v4374_v33 }
 0xdc9   : > { %v4236_v60 = vpop.f32.mrf.mxu2 }
 0xdca   : > { %v4354_v51 = vmul.f32 0.5, %v4236_v60  ;;  %v4371_v34 = vsel %vm16620_vm2, %v4355_v27, -inf }
 0xdcb   : > { %4372 = vmax.xlane.f32.xlu2 %v4371_v34 }
 0xdcc   : > { %v4368_v35 = vsel %vm16620_vm2, %v4354_v51, -inf }
 0xdcd   : > { %4369 = vmax.xlane.f32.xlu1 %v4368_v35 }
 0xdd1   : > { %v4320_v53 = vpop.f32.mrf.mxu1 }
 0xdd2   : > { %v14152_v12 = vmul.f32 0.5, %v4320_v53  ;;  %v4348_v7 = vpop.f32.mrf.mxu2 }
 0xdd3   : > { %v4358_v58 = vmul.f32 0.5, %v4348_v7 }
 0xdd4   : > { %v4377_v28 = vsel %vm16620_vm2, %v14152_v12, -inf }
 0xdd5   : > { %4378 = vmax.xlane.f32.xlu2 %v4377_v28  ;;  %v4380_v56 = vsel %vm16620_vm2, %v4358_v58, -inf }
 0xdd6   : > { %4381 = vmax.xlane.f32.xlu0 %v4380_v56 }
 0xde6   : > { %12016 = vrot.lane.b32.xlu1 %v12015_v3, %s12890_s27  ;;  %v12020_v3 = vpack.i.bf16 %v13189_v23, %v13184_v8  ;;  %v12030_v23 = vpack.i.bf16 %v13219_v36, %v13212_v13 }
 0xe26   : > { %v4364_v48 = vpop.xlane.xlu2 %4363 }
 0xe27   : > { %v4384_v26 = vsub.f32 %v4352_v38, %v4364_v48 }
 0xe29   : > { %v4393_v21 = vmul.f32 1.442695, %v4384_v26 }
 0xe2b   : > { %12408 = vpow2.f32 %v4393_v21  ;;  %v12025_v21 = vpack.i.bf16 %v13207_v31, %v13196_v9 }
 0xe31   : > { %v14160_v40 = vpop.eup %12408 }
 0xe32   : > { %v4410_v47 = vsel %vm16620_vm2, %v14160_v40, 0.0 }
 0xe33   : > { %v4367_v30 = vpop.xlane.xlu0 %4366  ;;  %4411 = vadd.xlane.f32.xlu2 %v4410_v47 }
 0xe34   : > { %v4385_v41 = vsub.f32 %v4353_v46, %v4367_v30  ;;  %v4361_v49 = vpop.xlane.xlu1 %4360 }
 0xe35   : > { %v4383_v25 = vsub.f32 %v4351_v45, %v4361_v49 }
 0xe36   : > { %v4395_v54 = vmul.f32 1.442695, %v4385_v41 }
 0xe37   : > { %v4391_v10 = vmul.f32 1.442695, %v4383_v25 }
 0xe38   : > { %12410 = vpow2.f32 %v4395_v54 }
 0xe39   : > { %12412 = vpow2.f32 %v4391_v10 }
 0xe3b   : > { %v4376_v2 = vpop.xlane.xlu0 %4375 }
 0xe3c   : > { %v4388_v5 = vsub.f32 %v4356_v63, %v4376_v2 }
 0xe3e   : > { %v14164_v0 = vpop.eup %12410  ;;  %v4401_v38 = vmul.f32 1.442695, %v4388_v5  ;;  %v4373_v17 = vpop.xlane.xlu2 %4372  ;;  %v16659_v5 = vld [vmem:[#allocation29_spill] sm:$0xff] }
 0xe3f   : > { %v14166_v33 = vpop.eup %12412  ;;  %v4387_v60 = vsub.f32 %v4355_v27, %v4373_v17  ;;  %v4413_v34 = vsel %vm16620_vm2, %v14164_v0, 0.0 }
 0xe40   : > { %12414 = vpow2.f32 %v4401_v38  ;;  %4414 = vadd.xlane.f32.xlu0 %v4413_v34  ;;  %v4407_v46 = vsel %vm16620_vm2, %v14166_v33, 0.0  ;;  %v4370_v35 = vpop.xlane.xlu1 %4369  ;;  %v16660_v38 = vld [vmem:[#allocation16_spill] sm:$0xff] }
 0xe41   : > { %4408 = vadd.xlane.f32.xlu1 %v4407_v46  ;;  %v4399_v45 = vmul.f32 1.442695, %v4387_v60  ;;  %v4386_v63 = vsub.f32 %v4354_v51, %v4370_v35 }
 0xe43   : > { %12416 = vpow2.f32 %v4399_v45  ;;  %v4397_v27 = vmul.f32 1.442695, %v4386_v63  ;;  %v16661_v63 = vld [vmem:[#allocation35_spill] sm:$0xff] }
 0xe45   : > { %12418 = vpow2.f32 %v4397_v27 }
 0xe46   : > { %v14172_v53 = vpop.eup %12414 }
 0xe47   : > { %v4422_v7 = vsel %vm16620_vm2, %v14172_v53, 0.0 }
 0xe48   : > { %4423 = vadd.xlane.f32.xlu2 %v4422_v7  ;;  %v4379_v49 = vpop.xlane.xlu2 %4378 }
 0xe49   : > { %v14176_v28 = vpop.eup %12416  ;;  %v4382_v41 = vpop.xlane.xlu0 %4381  ;;  %v4389_v54 = vsub.f32 %v14152_v12, %v4379_v49 }
 0xe4a   : > { %v4419_v56 = vsel %vm16620_vm2, %v14176_v28, 0.0  ;;  %v4390_v8 = vsub.f32 %v4358_v58, %v4382_v41 }
 0xe4b   : > { %v14182_v48 = vpop.eup %12418  ;;  %v4403_v10 = vmul.f32 1.442695, %v4389_v54  ;;  %v16667_v54 = vld [vmem:[#allocation24_spill] sm:$0xff] }
 0xe4c   : > { %v4416_v51 = vsel %vm16620_vm2, %v14182_v48, 0.0  ;;  %v4405_v25 = vmul.f32 1.442695, %v4390_v8 }
 0xe4e   : > { %12420 = vpow2.f32 %v4405_v25 }
 0xe4f   : > { %12422 = vpow2.f32 %v4403_v10 }
 0xe50   : > { %4420 = vadd.xlane.f32.xlu2 %v4419_v56  ;;  %v16664_v56 = vld [vmem:[#allocation27_spill] sm:$0xff] }
 0xe54   : > { %12021 = vrot.lane.b32.xlu0 %v12020_v3, %s12890_s27  ;;  %v14196_v9 = vpop.eup %12420  ;;  %v16665_v3 = vld [vmem:[#allocation17_spill] sm:$0xff] }
 0xe55   : > { %v4428_v31 = vsel %vm16620_vm2, %v14196_v9, 0.0  ;;  %v14200_v13 = vpop.eup %12422 }
 0xe56   : > { %v4425_v36 = vsel %vm16620_vm2, %v14200_v13, 0.0 }
 0xe58   : > { %v12017_v26 = vpop.permute.xlu1 %12016  ;;  %4417 = vadd.xlane.f32.xlu2 %v4416_v51 }
 0xe59   : > { %v12019_v47 = vunpack.i.h.bf16 %v12017_v26  ;;  %v12018_v30 = vunpack.i.l.bf16 %v12017_v26 }
 0xe5a   : > { %12026 = vrot.lane.b32.xlu1 %v12025_v21, %s12890_s27 }
 0xe5b   : > { %4468 = vmatpush.msra.mxu3 %v12018_v30  ;;  %4494 = vmatpush.msrb.mxu0 %v12019_v47 }
 0xe70   : > { %12031 = vrot.lane.b32.xlu2 %v12030_v23, %s12890_s27 }
 0xe78   : > { %4663 = vrot.lane.b32.xlu2 %v13445_v55, %s12891_s28 }
 0xe7e   : > { %4429 = vadd.xlane.f32.xlu0 %v4428_v31 }
 0xe80   : > { %4695 = vrot.lane.b32.xlu2 %v13584_v6, %s12892_s29 }
 0xe84   : > { %4426 = vadd.xlane.f32.xlu1 %v4425_v36 }
 0xe88   : > { %4791 = vrot.lane.b32.xlu2 %v14044_v24, %s12893_s30  ;;  %v16657_v24 = vld [vmem:[#allocation36_spill] sm:$0xff] }
 0xe90   : > { %4823 = vrot.lane.b32.xlu2 %v14136_v29, %s12894_s7  ;;  %v16658_v29 = vld [vmem:[#allocation30_spill] sm:$0xff] }
 0xe92   : > { %4759 = vrot.lane.b32.xlu0 %v13896_v43, %s12895_s8 }
 0xe98   : > { %4729 = vrot.lane.b32.xlu2 %v13742_v14, %s12896_s9  ;;  %v16654_v14 = vld [vmem:[#allocation18_spill] sm:$0xff] }
 0xe9a   : > { %4665 = vrot.lane.b32.xlu0 %v13447_v11, %s12891_s28 }
 0xe9d   : > { %4727 = vrot.lane.b32.xlu1 %v13750_v52, %s12896_s9 }
 0xea0   : > { %4825 = vrot.lane.b32.xlu2 %v14130_v62, %s12894_s7 }
 0xea2   : > { %4761 = vrot.lane.b32.xlu0 %v13889_v1, %s12895_s8 }
 0xea5   : > { %4697 = vrot.lane.b32.xlu1 %v13580_v59, %s12892_s29 }
 0xea6   : > { %v4412_v55 = vpop.xlane.xlu2 %4411 }
 0xea7   : > { %12424 = vrcp.f32 %v4412_v55 }
 0xea8   : > { %4699 = vrot.lane.b32.xlu2 %v13589_v39, %s12892_s29  ;;  %v16653_v39 = vld [vmem:[#allocation20_spill] sm:$0xff] }
 0xeaa   : > { %4731 = vrot.lane.b32.xlu0 %v13744_v18, %s12896_s9  ;;  %v16655_v18 = vld [vmem:[#allocation25_spill] sm:$0xff] }
 0xead   : > { %v12425_v11 = vpop.eup %12424  ;;  %4793 = vrot.lane.b32.xlu1 %v14035_v57, %s12893_s30 }
 0xeae   : > { %v4440_v6 = vmul.f32 %v12425_v11, %v14160_v40 }
 0xeb0   : > { %4795 = vrot.lane.b32.xlu2 %v14039_v20, %s12893_s30  ;;  %11557 = vmatmul.msk.f32.vlgmr.msrb.gmra.mxu0 %vm16620_vm2, %v4440_v6  ;;  %v16656_v20 = vld [vmem:[#allocation33_spill] sm:$0xff] }
 0xeb1   : > { %v16668_v6 = vld [vmem:[#allocation21_spill] sm:$0xff] }
 0xeb2   : > { %4827 = vrot.lane.b32.xlu0 %v14134_v22, %s12894_s7 }
 0xeb3   : > { %v4415_v43 = vpop.xlane.xlu0 %4414 }
 0xeb4   : > { %v4409_v59 = vpop.xlane.xlu1 %4408 }
 0xeb5   : > { %12426 = vrcp.f32 %v4409_v59  ;;  %4667 = vrot.lane.b32.xlu1 %v16653_v39, %s12891_s28 }
 0xeb6   : > { %12428 = vrcp.f32 %v4415_v43 }
 0xeb8   : > { %4669 = vrot.lane.b32.xlu2 %v16654_v14, %s12891_s28 }
 0xeba   : > { %4701 = vrot.lane.b32.xlu0 %v16655_v18, %s12892_s29 }
 0xebb   : > { %v12427_v52 = vpop.eup %12426  ;;  %v4424_v1 = vpop.xlane.xlu2 %4423 }
 0xebc   : > { %v4439_v57 = vmul.f32 %v12427_v52, %v14166_v33  ;;  %v12429_v22 = vpop.eup %12428  ;;  %v16669_v52 = vld [vmem:[#allocation28_spill] sm:$0xff] }
 0xebd   : > { %4763 = vrot.lane.b32.xlu1 %v16656_v20, %s12895_s8  ;;  %v4441_v2 = vmul.f32 %v12429_v22, %v14164_v0  ;;  %v16670_v20 = vld [vmem:[#allocation34_spill] sm:$0xff] }
 0xebe   : > { %11556 = vmatmul.msk.f32.vlgmr.msra.gmra.mxu3 %vm16620_vm2, %v4439_v57  ;;  %v16672_v22 = vld [vmem:[#allocation26_spill] sm:$0xff] }
 0xec0   : > { %4765 = vrot.lane.b32.xlu2 %v16657_v24, %s12895_s8  ;;  %v16671_v24 = vld [vmem:[#allocation19_spill] sm:$0xff] }
 0xec2   : > { %4797 = vrot.lane.b32.xlu0 %v14050_v4, %s12893_s30 }
 0xec3   : > { %v4421_v62 = vpop.xlane.xlu2 %4420 }
 0xec4   : > { %12430 = vrcp.f32 %v4421_v62 }
 0xec5   : > { %4733 = vrot.lane.b32.xlu1 %v16658_v29, %s12896_s9  ;;  %12432 = vrcp.f32 %v4424_v1 }
 0xec6   : > { %v12022_v12 = vpop.permute.xlu0 %12021 }
 0xec7   : > { %v12024_v58 = vunpack.i.h.bf16 %v12022_v12  ;;  %v12023_v40 = vunpack.i.l.bf16 %v12022_v12  ;;  %v16673_v12 = vld [vmem:[#allocation37_spill] sm:$0xff] }
 0xec8   : > { %4735 = vrot.lane.b32.xlu2 %v16659_v5, %s12896_s9 }
 0xec9   : > { %4520 = vmatpush.msrb.mxu1 %v12023_v40  ;;  %4546 = vmatpush.msrb.mxu2 %v12024_v58  ;;  %v4943_v58 = vld [vmem:[#allocation2 + $0x70] sm:$0xff]  ;;  %v4942_v40 = vld [vmem:[#allocation2 + $0x68] sm:$0xff] }
 0xeca   : > { %4671 = vrot.lane.b32.xlu0 %v16660_v38, %s12891_s28  ;;  %11558 = vmatmul.msk.f32.vlgmr.msrb.gmra.mxu1 %vm16620_vm2, %v4441_v2  ;;  %v12431_v4 = vpop.eup %12430 }
 0xecb   : > { %v4418_v17 = vpop.xlane.xlu2 %4417  ;;  %v12433_v33 = vpop.eup %12432  ;;  %v4443_v0 = vmul.f32 %v12431_v4, %v14176_v28 }
 0xecc   : > { %12434 = vrcp.f32 %v4418_v17  ;;  %v12027_v60 = vpop.permute.xlu1 %12026  ;;  %v4444_v45 = vmul.f32 %v12433_v33, %v14172_v53  ;;  %v16662_v53 = vld [vmem:[#allocation23_spill] sm:$0xff]  ;;  %v4941_v17 = vld [vmem:[#allocation2 + $0x60] sm:$0xff] }
 0xecd   : > { %v12029_v34 = vunpack.i.h.bf16 %v12027_v60  ;;  %v12028_v46 = vunpack.i.l.bf16 %v12027_v60  ;;  %4829 = vrot.lane.b32.xlu1 %v14143_v42, %s12894_s7 }
 0xecf   : > { %4572 = vmatpush.msrb.mxu3 %v12028_v46  ;;  %4598 = vmatpush.msra.mxu0 %v12029_v34 }
 0xed0   : > { %4831 = vrot.lane.b32.xlu2 %v14141_v37, %s12894_s7  ;;  %11560 = vmatmul.msk.f32.vlgmr.msrb.gmra.mxu3 %vm16620_vm2, %v4443_v0  ;;  %v16663_v37 = vld [vmem:[#allocation22_spill] sm:$0xff]  ;;  %v16674_v0 = vld [vmem:[#allocation31_spill] sm:$0xff] }
 0xed1   : > { %11561 = vmatmul.msk.f32.vlgmr.msra.gmra.mxu0 %vm16620_vm2, %v4444_v45 }
 0xed2   : > { %v12435_v35 = vpop.eup %12434  ;;  %4767 = vrot.lane.b32.xlu0 %v16661_v63, %s12895_s8 }
 0xed3   : > { %v4442_v7 = vmul.f32 %v12435_v35, %v14182_v48  ;;  %v12032_v42 = vpop.permute.xlu2 %12031  ;;  %v16666_v48 = vld [vmem:[#allocation32_spill] sm:$0xff] }
 0xed4   : > { %v12034_v27 = vunpack.i.h.bf16 %v12032_v42  ;;  %v12033_v28 = vunpack.i.l.bf16 %v12032_v42 }
 0xed5   : > { %4703 = vrot.lane.b32.xlu1 %v16662_v53, %s12892_s29  ;;  %11559 = vmatmul.msk.f32.vlgmr.msrb.gmra.mxu2 %vm16620_vm2, %v4442_v7  ;;  %v16675_v7 = vld [vmem:[#allocation8_spill] sm:$0xff] }
 0xed6   : > { %4624 = vmatpush.msra.mxu1 %v12033_v28  ;;  %4650 = vmatpush.msra.mxu2 %v12034_v27 }
 0xed8   : > { %4705 = vrot.lane.b32.xlu2 %v16663_v37, %s12892_s29 }
 0xeda   : > { %4737 = vrot.lane.b32.xlu0 %v16664_v56, %s12896_s9 }
 0xedd   : > { %4799 = vrot.lane.b32.xlu1 %v14047_v19, %s12893_s30  ;;  %v14286_v19 = vpop.permute.xlu2 %4663 }
 0xede   : > { %v4879_v42 = vsel %vm461_vm1, %v16675_v7, %v14286_v19 }
 0xee5   : > { %4673 = vrot.lane.b32.xlu1 %v16665_v3, %s12891_s28  ;;  %v14288_v8 = vpop.permute.xlu2 %4695  ;;  %v16676_v3 = vld [vmem:[#allocation12_spill] sm:$0xff] }
 0xee6   : > { %v4887_v27 = vsel %vm16620_vm2, %v4879_v42, %v14288_v8 }
 0xeed   : > { %4769 = vrot.lane.b32.xlu1 %v16666_v48, %s12895_s8  ;;  %v14291_v49 = vpop.permute.xlu2 %4791 }
 0xef1   : > { %v4430_v51 = vpop.xlane.xlu0 %4429 }
 0xef2   : > { %12436 = vrcp.f32 %v4430_v51 }
 0xef5   : > { %v14295_v25 = vpop.permute.xlu2 %4823 }
 0xef7   : > { %v4427_v26 = vpop.xlane.xlu1 %4426 }
 0xef8   : > { %v12437_v21 = vpop.eup %12436  ;;  %12438 = vrcp.f32 %v4427_v26 }
 0xef9   : > { %v4446_v47 = vmul.f32 %v12437_v21, %v14196_v9 }
 0xefb   : > { %11563 = vmatmul.msk.f32.vlgmr.msra.gmra.mxu2 %vm16620_vm2, %v4446_v47 }
 0xefd   : > { %v14302_v31 = vpop.permute.xlu2 %4729 }
 0xefe   : > { %v12439_v30 = vpop.eup %12438 }
 0xeff   : > { %v4445_v41 = vmul.f32 %v12439_v30, %v14200_v13 }
 0xf01   : > { %11562 = vmatmul.msk.f32.vlgmr.msra.gmra.mxu1 %vm16620_vm2, %v4445_v41 }
 0xf04   : > { %v14299_v10 = vpop.permute.xlu0 %4759 }
 0xf0c   : > { %v4666_v36 = vpop.permute.xlu0 %4665 }
 0xf0f   : > { %v4728_v55 = vpop.permute.xlu1 %4727 }
 0xf10   : > { %v4896_v28 = vsel %vm4895_vm3, %v4887_v27, %v4728_v55  ;;  %v16681_v27 = vld [vmem:[#allocation15_spill] sm:$0xff] }
 0xf11   : > { %v4905_v56 = vsel %vm4904_vm4, %v4896_v28, %v14299_v10 }
 0xf12   : > { %v4914_v48 = vsel %vm4913_vm5, %v4905_v56, %v14291_v49 }
 0xf13   : > { %v4923_v21 = vsel %vm4922_vm6, %v4914_v48, %v14295_v25 }
 0xf14   : > { %v14312_v39 = vpop.permute.xlu0 %4761 }
 0xf17   : > { %v4698_v18 = vpop.permute.xlu1 %4697 }
 0xf1c   : > { %v14322_v1 = vpop.permute.xlu0 %4731 }
 0xf1f   : > { %v4794_v57 = vpop.permute.xlu1 %4793 }
 0xf24   : > { %v14332_v62 = vpop.permute.xlu0 %4827 }
 0xf27   : > { %v4668_v29 = vpop.permute.xlu1 %4667 }
 0xf2c   : > { %v4702_v2 = vpop.permute.xlu0 %4701 }
 0xf2d   : > { %v4496_v23 = vpop.f32.mrf.mxu0 }
 0xf2e   : > { %4857 = vrot.lane.b32.xlu0 %v4496_v23, %s12897_s10 }
 0xf2f   : > { %v4764_v38 = vpop.permute.xlu1 %4763 }
 0xf34   : > { %v14342_v4 = vpop.permute.xlu0 %4797 }
 0xf36   : > { %4833 = vrot.lane.b32.xlu0 %v14132_v16, %s12894_s7  ;;  %v14307_v16 = vpop.permute.xlu2 %4825 }
 0xf37   : > { %v4734_v46 = vpop.permute.xlu1 %4733 }
 0xf3e   : > { %4707 = vrot.lane.b32.xlu0 %v16667_v54, %s12892_s29  ;;  %v14315_v14 = vpop.permute.xlu2 %4699 }
 0xf3f   : > { %v4830_v35 = vpop.permute.xlu1 %4829 }
 0xf41   : > { %v4470_v9 = vpop.f32.mrf.mxu3 }
 0xf42   : > { %4855 = vrot.lane.b32.xlu2 %v4470_v9, %s12897_s10 }
 0xf46   : > { %v14326_v43 = vpop.permute.xlu2 %4795 }
 0xf47   : > { %v4522_v13 = vpop.f32.mrf.mxu1  ;;  %v4704_v37 = vpop.permute.xlu1 %4703 }
 0xf48   : > { %4859 = vrot.lane.b32.xlu1 %v4522_v13, %s12897_s10 }
 0xf4a   : > { %4801 = vrot.lane.b32.xlu2 %v14037_v44, %s12893_s30 }
 0xf4e   : > { %v4600_v11 = vpop.f32.mrf.mxu0 }
 0xf4f   : > { %v4800_v19 = vpop.permute.xlu1 %4799 }
 0xf50   : > { %4865 = vrot.lane.b32.xlu1 %v4600_v11, %s12897_s10 }
 0xf52   : > { %4675 = vrot.lane.b32.xlu2 %v16668_v6, %s12891_s28 }
 0xf53   : > { %v4574_v59 = vpop.f32.mrf.mxu3 }
 0xf54   : > { %4863 = vrot.lane.b32.xlu0 %v4574_v59, %s12897_s10 }
 0xf57   : > { %v4674_v10 = vpop.permute.xlu1 %4673 }
 0xf58   : > { %4739 = vrot.lane.b32.xlu1 %v16669_v52, %s12896_s9  ;;  %v4548_v44 = vpop.f32.mrf.mxu2 }
 0xf5a   : > { %4861 = vrot.lane.b32.xlu2 %v4548_v44, %s12897_s10 }
 0xf5c   : > { %4803 = vrot.lane.b32.xlu0 %v14041_v32, %s12893_s30  ;;  %v14336_v32 = vpop.permute.xlu2 %4669 }
 0xf5f   : > { %v4770_v55 = vpop.permute.xlu1 %4769 }
 0xf60   : > { %4835 = vrot.lane.b32.xlu1 %v14139_v50, %s12894_s7  ;;  %v4944_v50 = vld [vmem:[#allocation2 + $0x78] sm:$0xff] }
 0xf61   : > { %4982 = vmatpush.msra.mxu3 %v4944_v50 }
 0xf62   : > { %4771 = vrot.lane.b32.xlu2 %v16670_v20, %s12895_s8 }
 0xf63   : > { %4983 = vmatpush.msra.mxu3 %v4943_v58 }
 0xf64   : > { %4677 = vrot.lane.b32.xlu0 %v16671_v24, %s12891_s28  ;;  %v4766_v5 = vpop.permute.xlu2 %4765 }
 0xf65   : > { %4984 = vmatpush.msra.mxu3 %v4942_v40 }
 0xf67   : > { %4985 = vmatpush.msra.mxu3 %v4941_v17 }
 0xf68   : > { %4709 = vrot.lane.b32.xlu1 %v16672_v22, %s12892_s29  ;;  %v16679_v22 = vld [vmem:[#allocation9_spill] sm:$0xff] }
 0xf6c   : > { %4773 = vrot.lane.b32.xlu0 %v16673_v12, %s12895_s8  ;;  %v4736_v34 = vpop.permute.xlu2 %4735 }
 0xf70   : > { %4805 = vrot.lane.b32.xlu1 %v14054_v61, %s12893_s30  ;;  %v4672_v61 = vpop.permute.xlu0 %4671 }
 0xf74   : > { %v14348_v45 = vpop.permute.xlu2 %4831 }
 0xf78   : > { %v4768_v63 = vpop.permute.xlu0 %4767 }
 0xf7c   : > { %v4706_v53 = vpop.permute.xlu2 %4705 }
 0xf7e   : > { %v4626_v33 = vpop.f32.mrf.mxu1  ;;  %v4652_v60 = vpop.f32.mrf.mxu2 }
 0xf7f   : > { %4869 = vrot.lane.b32.xlu0 %v4652_v60, %s12897_s10  ;;  %4867 = vrot.lane.b32.xlu2 %v4626_v33, %s12897_s10  ;;  %v16680_v33 = vld [vmem:[#allocation14_spill] sm:$0xff] }
 0xf80   : > { %v4738_v26 = vpop.permute.xlu0 %4737  ;;  %v4884_v60 = vsel %vm461_vm1, %v16680_v33, %v4674_v10 }
 0xf87   : > { %4741 = vrot.lane.b32.xlu2 %v16674_v0, %s12896_s9 }
 0xf8f   : > { %4837 = vrot.lane.b32.xlu2 %v14147_v15, %s12894_s7  ;;  %v4880_v15 = vsel %vm461_vm1, %v16676_v3, %v4666_v36 }
 0xf90   : > { %v4888_v51 = vsel %vm16620_vm2, %v4880_v15, %v4698_v18  ;;  %v16678_v18 = vld [vmem:[#allocation10_spill] sm:$0xff] }
 0xf91   : > { %v4897_v30 = vsel %vm4895_vm3, %v4888_v51, %v14302_v31  ;;  %v16677_v31 = vld [vmem:[#allocation13_spill] sm:$0xff]  ;;  %v4882_v52 = vsel %vm461_vm1, %v16678_v18, %v14336_v32 }
 0xf92   : > { %v4906_v8 = vsel %vm4904_vm4, %v4897_v30, %v14312_v39  ;;  %v4881_v13 = vsel %vm461_vm1, %v16677_v31, %v4668_v29  ;;  %v4890_v44 = vsel %vm16620_vm2, %v4882_v52, %v4702_v2 }
 0xf93   : > { %v4915_v23 = vsel %vm4913_vm5, %v4906_v8, %v4794_v57  ;;  %v4889_v36 = vsel %vm16620_vm2, %v4881_v13, %v14315_v14  ;;  %v4899_v20 = vsel %vm4895_vm3, %v4890_v44, %v4734_v46 }
 0xf94   : > { %v4924_v54 = vsel %vm4922_vm6, %v4915_v23, %v14307_v16  ;;  %v4898_v11 = vsel %vm4895_vm3, %v4889_v36, %v14322_v1  ;;  %v4908_v24 = vsel %vm4904_vm4, %v4899_v20, %v4766_v5 }
 0xf95   : > { %v4907_v6 = vsel %vm4904_vm4, %v4898_v11, %v4764_v38  ;;  %v4917_v50 = vsel %vm4913_vm5, %v4908_v24, %v14342_v4  ;;  %v14442_v11 = vld [vmem:[%s16605_s2] sm:$0xff] }
 0xf96   : > { %v4916_v39 = vsel %vm4913_vm5, %v4907_v6, %v14326_v43  ;;  %v4883_v43 = vsel %vm461_vm1, %v16679_v22, %v4672_v61  ;;  %v4892_v61 = vsel %vm16620_vm2, %v4884_v60, %v4706_v53  ;;  %v4945_v6 = vperm.slane %v14442_v11, 3 }
 0xf97   : > { %v4925_v14 = vsel %vm4922_vm6, %v4916_v39, %v14332_v62  ;;  %v4891_v29 = vsel %vm16620_vm2, %v4883_v43, %v4704_v37  ;;  %v4926_v62 = vsel %vm4922_vm6, %v4917_v50, %v4830_v35  ;;  %v4901_v0 = vsel %vm4895_vm3, %v4892_v61, %v4738_v26  ;;  %v12795_v39 = vld [vmem:[%s12974_s16] sm:$0xff]  ;;  %v12797_v43 = vld [vmem:[%s12974_s16 + $0x10] sm:$0xff] }
 0xf98   : > { %v4900_v40 = vsel %vm4895_vm3, %v4891_v29, %v4736_v34  ;;  %v4910_v35 = vsel %vm4904_vm4, %v4901_v0, %v4770_v55 }
 0xf99   : > { %v4909_v5 = vsel %vm4904_vm4, %v4900_v40, %v4768_v63 }
 0xf9a   : > { %v4918_v38 = vsel %vm4913_vm5, %v4909_v5, %v4800_v19  ;;  %v16682_v19 = vld [vmem:[#allocation11_spill] sm:$0xff] }
 0xf9b   : > { %v4927_v4 = vsel %vm4922_vm6, %v4918_v38, %v14348_v45  ;;  %v12799_v38 = vld [vmem:[%s12974_s16 + $0x20] sm:$0xff] }
 0xf9c   : > { %v4856_v47 = vpop.permute.xlu2 %4855 }
 0xf9d   : > { %v4932_v41 = vsel %vm4931_vm7, %v4923_v21, %v4856_v47 }
 0xf9e   : > { %11564 = vmatmul.msk.f32.vlgmr.msra.gmra.mxu3 %vm301_vm0, %v4932_v41 }
 0xfa0   : > { %v4858_v49 = vpop.permute.xlu0 %4857 }
 0xfa1   : > { %v4933_v25 = vsel %vm4931_vm7, %v4924_v54, %v4858_v49 }
 0xfa4   : > { %v4802_v9 = vpop.permute.xlu2 %4801 }
 0xfa5   : > { %v4919_v63 = vsel %vm4913_vm5, %v4910_v35, %v4802_v9 }
 0xfa6   : > { %11565 = vmatmul.msk.f32.gmra.mxu3 %vm301_vm0, %v4933_v25 }
 0xfa8   : > { %v4834_v59 = vpop.permute.xlu0 %4833 }
 0xfa9   : > { %v4928_v42 = vsel %vm4922_vm6, %v4919_v63, %v4834_v59  ;;  %v12801_v63 = vld [vmem:[%s12974_s16 + $0x30] sm:$0xff] }
 0xfac   : > { %v4676_v16 = vpop.permute.xlu2 %4675 }
 0xfad   : > { %v4885_v28 = vsel %vm461_vm1, %v16681_v27, %v4676_v16  ;;  %v12898_v27 = vmov 32.0  }
 0xfae   : > { %12440 = vrcp.f32 %v12898_v27 }
 0xfb0   : > { %v4708_v32 = vpop.permute.xlu0 %4707 }
 0xfb1   : > { %v4893_v45 = vsel %vm16620_vm2, %v4885_v28, %v4708_v32 }
 0xfb4   : > { %v4862_v12 = vpop.permute.xlu2 %4861  ;;  %v12441_v28 = vpop.eup %12440 }
 0xfb5   : > { %v4935_v2 = vsel %vm4931_vm7, %v4926_v62, %v4862_v12  ;;  %v12798_v62 = vld [vmem:[%s12974_s16 + $0x18] sm:$0xff]  ;;  %vm5048_vm8 = vweird.f32 %v12441_v28 }
 0xfba   : > { %v4860_v57 = vpop.permute.xlu1 %4859 }
 0xfbb   : > { %v4934_v1 = vsel %vm4931_vm7, %v4925_v14, %v4860_v57  ;;  %v12796_v14 = vld [vmem:[%s12974_s16 + $0x8] sm:$0xff] }
 0xfbc   : > { %11566 = vmatmul.msk.f32.gmra.mxu3 %vm301_vm0, %v4934_v1  ;;  %v4772_v7 = vpop.permute.xlu2 %4771 }
 0xfc2   : > { %v4866_v58 = vpop.permute.xlu1 %4865 }
 0xfc3   : > { %v4937_v37 = vsel %vm4931_vm7, %v4928_v42, %v4866_v58 }
 0xfc4   : > { %11567 = vmatmul.msk.f32.gmra.mxu3 %vm301_vm0, %v4935_v2 }
 0xfc6   : > { %v4864_v17 = vpop.permute.xlu0 %4863 }
 0xfc7   : > { %v4936_v46 = vsel %vm4931_vm7, %v4927_v4, %v4864_v17 }
 0xfca   : > { %v4740_v34 = vpop.permute.xlu1 %4739 }
 0xfcb   : > { %v4902_v53 = vsel %vm4895_vm3, %v4893_v45, %v4740_v34  ;;  %v5044_v45 = vmul.f32 32.0, %v12441_v28 }
 0xfcc   : > { %11568 = vmatmul.msk.f32.gmra.mxu3 %vm301_vm0, %v4936_v46  ;;  %v4911_v15 = vsel %vm4904_vm4, %v4902_v53, %v4772_v7  ;;  %v12800_v46 = vld [vmem:[%s12974_s16 + $0x28] sm:$0xff] }
 0xfce   : > { %v4804_v56 = vpop.permute.xlu0 %4803 }
 0xfcf   : > { %v4920_v48 = vsel %vm4913_vm5, %v4911_v15, %v4804_v56 }
 0xfd2   : > { %v4836_v3 = vpop.permute.xlu1 %4835 }
 0xfd3   : > { %v4929_v51 = vsel %vm4922_vm6, %v4920_v48, %v4836_v3 }
 0xfd4   : > { %11569 = vmatmul.msk.f32.gmra.mxu3 %vm301_vm0, %v4937_v37  ;;  %v5045_v37 = vsub.f32 1.0, %v5044_v45 }
 0xfd6   : > { %v4678_v47 = vpop.permute.xlu0 %4677  ;;  %v5046_v53 = vmul.f32 %v12441_v28, %v5045_v37 }
 0xfd7   : > { %v4886_v8 = vsel %vm461_vm1, %v16682_v19, %v4678_v47 }
 0xfd8   : > { %v5047_v56 = vadd.f32 %v12441_v28, %v5046_v53 }
 0xfd9   : > { %v4868_v26 = vpop.permute.xlu2 %4867 }
 0xfda   : > { %v4938_v21 = vsel %vm4931_vm7, %v4929_v51, %v4868_v26  ;;  %v4710_v30 = vpop.permute.xlu1 %4709  ;;  %v14459_v3 = vsel %vm5048_vm8, %v12441_v28, %v5047_v56 }
 0xfdb   : > { %v4894_v23 = vsel %vm16620_vm2, %v4886_v8, %v4710_v30  ;;  %16683 = vst [vmem:[#allocation20_spill] sm:$0xff] %v14459_v3 }
 0xfdc   : > { %11570 = vmatmul.msk.f32.gmra.mxu3 %vm301_vm0, %v4938_v21 }
 0xfde   : > { %v4774_v49 = vpop.permute.xlu0 %4773 }
 0xfe1   : > { %v4742_v41 = vpop.permute.xlu2 %4741 }
 0xfe2   : > { %v4903_v54 = vsel %vm4895_vm3, %v4894_v23, %v4742_v41  ;;  %v4806_v25 = vpop.permute.xlu1 %4805  ;;  %v12802_v23 = vld [vmem:[%s12974_s16 + $0x38] sm:$0xff] }
 0xfe3   : > { %v4912_v10 = vsel %vm4904_vm4, %v4903_v54, %v4774_v49 }
 0xfe4   : > { %v4921_v31 = vsel %vm4913_vm5, %v4912_v10, %v4806_v25 }
 0xfe9   : > { %v4838_v9 = vpop.permute.xlu2 %4837 }
 0xfea   : > { %v4930_v13 = vsel %vm4922_vm6, %v4921_v31, %v4838_v9 }
 0xff1   : > { %v4870_v36 = vpop.permute.xlu0 %4869 }
 0xff2   : > { %v4939_v55 = vsel %vm4931_vm7, %v4930_v13, %v4870_v36 }
 0xff3   : > { %11571 = vmatmul.msk.f32.gmra.mxu3 %vm301_vm0, %v4939_v55 }
0x1021   : > { %v4987_v59 = vpop.f32.mrf.mxu3 }
0x1022   : > { %v4988_v16 = vadd.f32 %v4987_v59, %v4945_v6 }
0x1024   : > { %v5011_v18 = vadd.f32 %v12795_v39, %v4988_v16 }
0x1026   : > { %v5019_v52 = vsel %vm301_vm0, %v5011_v18, 0.0 }
0x1027   : > { %5020 = vadd.xlane.f32.xlu1 %v5019_v52 }
0x1029   : > { %v4990_v44 = vpop.f32.mrf.mxu3 }
0x102a   : > { %v4991_v57 = vadd.f32 %v4990_v44, %v4945_v6 }
0x102c   : > { %v5012_v20 = vadd.f32 %v12796_v14, %v4991_v57 }
0x102e   : > { %v5022_v1 = vsel %vm301_vm0, %v5012_v20, 0.0 }
0x102f   : > { %5023 = vadd.xlane.f32.xlu2 %v5022_v1 }
0x103f   : > { %v4993_v24 = vpop.f32.mrf.mxu3 }
0x1040   : > { %v4994_v22 = vadd.f32 %v4993_v24, %v4945_v6 }
0x1042   : > { %v5013_v29 = vadd.f32 %v12797_v43, %v4994_v22 }
0x1044   : > { %v5025_v32 = vsel %vm301_vm0, %v5013_v29, 0.0 }
0x1045   : > { %5026 = vadd.xlane.f32.xlu0 %v5025_v32 }
0x1047   : > { %v4996_v12 = vpop.f32.mrf.mxu3 }
0x1048   : > { %v4997_v50 = vadd.f32 %v4996_v12, %v4945_v6 }
0x104a   : > { %v5014_v58 = vadd.f32 %v12798_v62, %v4997_v50 }
0x104c   : > { %v5028_v40 = vsel %vm301_vm0, %v5014_v58, 0.0 }
0x104d   : > { %5029 = vadd.xlane.f32.xlu2 %v5028_v40  ;;  %v5223_v40 = vld [vmem:[%s16606_s3 + $0x18] sm:$0xff] }
0x104e   : > { %5262 = vmatpush.msrb.mxu0 %v5223_v40 }
0x104f   : > { %v4999_v2 = vpop.f32.mrf.mxu3 }
0x1050   : > { %v5000_v5 = vadd.f32 %v4999_v2, %v4945_v6  ;;  %v5222_v2 = vld [vmem:[%s16606_s3 + $0x10] sm:$0xff] }
0x1051   : > { %5263 = vmatpush.msrb.mxu0 %v5222_v2 }
0x1052   : > { %v5015_v17 = vadd.f32 %v12799_v38, %v5000_v5  ;;  %v5221_v5 = vld [vmem:[%s16606_s3 + $0x8] sm:$0xff]  ;;  %v5220_v38 = vld [vmem:[%s16606_s3] sm:$0xff] }
0x1053   : > { %5264 = vmatpush.msrb.mxu0 %v5221_v5 }
0x1054   : > { %v5031_v33 = vsel %vm301_vm0, %v5015_v17, 0.0 }
0x1055   : > { %5032 = vadd.xlane.f32.xlu1 %v5031_v33  ;;  %5265 = vmatpush.msrb.mxu0 %v5220_v38 }
0x1057   : > { %v5002_v60 = vpop.f32.mrf.mxu3 }
0x1058   : > { %v5003_v4 = vadd.f32 %v5002_v60, %v4945_v6 }
0x105a   : > { %v5016_v61 = vadd.f32 %v12800_v46, %v5003_v4 }
0x105c   : > { %v5034_v34 = vsel %vm301_vm0, %v5016_v61, 0.0 }
0x105d   : > { %5035 = vadd.xlane.f32.xlu0 %v5034_v34 }
0x105f   : > { %v5005_v0 = vpop.f32.mrf.mxu3 }
0x1060   : > { %v5006_v35 = vadd.f32 %v5005_v0, %v4945_v6 }
0x1062   : > { %v5017_v7 = vadd.f32 %v12801_v63, %v5006_v35 }
0x1064   : > { %v5037_v42 = vsel %vm301_vm0, %v5017_v7, 0.0 }
0x1065   : > { %5038 = vadd.xlane.f32.xlu1 %v5037_v42 }
0x1076   : > { %v5008_v26 = vpop.f32.mrf.mxu3 }
0x1077   : > { %v5009_v47 = vadd.f32 %v5008_v26, %v4945_v6 }
0x1079   : > { %v5018_v49 = vadd.f32 %v12802_v23, %v5009_v47  ;;  %v14529_v47 = vperm.slane %v14442_v11, 5 }
0x107b   : > { %v5040_v25 = vsel %vm301_vm0, %v5018_v49, 0.0 }
0x109a   : > { %v5021_v15 = vpop.xlane.xlu1 %5020 }
0x109b   : > { %v5050_v48 = vmul.f32 %v14459_v3, %v5021_v15 }
0x109d   : > { %v14462_v51 = vsub.f32 %v5011_v18, %v5050_v48  ;;  %v14526_v48 = vperm.slane %v14442_v11, 4 }
0x109f   : > { %v5066_v21 = vmul.f32 %v14462_v51, %v14462_v51 }
0x10a1   : > { %v5074_v30 = vsel %vm301_vm0, %v5066_v21, 0.0 }
0x10a2   : > { %5075 = vadd.xlane.f32.xlu2 %v5074_v30  ;;  %v5024_v41 = vpop.xlane.xlu2 %5023 }
0x10a3   : > { %v5051_v19 = vmul.f32 %v14459_v3, %v5024_v41 }
0x10a5   : > { %v14468_v8 = vsub.f32 %v5012_v20, %v5051_v19 }
0x10a7   : > { %v5067_v54 = vmul.f32 %v14468_v8, %v14468_v8 }
0x10a9   : > { %v5077_v10 = vsel %vm301_vm0, %v5067_v54, 0.0 }
0x10aa   : > { %5041 = vadd.xlane.f32.xlu2 %v5040_v25  ;;  %5078 = vadd.xlane.f32.xlu0 %v5077_v10 }
0x10b8   : > { %v5027_v9 = vpop.xlane.xlu0 %5026 }
0x10b9   : > { %v5052_v31 = vmul.f32 %v14459_v3, %v5027_v9 }
0x10bb   : > { %v14476_v13 = vsub.f32 %v5013_v29, %v5052_v31 }
0x10bd   : > { %v5068_v36 = vmul.f32 %v14476_v13, %v14476_v13 }
0x10bf   : > { %v5080_v55 = vsel %vm301_vm0, %v5068_v36, 0.0 }
0x10c0   : > { %5081 = vadd.xlane.f32.xlu1 %v5080_v55  ;;  %v5030_v6 = vpop.xlane.xlu2 %5029 }
0x10c1   : > { %v5053_v59 = vmul.f32 %v14459_v3, %v5030_v6 }
0x10c3   : > { %v14482_v16 = vsub.f32 %v5014_v58, %v5053_v59 }
0x10c5   : > { %v5069_v39 = vmul.f32 %v14482_v16, %v14482_v16 }
0x10c7   : > { %v5083_v18 = vsel %vm301_vm0, %v5069_v39, 0.0 }
0x10c8   : > { %v5033_v52 = vpop.xlane.xlu1 %5032  ;;  %5084 = vadd.xlane.f32.xlu0 %v5083_v18 }
0x10c9   : > { %v5054_v44 = vmul.f32 %v14459_v3, %v5033_v52 }
0x10cb   : > { %v14488_v57 = vsub.f32 %v5015_v17, %v5054_v44 }
0x10cd   : > { %v5070_v14 = vmul.f32 %v14488_v57, %v14488_v57 }
0x10cf   : > { %v5086_v20 = vsel %vm301_vm0, %v5070_v14, 0.0 }
0x10d0   : > { %v5036_v1 = vpop.xlane.xlu0 %5035  ;;  %5087 = vadd.xlane.f32.xlu2 %v5086_v20 }
0x10d1   : > { %v5055_v24 = vmul.f32 %v14459_v3, %v5036_v1 }
0x10d3   : > { %v14494_v22 = vsub.f32 %v5016_v61, %v5055_v24 }
0x10d5   : > { %v5071_v43 = vmul.f32 %v14494_v22, %v14494_v22 }
0x10d7   : > { %v5089_v29 = vsel %vm301_vm0, %v5071_v43, 0.0 }
0x10d8   : > { %5090 = vadd.xlane.f32.xlu1 %v5089_v29  ;;  %v5039_v32 = vpop.xlane.xlu1 %5038 }
0x10d9   : > { %v5056_v12 = vmul.f32 %v14459_v3, %v5039_v32 }
0x10db   : > { %v14500_v50 = vsub.f32 %v5017_v7, %v5056_v12 }
0x10dd   : > { %v5072_v62 = vmul.f32 %v14500_v50, %v14500_v50 }
0x10df   : > { %v5092_v58 = vsel %vm301_vm0, %v5072_v62, 0.0 }
0x10e0   : > { %5093 = vadd.xlane.f32.xlu0 %v5092_v58 }
0x1115   : > { %v5076_v17 = vpop.xlane.xlu2 %5075 }
0x1116   : > { %v5098_v33 = vmul.f32 %v5076_v17, %v14459_v3 }
0x1118   : > { %v5106_v60 = vadd.f32 1e-05, %v5098_v33 }
0x111a   : > { %12442 = vrsqrt.f32 %v5106_v60  ;;  %vm5120_vm10 = vweird.f32 %v5106_v60 }
0x111d   : > { %v5079_v4 = vpop.xlane.xlu0 %5078  ;;  %v5042_v46 = vpop.xlane.xlu2 %5041 }
0x111e   : > { %v5099_v61 = vmul.f32 %v5079_v4, %v14459_v3  ;;  %v5057_v34 = vmul.f32 %v14459_v3, %v5042_v46 }
0x1120   : > { %v12443_v0 = vpop.eup %12442  ;;  %v5107_v35 = vadd.f32 1e-05, %v5099_v61  ;;  %v14520_v63 = vsub.f32 %v5018_v49, %v5057_v34 }
0x1121   : > { %v5115_v7 = vmul.f32 %v12443_v0, %v5106_v60  ;;  %vm5121_vm9 = vweird.f32 %v12443_v0 }
0x1122   : > { %12444 = vrsqrt.f32 %v5107_v35  ;;  %v5073_v42 = vmul.f32 %v14520_v63, %v14520_v63  ;;  %vm5122_vm11 = vmor %vm5120_vm10, %vm5121_vm9  ;;  %vm5130_vm13 = vweird.f32 %v5107_v35 }
0x1123   : > { %v5116_v27 = vmul.f32 %v12443_v0, %v5115_v7 }
0x1124   : > { %v5095_v28 = vsel %vm301_vm0, %v5073_v42, 0.0 }
0x1125   : > { %v5117_v45 = vmul.f32 0.5, %v5116_v27  ;;  %5096 = vadd.xlane.f32.xlu2 %v5095_v28 }
0x1127   : > { %v5118_v37 = vsub.f32 1.5, %v5117_v45 }
0x1128   : > { %v12445_v53 = vpop.eup %12444 }
0x1129   : > { %v5119_v56 = vmul.f32 %v12443_v0, %v5118_v37  ;;  %v5125_v15 = vmul.f32 %v12445_v53, %v5107_v35  ;;  %vm5131_vm12 = vweird.f32 %v12445_v53 }
0x112a   : > { %vm5132_vm14 = vmor %vm5130_vm13, %vm5131_vm12 }
0x112b   : > { %v5123_v26 = vsel %vm5122_vm11, %v12443_v0, %v5119_v56  ;;  %v5126_v21 = vmul.f32 %v12445_v53, %v5125_v15 }
0x112c   : > { %v5194_v30 = vmul.f32 %v5123_v26, %v14462_v51 }
0x112d   : > { %v5127_v41 = vmul.f32 0.5, %v5126_v21 }
0x112e   : > { %v5203_v19 = vmul.f32 %v14526_v48, %v5194_v30 }
0x112f   : > { %v5128_v23 = vsub.f32 1.5, %v5127_v41 }
0x1130   : > { %v14534_v49 = vadd.f32 %v14529_v47, %v5203_v19 }
0x1131   : > { %v5129_v54 = vmul.f32 %v12445_v53, %v5128_v23 }
0x1132   : > { %11572 = vmatmul.msk.f32.vlgmr.msrb.gmra.mxu0 %vm301_vm0, %v14534_v49 }
0x1133   : > { %v5133_v25 = vsel %vm5132_vm14, %v12445_v53, %v5129_v54  ;;  %v5082_v10 = vpop.xlane.xlu1 %5081 }
0x1134   : > { %v5195_v9 = vmul.f32 %v5133_v25, %v14468_v8  ;;  %v5100_v51 = vmul.f32 %v5082_v10, %v14459_v3 }
0x1136   : > { %v5108_v31 = vadd.f32 1e-05, %v5100_v51  ;;  %v5204_v36 = vmul.f32 %v14526_v48, %v5195_v9 }
0x1138   : > { %12446 = vrsqrt.f32 %v5108_v31  ;;  %v14542_v55 = vadd.f32 %v14529_v47, %v5204_v36  ;;  %vm5140_vm8 = vweird.f32 %v5108_v31 }
0x113a   : > { %11573 = vmatmul.msk.f32.gmra.mxu0 %vm301_vm0, %v14542_v55 }
0x113b   : > { %v5085_v6 = vpop.xlane.xlu0 %5084 }
0x113c   : > { %v5101_v59 = vmul.f32 %v5085_v6, %v14459_v3 }
0x113e   : > { %v12447_v39 = vpop.eup %12446  ;;  %v5109_v18 = vadd.f32 1e-05, %v5101_v59 }
0x113f   : > { %v5135_v52 = vmul.f32 %v12447_v39, %v5108_v31  ;;  %vm5141_vm15 = vweird.f32 %v12447_v39 }
0x1140   : > { %12448 = vrsqrt.f32 %v5109_v18  ;;  %vm5142_vm9 = vmor %vm5140_vm8, %vm5141_vm15  ;;  %vm5150_vm11 = vweird.f32 %v5109_v18 }
0x1141   : > { %v5136_v8 = vmul.f32 %v12447_v39, %v5135_v52 }
0x1143   : > { %v5137_v44 = vmul.f32 0.5, %v5136_v8  ;;  %v5088_v14 = vpop.xlane.xlu2 %5087 }
0x1144   : > { %v5102_v20 = vmul.f32 %v5088_v14, %v14459_v3  ;;  %v5299_v14 = vld [vmem:[#allocation4] sm:$0xff] }
0x1145   : > { %v5138_v1 = vsub.f32 1.5, %v5137_v44  ;;  %v5300_v44 = vld [vmem:[#allocation4 + $0x8] sm:$0xff] }
0x1146   : > { %v12449_v24 = vpop.eup %12448  ;;  %v5110_v43 = vadd.f32 1e-05, %v5102_v20  ;;  %5340 = vmatpush.msrb.mxu1 %v5300_v44 }
0x1147   : > { %v5139_v29 = vmul.f32 %v12447_v39, %v5138_v1  ;;  %v5145_v32 = vmul.f32 %v12449_v24, %v5109_v18  ;;  %vm5151_vm10 = vweird.f32 %v12449_v24 }
0x1148   : > { %12450 = vrsqrt.f32 %v5110_v43  ;;  %vm5152_vm12 = vmor %vm5150_vm11, %vm5151_vm10  ;;  %vm5160_vm14 = vweird.f32 %v5110_v43  ;;  %5341 = vmatpush.msrb.mxu1 %v5299_v14 }
0x1149   : > { %v5143_v12 = vsel %vm5142_vm9, %v12447_v39, %v5139_v29  ;;  %v5146_v62 = vmul.f32 %v12449_v24, %v5145_v32 }
0x114a   : > { %v5196_v58 = vmul.f32 %v5143_v12, %v14476_v13 }
0x114b   : > { %v5147_v40 = vmul.f32 0.5, %v5146_v62  ;;  %v5091_v2 = vpop.xlane.xlu1 %5090 }
0x114c   : > { %v5103_v5 = vmul.f32 %v5091_v2, %v14459_v3  ;;  %v5205_v38 = vmul.f32 %v14526_v48, %v5196_v58  ;;  %v12178_v58 = vld [vmem:[%s16608_s5] ss:$0 sm:$0xff] }
0x114d   : > { %v5148_v17 = vsub.f32 1.5, %v5147_v40 }
0x114e   : > { %v12451_v33 = vpop.eup %12450  ;;  %v5111_v60 = vadd.f32 1e-05, %v5103_v5  ;;  %v14552_v4 = vadd.f32 %v14529_v47, %v5205_v38 }
0x114f   : > { %v5149_v46 = vmul.f32 %v12449_v24, %v5148_v17  ;;  %v5155_v61 = vmul.f32 %v12451_v33, %v5110_v43  ;;  %vm5161_vm13 = vweird.f32 %v12451_v33 }
0x1150   : > { %12452 = vrsqrt.f32 %v5111_v60  ;;  %11574 = vmatmul.msk.f32.gmra.mxu0 %vm301_vm0, %v14552_v4  ;;  %vm5162_vm15 = vmor %vm5160_vm14, %vm5161_vm13  ;;  %vm5170_vm9 = vweird.f32 %v5111_v60 }
0x1151   : > { %v5153_v13 = vsel %vm5152_vm12, %v12449_v24, %v5149_v46  ;;  %v5156_v34 = vmul.f32 %v12451_v33, %v5155_v61 }
0x1152   : > { %v5197_v0 = vmul.f32 %v5153_v13, %v14482_v16 }
0x1153   : > { %v5157_v35 = vmul.f32 0.5, %v5156_v34  ;;  %v5094_v7 = vpop.xlane.xlu0 %5093 }
0x1154   : > { %v5104_v42 = vmul.f32 %v5094_v7, %v14459_v3  ;;  %v5206_v27 = vmul.f32 %v14526_v48, %v5197_v0 }
0x1155   : > { %v5158_v28 = vsub.f32 1.5, %v5157_v35 }
0x1156   : > { %v12453_v45 = vpop.eup %12452  ;;  %v5112_v37 = vadd.f32 1e-05, %v5104_v42  ;;  %v14560_v53 = vadd.f32 %v14529_v47, %v5206_v27 }
0x1157   : > { %v5159_v56 = vmul.f32 %v12451_v33, %v5158_v28  ;;  %v5165_v15 = vmul.f32 %v12453_v45, %v5111_v60  ;;  %vm5171_vm8 = vweird.f32 %v12453_v45 }
0x1158   : > { %12454 = vrsqrt.f32 %v5112_v37  ;;  %11575 = vmatmul.msk.f32.gmra.mxu0 %vm301_vm0, %v14560_v53  ;;  %vm5172_vm10 = vmor %vm5170_vm9, %vm5171_vm8  ;;  %vm5180_vm12 = vweird.f32 %v5112_v37 }
0x1159   : > { %v5163_v16 = vsel %vm5162_vm15, %v12451_v33, %v5159_v56  ;;  %v5166_v26 = vmul.f32 %v12453_v45, %v5165_v15 }
0x115a   : > { %v5198_v21 = vmul.f32 %v5163_v16, %v14488_v57 }
0x115b   : > { %v5167_v30 = vmul.f32 0.5, %v5166_v26  ;;  %v5301_v26 = vperm.slane %v14442_v11, 6 }
0x115c   : > { %v5207_v41 = vmul.f32 %v14526_v48, %v5198_v21 }
0x115d   : > { %v5168_v19 = vsub.f32 1.5, %v5167_v30 }
0x115e   : > { %v12455_v23 = vpop.eup %12454  ;;  %v14567_v54 = vadd.f32 %v14529_v47, %v5207_v41 }
0x115f   : > { %v5169_v25 = vmul.f32 %v12453_v45, %v5168_v19  ;;  %v5175_v10 = vmul.f32 %v12455_v23, %v5112_v37  ;;  %vm5181_vm11 = vweird.f32 %v12455_v23 }
0x1160   : > { %11576 = vmatmul.msk.f32.gmra.mxu0 %vm301_vm0, %v14567_v54  ;;  %vm5182_vm13 = vmor %vm5180_vm12, %vm5181_vm11 }
0x1161   : > { %v5173_v9 = vsel %vm5172_vm10, %v12453_v45, %v5169_v25  ;;  %v5176_v51 = vmul.f32 %v12455_v23, %v5175_v10 }
0x1162   : > { %v5199_v57 = vmul.f32 %v5173_v9, %v14494_v22 }
0x1163   : > { %v5177_v31 = vmul.f32 0.5, %v5176_v51 }
0x1164   : > { %v5208_v36 = vmul.f32 %v14526_v48, %v5199_v57 }
0x1165   : > { %v5178_v6 = vsub.f32 1.5, %v5177_v31 }
0x1166   : > { %v14574_v59 = vadd.f32 %v14529_v47, %v5208_v36 }
0x1167   : > { %v5179_v39 = vmul.f32 %v12455_v23, %v5178_v6 }
0x1168   : > { %11577 = vmatmul.msk.f32.gmra.mxu0 %vm301_vm0, %v14574_v59 }
0x1169   : > { %v5183_v18 = vsel %vm5182_vm13, %v12455_v23, %v5179_v39 }
0x116a   : > { %v5200_v52 = vmul.f32 %v5183_v18, %v14500_v50 }
0x116c   : > { %v5209_v8 = vmul.f32 %v14526_v48, %v5200_v52 }
0x116e   : > { %v14581_v22 = vadd.f32 %v14529_v47, %v5209_v8 }
0x1170   : > { %11578 = vmatmul.msk.f32.gmra.mxu0 %vm301_vm0, %v14581_v22 }
0x1198   : > { %v5097_v20 = vpop.xlane.xlu2 %5096 }
0x1199   : > { %v5105_v1 = vmul.f32 %v5097_v20, %v14459_v3 }
0x119b   : > { %v5113_v24 = vadd.f32 1e-05, %v5105_v1 }
0x119d   : > { %12456 = vrsqrt.f32 %v5113_v24  ;;  %vm5190_vm15 = vweird.f32 %v5113_v24 }
0x11a3   : > { %v12457_v43 = vpop.eup %12456 }
0x11a4   : > { %v5185_v29 = vmul.f32 %v12457_v43, %v5113_v24  ;;  %vm5191_vm14 = vweird.f32 %v12457_v43 }
0x11a5   : > { %vm5192_vm8 = vmor %vm5190_vm15, %vm5191_vm14 }
0x11a6   : > { %v5186_v50 = vmul.f32 %v12457_v43, %v5185_v29 }
0x11a8   : > { %v5187_v32 = vmul.f32 0.5, %v5186_v50 }
0x11aa   : > { %v5188_v12 = vsub.f32 1.5, %v5187_v32 }
0x11ac   : > { %v5189_v62 = vmul.f32 %v12457_v43, %v5188_v12 }
0x11ae   : > { %v5193_v40 = vsel %vm5192_vm8, %v12457_v43, %v5189_v62 }
0x11af   : > { %v5201_v2 = vmul.f32 %v5193_v40, %v14520_v63  ;;  %v5267_v5 = vpop.f32.mrf.mxu0 }
0x11b0   : > { %v5268_v38 = vadd.f32 %v12178_v58, %v5267_v5 }
0x11b1   : > { %v5210_v17 = vmul.f32 %v14526_v48, %v5201_v2 }
0x11b2   : > { %v5291_v33 = vmax.f32 %v5268_v38, 0.0 }
0x11b3   : > { %v14592_v60 = vadd.f32 %v14529_v47, %v5210_v17 }
0x11b4   : > { %11580 = vmatmul.msk.f32.vlgmr.msrb.gmra.mxu1 %vm4904_vm4, %v5291_v33 }
0x11b5   : > { %11579 = vmatmul.msk.f32.gmra.mxu0 %vm301_vm0, %v14592_v60 }
0x11b7   : > { %v5270_v46 = vpop.f32.mrf.mxu0 }
0x11b8   : > { %v5271_v61 = vadd.f32 %v12178_v58, %v5270_v46 }
0x11ba   : > { %v5292_v13 = vmax.f32 %v5271_v61, 0.0 }
0x11bc   : > { %11581 = vmatmul.msk.f32.gmra.mxu1 %vm4904_vm4, %v5292_v13 }
0x11cd   : > { %v5273_v34 = vpop.f32.mrf.mxu0 }
0x11ce   : > { %v5274_v63 = vadd.f32 %v12178_v58, %v5273_v34 }
0x11d0   : > { %v5293_v0 = vmax.f32 %v5274_v63, 0.0 }
0x11d2   : > { %11582 = vmatmul.msk.f32.gmra.mxu1 %vm4904_vm4, %v5293_v0 }
0x11d5   : > { %v5276_v48 = vpop.f32.mrf.mxu0 }
0x11d6   : > { %v5277_v35 = vadd.f32 %v12178_v58, %v5276_v48 }
0x11d8   : > { %v5294_v7 = vmax.f32 %v5277_v35, 0.0 }
0x11da   : > { %11583 = vmatmul.msk.f32.gmra.mxu1 %vm4904_vm4, %v5294_v7 }
0x11dd   : > { %v5279_v47 = vpop.f32.mrf.mxu0 }
0x11de   : > { %v5280_v42 = vadd.f32 %v12178_v58, %v5279_v47 }
0x11e0   : > { %v5295_v27 = vmax.f32 %v5280_v42, 0.0 }
0x11e2   : > { %11584 = vmatmul.msk.f32.gmra.mxu1 %vm4904_vm4, %v5295_v27 }
0x11e5   : > { %v5282_v28 = vpop.f32.mrf.mxu0 }
0x11e6   : > { %v5283_v45 = vadd.f32 %v12178_v58, %v5282_v28 }
0x11e8   : > { %v5296_v37 = vmax.f32 %v5283_v45, 0.0 }
0x11ea   : > { %11585 = vmatmul.msk.f32.gmra.mxu1 %vm4904_vm4, %v5296_v37 }
0x11ed   : > { %v5285_v56 = vpop.f32.mrf.mxu0 }
0x11ee   : > { %v5286_v15 = vadd.f32 %v12178_v58, %v5285_v56 }
0x11f0   : > { %v5297_v16 = vmax.f32 %v5286_v15, 0.0 }
0x11f2   : > { %11586 = vmatmul.msk.f32.gmra.mxu1 %vm4904_vm4, %v5297_v16 }
0x1231   : > { %v5343_v21 = vpop.f32.mrf.mxu1 }
0x1232   : > { %v5344_v30 = vadd.f32 %v5343_v21, %v5301_v26  ;;  %v5288_v41 = vpop.f32.mrf.mxu0 }
0x1233   : > { %v5289_v19 = vadd.f32 %v12178_v58, %v5288_v41 }
0x1234   : > { %v5367_v23 = vadd.f32 %v5344_v30, %v14534_v49 }
0x1235   : > { %v5298_v25 = vmax.f32 %v5289_v19, 0.0 }
0x1236   : > { %v5375_v10 = vsel %vm301_vm0, %v5367_v23, 0.0 }
0x1237   : > { %5376 = vadd.xlane.f32.xlu1 %v5375_v10  ;;  %11587 = vmatmul.msk.f32.gmra.mxu1 %vm4904_vm4, %v5298_v25 }
0x1239   : > { %v5346_v9 = vpop.f32.mrf.mxu1 }
0x123a   : > { %v5347_v51 = vadd.f32 %v5346_v9, %v5301_v26 }
0x123c   : > { %v5368_v57 = vadd.f32 %v5347_v51, %v14542_v55  ;;  %v5576_v51 = vld [vmem:[#allocation2 + $0x98] sm:$0xff] }
0x123d   : > { %5614 = vmatpush.msrb.mxu2 %v5576_v51 }
0x123e   : > { %v5378_v31 = vsel %vm301_vm0, %v5368_v57, 0.0 }
0x123f   : > { %5379 = vadd.xlane.f32.xlu0 %v5378_v31  ;;  %v5694_v31 = vld [vmem:[#allocation2 + $0xd8] sm:$0xff] }
0x1240   : > { %5708 = vmatpush.msra.mxu0 %v5694_v31 }
0x124f   : > { %v5349_v36 = vpop.f32.mrf.mxu1 }
0x1250   : > { %v5350_v6 = vadd.f32 %v5349_v36, %v5301_v26  ;;  %v5575_v36 = vld [vmem:[#allocation2 + $0x90] sm:$0xff] }
0x1251   : > { %5615 = vmatpush.msrb.mxu2 %v5575_v36 }
0x1252   : > { %v5369_v39 = vadd.f32 %v5350_v6, %v14552_v4  ;;  %v5646_v6 = vld [vmem:[#allocation2 + $0xb0] sm:$0xff] }
0x1254   : > { %v5381_v18 = vsel %vm301_vm0, %v5369_v39, 0.0 }
0x1255   : > { %5382 = vadd.xlane.f32.xlu2 %v5381_v18  ;;  %v5574_v18 = vld [vmem:[#allocation2 + $0x88] sm:$0xff] }
0x1256   : > { %5616 = vmatpush.msrb.mxu2 %v5574_v18 }
0x1257   : > { %v5352_v49 = vpop.f32.mrf.mxu1 }
0x1258   : > { %v5353_v52 = vadd.f32 %v5352_v49, %v5301_v26  ;;  %v5645_v49 = vld [vmem:[#allocation2 + $0xa8] sm:$0xff] }
0x125a   : > { %v5370_v8 = vadd.f32 %v5353_v52, %v14560_v53  ;;  %v5692_v52 = vld [vmem:[#allocation2 + $0xc8] sm:$0xff] }
0x125c   : > { %v5384_v44 = vsel %vm301_vm0, %v5370_v8, 0.0 }
0x125d   : > { %5385 = vadd.xlane.f32.xlu1 %v5384_v44  ;;  %v5644_v44 = vld [vmem:[#allocation2 + $0xa0] sm:$0xff] }
0x125f   : > { %v5355_v14 = vpop.f32.mrf.mxu1 }
0x1260   : > { %v5356_v20 = vadd.f32 %v5355_v14, %v5301_v26  ;;  %v5691_v14 = vld [vmem:[#allocation2 + $0xc0] sm:$0xff] }
0x1262   : > { %v5371_v55 = vadd.f32 %v5356_v20, %v14567_v54 }
0x1264   : > { %v5387_v1 = vsel %vm301_vm0, %v5371_v55, 0.0 }
0x1265   : > { %5388 = vadd.xlane.f32.xlu0 %v5387_v1 }
0x1267   : > { %v5358_v24 = vpop.f32.mrf.mxu1 }
0x1268   : > { %v5359_v43 = vadd.f32 %v5358_v24, %v5301_v26 }
0x126a   : > { %v5372_v4 = vadd.f32 %v5359_v43, %v14574_v59 }
0x126c   : > { %v5390_v29 = vsel %vm301_vm0, %v5372_v4, 0.0 }
0x126d   : > { %5391 = vadd.xlane.f32.xlu2 %v5390_v29 }
0x126f   : > { %v5361_v50 = vpop.f32.mrf.mxu1 }
0x1270   : > { %v5362_v32 = vadd.f32 %v5361_v50, %v5301_v26 }
0x1272   : > { %v5373_v53 = vadd.f32 %v5362_v32, %v14581_v22 }
0x1274   : > { %v5393_v12 = vsel %vm301_vm0, %v5373_v53, 0.0 }
0x1275   : > { %5394 = vadd.xlane.f32.xlu0 %v5393_v12 }
0x12aa   : > { %v5377_v62 = vpop.xlane.xlu1 %5376 }
0x12ab   : > { %v5399_v54 = vmul.f32 %v5377_v62, %v14459_v3 }
0x12ad   : > { %v14620_v58 = vsub.f32 %v5367_v23, %v5399_v54 }
0x12af   : > { %v5415_v40 = vmul.f32 %v14620_v58, %v14620_v58 }
0x12b1   : > { %v5423_v59 = vsel %vm301_vm0, %v5415_v40, 0.0 }
0x12b2   : > { %v5380_v2 = vpop.xlane.xlu0 %5379  ;;  %5424 = vadd.xlane.f32.xlu1 %v5423_v59 }
0x12b3   : > { %v5400_v5 = vmul.f32 %v5380_v2, %v14459_v3 }
0x12b4   : > { %v5364_v38 = vpop.f32.mrf.mxu1 }
0x12b5   : > { %v14626_v17 = vsub.f32 %v5368_v57, %v5400_v5  ;;  %v5365_v22 = vadd.f32 %v5364_v38, %v5301_v26  ;;  %v5647_v57 = vld [vmem:[#allocation2 + $0xb8] sm:$0xff] }
0x12b6   : > { %5661 = vmatpush.msrb.mxu3 %v5647_v57 }
0x12b7   : > { %v5416_v33 = vmul.f32 %v14626_v17, %v14626_v17  ;;  %v14631_v46 = vadd.f32 %v5365_v22, %v14592_v60 }
0x12b8   : > { %5662 = vmatpush.msrb.mxu3 %v5646_v6 }
0x12b9   : > { %v5426_v61 = vsel %vm301_vm0, %v5416_v33, 0.0  ;;  %v5396_v13 = vsel %vm301_vm0, %v14631_v46, 0.0  ;;  %v14676_v33 = vperm.slane %v14442_v11, 7 }
0x12ba   : > { %5427 = vadd.xlane.f32.xlu2 %v5426_v61  ;;  %5397 = vadd.xlane.f32.xlu1 %v5396_v13  ;;  %v14681_v13 = vld [vmem:[%s16605_s2 + $0x8] ss:$0 sm:$0xff] }
0x12bb   : > { %5663 = vmatpush.msrb.mxu3 %v5645_v49 }
0x12bd   : > { %5664 = vmatpush.msrb.mxu3 %v5644_v44 }
0x12c8   : > { %v5383_v34 = vpop.xlane.xlu2 %5382 }
0x12c9   : > { %v5401_v63 = vmul.f32 %v5383_v34, %v14459_v3 }
0x12cb   : > { %v14637_v0 = vsub.f32 %v5369_v39, %v5401_v63  ;;  %v5693_v39 = vld [vmem:[#allocation2 + $0xd0] sm:$0xff] }
0x12cc   : > { %5709 = vmatpush.msra.mxu0 %v5693_v39 }
0x12cd   : > { %v5417_v48 = vmul.f32 %v14637_v0, %v14637_v0 }
0x12ce   : > { %5710 = vmatpush.msra.mxu0 %v5692_v52 }
0x12cf   : > { %v5429_v35 = vsel %vm301_vm0, %v5417_v48, 0.0 }
0x12d0   : > { %v5386_v7 = vpop.xlane.xlu1 %5385  ;;  %5430 = vadd.xlane.f32.xlu0 %v5429_v35  ;;  %5711 = vmatpush.msra.mxu0 %v5691_v14 }
0x12d1   : > { %v5402_v60 = vmul.f32 %v5386_v7, %v14459_v3 }
0x12d3   : > { %v14643_v47 = vsub.f32 %v5370_v8, %v5402_v60  ;;  %v5573_v8 = vld [vmem:[#allocation2 + $0x80] sm:$0xff] }
0x12d4   : > { %5617 = vmatpush.msrb.mxu2 %v5573_v8 }
0x12d5   : > { %v5418_v42 = vmul.f32 %v14643_v47, %v14643_v47 }
0x12d7   : > { %v5432_v27 = vsel %vm301_vm0, %v5418_v42, 0.0 }
0x12d8   : > { %5433 = vadd.xlane.f32.xlu2 %v5432_v27  ;;  %v5389_v28 = vpop.xlane.xlu0 %5388 }
0x12d9   : > { %v5403_v45 = vmul.f32 %v5389_v28, %v14459_v3 }
0x12db   : > { %v14649_v37 = vsub.f32 %v5371_v55, %v5403_v45 }
0x12dd   : > { %v5419_v56 = vmul.f32 %v14649_v37, %v14649_v37 }
0x12df   : > { %v5435_v15 = vsel %vm301_vm0, %v5419_v56, 0.0 }
0x12e0   : > { %5436 = vadd.xlane.f32.xlu1 %v5435_v15  ;;  %v5392_v16 = vpop.xlane.xlu2 %5391 }
0x12e1   : > { %v5404_v26 = vmul.f32 %v5392_v16, %v14459_v3 }
0x12e3   : > { %v14655_v21 = vsub.f32 %v5372_v4, %v5404_v26 }
0x12e5   : > { %v5420_v30 = vmul.f32 %v14655_v21, %v14655_v21 }
0x12e7   : > { %v5438_v41 = vsel %vm301_vm0, %v5420_v30, 0.0 }
0x12e8   : > { %v5395_v19 = vpop.xlane.xlu0 %5394  ;;  %5439 = vadd.xlane.f32.xlu0 %v5438_v41 }
0x12e9   : > { %v5405_v23 = vmul.f32 %v5395_v19, %v14459_v3 }
0x12eb   : > { %v14661_v25 = vsub.f32 %v5373_v53, %v5405_v23 }
0x12ed   : > { %v5421_v10 = vmul.f32 %v14661_v25, %v14661_v25 }
0x12ef   : > { %v5441_v9 = vsel %vm301_vm0, %v5421_v10, 0.0 }
0x12f0   : > { %5442 = vadd.xlane.f32.xlu2 %v5441_v9 }
0x1325   : > { %v5425_v20 = vpop.xlane.xlu1 %5424 }
0x1326   : > { %v5447_v55 = vmul.f32 %v5425_v20, %v14459_v3 }
0x1328   : > { %v5455_v1 = vadd.f32 1e-05, %v5447_v55 }
0x132a   : > { %12458 = vrsqrt.f32 %v5455_v1  ;;  %vm5469_vm10 = vweird.f32 %v5455_v1 }
0x132d   : > { %v5398_v24 = vpop.xlane.xlu1 %5397  ;;  %v5428_v43 = vpop.xlane.xlu2 %5427 }
0x132e   : > { %v5406_v4 = vmul.f32 %v5398_v24, %v14459_v3  ;;  %v5448_v29 = vmul.f32 %v5428_v43, %v14459_v3 }
0x1330   : > { %v12459_v50 = vpop.eup %12458  ;;  %v14670_v32 = vsub.f32 %v14631_v46, %v5406_v4  ;;  %v5456_v53 = vadd.f32 1e-05, %v5448_v29 }
0x1331   : > { %v5464_v12 = vmul.f32 %v12459_v50, %v5455_v1  ;;  %vm5470_vm9 = vweird.f32 %v12459_v50 }
0x1332   : > { %12460 = vrsqrt.f32 %v5456_v53  ;;  %v5422_v62 = vmul.f32 %v14670_v32, %v14670_v32  ;;  %vm5471_vm11 = vmor %vm5469_vm10, %vm5470_vm9  ;;  %vm5479_vm13 = vweird.f32 %v5456_v53 }
0x1333   : > { %v5465_v54 = vmul.f32 %v12459_v50, %v5464_v12 }
0x1334   : > { %v5444_v40 = vsel %vm301_vm0, %v5422_v62, 0.0 }
0x1335   : > { %v5466_v59 = vmul.f32 0.5, %v5465_v54  ;;  %5445 = vadd.xlane.f32.xlu1 %v5444_v40 }
0x1337   : > { %v5467_v2 = vsub.f32 1.5, %v5466_v59 }
0x1338   : > { %v12461_v5 = vpop.eup %12460 }
0x1339   : > { %v5468_v38 = vmul.f32 %v12459_v50, %v5467_v2  ;;  %v5474_v22 = vmul.f32 %v12461_v5, %v5456_v53  ;;  %vm5480_vm12 = vweird.f32 %v12461_v5 }
0x133a   : > { %vm5481_vm14 = vmor %vm5479_vm13, %vm5480_vm12 }
0x133b   : > { %v5472_v46 = vsel %vm5471_vm11, %v12459_v50, %v5468_v38  ;;  %v5475_v61 = vmul.f32 %v12461_v5, %v5474_v22 }
0x133c   : > { %v5543_v34 = vmul.f32 %v5472_v46, %v14620_v58 }
0x133d   : > { %v5476_v63 = vmul.f32 0.5, %v5475_v61 }
0x133e   : > { %v5552_v48 = vmul.f32 %v14676_v33, %v5543_v34 }
0x133f   : > { %v5477_v35 = vsub.f32 1.5, %v5476_v63 }
0x1340   : > { %v14686_v7 = vadd.f32 %v14681_v13, %v5552_v48 }
0x1341   : > { %v5478_v11 = vmul.f32 %v12461_v5, %v5477_v35 }
0x1342   : > { %16684 = vst [vmem:[#allocation18_spill] sm:$0xff] %v14686_v7  ;;  %11590 = vmatmul.msk.f32.vlgmr.msrb.gmra.mxu2 %vm301_vm0, %v14686_v7  ;;  %11598 = vmatmul.msk.f32.vlgmr.msrb.gmra.mxu3 %vm301_vm0, %v14686_v7 }
0x1343   : > { %v5482_v60 = vsel %vm5481_vm14, %v12461_v5, %v5478_v11  ;;  %11606 = vmatmul.msk.f32.vlgmr.msra.gmra.mxu0 %vm301_vm0, %v14686_v7  ;;  %v5431_v58 = vpop.xlane.xlu0 %5430 }
0x1344   : > { %v5544_v42 = vmul.f32 %v5482_v60, %v14626_v17  ;;  %v5449_v27 = vmul.f32 %v5431_v58, %v14459_v3 }
0x1346   : > { %v5457_v28 = vadd.f32 1e-05, %v5449_v27  ;;  %v5553_v45 = vmul.f32 %v14676_v33, %v5544_v42 }
0x1348   : > { %12462 = vrsqrt.f32 %v5457_v28  ;;  %v14698_v56 = vadd.f32 %v14681_v13, %v5553_v45  ;;  %vm5489_vm8 = vweird.f32 %v5457_v28 }
0x134a   : > { %16685 = vst [vmem:[#allocation25_spill] sm:$0xff] %v14698_v56  ;;  %11591 = vmatmul.msk.f32.gmra.mxu2 %vm301_vm0, %v14698_v56  ;;  %11599 = vmatmul.msk.f32.gmra.mxu3 %vm301_vm0, %v14698_v56 }
0x134b   : > { %11607 = vmatmul.msk.f32.gmra.mxu0 %vm301_vm0, %v14698_v56  ;;  %v5434_v15 = vpop.xlane.xlu2 %5433 }
0x134c   : > { %v5450_v17 = vmul.f32 %v5434_v15, %v14459_v3 }
0x134e   : > { %v12463_v16 = vpop.eup %12462  ;;  %v5458_v26 = vadd.f32 1e-05, %v5450_v17 }
0x134f   : > { %v5484_v30 = vmul.f32 %v12463_v16, %v5457_v28  ;;  %vm5490_vm15 = vweird.f32 %v12463_v16 }
0x1350   : > { %12464 = vrsqrt.f32 %v5458_v26  ;;  %vm5491_vm9 = vmor %vm5489_vm8, %vm5490_vm15  ;;  %vm5499_vm11 = vweird.f32 %v5458_v26 }
0x1351   : > { %v5485_v41 = vmul.f32 %v12463_v16, %v5484_v30 }
0x1353   : > { %v5486_v19 = vmul.f32 0.5, %v5485_v41  ;;  %v5437_v23 = vpop.xlane.xlu1 %5436 }
0x1354   : > { %v5451_v10 = vmul.f32 %v5437_v23, %v14459_v3 }
0x1355   : > { %v5487_v9 = vsub.f32 1.5, %v5486_v19 }
0x1356   : > { %v12465_v51 = vpop.eup %12464  ;;  %v5459_v57 = vadd.f32 1e-05, %v5451_v10 }
0x1357   : > { %v5488_v31 = vmul.f32 %v12463_v16, %v5487_v9  ;;  %v5494_v36 = vmul.f32 %v12465_v51, %v5458_v26  ;;  %vm5500_vm10 = vweird.f32 %v12465_v51 }
0x1358   : > { %12466 = vrsqrt.f32 %v5459_v57  ;;  %vm5501_vm12 = vmor %vm5499_vm11, %vm5500_vm10  ;;  %vm5509_vm14 = vweird.f32 %v5459_v57 }
0x1359   : > { %v5492_v6 = vsel %vm5491_vm9, %v12463_v16, %v5488_v31  ;;  %v5495_v39 = vmul.f32 %v12465_v51, %v5494_v36 }
0x135a   : > { %v5545_v18 = vmul.f32 %v5492_v6, %v14637_v0 }
0x135b   : > { %v5496_v49 = vmul.f32 0.5, %v5495_v39  ;;  %v5440_v52 = vpop.xlane.xlu0 %5439  ;;  %v11588_v39 = vld [vmem:[%s16605_s2 + $0x10] sm:$0xff] }
0x135c   : > { %v5452_v8 = vmul.f32 %v5440_v52, %v14459_v3  ;;  %v5554_v44 = vmul.f32 %v14676_v33, %v5545_v18  ;;  %v14773_v52 = vperm.slane %v11588_v39, 1 }
0x135d   : > { %v5497_v14 = vsub.f32 1.5, %v5496_v49  ;;  %v14771_v49 = vperm.slane %v11588_v39, 0 }
0x135e   : > { %v12467_v20 = vpop.eup %12466  ;;  %v5460_v55 = vadd.f32 1e-05, %v5452_v8  ;;  %v14712_v1 = vadd.f32 %v14681_v13, %v5554_v44 }
0x135f   : > { %v5498_v24 = vmul.f32 %v12465_v51, %v5497_v14  ;;  %v5504_v43 = vmul.f32 %v12467_v20, %v5459_v57  ;;  %vm5510_vm13 = vweird.f32 %v12467_v20 }
0x1360   : > { %16686 = vst [vmem:[#allocation33_spill] sm:$0xff] %v14712_v1  ;;  %12468 = vrsqrt.f32 %v5460_v55  ;;  %11592 = vmatmul.msk.f32.gmra.mxu2 %vm301_vm0, %v14712_v1  ;;  %11600 = vmatmul.msk.f32.gmra.mxu3 %vm301_vm0, %v14712_v1  ;;  %vm5511_vm15 = vmor %vm5509_vm14, %vm5510_vm13  ;;  %vm5519_vm9 = vweird.f32 %v5460_v55 }
0x1361   : > { %v5502_v0 = vsel %vm5501_vm12, %v12465_v51, %v5498_v24  ;;  %v5505_v4 = vmul.f32 %v12467_v20, %v5504_v43  ;;  %11608 = vmatmul.msk.f32.gmra.mxu0 %vm301_vm0, %v14712_v1 }
0x1362   : > { %v5546_v29 = vmul.f32 %v5502_v0, %v14643_v47 }
0x1363   : > { %v5506_v50 = vmul.f32 0.5, %v5505_v4  ;;  %v5443_v53 = vpop.xlane.xlu2 %5442 }
0x1364   : > { %v5453_v12 = vmul.f32 %v5443_v53, %v14459_v3  ;;  %v5555_v62 = vmul.f32 %v14676_v33, %v5546_v29 }
0x1365   : > { %v5507_v54 = vsub.f32 1.5, %v5506_v50 }
0x1366   : > { %v12469_v40 = vpop.eup %12468  ;;  %v5461_v59 = vadd.f32 1e-05, %v5453_v12  ;;  %v14724_v2 = vadd.f32 %v14681_v13, %v5555_v62 }
0x1367   : > { %v5508_v5 = vmul.f32 %v12467_v20, %v5507_v54  ;;  %v5514_v38 = vmul.f32 %v12469_v40, %v5460_v55  ;;  %vm5520_vm8 = vweird.f32 %v12469_v40 }
0x1368   : > { %16687 = vst [vmem:[#allocation36_spill] sm:$0xff] %v14724_v2  ;;  %12470 = vrsqrt.f32 %v5461_v59  ;;  %11593 = vmatmul.msk.f32.gmra.mxu2 %vm301_vm0, %v14724_v2  ;;  %11601 = vmatmul.msk.f32.gmra.mxu3 %vm301_vm0, %v14724_v2  ;;  %vm5521_vm10 = vmor %vm5519_vm9, %vm5520_vm8  ;;  %vm5529_vm12 = vweird.f32 %v5461_v59 }
0x1369   : > { %v5512_v47 = vsel %vm5511_vm15, %v12467_v20, %v5508_v5  ;;  %v5515_v22 = vmul.f32 %v12469_v40, %v5514_v38  ;;  %11609 = vmatmul.msk.f32.gmra.mxu0 %vm301_vm0, %v14724_v2 }
0x136a   : > { %v5547_v46 = vmul.f32 %v5512_v47, %v14649_v37 }
0x136b   : > { %v5516_v61 = vmul.f32 0.5, %v5515_v22 }
0x136c   : > { %v5556_v34 = vmul.f32 %v14676_v33, %v5547_v46 }
0x136d   : > { %v5517_v63 = vsub.f32 1.5, %v5516_v61 }
0x136e   : > { %v12471_v48 = vpop.eup %12470  ;;  %v14735_v35 = vadd.f32 %v14681_v13, %v5556_v34 }
0x136f   : > { %v5518_v11 = vmul.f32 %v12469_v40, %v5517_v63  ;;  %v5524_v60 = vmul.f32 %v12471_v48, %v5461_v59  ;;  %vm5530_vm11 = vweird.f32 %v12471_v48  ;;  %v14846_v63 = vperm.slane %v11588_v39, 2 }
0x1370   : > { %16688 = vst [vmem:[#allocation30_spill] sm:$0xff] %v14735_v35  ;;  %11594 = vmatmul.msk.f32.gmra.mxu2 %vm301_vm0, %v14735_v35  ;;  %11602 = vmatmul.msk.f32.gmra.mxu3 %vm301_vm0, %v14735_v35  ;;  %vm5531_vm13 = vmor %vm5529_vm12, %vm5530_vm11 }
0x1371   : > { %v5522_v37 = vsel %vm5521_vm10, %v12469_v40, %v5518_v11  ;;  %v5525_v58 = vmul.f32 %v12471_v48, %v5524_v60  ;;  %11610 = vmatmul.msk.f32.gmra.mxu0 %vm301_vm0, %v14735_v35 }
0x1372   : > { %v5548_v42 = vmul.f32 %v5522_v37, %v14655_v21 }
0x1373   : > { %v5526_v27 = vmul.f32 0.5, %v5525_v58 }
0x1374   : > { %v5557_v28 = vmul.f32 %v14676_v33, %v5548_v42 }
0x1375   : > { %v5527_v45 = vsub.f32 1.5, %v5526_v27 }
0x1376   : > { %v14746_v15 = vadd.f32 %v14681_v13, %v5557_v28 }
0x1377   : > { %v5528_v17 = vmul.f32 %v12471_v48, %v5527_v45 }
0x1378   : > { %16689 = vst [vmem:[#allocation29_spill] sm:$0xff] %v14746_v15  ;;  %11595 = vmatmul.msk.f32.gmra.mxu2 %vm301_vm0, %v14746_v15  ;;  %11603 = vmatmul.msk.f32.gmra.mxu3 %vm301_vm0, %v14746_v15 }
0x1379   : > { %v5532_v16 = vsel %vm5531_vm13, %v12471_v48, %v5528_v17  ;;  %11611 = vmatmul.msk.f32.gmra.mxu0 %vm301_vm0, %v14746_v15 }
0x137a   : > { %v5549_v21 = vmul.f32 %v5532_v16, %v14661_v25 }
0x137c   : > { %v5558_v26 = vmul.f32 %v14676_v33, %v5549_v21 }
0x137e   : > { %v14757_v30 = vadd.f32 %v14681_v13, %v5558_v26 }
0x1380   : > { %16690 = vst [vmem:[#allocation16_spill] sm:$0xff] %v14757_v30  ;;  %11596 = vmatmul.msk.f32.gmra.mxu2 %vm301_vm0, %v14757_v30  ;;  %11604 = vmatmul.msk.f32.gmra.mxu3 %vm301_vm0, %v14757_v30 }
0x1381   : > { %11612 = vmatmul.msk.f32.gmra.mxu0 %vm301_vm0, %v14757_v30 }
0x13a8   : > { %v5446_v41 = vpop.xlane.xlu1 %5445 }
0x13a9   : > { %v5454_v19 = vmul.f32 %v5446_v41, %v14459_v3 }
0x13ab   : > { %v5462_v23 = vadd.f32 1e-05, %v5454_v19 }
0x13ad   : > { %12472 = vrsqrt.f32 %v5462_v23  ;;  %vm5539_vm15 = vweird.f32 %v5462_v23 }
0x13b3   : > { %v12473_v25 = vpop.eup %12472 }
0x13b4   : > { %v5534_v10 = vmul.f32 %v12473_v25, %v5462_v23  ;;  %vm5540_vm14 = vweird.f32 %v12473_v25 }
0x13b5   : > { %vm5541_vm8 = vmor %vm5539_vm15, %vm5540_vm14 }
0x13b6   : > { %v5535_v9 = vmul.f32 %v12473_v25, %v5534_v10 }
0x13b8   : > { %v5536_v51 = vmul.f32 0.5, %v5535_v9 }
0x13ba   : > { %v5537_v57 = vsub.f32 1.5, %v5536_v51 }
0x13bc   : > { %v5538_v31 = vmul.f32 %v12473_v25, %v5537_v57 }
0x13be   : > { %v5542_v36 = vsel %vm5541_vm8, %v12473_v25, %v5538_v31 }
0x13bf   : > { %v5550_v6 = vmul.f32 %v5542_v36, %v14670_v32 }
0x13c0   : > { %v5713_v54 = vpop.f32.mrf.mxu0 }
0x13c1   : > { %v5559_v18 = vmul.f32 %v14676_v33, %v5550_v6  ;;  %v14854_v37 = vadd.f32 %v5713_v54, %v14846_v63 }
0x13c3   : > { %v14776_v8 = vadd.f32 %v14681_v13, %v5559_v18 }
0x13c5   : > { %16691 = vst [vmem:[#allocation35_spill] sm:$0xff] %v14776_v8  ;;  %v5619_v44 = vpop.f32.mrf.mxu2  ;;  %11597 = vmatmul.msk.f32.gmra.mxu2 %vm301_vm0, %v14776_v8  ;;  %v5666_v14 = vpop.f32.mrf.mxu3  ;;  %11605 = vmatmul.msk.f32.gmra.mxu3 %vm301_vm0, %v14776_v8 }
0x13c6   : > { %v14783_v32 = vadd.f32 %v5619_v44, %v14771_v49  ;;  %v14786_v33 = vadd.f32 %v5666_v14, %v14773_v52  ;;  %11613 = vmatmul.msk.f32.gmra.mxu0 %vm301_vm0, %v14776_v8 }
0x13c8   : > { %11614 = vmatpush.xpose.msk.msra.mxu1 %vm461_vm1, %v14786_v33  ;;  %6227 = vrot.lane.b32.xlu2 %v14786_v33, %s12884_s19  ;;  %v5716_v61 = vpop.f32.mrf.mxu0 }
0x13c9   : > { %6225 = vrot.lane.b32.xlu0 %v14783_v32, %s12884_s19  ;;  %v14874_v41 = vadd.f32 %v5716_v61, %v14846_v63 }
0x13cb   : > { %11615 = vmatmul.msk.f32.vlgmr.msra.gmra.mxu1 %vm461_vm1, %v14783_v32 }
0x13cd   : > { %v5669_v13 = vpop.f32.mrf.mxu3  ;;  %v5622_v20 = vpop.f32.mrf.mxu2 }
0x13ce   : > { %v14799_v55 = vadd.f32 %v5669_v13, %v14773_v52  ;;  %v14804_v24 = vadd.f32 %v5622_v20, %v14771_v49 }
0x13d0   : > { %11616 = vmatpush.xpose.msk.msra.mxu2 %vm461_vm1, %v14799_v55 }
0x13d3   : > { %11617 = vmatmul.msk.f32.vlgmr.msra.gmra.mxu2 %vm461_vm1, %v14804_v24 }
0x13de   : > { %v5719_v58 = vpop.f32.mrf.mxu0 }
0x13df   : > { %v14863_v27 = vadd.f32 %v5719_v58, %v14846_v63 }
0x13e3   : > { %v5625_v43 = vpop.f32.mrf.mxu2  ;;  %v5672_v0 = vpop.f32.mrf.mxu3 }
0x13e4   : > { %v14809_v4 = vadd.f32 %v5672_v0, %v14773_v52  ;;  %v14814_v29 = vadd.f32 %v5625_v43, %v14771_v49 }
0x13e6   : > { %11618 = vmatpush.xpose.msk.msrb.mxu1 %vm461_vm1, %v14809_v4  ;;  %v5722_v19 = vpop.f32.mrf.mxu0 }
0x13e7   : > { %v14884_v9 = vadd.f32 %v5722_v19, %v14846_v63 }
0x13e9   : > { %11619 = vmatmul.msk.f32.vlgmr.msrb.gmra.mxu1 %vm461_vm1, %v14814_v29 }
0x13eb   : > { %v5628_v50 = vpop.f32.mrf.mxu2  ;;  %v5675_v53 = vpop.f32.mrf.mxu3 }
0x13ec   : > { %v14819_v12 = vadd.f32 %v5675_v53, %v14773_v52  ;;  %v14824_v62 = vadd.f32 %v5628_v50, %v14771_v49 }
0x13ee   : > { %11620 = vmatpush.xpose.msk.msrb.mxu2 %vm461_vm1, %v14819_v12 }
0x13f1   : > { %11621 = vmatmul.msk.f32.vlgmr.msrb.gmra.mxu2 %vm461_vm1, %v14824_v62 }
0x13f3   : > { %v5631_v40 = vpop.f32.mrf.mxu2  ;;  %v5678_v59 = vpop.f32.mrf.mxu3 }
0x13f4   : > { %v14829_v5 = vadd.f32 %v5678_v59, %v14773_v52  ;;  %v14834_v38 = vadd.f32 %v5631_v40, %v14771_v49 }
0x13f6   : > { %11622 = vmatpush.xpose.msk.msra.mxu1 %vm461_vm1, %v14829_v5 }
0x13f9   : > { %11623 = vmatmul.msk.f32.vlgmr.msra.gmra.mxu1 %vm461_vm1, %v14834_v38 }
0x13fb   : > { %v5634_v47 = vpop.f32.mrf.mxu2  ;;  %v5681_v22 = vpop.f32.mrf.mxu3 }
0x13fc   : > { %v14839_v46 = vadd.f32 %v5681_v22, %v14773_v52  ;;  %v14844_v34 = vadd.f32 %v5634_v47, %v14771_v49 }
0x13fe   : > { %11624 = vmatpush.xpose.msk.msra.mxu2 %vm461_vm1, %v14839_v46 }
0x1401   : > { %11625 = vmatmul.msk.f32.vlgmr.msra.gmra.mxu2 %vm461_vm1, %v14844_v34 }
0x1403   : > { %v5684_v48 = vpop.f32.mrf.mxu3  ;;  %v5637_v11 = vpop.f32.mrf.mxu2 }
0x1404   : > { %v14851_v60 = vadd.f32 %v5684_v48, %v14773_v52  ;;  %v14859_v42 = vadd.f32 %v5637_v11, %v14771_v49 }
0x1406   : > { %11626 = vmatpush.xpose.msk.msrb.mxu1 %vm461_vm1, %v14851_v60 }
0x1409   : > { %11627 = vmatmul.msk.f32.vlgmr.msrb.gmra.mxu1 %vm461_vm1, %v14859_v42 }
0x140a   : > { %6059 = vmatpush.msra.mxu1 %v14854_v37 }
0x140c   : > { %6105 = vmatpush.msrb.mxu1 %v14863_v27 }
0x1422   : > { %v6228_v28 = vpop.permute.xlu2 %6227 }
0x1423   : > { %11638 = vmatpush.xpose.msk.msra.mxu3 %vm461_vm1, %v6228_v28 }
0x143b   : > { %v6226_v45 = vpop.permute.xlu0 %6225 }
0x143c   : > { %11639 = vmatmul.msk.f32.vlgmr.msra.gmra.mxu3 %vm461_vm1, %v6226_v45 }
0x1448   : > { %v5687_v17 = vpop.f32.mrf.mxu3  ;;  %v5640_v16 = vpop.f32.mrf.mxu2 }
0x1449   : > { %v14871_v21 = vadd.f32 %v5687_v17, %v14773_v52  ;;  %v5760_v26 = vpop.f32.mrf.mxu1  ;;  %v14879_v25 = vadd.f32 %v5640_v16, %v14771_v49 }
0x144a   : > { %v5945_v23 = vmul.f32 0.5, %v5760_v26 }
0x144b   : > { %11628 = vmatpush.xpose.msk.msrb.mxu2 %vm461_vm1, %v14871_v21 }
0x144c   : > { %v5953_v10 = vsel %vm16620_vm2, %v5945_v23, -inf }
0x144d   : > { %5954 = vmax.xlane.f32.xlu2 %v5953_v10 }
0x144e   : > { %11629 = vmatmul.msk.f32.vlgmr.msrb.gmra.mxu2 %vm461_vm1, %v14879_v25 }
0x144f   : > { %6082 = vmatpush.msra.mxu2 %v14874_v41 }
0x1451   : > { %6128 = vmatpush.msrb.mxu2 %v14884_v9 }
0x1456   : > { %v5786_v51 = vpop.f32.mrf.mxu2 }
0x1457   : > { %v5946_v57 = vmul.f32 0.5, %v5786_v51 }
0x1459   : > { %v5956_v31 = vsel %vm16620_vm2, %v5946_v57, -inf }
0x145a   : > { %5957 = vmax.xlane.f32.xlu0 %v5956_v31 }
0x1466   : > { %v5812_v36 = vpop.f32.mrf.mxu1 }
0x1467   : > { %v14890_v6 = vmul.f32 0.5, %v5812_v36 }
0x1469   : > { %v5959_v39 = vsel %vm16620_vm2, %v14890_v6, -inf }
0x146a   : > { %5960 = vmax.xlane.f32.xlu1 %v5959_v39 }
0x146e   : > { %6337 = vrot.lane.b32.xlu0 %v14834_v38, %s12884_s19 }
0x1474   : > { %v5838_v18 = vpop.f32.mrf.mxu2 }
0x1475   : > { %v5948_v49 = vmul.f32 0.5, %v5838_v18 }
0x1476   : > { %6311 = vrot.lane.b32.xlu0 %v14819_v12, %s12884_s19  ;;  %v5864_v44 = vpop.f32.mrf.mxu1 }
0x1477   : > { %v5962_v52 = vsel %vm16620_vm2, %v5948_v49, -inf  ;;  %v5949_v14 = vmul.f32 0.5, %v5864_v44 }
0x1478   : > { %5963 = vmax.xlane.f32.xlu2 %v5962_v52 }
0x1479   : > { %v5965_v13 = vsel %vm16620_vm2, %v5949_v14, -inf }
0x147e   : > { %6309 = vrot.lane.b32.xlu0 %v14824_v62, %s12884_s19 }
0x1480   : > { %5966 = vmax.xlane.f32.xlu2 %v5965_v13 }
0x1484   : > { %v5890_v20 = vpop.f32.mrf.mxu2 }
0x1485   : > { %v5950_v43 = vmul.f32 0.5, %v5890_v20 }
0x1486   : > { %v5916_v50 = vpop.f32.mrf.mxu1 }
0x1487   : > { %v5968_v0 = vsel %vm16620_vm2, %v5950_v43, -inf  ;;  %v5951_v53 = vmul.f32 0.5, %v5916_v50 }
0x1488   : > { %5969 = vmax.xlane.f32.xlu1 %v5968_v0 }
0x1489   : > { %v5971_v54 = vsel %vm16620_vm2, %v5951_v53, -inf }
0x1498   : > { %6421 = vrot.lane.b32.xlu2 %v14879_v25, %s12884_s19 }
0x14a1   : > { %6339 = vrot.lane.b32.xlu1 %v14829_v5, %s12884_s19 }
0x14a8   : > { %5972 = vmax.xlane.f32.xlu0 %v5971_v54 }
0x14c0   : > { %v5955_v40 = vpop.xlane.xlu2 %5954 }
0x14c1   : > { %v5977_v59 = vsub.f32 %v5945_v23, %v5955_v40 }
0x14c3   : > { %v5985_v47 = vmul.f32 1.442695, %v5977_v59 }
0x14c5   : > { %12474 = vpow2.f32 %v5985_v47 }
0x14cb   : > { %v14908_v22 = vpop.eup %12474 }
0x14cc   : > { %v6001_v61 = vsel %vm16620_vm2, %v14908_v22, 0.0 }
0x14cd   : > { %6002 = vadd.xlane.f32.xlu1 %v6001_v61  ;;  %v5958_v48 = vpop.xlane.xlu0 %5957 }
0x14ce   : > { %v5978_v11 = vsub.f32 %v5946_v57, %v5958_v48 }
0x14d0   : > { %v5987_v58 = vmul.f32 1.442695, %v5978_v11 }
0x14d1   : > { %v5942_v28 = vpop.f32.mrf.mxu2 }
0x14d2   : > { %v14912_v45 = vmul.f32 0.5, %v5942_v28  ;;  %12476 = vpow2.f32 %v5987_v58 }
0x14d4   : > { %v5974_v17 = vsel %vm16620_vm2, %v14912_v45, -inf }
0x14d5   : > { %5975 = vmax.xlane.f32.xlu0 %v5974_v17 }
0x14d8   : > { %v14916_v16 = vpop.eup %12476 }
0x14d9   : > { %v6004_v26 = vsel %vm16620_vm2, %v14916_v16, 0.0 }
0x14dd   : > { %6005 = vadd.xlane.f32.xlu0 %v6004_v26  ;;  %v5961_v51 = vpop.xlane.xlu1 %5960 }
0x14de   : > { %v5979_v54 = vsub.f32 %v14890_v6, %v5961_v51 }
0x14e0   : > { %v6338_v20 = vpop.permute.xlu0 %6337 }
0x14e8   : > { %v14935_v40 = vpop.permute.xlu0 %6311 }
0x14eb   : > { %v5964_v19 = vpop.xlane.xlu2 %5963 }
0x14ec   : > { %v5980_v23 = vsub.f32 %v5948_v49, %v5964_v19 }
0x14ee   : > { %v5991_v10 = vmul.f32 1.442695, %v5980_v23 }
0x14f0   : > { %12478 = vpow2.f32 %v5991_v10  ;;  %v14937_v59 = vpop.permute.xlu0 %6309 }
0x14f1   : > { %6423 = vrot.lane.b32.xlu0 %v14871_v21, %s12884_s19 }
0x14f3   : > { %v5967_v57 = vpop.xlane.xlu2 %5966 }
0x14f4   : > { %v5981_v31 = vsub.f32 %v5949_v14, %v5967_v57 }
0x14f6   : > { %v14922_v36 = vpop.eup %12478  ;;  %v5993_v39 = vmul.f32 1.442695, %v5981_v31 }
0x14f7   : > { %v6010_v18 = vsel %vm16620_vm2, %v14922_v36, 0.0 }
0x14f8   : > { %12480 = vpow2.f32 %v5993_v39  ;;  %6011 = vadd.xlane.f32.xlu1 %v6010_v18 }
0x14fb   : > { %v5970_v52 = vpop.xlane.xlu1 %5969 }
0x14fc   : > { %v5982_v44 = vsub.f32 %v5950_v43, %v5970_v52  ;;  %v5989_v43 = vmul.f32 1.442695, %v5979_v54 }
0x14fe   : > { %v14926_v13 = vpop.eup %12480  ;;  %v5995_v49 = vmul.f32 1.442695, %v5982_v44 }
0x14ff   : > { %v6013_v0 = vsel %vm16620_vm2, %v14926_v13, 0.0 }
0x1500   : > { %12482 = vpow2.f32 %v5995_v49  ;;  %6014 = vadd.xlane.f32.xlu1 %v6013_v0 }
0x1501   : > { %12484 = vpow2.f32 %v5989_v43 }
0x1506   : > { %v14930_v14 = vpop.eup %12482 }
0x1507   : > { %v6016_v50 = vsel %vm16620_vm2, %v14930_v14, 0.0  ;;  %v14940_v61 = vpop.eup %12484 }
0x1508   : > { %6017 = vadd.xlane.f32.xlu1 %v6016_v50  ;;  %v6007_v48 = vsel %vm16620_vm2, %v14940_v61, 0.0 }
0x1513   : > { %v6340_v47 = vpop.permute.xlu1 %6339 }
0x1514   : > { %11646 = vmatpush.xpose.msk.msrb.mxu3 %vm461_vm1, %v6340_v47 }
0x1517   : > { %11647 = vmatmul.msk.f32.vlgmr.msrb.gmra.mxu3 %vm461_vm1, %v6338_v20 }
0x151b   : > { %6008 = vadd.xlane.f32.xlu0 %v6007_v48  ;;  %v5973_v11 = vpop.xlane.xlu0 %5972 }
0x151c   : > { %v5983_v58 = vsub.f32 %v5951_v53, %v5973_v11  ;;  %v5725_v53 = vpop.f32.mrf.mxu0 }
0x151d   : > { %v14959_v51 = vadd.f32 %v5725_v53, %v14846_v63 }
0x151e   : > { %v5997_v6 = vmul.f32 1.442695, %v5983_v58 }
0x1520   : > { %12486 = vpow2.f32 %v5997_v6 }
0x1524   : > { %v5728_v52 = vpop.f32.mrf.mxu0 }
0x1526   : > { %v14945_v28 = vpop.eup %12486 }
0x1527   : > { %v6019_v17 = vsel %vm16620_vm2, %v14945_v28, 0.0 }
0x1528   : > { %6020 = vadd.xlane.f32.xlu1 %v6019_v17  ;;  %v6250_v17 = vpop.f32.mrf.mxu3 }
0x152c   : > { %v5731_v20 = vpop.f32.mrf.mxu0 }
0x152f   : > { %6367 = vrot.lane.b32.xlu0 %v14839_v46, %s12884_s19 }
0x1534   : > { %v5734_v50 = vpop.f32.mrf.mxu0 }
0x1537   : > { %6393 = vrot.lane.b32.xlu0 %v14859_v42, %s12884_s19 }
0x153f   : > { %6763 = vrot.lane.b32.xlu0 %v14786_v33, %s12885_s20 }
0x1540   : > { %v6003_v26 = vpop.xlane.xlu1 %6002 }
0x1541   : > { %12488 = vrcp.f32 %v6003_v26  ;;  %6253 = vrot.lane.b32.xlu1 %v14804_v24, %s12884_s19 }
0x1547   : > { %v12489_v19 = vpop.eup %12488 }
0x1548   : > { %v6033_v23 = vmul.f32 %v12489_v19, %v14908_v22  ;;  %v5976_v10 = vpop.xlane.xlu0 %5975  ;;  %v14993_v19 = vadd.f32 %v5731_v20, %v14846_v63 }
0x1549   : > { %v5984_v57 = vsub.f32 %v14912_v45, %v5976_v10  ;;  %6395 = vrot.lane.b32.xlu1 %v14851_v60, %s12884_s19  ;;  %v14969_v45 = vadd.f32 %v5728_v52, %v14846_v63  ;;  %v6422_v52 = vpop.permute.xlu2 %6421 }
0x154a   : > { %11630 = vmatmul.msk.f32.vlgmr.msra.gmra.mxu1 %vm16620_vm2, %v6033_v23 }
0x154b   : > { %v5999_v31 = vmul.f32 1.442695, %v5984_v57  ;;  %6151 = vmatpush.msra.mxu1 %v14959_v51 }
0x154d   : > { %12490 = vpow2.f32 %v5999_v31 }
0x1550   : > { %v6006_v39 = vpop.xlane.xlu0 %6005 }
0x1551   : > { %12492 = vrcp.f32 %v6006_v39  ;;  %v6449_v39 = vmul.f32 0.5, %v6250_v17 }
0x1553   : > { %v12491_v18 = vpop.eup %12490 }
0x1554   : > { %v6022_v22 = vsel %vm16620_vm2, %v12491_v18, 0.0 }
0x1555   : > { %6023 = vadd.xlane.f32.xlu2 %v6022_v22  ;;  %v6457_v22 = vsel %vm16620_vm2, %v6449_v39, -inf }
0x1557   : > { %v12493_v44 = vpop.eup %12492 }
0x1558   : > { %v6034_v49 = vmul.f32 %v12493_v44, %v14916_v16  ;;  %v14977_v16 = vadd.f32 %v5734_v50, %v14846_v63  ;;  %v15005_v44 = vpack.i.bf16 %v14959_v51, %v14854_v37 }
0x155a   : > { %11631 = vmatmul.msk.f32.vlgmr.msra.gmra.mxu2 %vm16620_vm2, %v6034_v49 }
0x155b   : > { %6174 = vmatpush.msra.mxu2 %v14969_v45 }
0x156b   : > { %v6012_v0 = vpop.xlane.xlu1 %6011 }
0x156c   : > { %12494 = vrcp.f32 %v6012_v0 }
0x156d   : > { %6255 = vrot.lane.b32.xlu2 %v14799_v55, %s12884_s19 }
0x1572   : > { %v12495_v54 = vpop.eup %12494 }
0x1573   : > { %v6036_v43 = vmul.f32 %v12495_v54, %v14922_v36  ;;  %v6015_v47 = vpop.xlane.xlu1 %6014  ;;  %v6424_v36 = vpop.permute.xlu0 %6423  ;;  %v15018_v54 = vpack.i.bf16 %v14977_v16, %v14884_v9 }
0x1575   : > { %6283 = vrot.lane.b32.xlu2 %v14809_v4, %s12884_s19  ;;  %11633 = vmatmul.msk.f32.vlgmr.msrb.gmra.mxu2 %vm16620_vm2, %v6036_v43 }
0x1576   : > { %6220 = vmatpush.msrb.mxu2 %v14977_v16 }
0x157b   : > { %v6018_v48 = vpop.xlane.xlu1 %6017 }
0x157c   : > { %12496 = vrcp.f32 %v6018_v48 }
0x157d   : > { %6281 = vrot.lane.b32.xlu2 %v14814_v29, %s12884_s19 }
0x1582   : > { %v12497_v11 = vpop.eup %12496 }
0x1583   : > { %v6038_v58 = vmul.f32 %v12497_v11, %v14930_v14 }
0x1585   : > { %6365 = vrot.lane.b32.xlu2 %v14844_v34, %s12884_s19  ;;  %11635 = vmatmul.msk.f32.vlgmr.msra.gmra.mxu2 %vm16620_vm2, %v6038_v58 }
0x1586   : > { %11644 = vmatpush.xpose.msk.msra.mxu2 %vm461_vm1, %v14935_v40 }
0x158e   : > { %v6009_v6 = vpop.xlane.xlu0 %6008 }
0x158f   : > { %12498 = vrcp.f32 %v6009_v6 }
0x1590   : > { %12500 = vrcp.f32 %v6015_v47 }
0x1595   : > { %v12499_v26 = vpop.eup %12498 }
0x1596   : > { %v6035_v53 = vmul.f32 %v12499_v26, %v14940_v61  ;;  %v12501_v23 = vpop.eup %12500 }
0x1597   : > { %v6037_v31 = vmul.f32 %v12501_v23, %v14926_v13 }
0x1598   : > { %11632 = vmatmul.msk.f32.vlgmr.msrb.gmra.mxu1 %vm16620_vm2, %v6035_v53 }
0x1599   : > { %6197 = vmatpush.msrb.mxu1 %v14993_v19 }
0x159a   : > { %v6362_v14 = vpop.f32.mrf.mxu3 }
0x159b   : > { %v6453_v10 = vmul.f32 0.5, %v6362_v14  ;;  %v6021_v57 = vpop.xlane.xlu1 %6020 }
0x159c   : > { %12502 = vrcp.f32 %v6021_v57 }
0x159d   : > { %v6469_v40 = vsel %vm16620_vm2, %v6453_v10, -inf }
0x159e   : > { %6470 = vmax.xlane.f32.xlu1 %v6469_v40 }
0x15a0   : > { %11634 = vmatmul.msk.f32.vlgmr.msra.gmra.mxu1 %vm16620_vm2, %v6037_v31 }
0x15a1   : > { %v6368_v50 = vpop.permute.xlu0 %6367 }
0x15a2   : > { %v12503_v61 = vpop.eup %12502 }
0x15a3   : > { %v6039_v63 = vmul.f32 %v12503_v61, %v14945_v28 }
0x15a8   : > { %11636 = vmatmul.msk.f32.vlgmr.msrb.gmra.mxu1 %vm16620_vm2, %v6039_v63 }
0x15a9   : > { %v6394_v48 = vpop.permute.xlu0 %6393 }
0x15ae   : > { %6458 = vmax.xlane.f32.xlu2 %v6457_v22 }
0x15b3   : > { %v6254_v49 = vpop.permute.xlu1 %6253 }
0x15bb   : > { %v6396_v43 = vpop.permute.xlu1 %6395 }
0x15c6   : > { %12036 = vrot.lane.b32.xlu2 %v15005_v44, %s12884_s19 }
0x15c8   : > { %v6024_v13 = vpop.xlane.xlu2 %6023 }
0x15c9   : > { %12504 = vrcp.f32 %v6024_v13 }
0x15ce   : > { %6875 = vrot.lane.b32.xlu2 %v14829_v5, %s12885_s20 }
0x15cf   : > { %v12505_v28 = vpop.eup %12504 }
0x15d0   : > { %v6040_v20 = vmul.f32 %v12505_v28, %v12491_v18  ;;  %v6256_v0 = vpop.permute.xlu2 %6255 }
0x15d1   : > { %11640 = vmatpush.xpose.msk.msrb.mxu0 %vm461_vm1, %v6256_v0 }
0x15d2   : > { %11637 = vmatmul.msk.f32.vlgmr.msrb.gmra.mxu2 %vm16620_vm2, %v6040_v20 }
0x15d3   : > { %11652 = vmatpush.xpose.msk.msrb.mxu2 %vm461_vm1, %v6424_v36 }
0x15d4   : > { %11641 = vmatmul.msk.f32.vlgmr.msrb.gmra.mxu0 %vm461_vm1, %v6254_v49 }
0x15d5   : > { %11648 = vmatpush.xpose.msk.msra.mxu0 %vm461_vm1, %v6368_v50 }
0x15d6   : > { %12041 = vrot.lane.b32.xlu2 %v15018_v54, %s12884_s19 }
0x15d8   : > { %v6284_v18 = vpop.permute.xlu2 %6283 }
0x15d9   : > { %11642 = vmatpush.xpose.msk.msra.mxu1 %vm461_vm1, %v6284_v18 }
0x15da   : > { %11645 = vmatmul.msk.f32.vlgmr.msra.gmra.mxu2 %vm461_vm1, %v14937_v59 }
0x15dd   : > { %11650 = vmatpush.xpose.msk.msrb.mxu1 %vm461_vm1, %v6396_v43  ;;  %v15036_v13 = vpop.f32.mrf.mxu2 }
0x15de   : > { %6873 = vrot.lane.b32.xlu2 %v14834_v38, %s12885_s20  ;;  %16693 = vst [vmem:[#allocation22_spill] sm:$0xff] %v15036_v13 }
0x15e0   : > { %v6282_v47 = vpop.permute.xlu2 %6281 }
0x15e1   : > { %11643 = vmatmul.msk.f32.vlgmr.msra.gmra.mxu1 %vm461_vm1, %v6282_v47 }
0x15e2   : > { %11653 = vmatmul.msk.f32.vlgmr.msrb.gmra.mxu2 %vm461_vm1, %v6422_v52 }
0x15e8   : > { %v6366_v11 = vpop.permute.xlu2 %6365 }
0x15e9   : > { %11649 = vmatmul.msk.f32.vlgmr.msra.gmra.mxu0 %vm461_vm1, %v6366_v11  ;;  %11651 = vmatmul.msk.f32.vlgmr.msrb.gmra.mxu1 %vm461_vm1, %v6394_v48 }
0x15f8   : > { %v15040_v49 = vpop.f32.mrf.mxu2 }
0x15f9   : > { %16695 = vst [vmem:[#allocation17_spill] sm:$0xff] %v15040_v49 }
0x1608   : > { %v15044_v0 = vpop.f32.mrf.mxu2 }
0x1609   : > { %16697 = vst [vmem:[#allocation24_spill] sm:$0xff] %v15044_v0 }
0x1611   : > { %v6471_v58 = vpop.xlane.xlu1 %6470 }
0x1612   : > { %v6485_v59 = vsub.f32 %v6453_v10, %v6471_v58  ;;  %v15034_v10 = vpop.f32.mrf.mxu1 }
0x1613   : > { %16692 = vst [vmem:[#allocation23_spill] sm:$0xff] %v15034_v10 }
0x1614   : > { %v6497_v26 = vmul.f32 1.442695, %v6485_v59 }
0x161a   : > { %v15038_v28 = vpop.f32.mrf.mxu1 }
0x161b   : > { %16694 = vst [vmem:[#allocation27_spill] sm:$0xff] %v15038_v28 }
0x1621   : > { %v6459_v36 = vpop.xlane.xlu2 %6458 }
0x1622   : > { %v6481_v6 = vsub.f32 %v6449_v39, %v6459_v36  ;;  %v15042_v20 = vpop.f32.mrf.mxu1 }
0x1623   : > { %16696 = vst [vmem:[#allocation32_spill] sm:$0xff] %v15042_v20 }
0x1624   : > { %v6489_v17 = vmul.f32 1.442695, %v6481_v6 }
0x1626   : > { %12506 = vpow2.f32 %v6489_v17 }
0x1627   : > { %12508 = vpow2.f32 %v6497_v26 }
0x1629   : > { %v12037_v53 = vpop.permute.xlu2 %12036 }
0x162a   : > { %v12039_v14 = vunpack.i.h.bf16 %v12037_v53  ;;  %v12038_v23 = vunpack.i.l.bf16 %v12037_v53  ;;  %v15049_v48 = vpop.f32.mrf.mxu1 }
0x162b   : > { %16699 = vst [vmem:[#allocation28_spill] sm:$0xff] %v15049_v48 }
0x162c   : > { %v12507_v57 = vpop.eup %12506  ;;  %6567 = vmatpush.msra.mxu3 %v12038_v23 }
0x162d   : > { %v6505_v40 = vsel %vm16620_vm2, %v12507_v57, 0.0  ;;  %v12509_v61 = vpop.eup %12508 }
0x162e   : > { %6675 = vmatpush.msrb.mxu3 %v12039_v14  ;;  %6506 = vadd.xlane.f32.xlu0 %v6505_v40  ;;  %v6517_v63 = vsel %vm16620_vm2, %v12509_v61, 0.0 }
0x1631   : > { %v6876_v31 = vpop.permute.xlu2 %6875 }
0x1636   : > { %6518 = vadd.xlane.f32.xlu0 %v6517_v63 }
0x1639   : > { %v12042_v39 = vpop.permute.xlu2 %12041 }
0x163a   : > { %v12044_v22 = vunpack.i.h.bf16 %v12042_v39  ;;  %v12043_v52 = vunpack.i.l.bf16 %v12042_v39  ;;  %v6764_v39 = vpop.permute.xlu0 %6763 }
0x163c   : > { %6648 = vmatpush.msra.mxu2 %v12043_v52 }
0x163e   : > { %6756 = vmatpush.msrb.mxu2 %v12044_v22 }
0x1651   : > { %v6278_v50 = vpop.f32.mrf.mxu0 }
0x1652   : > { %v6450_v18 = vmul.f32 0.5, %v6278_v50 }
0x1654   : > { %v6460_v43 = vsel %vm16620_vm2, %v6450_v18, -inf }
0x1655   : > { %v15047_v47 = vpop.f32.mrf.mxu2  ;;  %6461 = vmax.xlane.f32.xlu1 %v6460_v43 }
0x1656   : > { %16698 = vst [vmem:[#allocation21_spill] sm:$0xff] %v15047_v47 }
0x165d   : > { %v6334_v11 = vpop.f32.mrf.mxu2 }
0x165e   : > { %v15051_v58 = vmul.f32 0.5, %v6334_v11  ;;  %v6306_v36 = vpop.f32.mrf.mxu1 }
0x165f   : > { %v6451_v6 = vmul.f32 0.5, %v6306_v36 }
0x1660   : > { %v6466_v59 = vsel %vm16620_vm2, %v15051_v58, -inf }
0x1661   : > { %6467 = vmax.xlane.f32.xlu0 %v6466_v59  ;;  %v6463_v17 = vsel %vm16620_vm2, %v6451_v6, -inf }
0x1662   : > { %6464 = vmax.xlane.f32.xlu2 %v6463_v17 }
0x1665   : > { %v6446_v26 = vpop.f32.mrf.mxu2 }
0x1666   : > { %v6456_v53 = vmul.f32 0.5, %v6446_v26  ;;  %v6390_v14 = vpop.f32.mrf.mxu0  ;;  %v6418_v11 = vpop.f32.mrf.mxu1 }
0x1667   : > { %v6454_v23 = vmul.f32 0.5, %v6390_v14  ;;  %v6455_v59 = vmul.f32 0.5, %v6418_v11 }
0x1668   : > { %v6478_v40 = vsel %vm16620_vm2, %v6456_v53, -inf }
0x1669   : > { %v6472_v63 = vsel %vm16620_vm2, %v6454_v23, -inf  ;;  %v6475_v26 = vsel %vm16620_vm2, %v6455_v59, -inf }
0x166a   : > { %6479 = vmax.xlane.f32.xlu2 %v6478_v40  ;;  %6473 = vmax.xlane.f32.xlu1 %v6472_v63  ;;  %v6874_v63 = vpop.permute.xlu2 %6873 }
0x1683   : > { %6761 = vrot.lane.b32.xlu1 %v14783_v32, %s12885_s20 }
0x168b   : > { %6847 = vrot.lane.b32.xlu1 %v14819_v12, %s12885_s20 }
0x16a1   : > { %v6507_v22 = vpop.xlane.xlu0 %6506 }
0x16a2   : > { %12510 = vrcp.f32 %v6507_v22 }
0x16a8   : > { %v12511_v52 = vpop.eup %12510 }
0x16a9   : > { %v6537_v50 = vmul.f32 %v12511_v52, %v12507_v57  ;;  %v6519_v43 = vpop.xlane.xlu0 %6518 }
0x16aa   : > { %12512 = vrcp.f32 %v6519_v43 }
0x16ab   : > { %11654 = vmatmul.msk.f32.vlgmr.msra.gmra.mxu3 %vm16620_vm2, %v6537_v50 }
0x16ac   : > { %11662 = vmatpush.xpose.msk.msra.mxu3 %vm461_vm1, %v6764_v39 }
0x16b0   : > { %v12513_v36 = vpop.eup %12512 }
0x16b1   : > { %v6541_v17 = vmul.f32 %v12513_v36, %v12509_v61 }
0x16b3   : > { %11658 = vmatmul.msk.f32.vlgmr.msrb.gmra.mxu3 %vm16620_vm2, %v6541_v17 }
0x16b4   : > { %11670 = vmatpush.xpose.msk.msrb.mxu3 %vm461_vm1, %v6876_v31 }
0x16b5   : > { %6476 = vmax.xlane.f32.xlu1 %v6475_v26 }
0x16c8   : > { %v6462_v14 = vpop.xlane.xlu1 %6461 }
0x16c9   : > { %v6482_v40 = vsub.f32 %v6450_v18, %v6462_v14 }
0x16cb   : > { %v6491_v57 = vmul.f32 1.442695, %v6482_v40 }
0x16cd   : > { %12514 = vpow2.f32 %v6491_v57 }
0x16ce   : > { %6845 = vrot.lane.b32.xlu1 %v14824_v62, %s12885_s20 }
0x16d3   : > { %v15069_v39 = vpop.eup %12514 }
0x16d4   : > { %v6508_v61 = vsel %vm16620_vm2, %v15069_v39, 0.0  ;;  %v6468_v14 = vpop.xlane.xlu0 %6467 }
0x16d5   : > { %6509 = vadd.xlane.f32.xlu2 %v6508_v61  ;;  %v6465_v22 = vpop.xlane.xlu2 %6464 }
0x16d6   : > { %v6483_v52 = vsub.f32 %v6451_v6, %v6465_v22  ;;  %6959 = vrot.lane.b32.xlu1 %v14871_v21, %s12885_s20  ;;  %v15082_v6 = vpack.i.bf16 %v14863_v27, %v14874_v41 }
0x16d8   : > { %v6493_v31 = vmul.f32 1.442695, %v6483_v52 }
0x16da   : > { %12516 = vpow2.f32 %v6493_v31 }
0x16dd   : > { %v6480_v18 = vpop.xlane.xlu2 %6479  ;;  %v6474_v40 = vpop.xlane.xlu1 %6473 }
0x16de   : > { %v6488_v50 = vsub.f32 %v6456_v53, %v6480_v18  ;;  %v6484_v53 = vsub.f32 %v15051_v58, %v6468_v14  ;;  %v6486_v22 = vsub.f32 %v6454_v23, %v6474_v40 }
0x16e0   : > { %v12517_v43 = vpop.eup %12516  ;;  %v6503_v11 = vmul.f32 1.442695, %v6488_v50  ;;  %v6495_v57 = vmul.f32 1.442695, %v6484_v53  ;;  %v6499_v52 = vmul.f32 1.442695, %v6486_v22 }
0x16e1   : > { %v6511_v36 = vsel %vm16620_vm2, %v12517_v43, 0.0 }
0x16e2   : > { %6512 = vadd.xlane.f32.xlu0 %v6511_v36  ;;  %12518 = vpow2.f32 %v6503_v11 }
0x16e3   : > { %12520 = vpow2.f32 %v6495_v57 }
0x16e4   : > { %12522 = vpow2.f32 %v6499_v52 }
0x16e8   : > { %v15076_v17 = vpop.eup %12518 }
0x16e9   : > { %v6526_v26 = vsel %vm16620_vm2, %v15076_v17, 0.0  ;;  %v12521_v31 = vpop.eup %12520 }
0x16ea   : > { %6527 = vadd.xlane.f32.xlu0 %v6526_v26  ;;  %v6514_v58 = vsel %vm16620_vm2, %v12521_v31, 0.0  ;;  %v15096_v18 = vpop.eup %12522 }
0x16eb   : > { %v6520_v23 = vsel %vm16620_vm2, %v15096_v18, 0.0 }
0x16ed   : > { %12046 = vrot.lane.b32.xlu2 %v15082_v6, %s12884_s19 }
0x16f5   : > { %6791 = vrot.lane.b32.xlu2 %v14799_v55, %s12885_s20  ;;  %v6762_v61 = vpop.permute.xlu1 %6761 }
0x16f6   : > { %11663 = vmatmul.msk.f32.vlgmr.msra.gmra.mxu3 %vm461_vm1, %v6762_v61 }
0x16fd   : > { %6789 = vrot.lane.b32.xlu2 %v14804_v24, %s12885_s20  ;;  %v6848_v50 = vpop.permute.xlu1 %6847 }
0x16fe   : > { %11671 = vmatmul.msk.f32.vlgmr.msrb.gmra.mxu3 %vm461_vm1, %v6874_v63  ;;  %6957 = vrot.lane.b32.xlu0 %v14879_v25, %s12885_s20  ;;  %v15108_v63 = vpack.i.bf16 %v14993_v19, %v14969_v45 }
0x1700   : > { %6515 = vadd.xlane.f32.xlu1 %v6514_v58 }
0x1705   : > { %6819 = vrot.lane.b32.xlu2 %v14809_v4, %s12885_s20 }
0x1708   : > { %6521 = vadd.xlane.f32.xlu1 %v6520_v23 }
0x170d   : > { %6817 = vrot.lane.b32.xlu2 %v14814_v29, %s12885_s20 }
0x1715   : > { %6929 = vrot.lane.b32.xlu2 %v14859_v42, %s12885_s20 }
0x1721   : > { %12051 = vrot.lane.b32.xlu1 %v15108_v63, %s12884_s19 }
0x1728   : > { %v6477_v11 = vpop.xlane.xlu1 %6476 }
0x1729   : > { %v6487_v36 = vsub.f32 %v6455_v59, %v6477_v11  ;;  %6903 = vrot.lane.b32.xlu1 %v14839_v46, %s12885_s20 }
0x172b   : > { %v6501_v26 = vmul.f32 1.442695, %v6487_v36 }
0x172d   : > { %12524 = vpow2.f32 %v6501_v26 }
0x172e   : > { %v15127_v26 = vpop.f32.mrf.mxu3 }
0x1731   : > { %6931 = vrot.lane.b32.xlu1 %v14851_v60, %s12885_s20 }
0x1733   : > { %v15116_v14 = vpop.eup %12524 }
0x1734   : > { %v6523_v40 = vsel %vm16620_vm2, %v15116_v14, 0.0 }
0x1735   : > { %6524 = vadd.xlane.f32.xlu0 %v6523_v40 }
0x1740   : > { %v6846_v36 = vpop.permute.xlu1 %6845 }
0x1748   : > { %v6510_v53 = vpop.xlane.xlu2 %6509  ;;  %v6960_v40 = vpop.permute.xlu1 %6959 }
0x1749   : > { %12526 = vrcp.f32 %v6510_v53  ;;  %6901 = vrot.lane.b32.xlu0 %v14844_v34, %s12885_s20  ;;  %v15129_v53 = vpop.f32.mrf.mxu3 }
0x174a   : > { %16700 = vst [vmem:[#allocation34_spill] sm:$0xff] %v15129_v53 }
0x174f   : > { %v12527_v59 = vpop.eup %12526 }
0x1750   : > { %v12047_v57 = vpop.permute.xlu2 %12046  ;;  %v6538_v52 = vmul.f32 %v12527_v59, %v15069_v39 }
0x1751   : > { %v12049_v61 = vunpack.i.h.bf16 %v12047_v57  ;;  %v12048_v22 = vunpack.i.l.bf16 %v12047_v57  ;;  %7291 = vrot.lane.b32.xlu0 %v14786_v33, %s12886_s22 }
0x1753   : > { %6594 = vmatpush.msrb.mxu0 %v12048_v22  ;;  %6621 = vmatpush.msra.mxu1 %v12049_v61 }
0x1754   : > { %11655 = vmatmul.msk.f32.vlgmr.msrb.gmra.mxu0 %vm16620_vm2, %v6538_v52 }
0x1755   : > { %v6513_v58 = vpop.xlane.xlu0 %6512 }
0x1756   : > { %12528 = vrcp.f32 %v6513_v58 }
0x175c   : > { %v12529_v23 = vpop.eup %12528 }
0x175d   : > { %v6539_v11 = vmul.f32 %v12529_v23, %v12517_v43  ;;  %v6528_v8 = vpop.xlane.xlu0 %6527  ;;  %v6792_v23 = vpop.permute.xlu2 %6791 }
0x175f   : > { %11656 = vmatmul.msk.f32.vlgmr.msra.gmra.mxu1 %vm16620_vm2, %v6539_v11 }
0x1773   : > { %v6516_v57 = vpop.xlane.xlu1 %6515 }
0x1774   : > { %12530 = vrcp.f32 %v6516_v57 }
0x1775   : > { %12532 = vrcp.f32 %v6528_v8 }
0x1779   : > { %v6786_v39 = vpop.f32.mrf.mxu3 }
0x177a   : > { %v12531_v59 = vpop.eup %12530  ;;  %v15131_v61 = vmul.f32 0.5, %v6786_v39  ;;  %v6790_v39 = vpop.permute.xlu2 %6789 }
0x177b   : > { %v6540_v22 = vmul.f32 %v12531_v59, %v12521_v31  ;;  %v12533_v52 = vpop.eup %12532  ;;  %v6522_v31 = vpop.xlane.xlu1 %6521 }
0x177c   : > { %v6993_v43 = vsel %vm16620_vm2, %v15131_v61, -inf  ;;  %v6544_v57 = vmul.f32 %v12533_v52, %v15076_v17  ;;  %12534 = vrcp.f32 %v6522_v31 }
0x177d   : > { %11657 = vmatmul.msk.f32.vlgmr.msra.gmra.mxu2 %vm16620_vm2, %v6540_v22  ;;  %6994 = vmax.xlane.f32.xlu1 %v6993_v43  ;;  %v6958_v22 = vpop.permute.xlu0 %6957 }
0x177e   : > { %11668 = vmatpush.xpose.msk.msra.mxu2 %vm461_vm1, %v6848_v50 }
0x1781   : > { %v6898_v58 = vpop.f32.mrf.mxu3 }
0x1782   : > { %v15137_v11 = vmul.f32 0.5, %v6898_v58  ;;  %v12535_v50 = vpop.eup %12534  ;;  %v6820_v52 = vpop.permute.xlu2 %6819 }
0x1783   : > { %v6542_v17 = vmul.f32 %v12535_v50, %v15096_v18 }
0x1784   : > { %v7005_v8 = vsel %vm16620_vm2, %v15137_v11, -inf }
0x1785   : > { %11661 = vmatmul.msk.f32.vlgmr.msrb.gmra.mxu2 %vm16620_vm2, %v6544_v57  ;;  %7006 = vmax.xlane.f32.xlu2 %v7005_v8 }
0x1786   : > { %11676 = vmatpush.xpose.msk.msrb.mxu2 %vm461_vm1, %v6960_v40 }
0x178a   : > { %v6818_v31 = vpop.permute.xlu2 %6817 }
0x178d   : > { %11669 = vmatmul.msk.f32.vlgmr.msra.gmra.mxu2 %vm461_vm1, %v6846_v36 }
0x1793   : > { %v12052_v59 = vpop.permute.xlu1 %12051 }
0x1794   : > { %v12054_v43 = vunpack.i.h.bf16 %v12052_v59  ;;  %v12053_v58 = vunpack.i.l.bf16 %v12052_v59 }
0x1795   : > { %11677 = vmatmul.msk.f32.vlgmr.msrb.gmra.mxu2 %vm461_vm1, %v6958_v22 }
0x1796   : > { %6702 = vmatpush.msra.mxu0 %v12053_v58  ;;  %6729 = vmatpush.msrb.mxu1 %v12054_v43 }
0x1797   : > { %11659 = vmatmul.msk.f32.vlgmr.msra.gmra.mxu0 %vm16620_vm2, %v6542_v17 }
0x1798   : > { %11666 = vmatpush.xpose.msk.msra.mxu1 %vm461_vm1, %v6820_v52  ;;  %11664 = vmatpush.xpose.msk.msrb.mxu0 %vm461_vm1, %v6792_v23  ;;  %v6930_v23 = vpop.permute.xlu2 %6929 }
0x179b   : > { %v6904_v40 = vpop.permute.xlu1 %6903 }
0x179c   : > { %11672 = vmatpush.xpose.msk.msra.mxu0 %vm461_vm1, %v6904_v40 }
0x179f   : > { %11665 = vmatmul.msk.f32.vlgmr.msrb.gmra.mxu0 %vm461_vm1, %v6790_v39 }
0x17a3   : > { %v6932_v8 = vpop.permute.xlu1 %6931 }
0x17a8   : > { %v6525_v36 = vpop.xlane.xlu0 %6524 }
0x17a9   : > { %12536 = vrcp.f32 %v6525_v36 }
0x17af   : > { %v12537_v57 = vpop.eup %12536 }
0x17b0   : > { %v6543_v18 = vmul.f32 %v12537_v57, %v15116_v14 }
0x17b2   : > { %11660 = vmatmul.msk.f32.vlgmr.msrb.gmra.mxu1 %vm16620_vm2, %v6543_v18 }
0x17b3   : > { %11674 = vmatpush.xpose.msk.msrb.mxu1 %vm461_vm1, %v6932_v8 }
0x17ba   : > { %11667 = vmatmul.msk.f32.vlgmr.msra.gmra.mxu1 %vm461_vm1, %v6818_v31 }
0x17bb   : > { %v6902_v50 = vpop.permute.xlu0 %6901 }
0x17bc   : > { %11673 = vmatmul.msk.f32.vlgmr.msra.gmra.mxu0 %vm461_vm1, %v6902_v50 }
0x17c2   : > { %11675 = vmatmul.msk.f32.vlgmr.msrb.gmra.mxu1 %vm461_vm1, %v6930_v23 }
0x17d1   : > { %v15158_v39 = vpop.f32.mrf.mxu0 }
0x17dc   : > { %v15163_v58 = vpop.f32.mrf.mxu1 }
0x1800   : > { %v15165_v17 = vpop.f32.mrf.mxu2 }
0x1801   : > { %16702 = vst [vmem:[#allocation26_spill] sm:$0xff] %v15165_v17 }
0x1808   : > { %v15171_v57 = vpop.f32.mrf.mxu2 }
0x1809   : > { %16704 = vst [vmem:[#allocation31_spill] sm:$0xff] %v15171_v57 }
0x1814   : > { %v15160_v59 = vpop.f32.mrf.mxu0 }
0x1815   : > { %16701 = vst [vmem:[#allocation19_spill] sm:$0xff] %v15160_v59 }
0x181c   : > { %v6814_v22 = vpop.f32.mrf.mxu0 }
0x181d   : > { %v6986_v14 = vmul.f32 0.5, %v6814_v22 }
0x181f   : > { %v6996_v43 = vsel %vm16620_vm2, %v6986_v14, -inf }
0x1820   : > { %6997 = vmax.xlane.f32.xlu1 %v6996_v43 }
0x182f   : > { %v15167_v52 = vpop.f32.mrf.mxu1 }
0x1830   : > { %16703 = vst [vmem:[#allocation37_spill] sm:$0xff] %v15167_v52 }
0x1837   : > { %v6842_v40 = vpop.f32.mrf.mxu1 }
0x1838   : > { %v15169_v36 = vmul.f32 0.5, %v6842_v40  ;;  %v6870_v40 = vpop.f32.mrf.mxu2 }
0x1839   : > { %v6926_v18 = vpop.f32.mrf.mxu0  ;;  %12056 = vrot.lane.b32.xlu1 %v15005_v44, %s12885_s20  ;;  %v6988_v30 = vmul.f32 0.5, %v6870_v40 }
0x183a   : > { %v6990_v8 = vmul.f32 0.5, %v6926_v18  ;;  %v6999_v31 = vsel %vm16620_vm2, %v15169_v36, -inf }
0x183b   : > { %7000 = vmax.xlane.f32.xlu0 %v6999_v31  ;;  %v7002_v18 = vsel %vm16620_vm2, %v6988_v30, -inf  ;;  %v6995_v31 = vpop.xlane.xlu1 %6994 }
0x183c   : > { %v7008_v50 = vsel %vm16620_vm2, %v6990_v8, -inf }
0x183d   : > { %7009 = vmax.xlane.f32.xlu2 %v7008_v50  ;;  %v7017_v50 = vsub.f32 %v15131_v61, %v6995_v31 }
0x183f   : > { %v6954_v23 = vpop.f32.mrf.mxu1 }
0x1840   : > { %v15178_v22 = vmul.f32 0.5, %v6954_v23  ;;  %v7025_v23 = vmul.f32 1.442695, %v7017_v50  ;;  %v6982_v31 = vpop.f32.mrf.mxu2 }
0x1841   : > { %7403 = vrot.lane.b32.xlu1 %v14829_v5, %s12886_s22  ;;  %v15203_v50 = vmul.f32 0.5, %v6982_v31 }
0x1842   : > { %v7011_v43 = vsel %vm16620_vm2, %v15178_v22, -inf  ;;  %12538 = vpow2.f32 %v7025_v23 }
0x1843   : > { %7012 = vmax.xlane.f32.xlu0 %v7011_v43  ;;  %v7014_v1 = vsel %vm16620_vm2, %v15203_v50, -inf }
0x1848   : > { %v15194_v43 = vpop.eup %12538 }
0x1849   : > { %12061 = vrot.lane.b32.xlu1 %v15018_v54, %s12885_s20  ;;  %v7041_v40 = vsel %vm16620_vm2, %v15194_v43, 0.0 }
0x184b   : > { %7003 = vmax.xlane.f32.xlu0 %v7002_v18  ;;  %v7007_v18 = vpop.xlane.xlu2 %7006 }
0x184c   : > { %v7021_v15 = vsub.f32 %v15137_v11, %v7007_v18 }
0x184e   : > { %v7033_v35 = vmul.f32 1.442695, %v7021_v15 }
0x1850   : > { %12540 = vpow2.f32 %v7033_v35 }
0x1855   : > { %7289 = vrot.lane.b32.xlu2 %v14783_v32, %s12886_s22 }
0x1856   : > { %v15199_v2 = vpop.eup %12540 }
0x1857   : > { %v7053_v61 = vsel %vm16620_vm2, %v15199_v2, 0.0 }
0x185d   : > { %7401 = vrot.lane.b32.xlu2 %v14834_v38, %s12886_s22 }
0x1865   : > { %7375 = vrot.lane.b32.xlu2 %v14819_v12, %s12886_s22 }
0x1873   : > { %7042 = vadd.xlane.f32.xlu1 %v7041_v40 }
0x188e   : > { %7054 = vadd.xlane.f32.xlu2 %v7053_v61  ;;  %v7292_v61 = vpop.permute.xlu0 %7291 }
0x1893   : > { %v6998_v23 = vpop.xlane.xlu1 %6997 }
0x1894   : > { %v7018_v3 = vsub.f32 %v6986_v14, %v6998_v23 }
0x1896   : > { %v7027_v40 = vmul.f32 1.442695, %v7018_v3  ;;  %7015 = vmax.xlane.f32.xlu2 %v7014_v1 }
0x1898   : > { %12542 = vpow2.f32 %v7027_v40 }
0x189e   : > { %v15207_v11 = vpop.eup %12542 }
0x189f   : > { %v7044_v35 = vsel %vm16620_vm2, %v15207_v11, 0.0 }
0x18a0   : > { %7045 = vadd.xlane.f32.xlu1 %v7044_v35 }
0x18ab   : > { %v12057_v15 = vpop.permute.xlu1 %12056 }
0x18ac   : > { %v12059_v18 = vunpack.i.h.bf16 %v12057_v15  ;;  %v12058_v56 = vunpack.i.l.bf16 %v12057_v15 }
0x18ae   : > { %7102 = vmatpush.msra.mxu3 %v12058_v56  ;;  %7373 = vrot.lane.b32.xlu2 %v14824_v62, %s12886_s22  ;;  %v7001_v23 = vpop.xlane.xlu0 %7000 }
0x18b0   : > { %7206 = vmatpush.msrb.mxu3 %v12059_v18  ;;  %v7010_v14 = vpop.xlane.xlu2 %7009 }
0x18b1   : > { %v7022_v31 = vsub.f32 %v6990_v8, %v7010_v14  ;;  %v7019_v8 = vsub.f32 %v15169_v36, %v7001_v23 }
0x18b3   : > { %v7035_v3 = vmul.f32 1.442695, %v7022_v31  ;;  %v7404_v1 = vpop.permute.xlu1 %7403  ;;  %v7029_v14 = vmul.f32 1.442695, %v7019_v8 }
0x18b5   : > { %12544 = vpow2.f32 %v7035_v3 }
0x18b6   : > { %v7013_v18 = vpop.xlane.xlu0 %7012  ;;  %12546 = vpow2.f32 %v7029_v14 }
0x18b8   : > { %v7290_v23 = vpop.permute.xlu2 %7289 }
0x18b9   : > { %7487 = vrot.lane.b32.xlu1 %v14871_v21, %s12886_s22 }
0x18bb   : > { %v15215_v40 = vpop.eup %12544  ;;  %v12062_v35 = vpop.permute.xlu1 %12061 }
0x18bc   : > { %v12064_v47 = vunpack.i.h.bf16 %v12062_v35  ;;  %v12063_v15 = vunpack.i.l.bf16 %v12062_v35  ;;  %v7056_v56 = vsel %vm16620_vm2, %v15215_v40, 0.0 }
0x18bd   : > { %7057 = vadd.xlane.f32.xlu0 %v7056_v56 }
0x18be   : > { %7180 = vmatpush.msra.mxu2 %v12063_v15  ;;  %v7004_v31 = vpop.xlane.xlu0 %7003 }
0x18bf   : > { %v7020_v3 = vsub.f32 %v6988_v30, %v7004_v31 }
0x18c0   : > { %7284 = vmatpush.msrb.mxu2 %v12064_v47  ;;  %v12547_v47 = vpop.eup %12546  ;;  %v7402_v31 = vpop.permute.xlu2 %7401 }
0x18c1   : > { %7319 = vrot.lane.b32.xlu1 %v14799_v55, %s12886_s22  ;;  %v7031_v35 = vmul.f32 1.442695, %v7020_v3  ;;  %v7047_v15 = vsel %vm16620_vm2, %v12547_v47, 0.0 }
0x18c3   : > { %12548 = vpow2.f32 %v7031_v35 }
0x18c8   : > { %v7376_v3 = vpop.permute.xlu2 %7375 }
0x18c9   : > { %7317 = vrot.lane.b32.xlu1 %v14804_v24, %s12886_s22  ;;  %v15231_v36 = vpop.eup %12548 }
0x18ca   : > { %v7050_v30 = vsel %vm16620_vm2, %v15231_v36, 0.0 }
0x18d1   : > { %7347 = vrot.lane.b32.xlu1 %v14809_v4, %s12886_s22  ;;  %12066 = vrot.lane.b32.xlu0 %v15082_v6, %s12885_s20 }
0x18d7   : > { %7048 = vadd.xlane.f32.xlu2 %v7047_v15 }
0x18d9   : > { %7345 = vrot.lane.b32.xlu1 %v14814_v29, %s12886_s22 }
0x18df   : > { %7051 = vadd.xlane.f32.xlu2 %v7050_v30 }
0x18e1   : > { %7459 = vrot.lane.b32.xlu1 %v14851_v60, %s12886_s22 }
0x18e6   : > { %v7043_v56 = vpop.xlane.xlu1 %7042 }
0x18e7   : > { %12550 = vrcp.f32 %v7043_v56 }
0x18ed   : > { %v12551_v8 = vpop.eup %12550 }
0x18ee   : > { %v7073_v14 = vmul.f32 %v12551_v8, %v15194_v43 }
0x18f0   : > { %11678 = vmatmul.msk.f32.vlgmr.msra.gmra.mxu3 %vm16620_vm2, %v7073_v14 }
0x18f1   : > { %11686 = vmatpush.xpose.msk.msra.mxu3 %vm461_vm1, %v7292_v61 }
0x18f7   : > { %12071 = vrot.lane.b32.xlu2 %v15108_v63, %s12885_s20 }
0x18ff   : > { %7431 = vrot.lane.b32.xlu2 %v14839_v46, %s12886_s22 }
0x1901   : > { %v7055_v35 = vpop.xlane.xlu2 %7054 }
0x1902   : > { %12552 = vrcp.f32 %v7055_v35 }
0x1907   : > { %7429 = vrot.lane.b32.xlu2 %v14844_v34, %s12886_s22 }
0x1908   : > { %v12553_v15 = vpop.eup %12552 }
0x1909   : > { %v7077_v43 = vmul.f32 %v12553_v15, %v15199_v2  ;;  %v7016_v30 = vpop.xlane.xlu2 %7015  ;;  %v7023_v15 = vsub.f32 %v15178_v22, %v7013_v18 }
0x190a   : > { %v7024_v56 = vsub.f32 %v15203_v50, %v7016_v30 }
0x190b   : > { %11682 = vmatmul.msk.f32.vlgmr.msrb.gmra.mxu3 %vm16620_vm2, %v7077_v43 }
0x190c   : > { %v7039_v61 = vmul.f32 1.442695, %v7024_v56  ;;  %11694 = vmatpush.xpose.msk.msrb.mxu3 %vm461_vm1, %v7404_v1 }
0x190e   : > { %12554 = vpow2.f32 %v7039_v61 }
0x190f   : > { %7457 = vrot.lane.b32.xlu2 %v14859_v42, %s12886_s22 }
0x1913   : > { %11687 = vmatmul.msk.f32.vlgmr.msra.gmra.mxu3 %vm461_vm1, %v7290_v23  ;;  %v7046_v2 = vpop.xlane.xlu1 %7045  ;;  %v7374_v23 = vpop.permute.xlu2 %7373 }
0x1914   : > { %v12555_v8 = vpop.eup %12554  ;;  %12556 = vrcp.f32 %v7046_v2 }
0x1915   : > { %v7062_v14 = vsel %vm16620_vm2, %v12555_v8, 0.0 }
0x1916   : > { %7063 = vadd.xlane.f32.xlu0 %v7062_v14  ;;  %v7037_v14 = vmul.f32 1.442695, %v7023_v15 }
0x1917   : > { %7817 = vrot.lane.b32.xlu2 %v14783_v32, %s12887_s23 }
0x1918   : > { %12558 = vpow2.f32 %v7037_v14 }
0x191a   : > { %v12557_v35 = vpop.eup %12556 }
0x191b   : > { %11695 = vmatmul.msk.f32.vlgmr.msrb.gmra.mxu3 %vm461_vm1, %v7402_v31  ;;  %v7074_v61 = vmul.f32 %v12557_v35, %v15207_v11 }
0x191e   : > { %v12559_v2 = vpop.eup %12558 }
0x191f   : > { %v7059_v18 = vsel %vm16620_vm2, %v12559_v2, 0.0 }
0x192a   : > { %7485 = vrot.lane.b32.xlu0 %v14879_v25, %s12886_s22 }
0x192b   : > { %v7488_v1 = vpop.permute.xlu1 %7487 }
0x1930   : > { %v7058_v50 = vpop.xlane.xlu0 %7057 }
0x1933   : > { %v7320_v31 = vpop.permute.xlu1 %7319 }
0x1943   : > { %v12067_v43 = vpop.permute.xlu0 %12066 }
0x1944   : > { %v12069_v30 = vunpack.i.h.bf16 %v12067_v43  ;;  %v12068_v56 = vunpack.i.l.bf16 %v12067_v43  ;;  %v7318_v43 = vpop.permute.xlu1 %7317 }
0x1946   : > { %7128 = vmatpush.msrb.mxu0 %v12068_v56  ;;  %7154 = vmatpush.msra.mxu1 %v12069_v30 }
0x1947   : > { %11679 = vmatmul.msk.f32.vlgmr.msrb.gmra.mxu0 %vm16620_vm2, %v7074_v61 }
0x194a   : > { %v7049_v48 = vpop.xlane.xlu2 %7048 }
0x194b   : > { %12560 = vrcp.f32 %v7049_v48 }
0x194c   : > { %12562 = vrcp.f32 %v7058_v50 }
0x1951   : > { %v12561_v0 = vpop.eup %12560 }
0x1952   : > { %v7075_v7 = vmul.f32 %v12561_v0, %v12547_v47  ;;  %v7052_v22 = vpop.xlane.xlu2 %7051  ;;  %v12563_v11 = vpop.eup %12562 }
0x1953   : > { %12564 = vrcp.f32 %v7052_v22  ;;  %v7078_v48 = vmul.f32 %v12563_v11, %v15215_v40  ;;  %v7348_v0 = vpop.permute.xlu1 %7347 }
0x1954   : > { %7060 = vadd.xlane.f32.xlu0 %v7059_v18  ;;  %11680 = vmatmul.msk.f32.vlgmr.msra.gmra.mxu1 %vm16620_vm2, %v7075_v7 }
0x1959   : > { %v12565_v35 = vpop.eup %12564 }
0x195a   : > { %v7076_v15 = vmul.f32 %v12565_v35, %v15231_v36  ;;  %v12072_v30 = vpop.permute.xlu2 %12071 }
0x195b   : > { %v12074_v56 = vunpack.i.h.bf16 %v12072_v30  ;;  %v12073_v61 = vunpack.i.l.bf16 %v12072_v30 }
0x195c   : > { %11681 = vmatmul.msk.f32.vlgmr.msra.gmra.mxu2 %vm16620_vm2, %v7076_v15 }
0x195d   : > { %11692 = vmatpush.xpose.msk.msra.mxu2 %vm461_vm1, %v7376_v3  ;;  %7232 = vmatpush.msra.mxu0 %v12073_v61 }
0x195e   : > { %7258 = vmatpush.msrb.mxu1 %v12074_v56  ;;  %11683 = vmatmul.msk.f32.vlgmr.msra.gmra.mxu0 %vm16620_vm2, %v7078_v48 }
0x195f   : > { %11688 = vmatpush.xpose.msk.msrb.mxu0 %vm461_vm1, %v7320_v31 }
0x1960   : > { %11690 = vmatpush.xpose.msk.msra.mxu1 %vm461_vm1, %v7348_v0 }
0x1962   : > { %v7432_v7 = vpop.permute.xlu2 %7431 }
0x1963   : > { %11696 = vmatpush.xpose.msk.msra.mxu0 %vm461_vm1, %v7432_v7 }
0x1966   : > { %11689 = vmatmul.msk.f32.vlgmr.msrb.gmra.mxu0 %vm461_vm1, %v7318_v43 }
0x196a   : > { %v7430_v47 = vpop.permute.xlu2 %7429 }
0x196e   : > { %11697 = vmatmul.msk.f32.vlgmr.msra.gmra.mxu0 %vm461_vm1, %v7430_v47 }
0x1973   : > { %v15274_v40 = vpop.f32.mrf.mxu3 }
0x1989   : > { %v7064_v36 = vpop.xlane.xlu0 %7063 }
0x198a   : > { %12566 = vrcp.f32 %v7064_v36 }
0x198e   : > { %v15276_v3 = vpop.f32.mrf.mxu3 }
0x198f   : > { %16705 = vst [vmem:[#allocation8_spill] sm:$0xff] %v15276_v3 }
0x1990   : > { %v12567_v50 = vpop.eup %12566 }
0x1991   : > { %v7080_v14 = vmul.f32 %v12567_v50, %v12555_v8  ;;  %v7346_v8 = vpop.permute.xlu1 %7345 }
0x1993   : > { %11685 = vmatmul.msk.f32.vlgmr.msrb.gmra.mxu2 %vm16620_vm2, %v7080_v14 }
0x1994   : > { %11700 = vmatpush.xpose.msk.msrb.mxu2 %vm461_vm1, %v7488_v1 }
0x1996   : > { %v7314_v31 = vpop.f32.mrf.mxu3 }
0x1997   : > { %v15280_v22 = vmul.f32 0.5, %v7314_v31 }
0x1999   : > { %v7521_v18 = vsel %vm16620_vm2, %v15280_v22, -inf  ;;  %v7460_v56 = vpop.permute.xlu1 %7459 }
0x199a   : > { %7522 = vmax.xlane.f32.xlu0 %v7521_v18 }
0x199b   : > { %11693 = vmatmul.msk.f32.vlgmr.msra.gmra.mxu2 %vm461_vm1, %v7374_v23 }
0x199c   : > { %v7486_v15 = vpop.permute.xlu0 %7485 }
0x199e   : > { %v7426_v43 = vpop.f32.mrf.mxu3 }
0x199f   : > { %v7517_v11 = vmul.f32 0.5, %v7426_v43 }
0x19a1   : > { %v7533_v35 = vsel %vm16620_vm2, %v7517_v11, -inf }
0x19a2   : > { %7534 = vmax.xlane.f32.xlu1 %v7533_v35 }
0x19a3   : > { %11701 = vmatmul.msk.f32.vlgmr.msrb.gmra.mxu2 %vm461_vm1, %v7486_v15 }
0x19bb   : > { %7819 = vrot.lane.b32.xlu1 %v14786_v33, %s12887_s23 }
0x19c3   : > { %12081 = vrot.lane.b32.xlu1 %v15018_v54, %s12886_s22  ;;  %v7458_v54 = vpop.permute.xlu2 %7457 }
0x19c4   : > { %v15295_v61 = vpop.f32.mrf.mxu0 }
0x19c7   : > { %v7061_v1 = vpop.xlane.xlu0 %7060 }
0x19c8   : > { %12568 = vrcp.f32 %v7061_v1 }
0x19cb   : > { %7929 = vrot.lane.b32.xlu1 %v14834_v38, %s12887_s23 }
0x19ce   : > { %v12569_v23 = vpop.eup %12568 }
0x19cf   : > { %v7079_v30 = vmul.f32 %v12569_v23, %v12559_v2 }
0x19d1   : > { %11684 = vmatmul.msk.f32.vlgmr.msrb.gmra.mxu1 %vm16620_vm2, %v7079_v30  ;;  %v15309_v15 = vpop.f32.mrf.mxu1 }
0x19d2   : > { %11698 = vmatpush.xpose.msk.msrb.mxu1 %vm461_vm1, %v7460_v56  ;;  %16707 = vst [vmem:[#allocation13_spill] sm:$0xff] %v15309_v15 }
0x19d9   : > { %11691 = vmatmul.msk.f32.vlgmr.msra.gmra.mxu1 %vm461_vm1, %v7346_v8 }
0x19db   : > { %v15298_v48 = vpop.f32.mrf.mxu0 }
0x19dc   : > { %16706 = vst [vmem:[#allocation12_spill] sm:$0xff] %v15298_v48 }
0x19e1   : > { %11699 = vmatmul.msk.f32.vlgmr.msrb.gmra.mxu1 %vm461_vm1, %v7458_v54  ;;  %v15313_v54 = vpop.f32.mrf.mxu2 }
0x19e2   : > { %16709 = vst [vmem:[#allocation9_spill] sm:$0xff] %v15313_v54 }
0x19e3   : > { %v7342_v0 = vpop.f32.mrf.mxu0 }
0x19e4   : > { %v7514_v7 = vmul.f32 0.5, %v7342_v0 }
0x19e6   : > { %v7524_v47 = vsel %vm16620_vm2, %v7514_v7, -inf }
0x19e7   : > { %7525 = vmax.xlane.f32.xlu0 %v7524_v47 }
0x19eb   : > { %v7454_v2 = vpop.f32.mrf.mxu0 }
0x19ec   : > { %v7518_v36 = vmul.f32 0.5, %v7454_v2 }
0x19ee   : > { %v7536_v50 = vsel %vm16620_vm2, %v7518_v36, -inf }
0x19ef   : > { %7537 = vmax.xlane.f32.xlu0 %v7536_v50 }
0x1a03   : > { %12076 = vrot.lane.b32.xlu0 %v15005_v44, %s12886_s22 }
0x1a0b   : > { %7931 = vrot.lane.b32.xlu0 %v14829_v5, %s12887_s23 }
0x1a0d   : > { %v7523_v1 = vpop.xlane.xlu0 %7522 }
0x1a0e   : > { %v7545_v28 = vsub.f32 %v15280_v22, %v7523_v1 }
0x1a15   : > { %v7535_v14 = vpop.xlane.xlu1 %7534 }
0x1a16   : > { %v7549_v0 = vsub.f32 %v7517_v11, %v7535_v14 }
0x1a18   : > { %v7561_v20 = vmul.f32 1.442695, %v7549_v0 }
0x1a2d   : > { %v15307_v31 = vpop.permute.xlu1 %7819 }
0x1a35   : > { %v12082_v18 = vpop.permute.xlu1 %12081 }
0x1a36   : > { %v12084_v43 = vunpack.i.h.bf16 %v12082_v18  ;;  %v12083_v35 = vunpack.i.l.bf16 %v12082_v18 }
0x1a38   : > { %7708 = vmatpush.msra.mxu2 %v12083_v35 }
0x1a3a   : > { %7812 = vmatpush.msrb.mxu2 %v12084_v43 }
0x1a4e   : > { %v15311_v8 = vpop.f32.mrf.mxu1 }
0x1a4f   : > { %16708 = vst [vmem:[#allocation10_spill] sm:$0xff] %v15311_v8 }
0x1a56   : > { %v7370_v23 = vpop.f32.mrf.mxu1 }
0x1a5a   : > { %v7526_v30 = vpop.xlane.xlu0 %7525 }
0x1a5b   : > { %v7546_v56 = vsub.f32 %v7514_v7, %v7526_v30  ;;  %v15322_v7 = vpop.f32.mrf.mxu2  ;;  %v7553_v30 = vmul.f32 1.442695, %v7545_v28 }
0x1a5c   : > { %16710 = vst [vmem:[#allocation14_spill] sm:$0xff] %v15322_v7 }
0x1a5d   : > { %v7555_v47 = vmul.f32 1.442695, %v7546_v56 }
0x1a5e   : > { %v7482_v2 = vpop.f32.mrf.mxu1 }
0x1a5f   : > { %12570 = vpow2.f32 %v7555_v47  ;;  %v15315_v50 = vmul.f32 0.5, %v7482_v2 }
0x1a60   : > { %12572 = vpow2.f32 %v7561_v20 }
0x1a61   : > { %v7539_v18 = vsel %vm16620_vm2, %v15315_v50, -inf }
0x1a62   : > { %7540 = vmax.xlane.f32.xlu1 %v7539_v18  ;;  %v7538_v43 = vpop.xlane.xlu0 %7537 }
0x1a63   : > { %v7550_v35 = vsub.f32 %v7518_v36, %v7538_v43  ;;  %v7398_v22 = vpop.f32.mrf.mxu2 }
0x1a64   : > { %v7516_v20 = vmul.f32 0.5, %v7398_v22  ;;  %v7818_v22 = vpop.permute.xlu2 %7817 }
0x1a65   : > { %v15319_v49 = vpop.eup %12570  ;;  %v7563_v11 = vmul.f32 1.442695, %v7550_v35 }
0x1a66   : > { %v7572_v14 = vsel %vm16620_vm2, %v15319_v49, 0.0  ;;  %v12573_v56 = vpop.eup %12572  ;;  %v7530_v35 = vsel %vm16620_vm2, %v7516_v20, -inf }
0x1a67   : > { %12574 = vpow2.f32 %v7563_v11  ;;  %7573 = vadd.xlane.f32.xlu2 %v7572_v14  ;;  %v7581_v36 = vsel %vm16620_vm2, %v12573_v56, 0.0  ;;  %v7515_v11 = vmul.f32 0.5, %v7370_v23 }
0x1a68   : > { %12576 = vpow2.f32 %v7553_v30 }
0x1a69   : > { %v7527_v14 = vsel %vm16620_vm2, %v7515_v11, -inf }
0x1a6b   : > { %v7510_v30 = vpop.f32.mrf.mxu2 }
0x1a6d   : > { %v15326_v0 = vpop.eup %12574 }
0x1a6e   : > { %v7584_v47 = vsel %vm16620_vm2, %v15326_v0, 0.0  ;;  %v12577_v1 = vpop.eup %12576 }
0x1a6f   : > { %7582 = vadd.xlane.f32.xlu2 %v7581_v36  ;;  %7585 = vadd.xlane.f32.xlu0 %v7584_v47  ;;  %v7569_v28 = vsel %vm16620_vm2, %v12577_v1, 0.0  ;;  %v7520_v36 = vmul.f32 0.5, %v7510_v30 }
0x1a71   : > { %v7542_v47 = vsel %vm16620_vm2, %v7520_v36, -inf }
0x1a75   : > { %v12077_v2 = vpop.permute.xlu0 %12076 }
0x1a76   : > { %v12079_v18 = vunpack.i.h.bf16 %v12077_v2  ;;  %v12078_v43 = vunpack.i.l.bf16 %v12077_v2 }
0x1a77   : > { %7531 = vmax.xlane.f32.xlu2 %v7530_v35  ;;  %7570 = vadd.xlane.f32.xlu0 %v7569_v28 }
0x1a78   : > { %7630 = vmatpush.msra.mxu3 %v12078_v43 }
0x1a7a   : > { %7734 = vmatpush.msrb.mxu3 %v12079_v18 }
0x1a7b   : > { %7901 = vrot.lane.b32.xlu1 %v14824_v62, %s12887_s23 }
0x1a7d   : > { %v7932_v2 = vpop.permute.xlu0 %7931 }
0x1a7f   : > { %7528 = vmax.xlane.f32.xlu0 %v7527_v14 }
0x1a87   : > { %7543 = vmax.xlane.f32.xlu0 %v7542_v47  ;;  %v7930_v47 = vpop.permute.xlu1 %7929 }
0x1a8f   : > { %7903 = vrot.lane.b32.xlu2 %v14819_v12, %s12887_s23 }
0x1a9b   : > { %12086 = vrot.lane.b32.xlu0 %v15082_v6, %s12886_s22 }
0x1ada   : > { %v7574_v23 = vpop.xlane.xlu2 %7573 }
0x1ae2   : > { %v7583_v18 = vpop.xlane.xlu2 %7582  ;;  %v15341_v43 = vpop.xlane.xlu0 %7585 }
0x1aea   : > { %v7532_v35 = vpop.xlane.xlu2 %7531  ;;  %v7571_v28 = vpop.xlane.xlu0 %7570 }
0x1aeb   : > { %v7548_v57 = vsub.f32 %v7516_v20, %v7532_v35  ;;  %12578 = vrcp.f32 %v7571_v28 }
0x1aed   : > { %v7559_v14 = vmul.f32 1.442695, %v7548_v57  ;;  %v7541_v57 = vpop.xlane.xlu1 %7540 }
0x1aef   : > { %12580 = vpow2.f32 %v7559_v14 }
0x1af0   : > { %12582 = vrcp.f32 %v7583_v18 }
0x1af1   : > { %v12579_v30 = vpop.eup %12578 }
0x1af2   : > { %v7601_v13 = vmul.f32 %v12579_v30, %v12577_v1  ;;  %v7529_v8 = vpop.xlane.xlu0 %7528 }
0x1af3   : > { %v7547_v7 = vsub.f32 %v7515_v11, %v7529_v8  ;;  %v7551_v8 = vsub.f32 %v15315_v50, %v7541_v57 }
0x1af4   : > { %11702 = vmatmul.msk.f32.vlgmr.msra.gmra.mxu3 %vm16620_vm2, %v7601_v13 }
0x1af5   : > { %v12581_v6 = vpop.eup %12580  ;;  %v7557_v53 = vmul.f32 1.442695, %v7547_v7  ;;  %11710 = vmatpush.xpose.msk.msra.mxu3 %vm461_vm1, %v15307_v31  ;;  %v7565_v31 = vmul.f32 1.442695, %v7551_v8 }
0x1af6   : > { %v7578_v54 = vsel %vm16620_vm2, %v12581_v6, 0.0  ;;  %v12583_v10 = vpop.eup %12582 }
0x1af7   : > { %12584 = vpow2.f32 %v7557_v53  ;;  %7579 = vadd.xlane.f32.xlu2 %v7578_v54  ;;  %v7605_v20 = vmul.f32 %v12583_v10, %v12573_v56 }
0x1afa   : > { %v7544_v35 = vpop.xlane.xlu0 %7543 }
0x1afb   : > { %v7552_v18 = vsub.f32 %v7520_v36, %v7544_v35 }
0x1afc   : > { %11706 = vmatmul.msk.f32.vlgmr.msrb.gmra.mxu3 %vm16620_vm2, %v7605_v20 }
0x1afd   : > { %v12585_v1 = vpop.eup %12584  ;;  %v7567_v13 = vmul.f32 1.442695, %v7552_v18  ;;  %11718 = vmatpush.xpose.msk.msrb.mxu3 %vm461_vm1, %v7932_v2 }
0x1afe   : > { %v7575_v7 = vsel %vm16620_vm2, %v12585_v1, 0.0 }
0x1aff   : > { %12586 = vpow2.f32 %v7567_v13  ;;  %7576 = vadd.xlane.f32.xlu1 %v7575_v7 }
0x1b00   : > { %12588 = vpow2.f32 %v7565_v31 }
0x1b01   : > { %12590 = vrcp.f32 %v7574_v23 }
0x1b02   : > { %12592 = vrcp.f32 %v15341_v43 }
0x1b04   : > { %11711 = vmatmul.msk.f32.vlgmr.msra.gmra.mxu3 %vm461_vm1, %v7818_v22  ;;  %v7902_v22 = vpop.permute.xlu1 %7901 }
0x1b05   : > { %v12587_v53 = vpop.eup %12586 }
0x1b06   : > { %v7590_v10 = vsel %vm16620_vm2, %v12587_v53, 0.0  ;;  %v12589_v54 = vpop.eup %12588 }
0x1b07   : > { %7591 = vadd.xlane.f32.xlu0 %v7590_v10  ;;  %v12591_v56 = vpop.eup %12590  ;;  %v7587_v2 = vsel %vm16620_vm2, %v12589_v54, 0.0 }
0x1b08   : > { %v7602_v28 = vmul.f32 %v12591_v56, %v15319_v49  ;;  %v7904_v49 = vpop.permute.xlu2 %7903  ;;  %v12593_v14 = vpop.eup %12592 }
0x1b09   : > { %v7606_v8 = vmul.f32 %v12593_v14, %v15326_v0 }
0x1b0c   : > { %11719 = vmatmul.msk.f32.vlgmr.msrb.gmra.mxu3 %vm461_vm1, %v7930_v47 }
0x1b0d   : > { %v12087_v50 = vpop.permute.xlu0 %12086 }
0x1b0e   : > { %v12089_v11 = vunpack.i.h.bf16 %v12087_v50  ;;  %v12088_v36 = vunpack.i.l.bf16 %v12087_v50 }
0x1b0f   : > { %12091 = vrot.lane.b32.xlu2 %v15108_v63, %s12886_s22  ;;  %7588 = vadd.xlane.f32.xlu0 %v7587_v2 }
0x1b10   : > { %7656 = vmatpush.msrb.mxu0 %v12088_v36  ;;  %7682 = vmatpush.msra.mxu1 %v12089_v11 }
0x1b11   : > { %11703 = vmatmul.msk.f32.vlgmr.msrb.gmra.mxu0 %vm16620_vm2, %v7602_v28 }
0x1b17   : > { %8013 = vrot.lane.b32.xlu2 %v14879_v25, %s12887_s23 }
0x1b18   : > { %8015 = vrot.lane.b32.xlu1 %v14871_v21, %s12887_s23 }
0x1b1f   : > { %7845 = vrot.lane.b32.xlu2 %v14804_v24, %s12887_s23 }
0x1b20   : > { %7847 = vrot.lane.b32.xlu1 %v14799_v55, %s12887_s23 }
0x1b23   : > { %7987 = vrot.lane.b32.xlu0 %v14851_v60, %s12887_s23 }
0x1b27   : > { %7959 = vrot.lane.b32.xlu2 %v14839_v46, %s12887_s23 }
0x1b28   : > { %7875 = vrot.lane.b32.xlu1 %v14809_v4, %s12887_s23 }
0x1b2b   : > { %12096 = vrot.lane.b32.xlu0 %v15005_v44, %s12887_s23 }
0x1b2f   : > { %7957 = vrot.lane.b32.xlu2 %v14844_v34, %s12887_s23 }
0x1b30   : > { %7873 = vrot.lane.b32.xlu1 %v14814_v29, %s12887_s23 }
0x1b33   : > { %8459 = vrot.lane.b32.xlu0 %v14829_v5, %s12888_s24 }
0x1b38   : > { %7985 = vrot.lane.b32.xlu1 %v14859_v42, %s12887_s23 }
0x1b6a   : > { %v7580_v23 = vpop.xlane.xlu2 %7579 }
0x1b6b   : > { %12594 = vrcp.f32 %v7580_v23 }
0x1b71   : > { %v12595_v30 = vpop.eup %12594 }
0x1b72   : > { %v7604_v47 = vmul.f32 %v12595_v30, %v12581_v6  ;;  %v12092_v57 = vpop.permute.xlu2 %12091  ;;  %v7577_v20 = vpop.xlane.xlu1 %7576 }
0x1b73   : > { %v12094_v35 = vunpack.i.h.bf16 %v12092_v57  ;;  %v12093_v18 = vunpack.i.l.bf16 %v12092_v57  ;;  %12596 = vrcp.f32 %v7577_v20 }
0x1b74   : > { %11705 = vmatmul.msk.f32.vlgmr.msra.gmra.mxu2 %vm16620_vm2, %v7604_v47 }
0x1b75   : > { %11716 = vmatpush.xpose.msk.msra.mxu2 %vm461_vm1, %v7904_v49  ;;  %7760 = vmatpush.msra.mxu0 %v12093_v18 }
0x1b76   : > { %7786 = vmatpush.msrb.mxu1 %v12094_v35  ;;  %11707 = vmatmul.msk.f32.vlgmr.msra.gmra.mxu0 %vm16620_vm2, %v7606_v8 }
0x1b77   : > { %v15388_v43 = vpop.f32.mrf.mxu3 }
0x1b79   : > { %v12597_v13 = vpop.eup %12596 }
0x1b7a   : > { %v7603_v7 = vmul.f32 %v12597_v13, %v12585_v1  ;;  %v7592_v6 = vpop.xlane.xlu0 %7591  ;;  %v8014_v31 = vpop.permute.xlu2 %8013 }
0x1b7b   : > { %12598 = vrcp.f32 %v7592_v6 }
0x1b7c   : > { %11704 = vmatmul.msk.f32.vlgmr.msra.gmra.mxu1 %vm16620_vm2, %v7603_v7 }
0x1b7f   : > { %v15391_v10 = vpop.f32.mrf.mxu3 }
0x1b80   : > { %16711 = vst [vmem:[#allocation15_spill] sm:$0xff] %v15391_v10 }
0x1b81   : > { %v12599_v0 = vpop.eup %12598 }
0x1b82   : > { %v7608_v56 = vmul.f32 %v12599_v0, %v12587_v53  ;;  %v7589_v50 = vpop.xlane.xlu0 %7588  ;;  %v7846_v28 = vpop.permute.xlu2 %7845 }
0x1b83   : > { %12600 = vrcp.f32 %v7589_v50 }
0x1b84   : > { %11709 = vmatmul.msk.f32.vlgmr.msrb.gmra.mxu2 %vm16620_vm2, %v7608_v56 }
0x1b87   : > { %v7842_v11 = vpop.f32.mrf.mxu3 }
0x1b88   : > { %v15394_v36 = vmul.f32 0.5, %v7842_v11 }
0x1b89   : > { %v12601_v2 = vpop.eup %12600 }
0x1b8a   : > { %v7607_v49 = vmul.f32 %v12601_v2, %v12589_v54  ;;  %v8016_v1 = vpop.permute.xlu1 %8015  ;;  %v8049_v23 = vsel %vm16620_vm2, %v15394_v36, -inf  ;;  %v7960_v57 = vpop.permute.xlu2 %7959 }
0x1b8b   : > { %11724 = vmatpush.xpose.msk.msrb.mxu2 %vm461_vm1, %v8016_v1  ;;  %8050 = vmax.xlane.f32.xlu2 %v8049_v23 }
0x1b8c   : > { %11708 = vmatmul.msk.f32.vlgmr.msrb.gmra.mxu1 %vm16620_vm2, %v7607_v49  ;;  %11717 = vmatmul.msk.f32.vlgmr.msra.gmra.mxu2 %vm461_vm1, %v7902_v22 }
0x1b8e   : > { %v15413_v6 = vpop.f32.mrf.mxu0 }
0x1b8f   : > { %v7954_v53 = vpop.f32.mrf.mxu3 }
0x1b90   : > { %v8045_v14 = vmul.f32 0.5, %v7954_v53 }
0x1b92   : > { %v7848_v30 = vpop.permute.xlu1 %7847  ;;  %v8061_v47 = vsel %vm16620_vm2, %v8045_v14, -inf  ;;  %v7958_v22 = vpop.permute.xlu2 %7957 }
0x1b93   : > { %11712 = vmatpush.xpose.msk.msrb.mxu0 %vm461_vm1, %v7848_v30  ;;  %8062 = vmax.xlane.f32.xlu1 %v8061_v47 }
0x1b94   : > { %11725 = vmatmul.msk.f32.vlgmr.msrb.gmra.mxu2 %vm461_vm1, %v8014_v31 }
0x1b95   : > { %v7988_v54 = vpop.permute.xlu0 %7987 }
0x1b96   : > { %11713 = vmatmul.msk.f32.vlgmr.msrb.gmra.mxu0 %vm461_vm1, %v7846_v28 }
0x1b97   : > { %11720 = vmatpush.xpose.msk.msra.mxu0 %vm461_vm1, %v7960_v57 }
0x1b9a   : > { %v7876_v20 = vpop.permute.xlu1 %7875 }
0x1b9b   : > { %11714 = vmatpush.xpose.msk.msra.mxu1 %vm461_vm1, %v7876_v20 }
0x1b9d   : > { %v12097_v35 = vpop.permute.xlu0 %12096 }
0x1b9e   : > { %v12099_v18 = vunpack.i.h.bf16 %v12097_v35  ;;  %v12098_v8 = vunpack.i.l.bf16 %v12097_v35  ;;  %11721 = vmatmul.msk.f32.vlgmr.msra.gmra.mxu0 %vm461_vm1, %v7958_v22 }
0x1b9f   : > { %11722 = vmatpush.xpose.msk.msrb.mxu1 %vm461_vm1, %v7988_v54 }
0x1ba0   : > { %8158 = vmatpush.msra.mxu3 %v12098_v8  ;;  %v15442_v8 = vpack.i.bf16 %v14863_v27, %v14977_v16 }
0x1ba2   : > { %8262 = vmatpush.msrb.mxu3 %v12099_v18  ;;  %v7874_v13 = vpop.permute.xlu1 %7873  ;;  %v15436_v18 = vpack.i.bf16 %v14874_v41, %v14884_v9 }
0x1ba3   : > { %11715 = vmatmul.msk.f32.vlgmr.msra.gmra.mxu1 %vm461_vm1, %v7874_v13 }
0x1baa   : > { %v7986_v7 = vpop.permute.xlu1 %7985 }
0x1bab   : > { %11723 = vmatmul.msk.f32.vlgmr.msrb.gmra.mxu1 %vm461_vm1, %v7986_v7 }
0x1bac   : > { %8347 = vrot.lane.b32.xlu1 %v14786_v33, %s12888_s24 }
0x1bf3   : > { %v15415_v31 = vpop.f32.mrf.mxu0 }
0x1bf4   : > { %16712 = vst [vmem:[#allocation11_spill] sm:$0xff] %v15415_v31 }
0x1bf7   : > { %v15422_v28 = vpop.f32.mrf.mxu2 }
0x1bf8   : > { %16715 = vst [vmem:[#allocation40_spill] sm:$0xff] %v15422_v28 }
0x1bf9   : > { %v15417_v0 = vpop.f32.mrf.mxu1 }
0x1bfa   : > { %16713 = vst [vmem:[#allocation38_spill] sm:$0xff] %v15417_v0 }
0x1c06   : > { %v8063_v13 = vpop.xlane.xlu1 %8062 }
0x1c07   : > { %v15425_v30 = vpop.f32.mrf.mxu2  ;;  %v8077_v7 = vsub.f32 %v8045_v14, %v8063_v13 }
0x1c08   : > { %16716 = vst [vmem:[#allocation41_spill] sm:$0xff] %v15425_v30 }
0x1c09   : > { %v15420_v2 = vpop.f32.mrf.mxu1 }
0x1c0a   : > { %16714 = vst [vmem:[#allocation39_spill] sm:$0xff] %v15420_v2 }
0x1c0f   : > { %v7926_v20 = vpop.f32.mrf.mxu2 }
0x1c10   : > { %v15428_v22 = vmul.f32 0.5, %v7926_v20 }
0x1c12   : > { %v8058_v35 = vsel %vm16620_vm2, %v15428_v22, -inf }
0x1c13   : > { %v7870_v56 = vpop.f32.mrf.mxu0 }
0x1c14   : > { %v8042_v50 = vmul.f32 0.5, %v7870_v56  ;;  %v8089_v56 = vmul.f32 1.442695, %v8077_v7 }
0x1c16   : > { %v8052_v11 = vsel %vm16620_vm2, %v8042_v50, -inf  ;;  %12602 = vpow2.f32 %v8089_v56  ;;  %v15456_v56 = vpop.permute.xlu0 %8459 }
0x1c17   : > { %8053 = vmax.xlane.f32.xlu2 %v8052_v11 }
0x1c1b   : > { %v7982_v49 = vpop.f32.mrf.mxu0 }
0x1c1c   : > { %v8046_v1 = vmul.f32 0.5, %v7982_v49  ;;  %v15448_v11 = vpop.eup %12602 }
0x1c1d   : > { %v8109_v49 = vsel %vm16620_vm2, %v15448_v11, 0.0 }
0x1c1e   : > { %v8064_v23 = vsel %vm16620_vm2, %v8046_v1, -inf }
0x1c1f   : > { %8065 = vmax.xlane.f32.xlu2 %v8064_v23  ;;  %v8051_v23 = vpop.xlane.xlu2 %8050 }
0x1c20   : > { %v7898_v53 = vpop.f32.mrf.mxu1  ;;  %v8073_v14 = vsub.f32 %v15394_v36, %v8051_v23 }
0x1c28   : > { %v8010_v47 = vpop.f32.mrf.mxu1 }
0x1c29   : > { %v8047_v57 = vmul.f32 0.5, %v8010_v47 }
0x1c2b   : > { %v8067_v54 = vsel %vm16620_vm2, %v8047_v57, -inf }
0x1c2c   : > { %8068 = vmax.xlane.f32.xlu0 %v8067_v54 }
0x1c34   : > { %8059 = vmax.xlane.f32.xlu0 %v8058_v35 }
0x1c37   : > { %8345 = vrot.lane.b32.xlu2 %v14783_v32, %s12888_s24 }
0x1c3f   : > { %12101 = vrot.lane.b32.xlu2 %v15436_v18, %s12887_s23 }
0x1c47   : > { %8457 = vrot.lane.b32.xlu2 %v14834_v38, %s12888_s24 }
0x1c48   : > { %12106 = vrot.lane.b32.xlu0 %v15442_v8, %s12887_s23 }
0x1c70   : > { %8110 = vadd.xlane.f32.xlu2 %v8109_v49  ;;  %v8081_v49 = vmul.f32 1.442695, %v8073_v14  ;;  %v8038_v14 = vpop.f32.mrf.mxu2 }
0x1c88   : > { %12111 = vrot.lane.b32.xlu2 %v15108_v63, %s12887_s23 }
0x1c8a   : > { %v8054_v47 = vpop.xlane.xlu2 %8053 }
0x1c8b   : > { %v8074_v54 = vsub.f32 %v8042_v50, %v8054_v47 }
0x1c8d   : > { %v8083_v20 = vmul.f32 1.442695, %v8074_v54 }
0x1c8f   : > { %12604 = vpow2.f32 %v8083_v20 }
0x1c92   : > { %v8066_v35 = vpop.xlane.xlu2 %8065 }
0x1c93   : > { %v8078_v31 = vsub.f32 %v8046_v1, %v8066_v35 }
0x1c95   : > { %v12605_v30 = vpop.eup %12604  ;;  %v8091_v13 = vmul.f32 1.442695, %v8078_v31 }
0x1c96   : > { %v8100_v7 = vsel %vm16620_vm2, %v12605_v30, 0.0 }
0x1c97   : > { %12606 = vpow2.f32 %v8091_v13  ;;  %8101 = vadd.xlane.f32.xlu1 %v8100_v7  ;;  %v8043_v7 = vmul.f32 0.5, %v7898_v53 }
0x1c98   : > { %12608 = vpow2.f32 %v8081_v49 }
0x1c9a   : > { %v15458_v2 = vpop.permute.xlu2 %8345 }
0x1c9d   : > { %v12607_v0 = vpop.eup %12606 }
0x1c9e   : > { %v8112_v50 = vsel %vm16620_vm2, %v12607_v0, 0.0  ;;  %v12609_v36 = vpop.eup %12608 }
0x1c9f   : > { %v8069_v47 = vpop.xlane.xlu0 %8068  ;;  %8113 = vadd.xlane.f32.xlu1 %v8112_v50  ;;  %v8097_v35 = vsel %vm16620_vm2, %v12609_v36, 0.0  ;;  %v8048_v50 = vmul.f32 0.5, %v8038_v14 }
0x1ca0   : > { %v8079_v1 = vsub.f32 %v8047_v57, %v8069_v47  ;;  %v8055_v57 = vsel %vm16620_vm2, %v8043_v7, -inf }
0x1ca1   : > { %v8070_v47 = vsel %vm16620_vm2, %v8048_v50, -inf }
0x1ca2   : > { %v8093_v54 = vmul.f32 1.442695, %v8079_v1  ;;  %v12102_v20 = vpop.permute.xlu2 %12101 }
0x1ca3   : > { %v12104_v31 = vunpack.i.h.bf16 %v12102_v20  ;;  %v12103_v23 = vunpack.i.l.bf16 %v12102_v20 }
0x1ca4   : > { %12610 = vpow2.f32 %v8093_v54 }
0x1ca5   : > { %8184 = vmatpush.msrb.mxu0 %v12104_v31  ;;  %8236 = vmatpush.msra.mxu2 %v12103_v23 }
0x1ca7   : > { %8098 = vadd.xlane.f32.xlu1 %v8097_v35  ;;  %v8060_v1 = vpop.xlane.xlu0 %8059 }
0x1caa   : > { %v15462_v13 = vpop.eup %12610  ;;  %v8458_v53 = vpop.permute.xlu2 %8457 }
0x1cab   : > { %v8115_v49 = vsel %vm16620_vm2, %v15462_v13, 0.0 }
0x1cac   : > { %8116 = vadd.xlane.f32.xlu0 %v8115_v49 }
0x1caf   : > { %8056 = vmax.xlane.f32.xlu1 %v8055_v57  ;;  %v8348_v57 = vpop.permute.xlu1 %8347 }
0x1cb1   : > { %8071 = vmax.xlane.f32.xlu2 %v8070_v47 }
0x1cba   : > { %v12107_v54 = vpop.permute.xlu0 %12106 }
0x1cbb   : > { %v12109_v20 = vunpack.i.h.bf16 %v12107_v54  ;;  %v12108_v31 = vunpack.i.l.bf16 %v12107_v54 }
0x1cbd   : > { %8210 = vmatpush.msra.mxu1 %v12109_v20  ;;  %8340 = vmatpush.msrb.mxu2 %v12108_v31 }
0x1cc8   : > { %8431 = vrot.lane.b32.xlu1 %v14819_v12, %s12888_s24 }
0x1cc9   : > { %8373 = vrot.lane.b32.xlu2 %v14804_v24, %s12888_s24 }
0x1cd0   : > { %8429 = vrot.lane.b32.xlu1 %v14824_v62, %s12888_s24 }
0x1cd8   : > { %8375 = vrot.lane.b32.xlu1 %v14799_v55, %s12888_s24 }
0x1ce0   : > { %8543 = vrot.lane.b32.xlu1 %v14871_v21, %s12888_s24 }
0x1ce3   : > { %v8111_v23 = vpop.xlane.xlu2 %8110 }
0x1ce8   : > { %8541 = vrot.lane.b32.xlu1 %v14879_v25, %s12888_s24 }
0x1ceb   : > { %v12112_v35 = vpop.permute.xlu2 %12111 }
0x1cec   : > { %v12114_v14 = vunpack.i.h.bf16 %v12112_v35  ;;  %v12113_v49 = vunpack.i.l.bf16 %v12112_v35 }
0x1cee   : > { %8288 = vmatpush.msra.mxu0 %v12113_v49  ;;  %8314 = vmatpush.msrb.mxu1 %v12114_v14 }
0x1cf0   : > { %8401 = vrot.lane.b32.xlu1 %v14814_v29, %s12888_s24 }
0x1cf8   : > { %8515 = vrot.lane.b32.xlu1 %v14851_v60, %s12888_s24 }
0x1d0a   : > { %v8102_v47 = vpop.xlane.xlu1 %8101 }
0x1d0b   : > { %12612 = vrcp.f32 %v8102_v47 }
0x1d11   : > { %v12613_v54 = vpop.eup %12612 }
0x1d12   : > { %v8130_v20 = vmul.f32 %v12613_v54, %v12605_v30  ;;  %v8114_v31 = vpop.xlane.xlu1 %8113  ;;  %v8076_v30 = vsub.f32 %v15428_v22, %v8060_v1 }
0x1d13   : > { %12614 = vrcp.f32 %v8114_v31 }
0x1d14   : > { %11727 = vmatmul.msk.f32.vlgmr.msrb.gmra.mxu0 %vm16620_vm2, %v8130_v20 }
0x1d19   : > { %v12615_v52 = vpop.eup %12614 }
0x1d1a   : > { %v8134_v48 = vmul.f32 %v12615_v52, %v12607_v0  ;;  %v8099_v35 = vpop.xlane.xlu1 %8098  ;;  %v8087_v0 = vmul.f32 1.442695, %v8076_v30 }
0x1d1b   : > { %12616 = vrcp.f32 %v8099_v35 }
0x1d1c   : > { %11731 = vmatmul.msk.f32.vlgmr.msra.gmra.mxu0 %vm16620_vm2, %v8134_v48  ;;  %12618 = vrcp.f32 %v8111_v23 }
0x1d21   : > { %v12617_v14 = vpop.eup %12616 }
0x1d22   : > { %v8129_v49 = vmul.f32 %v12617_v14, %v12609_v36  ;;  %v8057_v10 = vpop.xlane.xlu1 %8056  ;;  %v12619_v20 = vpop.eup %12618 }
0x1d23   : > { %v8075_v17 = vsub.f32 %v8043_v7, %v8057_v10  ;;  %v8133_v48 = vmul.f32 %v12619_v20, %v15448_v11 }
0x1d24   : > { %v8072_v15 = vpop.xlane.xlu2 %8071  ;;  %11726 = vmatmul.msk.f32.vlgmr.msra.gmra.mxu3 %vm16620_vm2, %v8129_v49 }
0x1d25   : > { %v8085_v47 = vmul.f32 1.442695, %v8075_v17  ;;  %v8080_v54 = vsub.f32 %v8048_v50, %v8072_v15  ;;  %11734 = vmatpush.xpose.msk.msra.mxu3 %vm461_vm1, %v8348_v57  ;;  %v8117_v57 = vpop.xlane.xlu0 %8116 }
0x1d27   : > { %12620 = vpow2.f32 %v8085_v47  ;;  %v8095_v52 = vmul.f32 1.442695, %v8080_v54 }
0x1d29   : > { %12622 = vpow2.f32 %v8095_v52 }
0x1d2a   : > { %12624 = vpow2.f32 %v8087_v0 }
0x1d2c   : > { %11730 = vmatmul.msk.f32.vlgmr.msrb.gmra.mxu3 %vm16620_vm2, %v8133_v48  ;;  %v8374_v1 = vpop.permute.xlu2 %8373 }
0x1d2d   : > { %v12621_v36 = vpop.eup %12620  ;;  %11742 = vmatpush.xpose.msk.msrb.mxu3 %vm461_vm1, %v15456_v56 }
0x1d2e   : > { %v8103_v10 = vsel %vm16620_vm2, %v12621_v36, 0.0 }
0x1d2f   : > { %v12623_v17 = vpop.eup %12622  ;;  %8104 = vadd.xlane.f32.xlu2 %v8103_v10 }
0x1d30   : > { %v8118_v15 = vsel %vm16620_vm2, %v12623_v17, 0.0  ;;  %v12625_v22 = vpop.eup %12624 }
0x1d31   : > { %8119 = vadd.xlane.f32.xlu0 %v8118_v15  ;;  %v8106_v11 = vsel %vm16620_vm2, %v12625_v22, 0.0 }
0x1d34   : > { %11735 = vmatmul.msk.f32.vlgmr.msra.gmra.mxu3 %vm461_vm1, %v15458_v2 }
0x1d37   : > { %8107 = vadd.xlane.f32.xlu2 %v8106_v11 }
0x1d3a   : > { %v8432_v7 = vpop.permute.xlu1 %8431 }
0x1d3c   : > { %11743 = vmatmul.msk.f32.vlgmr.msrb.gmra.mxu3 %vm461_vm1, %v8458_v53 }
0x1d42   : > { %v8430_v50 = vpop.permute.xlu1 %8429 }
0x1d45   : > { %8487 = vrot.lane.b32.xlu0 %v14839_v46, %s12888_s24 }
0x1d4a   : > { %v8376_v56 = vpop.permute.xlu1 %8375 }
0x1d4b   : > { %11736 = vmatpush.xpose.msk.msrb.mxu0 %vm461_vm1, %v8376_v56 }
0x1d4e   : > { %11737 = vmatmul.msk.f32.vlgmr.msrb.gmra.mxu0 %vm461_vm1, %v8374_v1 }
0x1d4f   : > { %8403 = vrot.lane.b32.xlu2 %v14809_v4, %s12888_s24 }
0x1d52   : > { %v8544_v2 = vpop.permute.xlu1 %8543 }
0x1d57   : > { %8485 = vrot.lane.b32.xlu2 %v14844_v34, %s12888_s24 }
0x1d5a   : > { %v8542_v53 = vpop.permute.xlu1 %8541 }
0x1d5f   : > { %8513 = vrot.lane.b32.xlu2 %v14859_v42, %s12888_s24 }
0x1d62   : > { %v8402_v14 = vpop.permute.xlu1 %8401 }
0x1d67   : > { %12116 = vrot.lane.b32.xlu2 %v15005_v44, %s12888_s24 }
0x1d6a   : > { %v8516_v10 = vpop.permute.xlu1 %8515 }
0x1d6f   : > { %8985 = vrot.lane.b32.xlu2 %v14834_v38, %s12889_s26 }
0x1d77   : > { %12131 = vrot.lane.b32.xlu2 %v15108_v63, %s12888_s24 }
0x1d7f   : > { %8903 = vrot.lane.b32.xlu2 %v14799_v55, %s12889_s26 }
0x1d87   : > { %8901 = vrot.lane.b32.xlu2 %v14804_v24, %s12889_s26 }
0x1d8f   : > { %8931 = vrot.lane.b32.xlu2 %v14809_v4, %s12889_s26 }
0x1da2   : > { %v8105_v23 = vpop.xlane.xlu2 %8104 }
0x1da3   : > { %12626 = vrcp.f32 %v8105_v23 }
0x1da4   : > { %12628 = vrcp.f32 %v8117_v57  ;;  %v8120_v30 = vpop.xlane.xlu0 %8119 }
0x1da7   : > { %v15521_v31 = vpop.f32.mrf.mxu3 }
0x1da9   : > { %v12627_v35 = vpop.eup %12626 }
0x1daa   : > { %v8131_v63 = vmul.f32 %v12627_v35, %v12621_v36  ;;  %v8108_v49 = vpop.xlane.xlu2 %8107  ;;  %v12629_v47 = vpop.eup %12628 }
0x1dab   : > { %12630 = vrcp.f32 %v8108_v49  ;;  %v8135_v52 = vmul.f32 %v12629_v47, %v15462_v13  ;;  %v15533_v13 = vpop.f32.mrf.mxu0 }
0x1dac   : > { %11728 = vmatmul.msk.f32.vlgmr.msra.gmra.mxu1 %vm16620_vm2, %v8131_v63  ;;  %12632 = vrcp.f32 %v8120_v30 }
0x1daf   : > { %v15524_v54 = vpop.f32.mrf.mxu3 }
0x1db0   : > { %16717 = vst [vmem:[#allocation42_spill] sm:$0xff] %v15524_v54 }
0x1db1   : > { %v12631_v20 = vpop.eup %12630 }
0x1db2   : > { %v8132_v0 = vmul.f32 %v12631_v20, %v12625_v22  ;;  %v8404_v48 = vpop.permute.xlu2 %8403  ;;  %v12633_v36 = vpop.eup %12632 }
0x1db3   : > { %11738 = vmatpush.xpose.msk.msra.mxu1 %vm461_vm1, %v8404_v48  ;;  %v8136_v22 = vmul.f32 %v12633_v36, %v12623_v17  ;;  %v15544_v17 = vpop.f32.mrf.mxu0 }
0x1db4   : > { %11729 = vmatmul.msk.f32.vlgmr.msra.gmra.mxu2 %vm16620_vm2, %v8132_v0  ;;  %11732 = vmatmul.msk.f32.vlgmr.msrb.gmra.mxu1 %vm16620_vm2, %v8135_v52  ;;  %16718 = vst [vmem:[#allocation43_spill] sm:$0xff] %v15544_v17 }
0x1db5   : > { %11740 = vmatpush.xpose.msk.msra.mxu2 %vm461_vm1, %v8432_v7 }
0x1db7   : > { %11746 = vmatpush.xpose.msk.msrb.mxu1 %vm461_vm1, %v8516_v10  ;;  %v8488_v15 = vpop.permute.xlu0 %8487  ;;  %v8370_v11 = vpop.f32.mrf.mxu3 }
0x1db8   : > { %v8569_v56 = vmul.f32 0.5, %v8370_v11  ;;  %11744 = vmatpush.xpose.msk.msra.mxu0 %vm461_vm1, %v8488_v15 }
0x1dba   : > { %v8486_v1 = vpop.permute.xlu2 %8485  ;;  %v8577_v23 = vsel %vm16620_vm2, %v8569_v56, -inf }
0x1dbb   : > { %8578 = vmax.xlane.f32.xlu1 %v8577_v23  ;;  %11745 = vmatmul.msk.f32.vlgmr.msra.gmra.mxu0 %vm461_vm1, %v8486_v1 }
0x1dbc   : > { %11733 = vmatmul.msk.f32.vlgmr.msrb.gmra.mxu2 %vm16620_vm2, %v8136_v22  ;;  %11739 = vmatmul.msk.f32.vlgmr.msra.gmra.mxu1 %vm461_vm1, %v8402_v14 }
0x1dbd   : > { %11748 = vmatpush.xpose.msk.msrb.mxu2 %vm461_vm1, %v8544_v2 }
0x1dbf   : > { %v8482_v7 = vpop.f32.mrf.mxu3 }
0x1dc0   : > { %v15540_v57 = vmul.f32 0.5, %v8482_v7 }
0x1dc2   : > { %v8514_v35 = vpop.permute.xlu2 %8513  ;;  %v8589_v63 = vsel %vm16620_vm2, %v15540_v57, -inf }
0x1dc3   : > { %8590 = vmax.xlane.f32.xlu0 %v8589_v63 }
0x1dc4   : > { %11741 = vmatmul.msk.f32.vlgmr.msra.gmra.mxu2 %vm461_vm1, %v8430_v50  ;;  %11747 = vmatmul.msk.f32.vlgmr.msrb.gmra.mxu1 %vm461_vm1, %v8514_v35 }
0x1dca   : > { %v12117_v49 = vpop.permute.xlu2 %12116 }
0x1dcb   : > { %v12119_v30 = vunpack.i.h.bf16 %v12117_v49  ;;  %v12118_v47 = vunpack.i.l.bf16 %v12117_v49  ;;  %v8398_v14 = vpop.f32.mrf.mxu0 }
0x1dcc   : > { %v15548_v20 = vmul.f32 0.5, %v8398_v14  ;;  %11749 = vmatmul.msk.f32.vlgmr.msrb.gmra.mxu2 %vm461_vm1, %v8542_v53 }
0x1dcd   : > { %8686 = vmatpush.msra.mxu3 %v12118_v47 }
0x1dce   : > { %v8580_v2 = vsel %vm16620_vm2, %v15548_v20, -inf }
0x1dcf   : > { %8790 = vmatpush.msrb.mxu3 %v12119_v30  ;;  %8581 = vmax.xlane.f32.xlu1 %v8580_v2 }
0x1dd7   : > { %8875 = vrot.lane.b32.xlu0 %v14786_v33, %s12889_s26 }
0x1ddf   : > { %8873 = vrot.lane.b32.xlu0 %v14783_v32, %s12889_s26 }
0x1de7   : > { %12121 = vrot.lane.b32.xlu0 %v15436_v18, %s12888_s24 }
0x1def   : > { %12126 = vrot.lane.b32.xlu0 %v15442_v8, %s12888_s24  ;;  %s11347_s24 = sshll.u32 %s16770_s25, 3 }
0x1df7   : > { %8957 = vrot.lane.b32.xlu0 %v14824_v62, %s12889_s26 }
0x1dff   : > { %9071 = vrot.lane.b32.xlu0 %v14871_v21, %s12889_s26 }
0x1e29   : > { %v15565_v50 = vpop.f32.mrf.mxu1 }
0x1e2e   : > { %v8579_v53 = vpop.xlane.xlu1 %8578 }
0x1e2f   : > { %v8601_v52 = vsub.f32 %v8569_v56, %v8579_v53  ;;  %v15590_v53 = vpop.permute.xlu2 %8985 }
0x1e31   : > { %v8609_v0 = vmul.f32 1.442695, %v8601_v52  ;;  %v15567_v48 = vpop.f32.mrf.mxu1 }
0x1e32   : > { %16719 = vst [vmem:[#allocation44_spill] sm:$0xff] %v15567_v48 }
0x1e33   : > { %12634 = vpow2.f32 %v8609_v0 }
0x1e36   : > { %v8591_v23 = vpop.xlane.xlu0 %8590 }
0x1e37   : > { %v15569_v10 = vpop.f32.mrf.mxu2 }
0x1e38   : > { %16720 = vst [vmem:[#allocation45_spill] sm:$0xff] %v15569_v10  ;;  %v8510_v18 = vpop.f32.mrf.mxu0 }
0x1e39   : > { %v15571_v36 = vpop.eup %12634  ;;  %v8574_v8 = vmul.f32 0.5, %v8510_v18  ;;  %v8426_v15 = vpop.f32.mrf.mxu1 }
0x1e3a   : > { %v8625_v11 = vsel %vm16620_vm2, %v15571_v36, 0.0  ;;  %v15576_v1 = vmul.f32 0.5, %v8426_v15 }
0x1e3b   : > { %8626 = vadd.xlane.f32.xlu0 %v8625_v11  ;;  %v8592_v22 = vsel %vm16620_vm2, %v8574_v8, -inf  ;;  %v12132_v11 = vpop.permute.xlu2 %12131 }
0x1e3c   : > { %8593 = vmax.xlane.f32.xlu1 %v8592_v22  ;;  %v8583_v63 = vsel %vm16620_vm2, %v15576_v1, -inf }
0x1e3f   : > { %v15578_v56 = vpop.f32.mrf.mxu2 }
0x1e40   : > { %16721 = vst [vmem:[#allocation46_spill] sm:$0xff] %v15578_v56  ;;  %v12134_v56 = vunpack.i.h.bf16 %v12132_v11 }
0x1e41   : > { %v8538_v7 = vpop.f32.mrf.mxu1 }
0x1e42   : > { %v15580_v35 = vmul.f32 0.5, %v8538_v7 }
0x1e43   : > { %8584 = vmax.xlane.f32.xlu0 %v8583_v63 }
0x1e44   : > { %v8595_v49 = vsel %vm16620_vm2, %v15580_v35, -inf }
0x1e45   : > { %8596 = vmax.xlane.f32.xlu2 %v8595_v49  ;;  %v12133_v49 = vunpack.i.l.bf16 %v12132_v11 }
0x1e47   : > { %v8454_v30 = vpop.f32.mrf.mxu2 }
0x1e48   : > { %v15586_v47 = vmul.f32 0.5, %v8454_v30 }
0x1e49   : > { %v8876_v14 = vpop.permute.xlu0 %8875 }
0x1e4a   : > { %v8586_v2 = vsel %vm16620_vm2, %v15586_v47, -inf }
0x1e4d   : > { %8587 = vmax.xlane.f32.xlu2 %v8586_v2 }
0x1e4f   : > { %v8566_v52 = vpop.f32.mrf.mxu2 }
0x1e50   : > { %v15592_v0 = vmul.f32 0.5, %v8566_v52 }
0x1e51   : > { %v15594_v18 = vpop.permute.xlu0 %8873 }
0x1e52   : > { %v8598_v15 = vsel %vm16620_vm2, %v15592_v0, -inf }
0x1e55   : > { %8987 = vrot.lane.b32.xlu1 %v14829_v5, %s12889_s26  ;;  %8599 = vmax.xlane.f32.xlu2 %v8598_v15  ;;  %v8582_v15 = vpop.xlane.xlu1 %8581 }
0x1e57   : > { %9015 = vrot.lane.b32.xlu0 %v14839_v46, %s12889_s26 }
0x1e59   : > { %v12122_v22 = vpop.permute.xlu0 %12121 }
0x1e5a   : > { %v12124_v7 = vunpack.i.h.bf16 %v12122_v22  ;;  %v12123_v63 = vunpack.i.l.bf16 %v12122_v22  ;;  %v8602_v22 = vsub.f32 %v15548_v20, %v8582_v15  ;;  %v8605_v20 = vsub.f32 %v15540_v57, %v8591_v23 }
0x1e5c   : > { %8712 = vmatpush.msrb.mxu0 %v12124_v7  ;;  %8764 = vmatpush.msra.mxu2 %v12123_v63  ;;  %v8611_v54 = vmul.f32 1.442695, %v8602_v22  ;;  %v8617_v22 = vmul.f32 1.442695, %v8605_v20 }
0x1e5d   : > { %8959 = vrot.lane.b32.xlu1 %v14819_v12, %s12889_s26 }
0x1e5e   : > { %8816 = vmatpush.msra.mxu0 %v12133_v49  ;;  %12636 = vpow2.f32 %v8611_v54  ;;  %v8904_v49 = vpop.permute.xlu2 %8903 }
0x1e61   : > { %v12127_v30 = vpop.permute.xlu0 %12126 }
0x1e62   : > { %v12129_v2 = vunpack.i.h.bf16 %v12127_v30  ;;  %v12128_v52 = vunpack.i.l.bf16 %v12127_v30 }
0x1e64   : > { %8738 = vmatpush.msra.mxu1 %v12129_v2  ;;  %8868 = vmatpush.msrb.mxu2 %v12128_v52  ;;  %v12637_v7 = vpop.eup %12636 }
0x1e65   : > { %v8628_v63 = vsel %vm16620_vm2, %v12637_v7, 0.0 }
0x1e66   : > { %8842 = vmatpush.msrb.mxu1 %v12134_v56  ;;  %v15610_v30 = vpop.permute.xlu2 %8901 }
0x1e69   : > { %v15608_v48 = vpop.permute.xlu0 %8957 }
0x1e6d   : > { %8929 = vrot.lane.b32.xlu2 %v14814_v29, %s12889_s26 }
0x1e6e   : > { %v15614_v52 = vpop.permute.xlu2 %8931 }
0x1e71   : > { %v15612_v11 = vpop.permute.xlu0 %9071 }
0x1e87   : > { %8629 = vadd.xlane.f32.xlu1 %v8628_v63 }
0x1eae   : > { %v8627_v56 = vpop.xlane.xlu0 %8626 }
0x1eaf   : > { %12638 = vrcp.f32 %v8627_v56  ;;  %v8594_v2 = vpop.xlane.xlu1 %8593 }
0x1eb0   : > { %v8606_v10 = vsub.f32 %v8574_v8, %v8594_v2 }
0x1eb2   : > { %v8619_v54 = vmul.f32 1.442695, %v8606_v10 }
0x1eb4   : > { %12640 = vpow2.f32 %v8619_v54 }
0x1eb5   : > { %v12639_v15 = vpop.eup %12638  ;;  %12642 = vpow2.f32 %v8617_v22 }
0x1eb6   : > { %v8657_v63 = vmul.f32 %v12639_v15, %v15571_v36  ;;  %v8585_v17 = vpop.xlane.xlu0 %8584 }
0x1eb7   : > { %v8603_v59 = vsub.f32 %v15576_v1, %v8585_v17 }
0x1eb8   : > { %v8597_v3 = vpop.xlane.xlu2 %8596  ;;  %11750 = vmatmul.msk.f32.vlgmr.msra.gmra.mxu3 %vm16620_vm2, %v8657_v63 }
0x1eb9   : > { %v8613_v28 = vmul.f32 1.442695, %v8603_v59  ;;  %11758 = vmatpush.xpose.msk.msra.mxu3 %vm461_vm1, %v8876_v14 }
0x1eba   : > { %v12641_v56 = vpop.eup %12640 }
0x1ebb   : > { %12644 = vpow2.f32 %v8613_v28  ;;  %v8640_v57 = vsel %vm16620_vm2, %v12641_v56, 0.0  ;;  %v12643_v10 = vpop.eup %12642 }
0x1ebc   : > { %8641 = vadd.xlane.f32.xlu1 %v8640_v57  ;;  %v8637_v17 = vsel %vm16620_vm2, %v12643_v10, 0.0 }
0x1ec0   : > { %v8588_v8 = vpop.xlane.xlu2 %8587 }
0x1ec1   : > { %v12645_v23 = vpop.eup %12644  ;;  %v8604_v63 = vsub.f32 %v15586_v47, %v8588_v8 }
0x1ec2   : > { %v8631_v36 = vsel %vm16620_vm2, %v12645_v23, 0.0 }
0x1ec3   : > { %8632 = vadd.xlane.f32.xlu0 %v8631_v36  ;;  %v8615_v36 = vmul.f32 1.442695, %v8604_v63 }
0x1ec4   : > { %8638 = vadd.xlane.f32.xlu1 %v8637_v17 }
0x1ec7   : > { %v8988_v20 = vpop.permute.xlu1 %8987 }
0x1ec8   : > { %v8600_v1 = vpop.xlane.xlu2 %8599 }
0x1ec9   : > { %v8608_v59 = vsub.f32 %v15592_v0, %v8600_v1  ;;  %v8607_v0 = vsub.f32 %v15580_v35, %v8597_v3  ;;  %v9016_v35 = vpop.permute.xlu0 %9015 }
0x1ecb   : > { %v8623_v2 = vmul.f32 1.442695, %v8608_v59  ;;  %v8621_v15 = vmul.f32 1.442695, %v8607_v0 }
0x1ecd   : > { %12646 = vpow2.f32 %v8623_v2 }
0x1ecf   : > { %v8960_v54 = vpop.permute.xlu1 %8959 }
0x1ed3   : > { %v15625_v14 = vpop.eup %12646 }
0x1ed4   : > { %v8646_v28 = vsel %vm16620_vm2, %v15625_v14, 0.0 }
0x1ed5   : > { %8647 = vadd.xlane.f32.xlu2 %v8646_v28 }
0x1ed7   : > { %9013 = vrot.lane.b32.xlu0 %v14844_v34, %s12889_s26 }
0x1edd   : > { %9069 = vrot.lane.b32.xlu1 %v14879_v25, %s12889_s26 }
0x1eed   : > { %9041 = vrot.lane.b32.xlu2 %v14859_v42, %s12889_s26 }
0x1efa   : > { %v8630_v22 = vpop.xlane.xlu1 %8629 }
0x1efb   : > { %12648 = vrcp.f32 %v8630_v22 }
0x1efc   : > { %12650 = vpow2.f32 %v8621_v15 }
0x1efd   : > { %12652 = vpow2.f32 %v8615_v36 }
0x1f01   : > { %v12649_v57 = vpop.eup %12648 }
0x1f02   : > { %v8658_v17 = vmul.f32 %v12649_v57, %v12637_v7  ;;  %v12651_v1 = vpop.eup %12650 }
0x1f03   : > { %v8643_v59 = vsel %vm16620_vm2, %v12651_v1, 0.0  ;;  %v12653_v2 = vpop.eup %12652 }
0x1f04   : > { %11751 = vmatmul.msk.f32.vlgmr.msrb.gmra.mxu0 %vm16620_vm2, %v8658_v17  ;;  %v8634_v3 = vsel %vm16620_vm2, %v12653_v2, 0.0 }
0x1f05   : > { %11760 = vmatpush.xpose.msk.msrb.mxu0 %vm461_vm1, %v8904_v49 }
0x1f07   : > { %8644 = vadd.xlane.f32.xlu1 %v8643_v59 }
0x1f0f   : > { %8635 = vadd.xlane.f32.xlu1 %v8634_v3 }
0x1f28   : > { %9043 = vrot.lane.b32.xlu1 %v14851_v60, %s12889_s26 }
0x1f2f   : > { %v8642_v47 = vpop.xlane.xlu1 %8641 }
0x1f30   : > { %12654 = vrcp.f32 %v8642_v47 }
0x1f36   : > { %v12655_v7 = vpop.eup %12654  ;;  %v8633_v8 = vpop.xlane.xlu0 %8632 }
0x1f37   : > { %v8662_v28 = vmul.f32 %v12655_v7, %v12641_v56  ;;  %12656 = vrcp.f32 %v8633_v8  ;;  %v8639_v0 = vpop.xlane.xlu1 %8638 }
0x1f38   : > { %12658 = vrcp.f32 %v8639_v0 }
0x1f39   : > { %11755 = vmatmul.msk.f32.vlgmr.msra.gmra.mxu0 %vm16620_vm2, %v8662_v28 }
0x1f3a   : > { %11768 = vmatpush.xpose.msk.msra.mxu0 %vm461_vm1, %v9016_v35 }
0x1f3d   : > { %v12657_v49 = vpop.eup %12656 }
0x1f3e   : > { %v12659_v15 = vpop.eup %12658  ;;  %v8659_v22 = vmul.f32 %v12657_v49, %v12645_v23 }
0x1f3f   : > { %v8661_v63 = vmul.f32 %v12659_v15, %v12643_v10 }
0x1f40   : > { %11752 = vmatmul.msk.f32.vlgmr.msra.gmra.mxu1 %vm16620_vm2, %v8659_v22 }
0x1f41   : > { %11762 = vmatpush.xpose.msk.msra.mxu1 %vm461_vm1, %v15614_v52  ;;  %11754 = vmatmul.msk.f32.vlgmr.msrb.gmra.mxu3 %vm16620_vm2, %v8661_v63  ;;  %v8930_v52 = vpop.permute.xlu2 %8929 }
0x1f42   : > { %11761 = vmatmul.msk.f32.vlgmr.msrb.gmra.mxu0 %vm461_vm1, %v15610_v30  ;;  %11766 = vmatpush.xpose.msk.msrb.mxu3 %vm461_vm1, %v8988_v20 }
0x1f49   : > { %v9014_v56 = vpop.permute.xlu0 %9013  ;;  %11759 = vmatmul.msk.f32.vlgmr.msra.gmra.mxu3 %vm461_vm1, %v15594_v18  ;;  %v8648_v30 = vpop.xlane.xlu2 %8647 }
0x1f4a   : > { %11769 = vmatmul.msk.f32.vlgmr.msra.gmra.mxu0 %vm461_vm1, %v9014_v56 }
0x1f4f   : > { %v9070_v10 = vpop.permute.xlu1 %9069 }
0x1f51   : > { %11767 = vmatmul.msk.f32.vlgmr.msrb.gmra.mxu3 %vm461_vm1, %v15590_v53 }
0x1f7a   : > { %v8645_v23 = vpop.xlane.xlu1 %8644 }
0x1f7b   : > { %12660 = vrcp.f32 %v8645_v23 }
0x1f81   : > { %v12661_v57 = vpop.eup %12660 }
0x1f82   : > { %v8663_v36 = vmul.f32 %v12661_v57, %v12651_v1  ;;  %v8636_v17 = vpop.xlane.xlu1 %8635 }
0x1f83   : > { %12662 = vrcp.f32 %v8636_v17 }
0x1f84   : > { %11756 = vmatmul.msk.f32.vlgmr.msrb.gmra.mxu1 %vm16620_vm2, %v8663_v36  ;;  %12664 = vrcp.f32 %v8648_v30 }
0x1f89   : > { %v12663_v20 = vpop.eup %12662 }
0x1f8a   : > { %v8660_v59 = vmul.f32 %v12663_v20, %v12653_v2  ;;  %v12665_v53 = vpop.eup %12664  ;;  %v9042_v2 = vpop.permute.xlu2 %9041 }
0x1f8b   : > { %v8664_v18 = vmul.f32 %v12665_v53, %v15625_v14  ;;  %v15674_v14 = vpop.f32.mrf.mxu3 }
0x1f8c   : > { %11753 = vmatmul.msk.f32.vlgmr.msra.gmra.mxu2 %vm16620_vm2, %v8660_v59  ;;  %11763 = vmatmul.msk.f32.vlgmr.msra.gmra.mxu1 %vm461_vm1, %v8930_v52 }
0x1f8d   : > { %11764 = vmatpush.xpose.msk.msra.mxu2 %vm461_vm1, %v8960_v54  ;;  %v15670_v54 = vpop.f32.mrf.mxu0 }
0x1f94   : > { %11757 = vmatmul.msk.f32.vlgmr.msrb.gmra.mxu2 %vm16620_vm2, %v8664_v18 }
0x1f95   : > { %11772 = vmatpush.xpose.msk.msrb.mxu2 %vm461_vm1, %v15612_v11 }
0x1f9a   : > { %v9044_v1 = vpop.permute.xlu1 %9043 }
0x1f9b   : > { %11770 = vmatpush.xpose.msk.msrb.mxu1 %vm461_vm1, %v9044_v1 }
0x1f9c   : > { %11765 = vmatmul.msk.f32.vlgmr.msra.gmra.mxu2 %vm461_vm1, %v15608_v48 }
0x1f9e   : > { %11771 = vmatmul.msk.f32.vlgmr.msrb.gmra.mxu1 %vm461_vm1, %v9042_v2 }
0x1fa4   : > { %11773 = vmatmul.msk.f32.vlgmr.msrb.gmra.mxu2 %vm461_vm1, %v9070_v10 }
0x1fb6   : > { %v15672_v3 = vpop.f32.mrf.mxu0 }
0x1fbd   : > { %v15686_v10 = vpop.f32.mrf.mxu1 }
0x1fbf   : > { %v8926_v35 = vpop.f32.mrf.mxu0 }
0x1fc0   : > { %v9098_v47 = vmul.f32 0.5, %v8926_v35 }
0x1fc2   : > { %v9108_v11 = vsel %vm16620_vm2, %v9098_v47, -inf }
0x1fc3   : > { %9109 = vmax.xlane.f32.xlu2 %v9108_v11 }
0x1fc4   : > { %v15677_v7 = vpop.f32.mrf.mxu3 }
0x1fc7   : > { %v9038_v22 = vpop.f32.mrf.mxu0 }
0x1fc8   : > { %v9102_v63 = vmul.f32 0.5, %v9038_v22 }
0x1fca   : > { %v9120_v56 = vsel %vm16620_vm2, %v9102_v63, -inf }
0x1fcc   : > { %v8898_v8 = vpop.f32.mrf.mxu3 }
0x1fcd   : > { %v9097_v48 = vmul.f32 0.5, %v8898_v8 }
0x1fcf   : > { %v9105_v28 = vsel %vm16620_vm2, %v9097_v48, -inf }
0x1fd0   : > { %9106 = vmax.xlane.f32.xlu0 %v9105_v28 }
0x1fd4   : > { %v9010_v0 = vpop.f32.mrf.mxu3 }
0x1fd5   : > { %v9101_v49 = vmul.f32 0.5, %v9010_v0 }
0x1fd7   : > { %v9117_v15 = vsel %vm16620_vm2, %v9101_v49, -inf }
0x1fd8   : > { %9118 = vmax.xlane.f32.xlu1 %v9117_v15 }
0x1fdb   : > { %12136 = vrot.lane.b32.xlu2 %v15005_v44, %s12889_s26 }
0x1fe0   : > { %9121 = vmax.xlane.f32.xlu1 %v9120_v56 }
0x1fe4   : > { %9403 = vrot.lane.b32.xlu0 %v14786_v33, %s12890_s27 }
0x1ff9   : > { %9401 = vrot.lane.b32.xlu1 %v14783_v32, %s12890_s27 }
0x2001   : > { %v15690_v23 = vpop.f32.mrf.mxu1 }
0x2009   : > { %v8954_v52 = vpop.f32.mrf.mxu1 }
0x200a   : > { %v9099_v57 = vmul.f32 0.5, %v8954_v52 }
0x200c   : > { %v9111_v36 = vsel %vm16620_vm2, %v9099_v57, -inf }
0x200d   : > { %9112 = vmax.xlane.f32.xlu2 %v9111_v36 }
0x200f   : > { %v15696_v2 = vpop.f32.mrf.mxu2 }
0x2017   : > { %v15700_v0 = vpop.f32.mrf.mxu2 }
0x201b   : > { %v9066_v17 = vpop.f32.mrf.mxu1 }
0x201c   : > { %v9103_v44 = vmul.f32 0.5, %v9066_v17 }
0x201e   : > { %v9123_v30 = vsel %vm16620_vm2, %v9103_v44, -inf }
0x201f   : > { %9124 = vmax.xlane.f32.xlu2 %v9123_v30 }
0x2036   : > { %v9110_v20 = vpop.xlane.xlu2 %9109 }
0x2037   : > { %v9130_v59 = vsub.f32 %v9098_v47, %v9110_v20  ;;  %v8982_v20 = vpop.f32.mrf.mxu2 }
0x2039   : > { %v9139_v33 = vmul.f32 1.442695, %v9130_v59 }
0x203b   : > { %12666 = vpow2.f32 %v9139_v33 }
0x203e   : > { %v12137_v53 = vpop.permute.xlu2 %12136 }
0x203f   : > { %v12139_v18 = vunpack.i.h.bf16 %v12137_v53  ;;  %v12138_v1 = vunpack.i.l.bf16 %v12137_v53 }
0x2041   : > { %v15694_v32 = vpop.eup %12666  ;;  %9214 = vmatpush.msra.mxu3 %v12138_v1  ;;  %v9094_v1 = vpop.f32.mrf.mxu2 }
0x2042   : > { %v9156_v35 = vsel %vm16620_vm2, %v15694_v32, 0.0 }
0x2043   : > { %9318 = vmatpush.msrb.mxu3 %v12139_v18  ;;  %9157 = vadd.xlane.f32.xlu1 %v9156_v35  ;;  %v9107_v11 = vpop.xlane.xlu0 %9106  ;;  %v15709_v35 = vmul.f32 0.5, %v9094_v1 }
0x2044   : > { %v9129_v8 = vsub.f32 %v9097_v48, %v9107_v11  ;;  %v9100_v48 = vmul.f32 0.5, %v8982_v20  ;;  %v12140_v11 = vpack.i.bf16 %v14884_v9, %v14874_v41 }
0x2046   : > { %v9137_v28 = vmul.f32 1.442695, %v9129_v8  ;;  %v12145_v8 = vpack.i.bf16 %v14969_v45, %v14863_v27 }
0x2048   : > { %12668 = vpow2.f32 %v9137_v28  ;;  %v12150_v28 = vpack.i.bf16 %v14993_v19, %v14977_v16 }
0x204b   : > { %v9119_v47 = vpop.xlane.xlu1 %9118 }
0x204c   : > { %v9133_v15 = vsub.f32 %v9101_v49, %v9119_v47  ;;  %v9114_v49 = vsel %vm16620_vm2, %v9100_v48, -inf }
0x204e   : > { %v12669_v22 = vpop.eup %12668  ;;  %v9145_v56 = vmul.f32 1.442695, %v9133_v15 }
0x204f   : > { %v9153_v52 = vsel %vm16620_vm2, %v12669_v22, 0.0 }
0x2050   : > { %12670 = vpow2.f32 %v9145_v56  ;;  %9154 = vadd.xlane.f32.xlu1 %v9153_v52 }
0x2053   : > { %v9122_v36 = vpop.xlane.xlu1 %9121 }
0x2054   : > { %v9134_v17 = vsub.f32 %v9102_v63, %v9122_v36  ;;  %v9126_v63 = vsel %vm16620_vm2, %v15709_v35, -inf }
0x2056   : > { %v12671_v30 = vpop.eup %12670  ;;  %v9147_v59 = vmul.f32 1.442695, %v9134_v17 }
0x2057   : > { %v9165_v33 = vsel %vm16620_vm2, %v12671_v30, 0.0 }
0x2058   : > { %12672 = vpow2.f32 %v9147_v59  ;;  %9166 = vadd.xlane.f32.xlu0 %v9165_v33 }
0x205e   : > { %v15704_v53 = vpop.eup %12672 }
0x205f   : > { %v9168_v18 = vsel %vm16620_vm2, %v15704_v53, 0.0 }
0x2060   : > { %9115 = vmax.xlane.f32.xlu0 %v9114_v49  ;;  %9169 = vadd.xlane.f32.xlu2 %v9168_v18 }
0x2068   : > { %9127 = vmax.xlane.f32.xlu0 %v9126_v63 }
0x2069   : > { %12141 = vrot.lane.b32.xlu1 %v12140_v11, %s12889_s26 }
0x2078   : > { %12146 = vrot.lane.b32.xlu2 %v12145_v8, %s12889_s26 }
0x207c   : > { %12151 = vrot.lane.b32.xlu0 %v12150_v28, %s12889_s26 }
0x2080   : > { %9431 = vrot.lane.b32.xlu2 %v14799_v55, %s12890_s27  ;;  %v9113_v47 = vpop.xlane.xlu2 %9112 }
0x2081   : > { %v9131_v15 = vsub.f32 %v9099_v57, %v9113_v47  ;;  %v9402_v57 = vpop.permute.xlu1 %9401 }
0x2083   : > { %v9141_v56 = vmul.f32 1.442695, %v9131_v15 }
0x2085   : > { %12674 = vpow2.f32 %v9141_v56 }
0x2088   : > { %9485 = vrot.lane.b32.xlu2 %v14824_v62, %s12890_s27 }
0x208b   : > { %v15732_v55 = vpop.eup %12674 }
0x208c   : > { %v9159_v62 = vsel %vm16620_vm2, %v15732_v55, 0.0 }
0x2090   : > { %9457 = vrot.lane.b32.xlu2 %v14814_v29, %s12890_s27 }
0x2092   : > { %v9125_v52 = vpop.xlane.xlu2 %9124 }
0x2093   : > { %v9135_v36 = vsub.f32 %v9103_v44, %v9125_v52 }
0x2095   : > { %v9149_v17 = vmul.f32 1.442695, %v9135_v36 }
0x2097   : > { %12676 = vpow2.f32 %v9149_v17 }
0x2098   : > { %9513 = vrot.lane.b32.xlu2 %v14834_v38, %s12890_s27 }
0x209d   : > { %v15738_v29 = vpop.eup %12676 }
0x209e   : > { %v9171_v38 = vsel %vm16620_vm2, %v15738_v29, 0.0 }
0x20a0   : > { %9599 = vrot.lane.b32.xlu2 %v14871_v21, %s12890_s27  ;;  %v9404_v21 = vpop.permute.xlu0 %9403 }
0x20a6   : > { %9160 = vadd.xlane.f32.xlu0 %v9159_v62 }
0x20a8   : > { %9569 = vrot.lane.b32.xlu2 %v14859_v42, %s12890_s27 }
0x20ae   : > { %9172 = vadd.xlane.f32.xlu0 %v9171_v38 }
0x20b6   : > { %v9158_v44 = vpop.xlane.xlu1 %9157 }
0x20c2   : > { %9487 = vrot.lane.b32.xlu0 %v14819_v12, %s12890_s27 }
0x20c3   : > { %v9155_v20 = vpop.xlane.xlu1 %9154 }
0x20c4   : > { %12678 = vrcp.f32 %v9155_v20 }
0x20ca   : > { %v12679_v59 = vpop.eup %12678  ;;  %9459 = vrot.lane.b32.xlu0 %v14809_v4, %s12890_s27 }
0x20cb   : > { %v9185_v33 = vmul.f32 %v12679_v59, %v12669_v22  ;;  %v9167_v42 = vpop.xlane.xlu0 %9166 }
0x20cc   : > { %12680 = vrcp.f32 %v9167_v42 }
0x20cd   : > { %11774 = vmatmul.msk.f32.vlgmr.msra.gmra.mxu3 %vm16620_vm2, %v9185_v33  ;;  %12682 = vrcp.f32 %v9158_v44 }
0x20ce   : > { %11782 = vmatpush.xpose.msk.msra.mxu3 %vm461_vm1, %v9404_v21 }
0x20d2   : > { %v12681_v49 = vpop.eup %12680  ;;  %9515 = vrot.lane.b32.xlu0 %v14829_v5, %s12890_s27 }
0x20d3   : > { %v9189_v18 = vmul.f32 %v12681_v49, %v12671_v30  ;;  %v9116_v12 = vpop.xlane.xlu0 %9115  ;;  %v9170_v1 = vpop.xlane.xlu2 %9169 }
0x20d4   : > { %v9132_v63 = vsub.f32 %v9100_v48, %v9116_v12  ;;  %v12683_v4 = vpop.eup %12682 }
0x20d5   : > { %11778 = vmatmul.msk.f32.vlgmr.msrb.gmra.mxu3 %vm16620_vm2, %v9189_v18  ;;  %v9186_v52 = vmul.f32 %v12683_v4, %v15694_v32 }
0x20d6   : > { %v9143_v11 = vmul.f32 1.442695, %v9132_v63 }
0x20d8   : > { %12684 = vpow2.f32 %v9143_v11 }
0x20d9   : > { %12686 = vrcp.f32 %v9170_v1 }
0x20da   : > { %9543 = vrot.lane.b32.xlu0 %v14839_v46, %s12890_s27 }
0x20db   : > { %v9128_v22 = vpop.xlane.xlu0 %9127  ;;  %v12147_v8 = vpop.permute.xlu2 %12146 }
0x20dc   : > { %v9136_v28 = vsub.f32 %v15709_v35, %v9128_v22  ;;  %v12148_v47 = vunpack.i.l.bf16 %v12147_v8  ;;  %v12142_v15 = vpop.permute.xlu1 %12141  ;;  %v12149_v5 = vunpack.i.h.bf16 %v12147_v8 }
0x20dd   : > { %v12144_v30 = vunpack.i.h.bf16 %v12142_v15  ;;  %v12143_v56 = vunpack.i.l.bf16 %v12142_v15  ;;  %11783 = vmatmul.msk.f32.vlgmr.msra.gmra.mxu3 %vm461_vm1, %v9402_v57 }
0x20de   : > { %v12685_v48 = vpop.eup %12684  ;;  %v9151_v36 = vmul.f32 1.442695, %v9136_v28  ;;  %9266 = vmatpush.msra.mxu1 %v12148_v47 }
0x20df   : > { %9240 = vmatpush.msrb.mxu0 %v12143_v56  ;;  %9292 = vmatpush.msra.mxu2 %v12144_v30  ;;  %v9162_v46 = vsel %vm16620_vm2, %v12685_v48, 0.0  ;;  %v12687_v35 = vpop.eup %12686 }
0x20e0   : > { %12688 = vpow2.f32 %v9151_v36  ;;  %11775 = vmatmul.msk.f32.vlgmr.msrb.gmra.mxu0 %vm16620_vm2, %v9186_v52  ;;  %9163 = vadd.xlane.f32.xlu1 %v9162_v46  ;;  %v9190_v32 = vmul.f32 %v12687_v35, %v15704_v53 }
0x20e1   : > { %9344 = vmatpush.msra.mxu0 %v12149_v5 }
0x20e2   : > { %9597 = vrot.lane.b32.xlu0 %v14879_v25, %s12890_s27 }
0x20e3   : > { %v9432_v17 = vpop.permute.xlu2 %9431 }
0x20e4   : > { %11784 = vmatpush.xpose.msk.msrb.mxu0 %vm461_vm1, %v9432_v17 }
0x20e6   : > { %v12689_v62 = vpop.eup %12688 }
0x20e7   : > { %v9174_v38 = vsel %vm16620_vm2, %v12689_v62, 0.0 }
0x20e8   : > { %11779 = vmatmul.msk.f32.vlgmr.msra.gmra.mxu0 %vm16620_vm2, %v9190_v32  ;;  %9175 = vadd.xlane.f32.xlu1 %v9174_v38 }
0x20ee   : > { %v12152_v57 = vpop.permute.xlu0 %12151 }
0x20ef   : > { %v12154_v44 = vunpack.i.h.bf16 %v12152_v57  ;;  %v12153_v21 = vunpack.i.l.bf16 %v12152_v57 }
0x20f1   : > { %9370 = vmatpush.msrb.mxu1 %v12154_v44  ;;  %9396 = vmatpush.msrb.mxu2 %v12153_v21 }
0x2101   : > { %9429 = vrot.lane.b32.xlu1 %v14804_v24, %s12890_s27  ;;  %v9486_v24 = vpop.permute.xlu2 %9485 }
0x2109   : > { %9541 = vrot.lane.b32.xlu1 %v14844_v34, %s12890_s27  ;;  %v9458_v18 = vpop.permute.xlu2 %9457 }
0x2111   : > { %9571 = vrot.lane.b32.xlu1 %v14851_v60, %s12890_s27 }
0x2119   : > { %v9161_v25 = vpop.xlane.xlu0 %9160 }
0x211a   : > { %12690 = vrcp.f32 %v9161_v25 }
0x2120   : > { %v12691_v53 = vpop.eup %12690 }
0x2121   : > { %v9187_v20 = vmul.f32 %v12691_v53, %v15732_v55  ;;  %v9173_v59 = vpop.xlane.xlu0 %9172  ;;  %v9514_v55 = vpop.permute.xlu2 %9513 }
0x2122   : > { %12692 = vrcp.f32 %v9173_v59 }
0x2123   : > { %11776 = vmatmul.msk.f32.vlgmr.msra.gmra.mxu1 %vm16620_vm2, %v9187_v20 }
0x2128   : > { %v12693_v33 = vpop.eup %12692 }
0x2129   : > { %v9191_v42 = vmul.f32 %v12693_v33, %v15738_v29  ;;  %v9600_v30 = vpop.permute.xlu2 %9599 }
0x212b   : > { %11780 = vmatmul.msk.f32.vlgmr.msrb.gmra.mxu1 %vm16620_vm2, %v9191_v42 }
0x2131   : > { %v9570_v46 = vpop.permute.xlu2 %9569 }
0x2134   : > { %v9488_v49 = vpop.permute.xlu0 %9487 }
0x213c   : > { %v9460_v34 = vpop.permute.xlu0 %9459 }
0x213d   : > { %11786 = vmatpush.xpose.msk.msra.mxu1 %vm461_vm1, %v9460_v34 }
0x2140   : > { %11787 = vmatmul.msk.f32.vlgmr.msra.gmra.mxu1 %vm461_vm1, %v9458_v18 }
0x2144   : > { %v9516_v60 = vpop.permute.xlu0 %9515 }
0x2145   : > { %11790 = vmatpush.xpose.msk.msrb.mxu3 %vm461_vm1, %v9516_v60 }
0x2148   : > { %11791 = vmatmul.msk.f32.vlgmr.msrb.gmra.mxu3 %vm461_vm1, %v9514_v55 }
0x214c   : > { %v9544_v12 = vpop.permute.xlu0 %9543 }
0x214d   : > { %11792 = vmatpush.xpose.msk.msra.mxu0 %vm461_vm1, %v9544_v12 }
0x2150   : > { %v15779_v29 = vpop.f32.mrf.mxu3 }
0x2153   : > { %v9164_v1 = vpop.xlane.xlu1 %9163 }
0x2154   : > { %12694 = vrcp.f32 %v9164_v1 }
0x2158   : > { %v15781_v63 = vpop.f32.mrf.mxu3 }
0x215a   : > { %v12695_v11 = vpop.eup %12694 }
0x215b   : > { %v9188_v4 = vmul.f32 %v12695_v11, %v12685_v48  ;;  %v9176_v22 = vpop.xlane.xlu1 %9175  ;;  %v9598_v48 = vpop.permute.xlu0 %9597 }
0x215c   : > { %12696 = vrcp.f32 %v9176_v22 }
0x215d   : > { %11777 = vmatmul.msk.f32.vlgmr.msra.gmra.mxu2 %vm16620_vm2, %v9188_v4  ;;  %v15794_v32 = vpop.f32.mrf.mxu0 }
0x215e   : > { %11788 = vmatpush.xpose.msk.msra.mxu2 %vm461_vm1, %v9488_v49 }
0x2160   : > { %v9426_v8 = vpop.f32.mrf.mxu3 }
0x2161   : > { %v9625_v28 = vmul.f32 0.5, %v9426_v8 }
0x2162   : > { %v12697_v47 = vpop.eup %12696 }
0x2163   : > { %v9192_v15 = vmul.f32 %v12697_v47, %v12689_v62  ;;  %v9633_v5 = vsel %vm16620_vm2, %v9625_v28, -inf }
0x2164   : > { %9634 = vmax.xlane.f32.xlu0 %v9633_v5  ;;  %v12155_v5 = vpack.i.bf16 %v14874_v41, %v14854_v37 }
0x2165   : > { %11781 = vmatmul.msk.f32.vlgmr.msrb.gmra.mxu2 %vm16620_vm2, %v9192_v15  ;;  %v15804_v25 = vpop.f32.mrf.mxu0 }
0x2166   : > { %11796 = vmatpush.xpose.msk.msrb.mxu2 %vm461_vm1, %v9600_v30 }
0x216d   : > { %11789 = vmatmul.msk.f32.vlgmr.msra.gmra.mxu2 %vm461_vm1, %v9486_v24 }
0x2173   : > { %v9430_v56 = vpop.permute.xlu1 %9429 }
0x2174   : > { %11785 = vmatmul.msk.f32.vlgmr.msrb.gmra.mxu0 %vm461_vm1, %v9430_v56 }
0x2175   : > { %11797 = vmatmul.msk.f32.vlgmr.msrb.gmra.mxu2 %vm461_vm1, %v9598_v48 }
0x217b   : > { %v9542_v52 = vpop.permute.xlu1 %9541 }
0x217c   : > { %11793 = vmatmul.msk.f32.vlgmr.msra.gmra.mxu0 %vm461_vm1, %v9542_v52  ;;  %v12165_v52 = vpack.i.bf16 %v14969_v45, %v14959_v51 }
0x2183   : > { %v9572_v36 = vpop.permute.xlu1 %9571 }
0x2184   : > { %11794 = vmatpush.xpose.msk.msrb.mxu1 %vm461_vm1, %v9572_v36  ;;  %v12160_v36 = vpack.i.bf16 %v14884_v9, %v14863_v27 }
0x2187   : > { %11795 = vmatmul.msk.f32.vlgmr.msrb.gmra.mxu1 %vm461_vm1, %v9570_v46 }
0x21a0   : > { %v15806_v53 = vpop.f32.mrf.mxu1 }
0x21a8   : > { %v15809_v49 = vpop.f32.mrf.mxu1 }
0x21bd   : > { %v9482_v1 = vpop.f32.mrf.mxu1 }
0x21be   : > { %v9627_v22 = vmul.f32 0.5, %v9482_v1 }
0x21cb   : > { %v9538_v18 = vpop.f32.mrf.mxu3 }
0x21cc   : > { %v9629_v60 = vmul.f32 0.5, %v9538_v18 }
0x21ce   : > { %v9645_v11 = vsel %vm16620_vm2, %v9629_v60, -inf }
0x21d7   : > { %v9635_v35 = vpop.xlane.xlu0 %9634 }
0x21d8   : > { %v9657_v17 = vsub.f32 %v9625_v28, %v9635_v35  ;;  %v9639_v28 = vsel %vm16620_vm2, %v9627_v22, -inf }
0x21da   : > { %v9665_v62 = vmul.f32 1.442695, %v9657_v17 }
0x21dc   : > { %12698 = vpow2.f32 %v9665_v62 }
0x21e0   : > { %v15796_v38 = vpop.f32.mrf.mxu2 }
0x21e2   : > { %v15798_v57 = vpop.eup %12698 }
0x21e3   : > { %v9681_v44 = vsel %vm16620_vm2, %v15798_v57, 0.0 }
0x21e4   : > { %9682 = vadd.xlane.f32.xlu0 %v9681_v44 }
0x21e8   : > { %v15802_v21 = vpop.f32.mrf.mxu2 }
0x21f0   : > { %v9510_v20 = vpop.f32.mrf.mxu2 }
0x21f1   : > { %v9628_v59 = vmul.f32 0.5, %v9510_v20  ;;  %v9454_v33 = vpop.f32.mrf.mxu0 }
0x21f2   : > { %v9626_v42 = vmul.f32 0.5, %v9454_v33 }
0x21f3   : > { %v9642_v24 = vsel %vm16620_vm2, %v9628_v59, -inf }
0x21f4   : > { %9643 = vmax.xlane.f32.xlu0 %v9642_v24  ;;  %v9636_v34 = vsel %vm16620_vm2, %v9626_v42, -inf }
0x21f5   : > { %9637 = vmax.xlane.f32.xlu1 %v9636_v34 }
0x21f8   : > { %v9622_v47 = vpop.f32.mrf.mxu2 }
0x21f9   : > { %v9566_v55 = vpop.f32.mrf.mxu0  ;;  %v15818_v56 = vmul.f32 0.5, %v9622_v47 }
0x21fa   : > { %v9630_v12 = vmul.f32 0.5, %v9566_v55 }
0x21fb   : > { %v9654_v48 = vsel %vm16620_vm2, %v15818_v56, -inf }
0x21fc   : > { %v9648_v4 = vsel %vm16620_vm2, %v9630_v12, -inf }
0x21fd   : > { %9646 = vmax.xlane.f32.xlu1 %v9645_v11  ;;  %9649 = vmax.xlane.f32.xlu2 %v9648_v4 }
0x2204   : > { %v9594_v8 = vpop.f32.mrf.mxu1 }
0x2205   : > { %v9631_v15 = vmul.f32 0.5, %v9594_v8  ;;  %9640 = vmax.xlane.f32.xlu2 %v9639_v28 }
0x2207   : > { %v9651_v30 = vsel %vm16620_vm2, %v9631_v15, -inf }
0x2208   : > { %12156 = vrot.lane.b32.xlu0 %v12155_v5, %s12890_s27  ;;  %9652 = vmax.xlane.f32.xlu1 %v9651_v30 }
0x220d   : > { %9655 = vmax.xlane.f32.xlu2 %v9654_v48 }
0x2210   : > { %12166 = vrot.lane.b32.xlu0 %v12165_v52, %s12890_s27 }
0x2225   : > { %12161 = vrot.lane.b32.xlu2 %v12160_v36, %s12890_s27 }
0x2257   : > { %v9683_v37 = vpop.xlane.xlu0 %9682 }
0x2267   : > { %v9644_v46 = vpop.xlane.xlu0 %9643 }
0x2268   : > { %v9638_v41 = vpop.xlane.xlu1 %9637  ;;  %v9660_v62 = vsub.f32 %v9628_v59, %v9644_v46 }
0x2269   : > { %v9658_v35 = vsub.f32 %v9626_v42, %v9638_v41 }
0x226a   : > { %v9671_v44 = vmul.f32 1.442695, %v9660_v62 }
0x226b   : > { %v9667_v17 = vmul.f32 1.442695, %v9658_v35 }
0x226d   : > { %12700 = vpow2.f32 %v9667_v17 }
0x226e   : > { %12702 = vrcp.f32 %v9683_v37 }
0x226f   : > { %12704 = vpow2.f32 %v9671_v44 }
0x2270   : > { %v9650_v20 = vpop.xlane.xlu2 %9649  ;;  %v9647_v33 = vpop.xlane.xlu1 %9646 }
0x2271   : > { %v9661_v51 = vsub.f32 %v9629_v60, %v9647_v33  ;;  %v9662_v28 = vsub.f32 %v9630_v12, %v9650_v20 }
0x2273   : > { %v15829_v24 = vpop.eup %12700  ;;  %v9673_v9 = vmul.f32 1.442695, %v9661_v51 }
0x2274   : > { %v9684_v27 = vsel %vm16620_vm2, %v15829_v24, 0.0  ;;  %v12703_v34 = vpop.eup %12702 }
0x2275   : > { %9685 = vadd.xlane.f32.xlu1 %v9684_v27  ;;  %v15833_v42 = vpop.eup %12704  ;;  %v9713_v8 = vmul.f32 %v12703_v34, %v15798_v57  ;;  %12706 = vpow2.f32 %v9673_v9  ;;  %v12170_v9 = vpack.i.bf16 %v14977_v16, %v14993_v19  ;;  %v16722_v16 = vld [vmem:[#allocation40_spill] sm:$0xff] }
0x2276   : > { %v9690_v47 = vsel %vm16620_vm2, %v15833_v42, 0.0 }
0x2278   : > { %v9641_v45 = vpop.xlane.xlu2 %9640 }
0x2279   : > { %v9659_v18 = vsub.f32 %v9627_v22, %v9641_v45  ;;  %v9675_v22 = vmul.f32 1.442695, %v9662_v28 }
0x227a   : > { %v12157_v59 = vpop.permute.xlu0 %12156 }
0x227b   : > { %v9669_v55 = vmul.f32 1.442695, %v9659_v18  ;;  %v12159_v1 = vunpack.i.h.bf16 %v12157_v59  ;;  %v12158_v11 = vunpack.i.l.bf16 %v12157_v59  ;;  %v9653_v4 = vpop.xlane.xlu1 %9652  ;;  %v15839_v48 = vpop.eup %12706 }
0x227c   : > { %v9663_v60 = vsub.f32 %v9631_v15, %v9653_v4  ;;  %v9693_v41 = vsel %vm16620_vm2, %v15839_v48, 0.0  ;;  %v16725_v4 = vld [vmem:[#allocation43_spill] sm:$0xff] }
0x227d   : > { %12708 = vpow2.f32 %v9669_v55  ;;  %9742 = vmatpush.msra.mxu3 %v12158_v11  ;;  %9768 = vmatpush.msrb.mxu0 %v12159_v1 }
0x227e   : > { %v9677_v5 = vmul.f32 1.442695, %v9663_v60  ;;  %9691 = vadd.xlane.f32.xlu1 %v9690_v47  ;;  %11798 = vmatmul.msk.f32.vlgmr.msra.gmra.mxu3 %vm16620_vm2, %v9713_v8  ;;  %v16726_v60 = vld [vmem:[#allocation13_spill] sm:$0xff] }
0x227f   : > { %v16728_v47 = vld [vmem:[#allocation45_spill] sm:$0xff] }
0x2280   : > { %12710 = vpow2.f32 %v9677_v5  ;;  %v9656_v30 = vpop.xlane.xlu2 %9655  ;;  %v16729_v5 = vld [vmem:[#allocation15_spill] sm:$0xff] }
0x2281   : > { %12712 = vpow2.f32 %v9675_v22  ;;  %v9664_v36 = vsub.f32 %v15818_v56, %v9656_v30  ;;  %v16730_v22 = vld [vmem:[#allocation12_spill] sm:$0xff]  ;;  %v10213_v30 = vld [vmem:[#allocation2 + $0xf8] sm:$0xff] }
0x2282   : > { %v12167_v52 = vpop.permute.xlu0 %12166 }
0x2283   : > { %v15841_v57 = vpop.eup %12708  ;;  %v12169_v12 = vunpack.i.h.bf16 %v12167_v52  ;;  %v12168_v15 = vunpack.i.l.bf16 %v12167_v52  ;;  %v9679_v17 = vmul.f32 1.442695, %v9664_v36  ;;  %v16731_v52 = vld [vmem:[#allocation37_spill] sm:$0xff]  ;;  %v16732_v36 = vld [vmem:[#allocation23_spill] sm:$0xff] }
0x2284   : > { %v9687_v37 = vsel %vm16620_vm2, %v15841_v57, 0.0 }
0x2285   : > { %9846 = vmatpush.msrb.mxu3 %v12168_v15  ;;  %9872 = vmatpush.msra.mxu0 %v12169_v12  ;;  %12714 = vpow2.f32 %v9679_v17  ;;  %v10210_v12 = vld [vmem:[#allocation2 + $0xe0] sm:$0xff] }
0x2286   : > { %v15848_v46 = vpop.eup %12710  ;;  %9694 = vadd.xlane.f32.xlu1 %v9693_v41  ;;  %9688 = vadd.xlane.f32.xlu2 %v9687_v37 }
0x2287   : > { %v9699_v35 = vsel %vm16620_vm2, %v15848_v46, 0.0  ;;  %v12713_v20 = vpop.eup %12712  ;;  %10251 = vmatpush.msra.mxu3 %v10213_v30 }
0x2288   : > { %9700 = vadd.xlane.f32.xlu0 %v9699_v35  ;;  %v12162_v62 = vpop.permute.xlu2 %12161  ;;  %v9696_v33 = vsel %vm16620_vm2, %v12713_v20, 0.0 }
0x2289   : > { %v12164_v44 = vunpack.i.h.bf16 %v12162_v62  ;;  %v12163_v56 = vunpack.i.l.bf16 %v12162_v62 }
0x228b   : > { %9794 = vmatpush.msra.mxu1 %v12163_v56  ;;  %9820 = vmatpush.msra.mxu2 %v12164_v44  ;;  %v15853_v51 = vpop.eup %12714 }
0x228c   : > { %v9702_v27 = vsel %vm16620_vm2, %v15853_v51, 0.0 }
0x228e   : > { %9697 = vadd.xlane.f32.xlu1 %v9696_v33 }
0x2296   : > { %9703 = vadd.xlane.f32.xlu1 %v9702_v27  ;;  %v16733_v27 = vld [vmem:[#allocation38_spill] sm:$0xff] }
0x229e   : > { %12171 = vrot.lane.b32.xlu2 %v12170_v9, %s12890_s27 }
0x22a6   : > { %9969 = vrot.lane.b32.xlu2 %v15274_v40, %s12892_s29 }
0x22ae   : > { %10001 = vrot.lane.b32.xlu2 %v15388_v43, %s12896_s9 }
0x22af   : > { %9937 = vrot.lane.b32.xlu1 %v15127_v26, %s12891_s28 }
0x22b6   : > { %10033 = vrot.lane.b32.xlu2 %v15521_v31, %s12895_s8 }
0x22b7   : > { %10065 = vrot.lane.b32.xlu1 %v15674_v14, %s12893_s30 }
0x22be   : > { %10097 = vrot.lane.b32.xlu2 %v15779_v29, %s12894_s7 }
0x22bf   : > { %9939 = vrot.lane.b32.xlu1 %v15158_v39, %s12891_s28 }
0x22c6   : > { %9971 = vrot.lane.b32.xlu2 %v15295_v61, %s12892_s29 }
0x22c7   : > { %10003 = vrot.lane.b32.xlu1 %v15413_v6, %s12896_s9 }
0x22ce   : > { %10035 = vrot.lane.b32.xlu2 %v15533_v13, %s12895_s8 }
0x22cf   : > { %10067 = vrot.lane.b32.xlu1 %v15670_v54, %s12893_s30 }
0x22d7   : > { %9941 = vrot.lane.b32.xlu1 %v15163_v58, %s12891_s28  ;;  %v16723_v58 = vld [vmem:[#allocation8_spill] sm:$0xff] }
0x22df   : > { %10037 = vrot.lane.b32.xlu1 %v15565_v50, %s12895_s8 }
0x22e7   : > { %10007 = vrot.lane.b32.xlu1 %v16722_v16, %s12896_s9 }
0x22e8   : > { %v9686_v19 = vpop.xlane.xlu1 %9685 }
0x22e9   : > { %12716 = vrcp.f32 %v9686_v19  ;;  %v16734_v19 = vld [vmem:[#allocation44_spill] sm:$0xff] }
0x22ef   : > { %v12717_v26 = vpop.eup %12716  ;;  %10103 = vrot.lane.b32.xlu1 %v15796_v38, %s12894_s7 }
0x22f0   : > { %v9714_v39 = vmul.f32 %v12717_v26, %v15829_v24 }
0x22f1   : > { %v9692_v40 = vpop.xlane.xlu1 %9691 }
0x22f2   : > { %12718 = vrcp.f32 %v9692_v40  ;;  %11799 = vmatmul.msk.f32.vlgmr.msrb.gmra.mxu0 %vm16620_vm2, %v9714_v39  ;;  %v16735_v40 = vld [vmem:[#allocation9_spill] sm:$0xff] }
0x22f7   : > { %9977 = vrot.lane.b32.xlu1 %v16723_v58, %s12892_s29 }
0x22f8   : > { %v12719_v61 = vpop.eup %12718 }
0x22f9   : > { %v9716_v43 = vmul.f32 %v12719_v61, %v15833_v42  ;;  %v9695_v6 = vpop.xlane.xlu1 %9694  ;;  %v9689_v31 = vpop.xlane.xlu2 %9688  ;;  %v16724_v42 = vld [vmem:[#allocation19_spill] sm:$0xff] }
0x22fa   : > { %12720 = vrcp.f32 %v9695_v6  ;;  %v16736_v61 = vld [vmem:[#allocation39_spill] sm:$0xff]  ;;  %v16737_v6 = vld [vmem:[#allocation41_spill] sm:$0xff] }
0x22fb   : > { %12722 = vrcp.f32 %v9689_v31  ;;  %11801 = vmatmul.msk.f32.vlgmr.msra.gmra.mxu2 %vm16620_vm2, %v9716_v43  ;;  %v9701_v13 = vpop.xlane.xlu0 %9700  ;;  %v16738_v31 = vld [vmem:[#allocation34_spill] sm:$0xff] }
0x22fc   : > { %12724 = vrcp.f32 %v9701_v13 }
0x22ff   : > { %10073 = vrot.lane.b32.xlu1 %v15677_v7, %s12893_s30 }
0x2300   : > { %v12721_v50 = vpop.eup %12720 }
0x2301   : > { %v12723_v54 = vpop.eup %12722  ;;  %v9717_v14 = vmul.f32 %v12721_v50, %v15839_v48  ;;  %v9698_v29 = vpop.xlane.xlu1 %9697  ;;  %v10211_v48 = vld [vmem:[#allocation2 + $0xe8] sm:$0xff] }
0x2302   : > { %v12172_v38 = vpop.permute.xlu2 %12171  ;;  %v9715_v24 = vmul.f32 %v12723_v54, %v15841_v57  ;;  %12726 = vrcp.f32 %v9698_v29  ;;  %v9744_v18 = vpop.f32.mrf.mxu3  ;;  %v16740_v54 = vld [vmem:[#allocation14_spill] sm:$0xff] }
0x2303   : > { %v12174_v45 = vunpack.i.h.bf16 %v12172_v38  ;;  %v12173_v34 = vunpack.i.l.bf16 %v12172_v38  ;;  %10129 = vrot.lane.b32.xlu0 %v9744_v18, %s12897_s10  ;;  %11802 = vmatmul.msk.f32.vlgmr.msrb.gmra.mxu3 %vm16620_vm2, %v9717_v14  ;;  %v12725_v7 = vpop.eup %12724 }
0x2304   : > { %11800 = vmatmul.msk.f32.vlgmr.msra.gmra.mxu1 %vm16620_vm2, %v9715_v24  ;;  %v9719_v11 = vmul.f32 %v12725_v7, %v15848_v46  ;;  %v16741_v24 = vld [vmem:[#allocation11_spill] sm:$0xff]  ;;  %v16742_v7 = vld [vmem:[#allocation10_spill] sm:$0xff] }
0x2305   : > { %9924 = vmatpush.msrb.mxu2 %v12174_v45  ;;  %9898 = vmatpush.msrb.mxu1 %v12173_v34 }
0x2307   : > { %9947 = vrot.lane.b32.xlu1 %v16724_v42, %s12891_s28  ;;  %v16743_v42 = vld [vmem:[#allocation22_spill] sm:$0xff] }
0x2308   : > { %v12727_v59 = vpop.eup %12726 }
0x2309   : > { %v9718_v55 = vmul.f32 %v12727_v59, %v12713_v20  ;;  %v9704_v1 = vpop.xlane.xlu1 %9703 }
0x230a   : > { %12728 = vrcp.f32 %v9704_v1  ;;  %v9970_v57 = vpop.permute.xlu2 %9969 }
0x230b   : > { %10099 = vrot.lane.b32.xlu0 %v15794_v32, %s12894_s7  ;;  %11803 = vmatmul.msk.f32.vlgmr.msra.gmra.mxu0 %vm16620_vm2, %v9718_v55  ;;  %v16727_v32 = vld [vmem:[#allocation26_spill] sm:$0xff] }
0x230c   : > { %11804 = vmatmul.msk.f32.vlgmr.msrb.gmra.mxu1 %vm16620_vm2, %v9719_v11 }
0x230f   : > { %10043 = vrot.lane.b32.xlu1 %v16725_v4, %s12895_s8 }
0x2310   : > { %v12729_v8 = vpop.eup %12728 }
0x2311   : > { %v9720_v28 = vmul.f32 %v12729_v8, %v15853_v51 }
0x2312   : > { %v10002_v15 = vpop.permute.xlu2 %10001 }
0x2313   : > { %9973 = vrot.lane.b32.xlu0 %v16726_v60, %s12892_s29  ;;  %11805 = vmatmul.msk.f32.vlgmr.msrb.gmra.mxu2 %vm16620_vm2, %v9720_v28 }
0x231a   : > { %v10034_v41 = vpop.permute.xlu2 %10033 }
0x231b   : > { %10069 = vrot.lane.b32.xlu0 %v15686_v10, %s12893_s30  ;;  %v10212_v10 = vld [vmem:[#allocation2 + $0xf0] sm:$0xff] }
0x231c   : > { %10252 = vmatpush.msra.mxu3 %v10212_v10 }
0x231e   : > { %10253 = vmatpush.msra.mxu3 %v10211_v48  ;;  %v16745_v48 = vld [vmem:[#allocation46_spill] sm:$0xff] }
0x2320   : > { %10254 = vmatpush.msra.mxu3 %v10210_v12 }
0x2322   : > { %v10098_v56 = vpop.permute.xlu2 %10097 }
0x2323   : > { %9943 = vrot.lane.b32.xlu0 %v16727_v32, %s12891_s28 }
0x232a   : > { %v9972_v45 = vpop.permute.xlu2 %9971 }
0x232b   : > { %10039 = vrot.lane.b32.xlu0 %v16728_v47, %s12895_s8 }
0x2332   : > { %v10036_v55 = vpop.permute.xlu2 %10035 }
0x2333   : > { %10009 = vrot.lane.b32.xlu0 %v16729_v5, %s12896_s9  ;;  %v16744_v5 = vld [vmem:[#allocation31_spill] sm:$0xff] }
0x233b   : > { %10105 = vrot.lane.b32.xlu0 %v15781_v63, %s12894_s7  ;;  %v9938_v63 = vpop.permute.xlu1 %9937 }
0x233c   : > { %v10153_v37 = vsel %vm461_vm1, %v16732_v36, %v9938_v63 }
0x2343   : > { %9979 = vrot.lane.b32.xlu0 %v16730_v22, %s12892_s29  ;;  %v10066_v35 = vpop.permute.xlu1 %10065 }
0x234b   : > { %10075 = vrot.lane.b32.xlu0 %v15672_v3, %s12893_s30  ;;  %v10161_v3 = vsel %vm16620_vm2, %v10153_v37, %v9970_v57  ;;  %v9940_v26 = vpop.permute.xlu1 %9939  ;;  %v16746_v37 = vld [vmem:[#allocation27_spill] sm:$0xff] }
0x234c   : > { %v10169_v46 = vsel %vm4895_vm3, %v10161_v3, %v10002_v15  ;;  %v10154_v59 = vsel %vm461_vm1, %v16743_v42, %v9940_v26 }
0x234d   : > { %v10177_v62 = vsel %vm4904_vm4, %v10169_v46, %v10034_v41 }
0x234e   : > { %v10185_v44 = vsel %vm4913_vm5, %v10177_v62, %v10066_v35  ;;  %v16747_v62 = vld [vmem:[#allocation17_spill] sm:$0xff] }
0x234f   : > { %v10193_v33 = vsel %vm4922_vm6, %v10185_v44, %v10098_v56 }
0x2353   : > { %9949 = vrot.lane.b32.xlu0 %v16731_v52, %s12891_s28 }
0x236f   : > { %v9770_v17 = vpop.f32.mrf.mxu0 }
0x2370   : > { %10131 = vrot.lane.b32.xlu2 %v9770_v17, %s12897_s10 }
0x2375   : > { %v10130_v20 = vpop.permute.xlu0 %10129 }
0x2376   : > { %v10201_v51 = vsel %vm4931_vm7, %v10193_v33, %v10130_v20 }
0x2377   : > { %11806 = vmatmul.msk.f32.vlgmr.msra.gmra.mxu3 %vm301_vm0, %v10201_v51 }
0x2378   : > { %10005 = vrot.lane.b32.xlu2 %v16733_v27, %s12896_s9 }
0x237d   : > { %v10100_v43 = vpop.permute.xlu0 %10099 }
0x237e   : > { %v9822_v9 = vpop.f32.mrf.mxu2 }
0x237f   : > { %10135 = vrot.lane.b32.xlu0 %v9822_v9, %s12897_s10 }
0x2380   : > { %10101 = vrot.lane.b32.xlu2 %v15806_v53, %s12894_s7  ;;  %v10004_v53 = vpop.permute.xlu1 %10003 }
0x2381   : > { %v9796_v16 = vpop.f32.mrf.mxu1 }
0x2382   : > { %10133 = vrot.lane.b32.xlu1 %v9796_v16, %s12897_s10 }
0x2385   : > { %v9974_v50 = vpop.permute.xlu0 %9973 }
0x2386   : > { %v9848_v29 = vpop.f32.mrf.mxu3 }
0x2387   : > { %10045 = vrot.lane.b32.xlu0 %v16734_v19, %s12895_s8  ;;  %v16748_v19 = vld [vmem:[#allocation32_spill] sm:$0xff] }
0x2388   : > { %v9874_v39 = vpop.f32.mrf.mxu0  ;;  %9975 = vrot.lane.b32.xlu2 %v16735_v40, %s12892_s29  ;;  %v10068_v13 = vpop.permute.xlu1 %10067  ;;  %v16013_v40 = vld [vmem:[%s16605_s2 + $0x10] sm:$0xff] }
0x2389   : > { %v9900_v58 = vpop.f32.mrf.mxu1 }
0x238a   : > { %10139 = vrot.lane.b32.xlu1 %v9874_v39, %s12897_s10 }
0x238d   : > { %v10070_v38 = vpop.permute.xlu0 %10069 }
0x238f   : > { %10141 = vrot.lane.b32.xlu0 %v9900_v58, %s12897_s10  ;;  %v16016_v58 = vperm.slane %v16013_v40, 3 }
0x2390   : > { %10071 = vrot.lane.b32.xlu2 %v15696_v2, %s12893_s30  ;;  %v16739_v2 = vld [vmem:[#allocation42_spill] sm:$0xff]  ;;  %v9942_v14 = vpop.permute.xlu1 %9941 }
0x2391   : > { %v10155_v41 = vsel %vm461_vm1, %v16746_v37, %v9942_v14 }
0x2392   : > { %10013 = vrot.lane.b32.xlu1 %v16736_v61, %s12896_s9  ;;  %v10163_v46 = vsel %vm16620_vm2, %v10155_v41, %v9974_v50  ;;  %v16752_v41 = vld [vmem:[#allocation21_spill] sm:$0xff] }
0x2396   : > { %v9926_v57 = vpop.f32.mrf.mxu2 }
0x2397   : > { %10015 = vrot.lane.b32.xlu0 %v16737_v6, %s12896_s9 }
0x2398   : > { %9945 = vrot.lane.b32.xlu2 %v16738_v31, %s12891_s28 }
0x239a   : > { %10109 = vrot.lane.b32.xlu1 %v15809_v49, %s12894_s7  ;;  %v10038_v49 = vpop.permute.xlu1 %10037 }
0x239f   : > { %10111 = vrot.lane.b32.xlu0 %v15802_v21, %s12894_s7  ;;  %v9944_v21 = vpop.permute.xlu0 %9943 }
0x23a0   : > { %10041 = vrot.lane.b32.xlu2 %v16739_v2, %s12895_s8  ;;  %v10156_v44 = vsel %vm461_vm1, %v16747_v62, %v9944_v21 }
0x23a2   : > { %9983 = vrot.lane.b32.xlu1 %v16740_v54, %s12892_s29  ;;  %v10008_v34 = vpop.permute.xlu1 %10007 }
0x23a7   : > { %v10040_v18 = vpop.permute.xlu0 %10039 }
0x23a8   : > { %10137 = vrot.lane.b32.xlu2 %v9848_v29, %s12897_s10 }
0x23aa   : > { %10079 = vrot.lane.b32.xlu1 %v15700_v0, %s12893_s30  ;;  %v10162_v0 = vsel %vm16620_vm2, %v10154_v59, %v9972_v45  ;;  %v10104_v1 = vpop.permute.xlu1 %10103 }
0x23ab   : > { %v10170_v11 = vsel %vm4895_vm3, %v10162_v0, %v10004_v53 }
0x23ac   : > { %v10178_v4 = vsel %vm4904_vm4, %v10170_v11, %v10036_v55 }
0x23af   : > { %v10010_v8 = vpop.permute.xlu0 %10009 }
0x23b0   : > { %10011 = vrot.lane.b32.xlu2 %v16741_v24, %s12896_s9 }
0x23b2   : > { %v9978_v47 = vpop.permute.xlu1 %9977 }
0x23b7   : > { %v10106_v30 = vpop.permute.xlu0 %10105 }
0x23b8   : > { %10107 = vrot.lane.b32.xlu2 %v15804_v25, %s12894_s7  ;;  %v10186_v25 = vsel %vm4913_vm5, %v10178_v4, %v10068_v13 }
0x23b9   : > { %v10194_v28 = vsel %vm4922_vm6, %v10186_v25, %v10100_v43 }
0x23ba   : > { %v10074_v10 = vpop.permute.xlu1 %10073 }
0x23bf   : > { %v9980_v52 = vpop.permute.xlu0 %9979 }
0x23c0   : > { %9981 = vrot.lane.b32.xlu2 %v16742_v7, %s12892_s29  ;;  %v16750_v7 = vld [vmem:[#allocation24_spill] sm:$0xff] }
0x23c2   : > { %v9948_v12 = vpop.permute.xlu1 %9947 }
0x23c3   : > { %v10158_v42 = vsel %vm461_vm1, %v16750_v7, %v9948_v12 }
0x23c4   : > { %v10166_v55 = vsel %vm16620_vm2, %v10158_v42, %v9980_v52  ;;  %v16757_v42 = vld [vmem:[#allocation30_spill] sm:$0xff] }
0x23c7   : > { %v10076_v63 = vpop.permute.xlu0 %10075 }
0x23c8   : > { %10077 = vrot.lane.b32.xlu2 %v15690_v23, %s12893_s30 }
0x23ca   : > { %v10132_v60 = vpop.permute.xlu2 %10131  ;;  %v10044_v3 = vpop.permute.xlu1 %10043 }
0x23cb   : > { %v10202_v32 = vsel %vm4931_vm7, %v10194_v28, %v10132_v60 }
0x23cc   : > { %11807 = vmatmul.msk.f32.gmra.mxu3 %vm301_vm0, %v10202_v32 }
0x23cf   : > { %v9950_v56 = vpop.permute.xlu0 %9949 }
0x23d0   : > { %9951 = vrot.lane.b32.xlu2 %v16744_v5, %s12891_s28  ;;  %v16751_v5 = vld [vmem:[#allocation28_spill] sm:$0xff]  ;;  %s285_s28 = scalar_lea.vmem %s16609_s6, %s11347_s24 }
0x23d2   : > { %v10006_v22 = vpop.permute.xlu2 %10005 }
0x23d3   : > { %v10171_v35 = vsel %vm4895_vm3, %v10163_v46, %v10006_v22  ;;  %v10159_v22 = vsel %vm461_vm1, %v16751_v5, %v9950_v56 }
0x23d4   : > { %v10179_v17 = vsel %vm4904_vm4, %v10171_v35, %v10038_v49 }
0x23d5   : > { %v10187_v51 = vsel %vm4913_vm5, %v10179_v17, %v10070_v38  ;;  %v16749_v38 = vld [vmem:[#allocation18_spill] sm:$0xff] }
0x23d8   : > { %10047 = vrot.lane.b32.xlu2 %v16745_v48, %s12895_s8 }
0x23da   : > { %v10102_v23 = vpop.permute.xlu2 %10101 }
0x23db   : > { %v10195_v27 = vsel %vm4922_vm6, %v10187_v51, %v10102_v23 }
0x23e0   : > { %10143 = vrot.lane.b32.xlu2 %v9926_v57, %s12897_s10 }
0x23e2   : > { %v9976_v15 = vpop.permute.xlu2 %9975 }
0x23e3   : > { %v10164_v20 = vsel %vm16620_vm2, %v10156_v44, %v9976_v15 }
0x23e4   : > { %v10172_v16 = vsel %vm4895_vm3, %v10164_v20, %v10008_v34 }
0x23e5   : > { %v10180_v53 = vsel %vm4904_vm4, %v10172_v16, %v10040_v18 }
0x23ea   : > { %v10072_v36 = vpop.permute.xlu2 %10071 }
0x23eb   : > { %v10188_v43 = vsel %vm4913_vm5, %v10180_v53, %v10072_v36 }
0x23ec   : > { %v10196_v54 = vsel %vm4922_vm6, %v10188_v43, %v10104_v1 }
0x23f1   : > { %v10136_v6 = vpop.permute.xlu0 %10135 }
0x23f2   : > { %v9946_v33 = vpop.permute.xlu2 %9945  ;;  %v10204_v29 = vsel %vm4931_vm7, %v10196_v54, %v10136_v6  ;;  %v16754_v6 = vld [vmem:[#allocation33_spill] sm:$0xff]  ;;  %v16755_v54 = vld [vmem:[#allocation20_spill] sm:$0xff] }
0x23f3   : > { %v10157_v26 = vsel %vm461_vm1, %v16748_v19, %v9946_v33 }
0x23f4   : > { %v10134_v9 = vpop.permute.xlu1 %10133  ;;  %v10165_v61 = vsel %vm16620_vm2, %v10157_v26, %v9978_v47  ;;  %v16753_v26 = vld [vmem:[#allocation25_spill] sm:$0xff] }
0x23f5   : > { %v10203_v39 = vsel %vm4931_vm7, %v10195_v27, %v10134_v9  ;;  %v10173_v50 = vsel %vm4895_vm3, %v10165_v61, %v10010_v8 }
0x23f6   : > { %11808 = vmatmul.msk.f32.gmra.mxu3 %vm301_vm0, %v10203_v39 }
0x23f9   : > { %v10046_v32 = vpop.permute.xlu0 %10045 }
0x23fa   : > { %v10256_v31 = vpop.f32.mrf.mxu3  ;;  %v10042_v13 = vpop.permute.xlu2 %10041 }
0x23fb   : > { %v10257_v2 = vadd.f32 %v10256_v31, %v16016_v58  ;;  %v10181_v14 = vsel %vm4904_vm4, %v10173_v50, %v10042_v13 }
0x23fc   : > { %v10189_v24 = vsel %vm4913_vm5, %v10181_v14, %v10074_v10  ;;  %v10140_v1 = vpop.permute.xlu1 %10139 }
0x23fd   : > { %v16027_v49 = vadd.f32 %v10257_v2, %v16749_v38  ;;  %v10197_v45 = vsel %vm4922_vm6, %v10189_v24, %v10106_v30  ;;  %v16756_v38 = vld [vmem:[#allocation36_spill] sm:$0xff] }
0x23fe   : > { %11809 = vmatmul.msk.f32.gmra.mxu3 %vm301_vm0, %v10204_v29 }
0x23ff   : > { %v10288_v21 = vsel %vm301_vm0, %v16027_v49, 0.0 }
0x2400   : > { %10289 = vadd.xlane.f32.xlu1 %v10288_v21 }
0x2401   : > { %v10142_v12 = vpop.permute.xlu0 %10141 }
0x2402   : > { %v10138_v34 = vpop.permute.xlu2 %10137 }
0x2403   : > { %v10205_v18 = vsel %vm4931_vm7, %v10197_v45, %v10138_v34 }
0x2404   : > { %v10014_v60 = vpop.permute.xlu1 %10013 }
0x2406   : > { %11810 = vmatmul.msk.f32.gmra.mxu3 %vm301_vm0, %v10205_v18 }
0x2409   : > { %v10016_v46 = vpop.permute.xlu0 %10015 }
0x240a   : > { %v10012_v59 = vpop.permute.xlu2 %10011 }
0x240b   : > { %v10174_v0 = vsel %vm4895_vm3, %v10166_v55, %v10012_v59 }
0x240c   : > { %v10182_v11 = vsel %vm4904_vm4, %v10174_v0, %v10044_v3  ;;  %v10110_v48 = vpop.permute.xlu1 %10109 }
0x240d   : > { %v10190_v4 = vsel %vm4913_vm5, %v10182_v11, %v10076_v63  ;;  %v16758_v11 = vld [vmem:[#allocation29_spill] sm:$0xff] }
0x2411   : > { %v10112_v33 = vpop.permute.xlu0 %10111 }
0x2412   : > { %v10108_v25 = vpop.permute.xlu2 %10107 }
0x2413   : > { %v10198_v8 = vsel %vm4922_vm6, %v10190_v4, %v10108_v25 }
0x2414   : > { %v10206_v28 = vsel %vm4931_vm7, %v10198_v8, %v10140_v1  ;;  %v9984_v37 = vpop.permute.xlu1 %9983 }
0x2415   : > { %11811 = vmatmul.msk.f32.gmra.mxu3 %vm301_vm0, %v10206_v28 }
0x241a   : > { %v9982_v47 = vpop.permute.xlu2 %9981 }
0x241b   : > { %v10167_v30 = vsel %vm16620_vm2, %v10159_v22, %v9982_v47 }
0x241c   : > { %v10175_v10 = vsel %vm4895_vm3, %v10167_v30, %v10014_v60  ;;  %v10080_v56 = vpop.permute.xlu1 %10079  ;;  %v16759_v60 = vld [vmem:[#allocation16_spill] sm:$0xff]  ;;  %v16760_v30 = vld [vmem:[#allocation35_spill] sm:$0xff] }
0x241d   : > { %v10183_v52 = vsel %vm4904_vm4, %v10175_v10, %v10046_v32 }
0x2422   : > { %v10078_v23 = vpop.permute.xlu2 %10077 }
0x2423   : > { %v10191_v57 = vsel %vm4913_vm5, %v10183_v52, %v10078_v23 }
0x2424   : > { %v10199_v15 = vsel %vm4922_vm6, %v10191_v57, %v10110_v48 }
0x2425   : > { %v10207_v63 = vsel %vm4931_vm7, %v10199_v15, %v10142_v12 }
0x2426   : > { %11812 = vmatmul.msk.f32.gmra.mxu3 %vm301_vm0, %v10207_v63 }
0x242a   : > { %v9952_v36 = vpop.permute.xlu2 %9951 }
0x242b   : > { %v10160_v3 = vsel %vm461_vm1, %v16752_v41, %v9952_v36  ;;  %v11817_v41 = vld [vmem:[%s16606_s3 + $0x38] sm:$0xff] }
0x242c   : > { %v10168_v35 = vsel %vm16620_vm2, %v10160_v3, %v9984_v37  ;;  %10525 = vmatpush.msrb.mxu0 %v11817_v41 }
0x242d   : > { %v10176_v62 = vsel %vm4895_vm3, %v10168_v35, %v10016_v46  ;;  %v11816_v46 = vld [vmem:[%s16606_s3 + $0x30] sm:$0xff] }
0x242e   : > { %10526 = vmatpush.msrb.mxu0 %v11816_v46 }
0x2432   : > { %v10048_v17 = vpop.permute.xlu2 %10047 }
0x2433   : > { %v10184_v44 = vsel %vm4904_vm4, %v10176_v62, %v10048_v17  ;;  %v11815_v62 = vld [vmem:[%s16606_s3 + $0x28] sm:$0xff] }
0x2434   : > { %v10192_v20 = vsel %vm4913_vm5, %v10184_v44, %v10080_v56  ;;  %10527 = vmatpush.msrb.mxu0 %v11815_v62  ;;  %v11814_v56 = vld [vmem:[%s16606_s3 + $0x20] sm:$0xff] }
0x2435   : > { %v10200_v27 = vsel %vm4922_vm6, %v10192_v20, %v10112_v33 }
0x2436   : > { %10528 = vmatpush.msrb.mxu0 %v11814_v56 }
0x243a   : > { %v10144_v51 = vpop.permute.xlu2 %10143 }
0x243b   : > { %v10208_v9 = vsel %vm4931_vm7, %v10200_v27, %v10144_v51 }
0x243c   : > { %11813 = vmatmul.msk.f32.gmra.mxu3 %vm301_vm0, %v10208_v9 }
0x244f   : > { %v10259_v16 = vpop.f32.mrf.mxu3 }
0x2450   : > { %v10260_v19 = vadd.f32 %v10259_v16, %v16016_v58 }
0x2452   : > { %v10281_v39 = vadd.f32 %v10260_v19, %v16753_v26 }
0x2454   : > { %v10291_v53 = vsel %vm301_vm0, %v10281_v39, 0.0 }
0x2455   : > { %10292 = vadd.xlane.f32.xlu0 %v10291_v53 }
0x2473   : > { %v10290_v2 = vpop.xlane.xlu1 %10289 }
0x2474   : > { %v10312_v14 = vmul.f32 %v10290_v2, %v16755_v54 }
0x2476   : > { %v16073_v21 = vsub.f32 %v16027_v49, %v10312_v14 }
0x2478   : > { %v10328_v7 = vmul.f32 %v16073_v21, %v16073_v21 }
0x2479   : > { %v10262_v61 = vpop.f32.mrf.mxu3 }
0x247a   : > { %v10263_v43 = vadd.f32 %v10262_v61, %v16016_v58  ;;  %v10336_v55 = vsel %vm301_vm0, %v10328_v7, 0.0 }
0x247c   : > { %v10282_v31 = vadd.f32 %v10263_v43, %v16754_v6 }
0x247e   : > { %v10294_v13 = vsel %vm301_vm0, %v10282_v31, 0.0 }
0x247f   : > { %10295 = vadd.xlane.f32.xlu2 %v10294_v13 }
0x2481   : > { %v10265_v50 = vpop.f32.mrf.mxu3 }
0x2482   : > { %v10266_v29 = vadd.f32 %v10265_v50, %v16016_v58 }
0x2484   : > { %v10283_v24 = vadd.f32 %v10266_v29, %v16756_v38 }
0x2486   : > { %v10297_v45 = vsel %vm301_vm0, %v10283_v24, 0.0 }
0x2487   : > { %10298 = vadd.xlane.f32.xlu1 %v10297_v45 }
0x2489   : > { %v10268_v34 = vpop.f32.mrf.mxu3 }
0x248a   : > { %v10269_v18 = vadd.f32 %v10268_v34, %v16016_v58 }
0x248c   : > { %v10284_v59 = vadd.f32 %v10269_v18, %v16757_v42  ;;  %v16144_v18 = vperm.slane %v16013_v40, 5 }
0x248e   : > { %v10300_v0 = vsel %vm301_vm0, %v10284_v59, 0.0 }
0x248f   : > { %10337 = vadd.xlane.f32.xlu1 %v10336_v55  ;;  %10301 = vadd.xlane.f32.xlu0 %v10300_v0 }
0x2498   : > { %v10271_v1 = vpop.f32.mrf.mxu3 }
0x2499   : > { %v10272_v49 = vadd.f32 %v10271_v1, %v16016_v58 }
0x249b   : > { %v10285_v4 = vadd.f32 %v10272_v49, %v16758_v11 }
0x249d   : > { %v10303_v25 = vsel %vm301_vm0, %v10285_v4, 0.0 }
0x249e   : > { %10304 = vadd.xlane.f32.xlu2 %v10303_v25 }
0x24a9   : > { %v10274_v8 = vpop.f32.mrf.mxu3 }
0x24aa   : > { %v10275_v28 = vadd.f32 %v10274_v8, %v16016_v58 }
0x24ac   : > { %v16087_v32 = vadd.f32 %v10275_v28, %v16759_v60 }
0x24ae   : > { %v10306_v47 = vsel %vm301_vm0, %v16087_v32, 0.0 }
0x24af   : > { %10307 = vadd.xlane.f32.xlu0 %v10306_v47 }
0x24bf   : > { %v10277_v5 = vpop.f32.mrf.mxu3 }
0x24c0   : > { %v10278_v22 = vadd.f32 %v10277_v5, %v16016_v58 }
0x24c2   : > { %v16093_v10 = vadd.f32 %v10278_v22, %v16760_v30 }
0x24c4   : > { %v10309_v48 = vsel %vm301_vm0, %v16093_v10, 0.0 }
0x24c5   : > { %10310 = vadd.xlane.f32.xlu1 %v10309_v48 }
0x24c8   : > { %v10293_v23 = vpop.xlane.xlu0 %10292 }
0x24c9   : > { %v10313_v52 = vmul.f32 %v10293_v23, %v16755_v54 }
0x24cb   : > { %v16098_v57 = vsub.f32 %v10281_v39, %v10313_v52 }
0x24cd   : > { %v10329_v12 = vmul.f32 %v16098_v57, %v16098_v57 }
0x24cf   : > { %v10339_v15 = vsel %vm301_vm0, %v10329_v12, 0.0 }
0x24d0   : > { %10340 = vadd.xlane.f32.xlu2 %v10339_v15 }
0x24f2   : > { %v10296_v63 = vpop.xlane.xlu2 %10295 }
0x24f3   : > { %v10314_v58 = vmul.f32 %v10296_v63, %v16755_v54 }
0x24f5   : > { %v16104_v36 = vsub.f32 %v10282_v31, %v10314_v58 }
0x24f7   : > { %v10330_v37 = vmul.f32 %v16104_v36, %v16104_v36 }
0x24f9   : > { %v10342_v3 = vsel %vm301_vm0, %v10330_v37, 0.0 }
0x24fa   : > { %v10299_v35 = vpop.xlane.xlu1 %10298  ;;  %10343 = vadd.xlane.f32.xlu0 %v10342_v3 }
0x24fb   : > { %v10315_v17 = vmul.f32 %v10299_v35, %v16755_v54 }
0x24fd   : > { %v16119_v44 = vsub.f32 %v10283_v24, %v10315_v17  ;;  %v16140_v24 = vperm.slane %v16013_v40, 4 }
0x24ff   : > { %v10331_v20 = vmul.f32 %v16119_v44, %v16119_v44 }
0x2501   : > { %v10345_v33 = vsel %vm301_vm0, %v10331_v20, 0.0 }
0x2502   : > { %v10338_v51 = vpop.xlane.xlu1 %10337  ;;  %10346 = vadd.xlane.f32.xlu2 %v10345_v33  ;;  %v10302_v27 = vpop.xlane.xlu0 %10301  ;;  %v10564_v33 = vld [vmem:[#allocation4 + $0x18] sm:$0xff] }
0x2503   : > { %v10360_v9 = vmul.f32 %v10338_v51, %v16755_v54  ;;  %v10316_v16 = vmul.f32 %v10302_v27, %v16755_v54  ;;  %10604 = vmatpush.msra.mxu1 %v10564_v33 }
0x2505   : > { %v10368_v19 = vadd.f32 1e-05, %v10360_v9  ;;  %v16129_v26 = vsub.f32 %v10284_v59, %v10316_v16  ;;  %v10563_v9 = vld [vmem:[#allocation4 + $0x10] sm:$0xff] }
0x2506   : > { %10605 = vmatpush.msra.mxu1 %v10563_v9 }
0x2507   : > { %12730 = vrsqrt.f32 %v10368_v19  ;;  %v10332_v39 = vmul.f32 %v16129_v26, %v16129_v26  ;;  %vm10382_vm3 = vweird.f32 %v10368_v19 }
0x2509   : > { %v10348_v53 = vsel %vm301_vm0, %v10332_v39, 0.0 }
0x250a   : > { %10349 = vadd.xlane.f32.xlu1 %v10348_v53 }
0x250d   : > { %v12731_v61 = vpop.eup %12730 }
0x250e   : > { %v10377_v43 = vmul.f32 %v12731_v61, %v10368_v19  ;;  %vm10383_vm1 = vweird.f32 %v12731_v61 }
0x250f   : > { %vm10384_vm5 = vmor %vm10382_vm3, %vm10383_vm1 }
0x2510   : > { %v10378_v6 = vmul.f32 %v12731_v61, %v10377_v43 }
0x2511   : > { %v10305_v31 = vpop.xlane.xlu2 %10304 }
0x2512   : > { %v10379_v13 = vmul.f32 0.5, %v10378_v6  ;;  %v10317_v2 = vmul.f32 %v10305_v31, %v16755_v54 }
0x2514   : > { %v10380_v50 = vsub.f32 1.5, %v10379_v13  ;;  %v16135_v14 = vsub.f32 %v10285_v4, %v10317_v2 }
0x2516   : > { %v10381_v29 = vmul.f32 %v12731_v61, %v10380_v50  ;;  %v10333_v38 = vmul.f32 %v16135_v14, %v16135_v14 }
0x2518   : > { %v10385_v45 = vsel %vm10384_vm5, %v12731_v61, %v10381_v29  ;;  %v10351_v34 = vsel %vm301_vm0, %v10333_v38, 0.0 }
0x2519   : > { %v10456_v7 = vmul.f32 %v10385_v45, %v16073_v21  ;;  %10352 = vadd.xlane.f32.xlu0 %v10351_v34 }
0x251b   : > { %v10465_v42 = vmul.f32 %v16140_v24, %v10456_v7 }
0x251d   : > { %v16149_v59 = vadd.f32 %v16144_v18, %v10465_v42 }
0x251f   : > { %11818 = vmatmul.msk.f32.vlgmr.msrb.gmra.mxu0 %vm301_vm0, %v16149_v59 }
0x2522   : > { %v10308_v55 = vpop.xlane.xlu0 %10307 }
0x2523   : > { %v10318_v0 = vmul.f32 %v10308_v55, %v16755_v54 }
0x2525   : > { %v16155_v1 = vsub.f32 %v16087_v32, %v10318_v0 }
0x2527   : > { %v10334_v49 = vmul.f32 %v16155_v1, %v16155_v1 }
0x2529   : > { %v10354_v21 = vsel %vm301_vm0, %v10334_v49, 0.0 }
0x252a   : > { %10355 = vadd.xlane.f32.xlu2 %v10354_v21 }
0x2538   : > { %v10311_v11 = vpop.xlane.xlu1 %10310 }
0x2539   : > { %v10319_v4 = vmul.f32 %v10311_v11, %v16755_v54 }
0x253b   : > { %v16162_v25 = vsub.f32 %v16093_v10, %v10319_v4 }
0x253d   : > { %v10335_v8 = vmul.f32 %v16162_v25, %v16162_v25 }
0x253f   : > { %v10357_v28 = vsel %vm301_vm0, %v10335_v8, 0.0 }
0x2540   : > { %10358 = vadd.xlane.f32.xlu1 %v10357_v28 }
0x2543   : > { %v10341_v60 = vpop.xlane.xlu2 %10340 }
0x2544   : > { %v10361_v32 = vmul.f32 %v10341_v60, %v16755_v54 }
0x2546   : > { %v10369_v47 = vadd.f32 1e-05, %v10361_v32 }
0x2548   : > { %12732 = vrsqrt.f32 %v10369_v47  ;;  %vm10392_vm7 = vweird.f32 %v10369_v47 }
0x254e   : > { %v12733_v5 = vpop.eup %12732 }
0x254f   : > { %v10387_v22 = vmul.f32 %v12733_v5, %v10369_v47  ;;  %vm10393_vm6 = vweird.f32 %v12733_v5 }
0x2550   : > { %vm10394_vm9 = vmor %vm10392_vm7, %vm10393_vm6 }
0x2551   : > { %v10388_v30 = vmul.f32 %v12733_v5, %v10387_v22  ;;  %v16201_v22 = vld [vmem:[%s16608_s5 + $0x1] ss:$0 sm:$0xff] }
0x2553   : > { %v10389_v48 = vmul.f32 0.5, %v10388_v30 }
0x2555   : > { %v10390_v23 = vsub.f32 1.5, %v10389_v48 }
0x2557   : > { %v10391_v52 = vmul.f32 %v12733_v5, %v10390_v23 }
0x2559   : > { %v10395_v10 = vsel %vm10394_vm9, %v12733_v5, %v10391_v52 }
0x255a   : > { %v10457_v12 = vmul.f32 %v10395_v10, %v16098_v57 }
0x255c   : > { %v10466_v15 = vmul.f32 %v16140_v24, %v10457_v12 }
0x255e   : > { %v16171_v63 = vadd.f32 %v16144_v18, %v10466_v15 }
0x2560   : > { %11819 = vmatmul.msk.f32.gmra.mxu0 %vm301_vm0, %v16171_v63 }
0x256d   : > { %v10344_v58 = vpop.xlane.xlu0 %10343 }
0x256e   : > { %v10362_v37 = vmul.f32 %v10344_v58, %v16755_v54 }
0x2570   : > { %v10370_v41 = vadd.f32 1e-05, %v10362_v37 }
0x2572   : > { %12734 = vrsqrt.f32 %v10370_v41  ;;  %vm10402_vm11 = vweird.f32 %v10370_v41 }
0x2575   : > { %v10347_v3 = vpop.xlane.xlu2 %10346 }
0x2576   : > { %v10363_v46 = vmul.f32 %v10347_v3, %v16755_v54 }
0x2578   : > { %v12735_v35 = vpop.eup %12734  ;;  %v10371_v17 = vadd.f32 1e-05, %v10363_v46 }
0x2579   : > { %v10397_v62 = vmul.f32 %v12735_v35, %v10370_v41  ;;  %vm10403_vm10 = vweird.f32 %v12735_v35 }
0x257a   : > { %12736 = vrsqrt.f32 %v10371_v17  ;;  %vm10404_vm12 = vmor %vm10402_vm11, %vm10403_vm10  ;;  %vm10412_vm14 = vweird.f32 %v10371_v17 }
0x257b   : > { %v10398_v57 = vmul.f32 %v12735_v35, %v10397_v62 }
0x257d   : > { %v10399_v56 = vmul.f32 0.5, %v10398_v57  ;;  %v10350_v20 = vpop.xlane.xlu1 %10349 }
0x257e   : > { %v10364_v51 = vmul.f32 %v10350_v20, %v16755_v54 }
0x257f   : > { %v10400_v27 = vsub.f32 1.5, %v10399_v56 }
0x2580   : > { %v12737_v16 = vpop.eup %12736  ;;  %v10372_v19 = vadd.f32 1e-05, %v10364_v51 }
0x2581   : > { %v10401_v39 = vmul.f32 %v12735_v35, %v10400_v27  ;;  %v10407_v53 = vmul.f32 %v12737_v16, %v10371_v17  ;;  %vm10413_vm13 = vweird.f32 %v12737_v16 }
0x2582   : > { %12738 = vrsqrt.f32 %v10372_v19  ;;  %vm10414_vm15 = vmor %vm10412_vm14, %vm10413_vm13  ;;  %vm10422_vm1 = vweird.f32 %v10372_v19 }
0x2583   : > { %v10405_v61 = vsel %vm10404_vm12, %v12735_v35, %v10401_v39  ;;  %v10408_v43 = vmul.f32 %v12737_v16, %v10407_v53 }
0x2584   : > { %v10458_v6 = vmul.f32 %v10405_v61, %v16104_v36 }
0x2585   : > { %v10409_v31 = vmul.f32 0.5, %v10408_v43 }
0x2586   : > { %v10467_v13 = vmul.f32 %v16140_v24, %v10458_v6 }
0x2587   : > { %v10410_v2 = vsub.f32 1.5, %v10409_v31 }
0x2588   : > { %v12739_v50 = vpop.eup %12738  ;;  %v16181_v29 = vadd.f32 %v16144_v18, %v10467_v13 }
0x2589   : > { %v10411_v38 = vmul.f32 %v12737_v16, %v10410_v2  ;;  %v10417_v45 = vmul.f32 %v12739_v50, %v10372_v19  ;;  %vm10423_vm8 = vweird.f32 %v12739_v50 }
0x258a   : > { %11820 = vmatmul.msk.f32.gmra.mxu0 %vm301_vm0, %v16181_v29  ;;  %vm10424_vm3 = vmor %vm10422_vm1, %vm10423_vm8 }
0x258b   : > { %v10415_v34 = vsel %vm10414_vm15, %v12737_v16, %v10411_v38  ;;  %v10418_v7 = vmul.f32 %v12739_v50, %v10417_v45 }
0x258c   : > { %v10459_v36 = vmul.f32 %v10415_v34, %v16119_v44  ;;  %v10353_v42 = vpop.xlane.xlu0 %10352 }
0x258d   : > { %v10419_v55 = vmul.f32 0.5, %v10418_v7  ;;  %v10365_v0 = vmul.f32 %v10353_v42, %v16755_v54 }
0x258e   : > { %v10468_v49 = vmul.f32 %v16140_v24, %v10459_v36 }
0x258f   : > { %v10420_v21 = vsub.f32 1.5, %v10419_v55  ;;  %v10373_v11 = vadd.f32 1e-05, %v10365_v0 }
0x2590   : > { %v16189_v4 = vadd.f32 %v16144_v18, %v10468_v49 }
0x2591   : > { %v10421_v8 = vmul.f32 %v12739_v50, %v10420_v21  ;;  %12740 = vrsqrt.f32 %v10373_v11  ;;  %vm10432_vm6 = vweird.f32 %v10373_v11 }
0x2592   : > { %11821 = vmatmul.msk.f32.gmra.mxu0 %vm301_vm0, %v16189_v4 }
0x2593   : > { %v10425_v44 = vsel %vm10424_vm3, %v12739_v50, %v10421_v8 }
0x2594   : > { %v10460_v28 = vmul.f32 %v10425_v44, %v16129_v26 }
0x2596   : > { %v10469_v60 = vmul.f32 %v16140_v24, %v10460_v28 }
0x2597   : > { %v12741_v32 = vpop.eup %12740 }
0x2598   : > { %v10427_v47 = vmul.f32 %v12741_v32, %v10373_v11  ;;  %v16196_v5 = vadd.f32 %v16144_v18, %v10469_v60  ;;  %vm10433_vm5 = vweird.f32 %v12741_v32  ;;  %v10565_v11 = vperm.slane %v16013_v40, 6 }
0x2599   : > { %vm10434_vm7 = vmor %vm10432_vm6, %vm10433_vm5 }
0x259a   : > { %v10428_v30 = vmul.f32 %v12741_v32, %v10427_v47  ;;  %11822 = vmatmul.msk.f32.gmra.mxu0 %vm301_vm0, %v16196_v5 }
0x259c   : > { %v10429_v48 = vmul.f32 0.5, %v10428_v30  ;;  %v10530_v23 = vpop.f32.mrf.mxu0 }
0x259d   : > { %v10531_v26 = vadd.f32 %v16201_v22, %v10530_v23  ;;  %v10356_v52 = vpop.xlane.xlu2 %10355 }
0x259e   : > { %v10430_v10 = vsub.f32 1.5, %v10429_v48  ;;  %v10366_v12 = vmul.f32 %v10356_v52, %v16755_v54 }
0x259f   : > { %v10554_v15 = vmax.f32 %v10531_v26, 0.0 }
0x25a0   : > { %v10431_v58 = vmul.f32 %v12741_v32, %v10430_v10  ;;  %v10374_v37 = vadd.f32 1e-05, %v10366_v12 }
0x25a1   : > { %11826 = vmatmul.msk.f32.vlgmr.msra.gmra.mxu1 %vm4904_vm4, %v10554_v15 }
0x25a2   : > { %v10435_v41 = vsel %vm10434_vm7, %v12741_v32, %v10431_v58  ;;  %12742 = vrsqrt.f32 %v10374_v37  ;;  %vm10442_vm10 = vweird.f32 %v10374_v37 }
0x25a3   : > { %v10461_v3 = vmul.f32 %v10435_v41, %v16135_v14 }
0x25a5   : > { %v10470_v46 = vmul.f32 %v16140_v24, %v10461_v3 }
0x25a7   : > { %v16211_v35 = vadd.f32 %v16144_v18, %v10470_v46 }
0x25a8   : > { %v12743_v17 = vpop.eup %12742 }
0x25a9   : > { %v10437_v62 = vmul.f32 %v12743_v17, %v10374_v37  ;;  %11823 = vmatmul.msk.f32.gmra.mxu0 %vm301_vm0, %v16211_v35  ;;  %vm10443_vm9 = vweird.f32 %v12743_v17 }
0x25aa   : > { %vm10444_vm11 = vmor %vm10442_vm10, %vm10443_vm9 }
0x25ab   : > { %v10438_v57 = vmul.f32 %v12743_v17, %v10437_v62 }
0x25ad   : > { %v10439_v56 = vmul.f32 0.5, %v10438_v57 }
0x25af   : > { %v10440_v20 = vsub.f32 1.5, %v10439_v56 }
0x25b1   : > { %v10441_v33 = vmul.f32 %v12743_v17, %v10440_v20 }
0x25b3   : > { %v10445_v51 = vsel %vm10444_vm11, %v12743_v17, %v10441_v33  ;;  %v10359_v27 = vpop.xlane.xlu1 %10358 }
0x25b4   : > { %v10462_v14 = vmul.f32 %v10445_v51, %v16155_v1  ;;  %v10367_v9 = vmul.f32 %v10359_v27, %v16755_v54 }
0x25b6   : > { %v10375_v16 = vadd.f32 1e-05, %v10367_v9  ;;  %v10471_v19 = vmul.f32 %v16140_v24, %v10462_v14 }
0x25b8   : > { %12744 = vrsqrt.f32 %v10375_v16  ;;  %v16219_v39 = vadd.f32 %v16144_v18, %v10471_v19  ;;  %vm10452_vm13 = vweird.f32 %v10375_v16 }
0x25ba   : > { %11824 = vmatmul.msk.f32.gmra.mxu0 %vm301_vm0, %v16219_v39 }
0x25be   : > { %v12745_v53 = vpop.eup %12744 }
0x25bf   : > { %v10447_v61 = vmul.f32 %v12745_v53, %v10375_v16  ;;  %vm10453_vm12 = vweird.f32 %v12745_v53 }
0x25c0   : > { %vm10454_vm14 = vmor %vm10452_vm13, %vm10453_vm12 }
0x25c1   : > { %v10448_v43 = vmul.f32 %v12745_v53, %v10447_v61 }
0x25c3   : > { %v10449_v6 = vmul.f32 0.5, %v10448_v43 }
0x25c5   : > { %v10450_v31 = vsub.f32 1.5, %v10449_v6 }
0x25c7   : > { %v10451_v13 = vmul.f32 %v12745_v53, %v10450_v31 }
0x25c9   : > { %v10455_v1 = vsel %vm10454_vm14, %v12745_v53, %v10451_v13 }
0x25ca   : > { %v10463_v2 = vmul.f32 %v10455_v1, %v16162_v25 }
0x25cc   : > { %v10472_v50 = vmul.f32 %v16140_v24, %v10463_v2 }
0x25ce   : > { %v16226_v38 = vadd.f32 %v16144_v18, %v10472_v50 }
0x25d0   : > { %11825 = vmatmul.msk.f32.gmra.mxu0 %vm301_vm0, %v16226_v38 }
0x25dd   : > { %v10533_v45 = vpop.f32.mrf.mxu0 }
0x25de   : > { %v10534_v34 = vadd.f32 %v16201_v22, %v10533_v45 }
0x25e0   : > { %v10555_v7 = vmax.f32 %v10534_v34, 0.0 }
0x25e2   : > { %11827 = vmatmul.msk.f32.gmra.mxu1 %vm4904_vm4, %v10555_v7 }
0x2607   : > { %v10536_v36 = vpop.f32.mrf.mxu0 }
0x2608   : > { %v10537_v42 = vadd.f32 %v16201_v22, %v10536_v36 }
0x260a   : > { %v10556_v55 = vmax.f32 %v10537_v42, 0.0 }
0x260c   : > { %11828 = vmatmul.msk.f32.gmra.mxu1 %vm4904_vm4, %v10556_v55 }
0x260f   : > { %v10539_v25 = vpop.f32.mrf.mxu0 }
0x2610   : > { %v10540_v24 = vadd.f32 %v16201_v22, %v10539_v25  ;;  %v11837_v25 = vld [vmem:[%s16606_s3 + $0x58] sm:$0xff] }
0x2611   : > { %10876 = vmatpush.msra.mxu2 %v11837_v25 }
0x2612   : > { %v10557_v18 = vmax.f32 %v10540_v24, 0.0 }
0x2614   : > { %11829 = vmatmul.msk.f32.gmra.mxu1 %vm4904_vm4, %v10557_v18  ;;  %v11836_v18 = vld [vmem:[%s16606_s3 + $0x50] sm:$0xff] }
0x2615   : > { %10877 = vmatpush.msra.mxu2 %v11836_v18 }
0x2617   : > { %v10542_v0 = vpop.f32.mrf.mxu0 }
0x2618   : > { %v10543_v49 = vadd.f32 %v16201_v22, %v10542_v0 }
0x261a   : > { %v10558_v21 = vmax.f32 %v10543_v49, 0.0 }
0x261c   : > { %11830 = vmatmul.msk.f32.gmra.mxu1 %vm4904_vm4, %v10558_v21  ;;  %v11835_v21 = vld [vmem:[%s16606_s3 + $0x48] sm:$0xff] }
0x261d   : > { %10878 = vmatpush.msra.mxu2 %v11835_v21 }
0x261e   : > { %v10607_v8 = vpop.f32.mrf.mxu1 }
0x261f   : > { %v10608_v44 = vadd.f32 %v10607_v8, %v10565_v11  ;;  %v11834_v8 = vld [vmem:[%s16606_s3 + $0x40] sm:$0xff] }
0x2620   : > { %10879 = vmatpush.msra.mxu2 %v11834_v8 }
0x2621   : > { %v10631_v28 = vadd.f32 %v10608_v44, %v16149_v59 }
0x2623   : > { %v10639_v60 = vsel %vm301_vm0, %v10631_v28, 0.0 }
0x2624   : > { %10640 = vadd.xlane.f32.xlu0 %v10639_v60 }
0x2626   : > { %v10545_v32 = vpop.f32.mrf.mxu0 }
0x2627   : > { %v10546_v47 = vadd.f32 %v16201_v22, %v10545_v32 }
0x2629   : > { %v10559_v30 = vmax.f32 %v10546_v47, 0.0 }
0x262b   : > { %11831 = vmatmul.msk.f32.gmra.mxu1 %vm4904_vm4, %v10559_v30 }
0x2637   : > { %v10548_v48 = vpop.f32.mrf.mxu0 }
0x2638   : > { %v10549_v23 = vadd.f32 %v16201_v22, %v10548_v48 }
0x263a   : > { %v10560_v26 = vmax.f32 %v10549_v23, 0.0 }
0x263c   : > { %11832 = vmatmul.msk.f32.gmra.mxu1 %vm4904_vm4, %v10560_v26 }
0x264d   : > { %v10551_v52 = vpop.f32.mrf.mxu0 }
0x264e   : > { %v10552_v10 = vadd.f32 %v16201_v22, %v10551_v52 }
0x2650   : > { %v10561_v12 = vmax.f32 %v10552_v10, 0.0 }
0x2652   : > { %11833 = vmatmul.msk.f32.gmra.mxu1 %vm4904_vm4, %v10561_v12 }
0x265f   : > { %v10610_v59 = vpop.f32.mrf.mxu1 }
0x2660   : > { %v10611_v15 = vadd.f32 %v10610_v59, %v10565_v11 }
0x2662   : > { %v10632_v58 = vadd.f32 %v10611_v15, %v16171_v63 }
0x2664   : > { %v10642_v37 = vsel %vm301_vm0, %v10632_v58, 0.0 }
0x2665   : > { %10643 = vadd.xlane.f32.xlu2 %v10642_v37 }
0x2689   : > { %v10613_v41 = vpop.f32.mrf.mxu1 }
0x268a   : > { %v10614_v3 = vadd.f32 %v10613_v41, %v10565_v11 }
0x268c   : > { %v10633_v46 = vadd.f32 %v10614_v3, %v16181_v29 }
0x268e   : > { %v10645_v17 = vsel %vm301_vm0, %v10633_v46, 0.0 }
0x268f   : > { %10646 = vadd.xlane.f32.xlu1 %v10645_v17 }
0x2691   : > { %v10616_v62 = vpop.f32.mrf.mxu1 }
0x2692   : > { %v10617_v57 = vadd.f32 %v10616_v62, %v10565_v11  ;;  %v16316_v62 = vperm.slane %v16013_v40, 7 }
0x2694   : > { %v10634_v22 = vadd.f32 %v10617_v57, %v16189_v4 }
0x2696   : > { %v10648_v56 = vsel %vm301_vm0, %v10634_v22, 0.0 }
0x2697   : > { %10649 = vadd.xlane.f32.xlu0 %v10648_v56  ;;  %v10641_v20 = vpop.xlane.xlu0 %10640  ;;  %v16322_v56 = vld [vmem:[%s16605_s2 + $0x18] ss:$0 sm:$0xff] }
0x2698   : > { %v10663_v63 = vmul.f32 %v10641_v20, %v16755_v54 }
0x2699   : > { %v10619_v33 = vpop.f32.mrf.mxu1 }
0x269a   : > { %v16254_v51 = vsub.f32 %v10631_v28, %v10663_v63  ;;  %v10620_v27 = vadd.f32 %v10619_v33, %v10565_v11 }
0x269c   : > { %v10635_v14 = vadd.f32 %v10620_v27, %v16196_v5  ;;  %v10679_v29 = vmul.f32 %v16254_v51, %v16254_v51 }
0x269e   : > { %v10651_v9 = vsel %vm301_vm0, %v10635_v14, 0.0  ;;  %v10687_v16 = vsel %vm301_vm0, %v10679_v29, 0.0 }
0x269f   : > { %10652 = vadd.xlane.f32.xlu2 %v10651_v9  ;;  %10688 = vadd.xlane.f32.xlu0 %v10687_v16 }
0x26a8   : > { %v10622_v4 = vpop.f32.mrf.mxu1 }
0x26a9   : > { %v10623_v19 = vadd.f32 %v10622_v4, %v10565_v11 }
0x26ab   : > { %v10636_v53 = vadd.f32 %v10623_v19, %v16211_v35 }
0x26ad   : > { %v10654_v61 = vsel %vm301_vm0, %v10636_v53, 0.0 }
0x26ae   : > { %10655 = vadd.xlane.f32.xlu1 %v10654_v61 }
0x26b9   : > { %v10625_v43 = vpop.f32.mrf.mxu1 }
0x26ba   : > { %v10626_v6 = vadd.f32 %v10625_v43, %v10565_v11 }
0x26bc   : > { %v16264_v5 = vadd.f32 %v10626_v6, %v16219_v39 }
0x26be   : > { %v10657_v31 = vsel %vm301_vm0, %v16264_v5, 0.0 }
0x26bf   : > { %10658 = vadd.xlane.f32.xlu2 %v10657_v31 }
0x26cf   : > { %v10628_v13 = vpop.f32.mrf.mxu1 }
0x26d0   : > { %v10629_v1 = vadd.f32 %v10628_v13, %v10565_v11 }
0x26d2   : > { %v16269_v2 = vadd.f32 %v10629_v1, %v16226_v38 }
0x26d4   : > { %v10660_v35 = vsel %vm301_vm0, %v16269_v2, 0.0 }
0x26d5   : > { %10661 = vadd.xlane.f32.xlu0 %v10660_v35 }
0x26d8   : > { %v10644_v50 = vpop.xlane.xlu2 %10643 }
0x26d9   : > { %v10664_v45 = vmul.f32 %v10644_v50, %v16755_v54 }
0x26db   : > { %v16274_v34 = vsub.f32 %v10632_v58, %v10664_v45 }
0x26dd   : > { %v10680_v39 = vmul.f32 %v16274_v34, %v16274_v34 }
0x26df   : > { %v10690_v7 = vsel %vm301_vm0, %v10680_v39, 0.0 }
0x26e0   : > { %10691 = vadd.xlane.f32.xlu1 %v10690_v7 }
0x2702   : > { %v10647_v36 = vpop.xlane.xlu1 %10646 }
0x2703   : > { %v10665_v42 = vmul.f32 %v10647_v36, %v16755_v54 }
0x2705   : > { %v16280_v38 = vsub.f32 %v10633_v46, %v10665_v42 }
0x2707   : > { %v10681_v55 = vmul.f32 %v16280_v38, %v16280_v38 }
0x2709   : > { %v10693_v24 = vsel %vm301_vm0, %v10681_v55, 0.0 }
0x270a   : > { %10694 = vadd.xlane.f32.xlu2 %v10693_v24  ;;  %v10650_v0 = vpop.xlane.xlu0 %10649 }
0x270b   : > { %v10666_v49 = vmul.f32 %v10650_v0, %v16755_v54 }
0x270d   : > { %v16295_v11 = vsub.f32 %v10634_v22, %v10666_v49 }
0x270f   : > { %v10682_v44 = vmul.f32 %v16295_v11, %v16295_v11 }
0x2711   : > { %v10696_v28 = vsel %vm301_vm0, %v10682_v44, 0.0 }
0x2712   : > { %v10653_v60 = vpop.xlane.xlu2 %10652  ;;  %10697 = vadd.xlane.f32.xlu1 %v10696_v28  ;;  %v10689_v32 = vpop.xlane.xlu0 %10688 }
0x2713   : > { %v10667_v47 = vmul.f32 %v10653_v60, %v16755_v54  ;;  %v10711_v30 = vmul.f32 %v10689_v32, %v16755_v54 }
0x2715   : > { %v16305_v48 = vsub.f32 %v10635_v14, %v10667_v47  ;;  %v10719_v23 = vadd.f32 1e-05, %v10711_v30 }
0x2717   : > { %12746 = vrsqrt.f32 %v10719_v23  ;;  %v10683_v26 = vmul.f32 %v16305_v48, %v16305_v48  ;;  %vm10733_vm8 = vweird.f32 %v10719_v23 }
0x2719   : > { %v10699_v52 = vsel %vm301_vm0, %v10683_v26, 0.0 }
0x271a   : > { %10700 = vadd.xlane.f32.xlu0 %v10699_v52 }
0x271d   : > { %v12747_v10 = vpop.eup %12746 }
0x271e   : > { %v10728_v12 = vmul.f32 %v12747_v10, %v10719_v23  ;;  %vm10734_vm15 = vweird.f32 %v12747_v10 }
0x271f   : > { %vm10735_vm1 = vmor %vm10733_vm8, %vm10734_vm15 }
0x2720   : > { %v10729_v59 = vmul.f32 %v12747_v10, %v10728_v12 }
0x2721   : > { %v10656_v15 = vpop.xlane.xlu1 %10655 }
0x2722   : > { %v10730_v58 = vmul.f32 0.5, %v10729_v59  ;;  %v10668_v37 = vmul.f32 %v10656_v15, %v16755_v54 }
0x2724   : > { %v10731_v41 = vsub.f32 1.5, %v10730_v58  ;;  %v16311_v3 = vsub.f32 %v10636_v53, %v10668_v37 }
0x2726   : > { %v10732_v46 = vmul.f32 %v12747_v10, %v10731_v41  ;;  %v10684_v17 = vmul.f32 %v16311_v3, %v16311_v3 }
0x2728   : > { %v10736_v57 = vsel %vm10735_vm1, %v12747_v10, %v10732_v46  ;;  %v10702_v22 = vsel %vm301_vm0, %v10684_v17, 0.0 }
0x2729   : > { %v10807_v20 = vmul.f32 %v10736_v57, %v16254_v51  ;;  %10703 = vadd.xlane.f32.xlu2 %v10702_v22 }
0x272b   : > { %v10816_v63 = vmul.f32 %v16316_v62, %v10807_v20 }
0x272d   : > { %v10825_v33 = vadd.f32 %v16322_v56, %v10816_v63 }
0x272f   : > { %11838 = vmatmul.msk.f32.vlgmr.msra.gmra.mxu2 %vm301_vm0, %v10825_v33 }
0x2732   : > { %v10659_v40 = vpop.xlane.xlu2 %10658 }
0x2733   : > { %v10669_v27 = vmul.f32 %v10659_v40, %v16755_v54 }
0x2735   : > { %v16330_v14 = vsub.f32 %v16264_v5, %v10669_v27 }
0x2737   : > { %v10685_v29 = vmul.f32 %v16330_v14, %v16330_v14 }
0x2739   : > { %v10705_v9 = vsel %vm301_vm0, %v10685_v29, 0.0 }
0x273a   : > { %10706 = vadd.xlane.f32.xlu1 %v10705_v9 }
0x2748   : > { %v10662_v51 = vpop.xlane.xlu0 %10661 }
0x2749   : > { %v10670_v16 = vmul.f32 %v10662_v51, %v16755_v54 }
0x274b   : > { %v16337_v4 = vsub.f32 %v16269_v2, %v10670_v16 }
0x274d   : > { %v10686_v19 = vmul.f32 %v16337_v4, %v16337_v4 }
0x274f   : > { %v10708_v53 = vsel %vm301_vm0, %v10686_v19, 0.0 }
0x2750   : > { %10709 = vadd.xlane.f32.xlu0 %v10708_v53 }
0x2753   : > { %v10692_v61 = vpop.xlane.xlu1 %10691 }
0x2754   : > { %v10712_v43 = vmul.f32 %v10692_v61, %v16755_v54 }
0x2756   : > { %v10720_v6 = vadd.f32 1e-05, %v10712_v43 }
0x2758   : > { %12748 = vrsqrt.f32 %v10720_v6  ;;  %vm10743_vm5 = vweird.f32 %v10720_v6 }
0x275e   : > { %v12749_v5 = vpop.eup %12748 }
0x275f   : > { %v10738_v31 = vmul.f32 %v12749_v5, %v10720_v6  ;;  %vm10744_vm3 = vweird.f32 %v12749_v5 }
0x2760   : > { %vm10745_vm6 = vmor %vm10743_vm5, %vm10744_vm3 }
0x2761   : > { %v10739_v13 = vmul.f32 %v12749_v5, %v10738_v31 }
0x2763   : > { %v10740_v1 = vmul.f32 0.5, %v10739_v13  ;;  %v16367_v13 = vld [vmem:[%s16608_s5 + $0x2] ss:$0 sm:$0xff] }
0x2765   : > { %v10741_v35 = vsub.f32 1.5, %v10740_v1 }
0x2767   : > { %v10742_v50 = vmul.f32 %v12749_v5, %v10741_v35 }
0x2769   : > { %v10746_v2 = vsel %vm10745_vm6, %v12749_v5, %v10742_v50 }
0x276a   : > { %v10808_v45 = vmul.f32 %v10746_v2, %v16274_v34 }
0x276c   : > { %v10817_v39 = vmul.f32 %v16316_v62, %v10808_v45 }
0x276e   : > { %v10826_v7 = vadd.f32 %v16322_v56, %v10817_v39  ;;  %v16374_v39 = vld [vmem:[%s16608_s5 + $0x3] ss:$0 sm:$0xff] }
0x2770   : > { %11839 = vmatmul.msk.f32.gmra.mxu2 %vm301_vm0, %v10826_v7 }
0x277d   : > { %v10695_v36 = vpop.xlane.xlu2 %10694 }
0x277e   : > { %v10713_v42 = vmul.f32 %v10695_v36, %v16755_v54 }
0x2780   : > { %v10721_v55 = vadd.f32 1e-05, %v10713_v42 }
0x2782   : > { %12750 = vrsqrt.f32 %v10721_v55  ;;  %vm10753_vm9 = vweird.f32 %v10721_v55 }
0x2785   : > { %v10698_v25 = vpop.xlane.xlu1 %10697 }
0x2786   : > { %v10714_v24 = vmul.f32 %v10698_v25, %v16755_v54 }
0x2788   : > { %v12751_v18 = vpop.eup %12750  ;;  %v10722_v0 = vadd.f32 1e-05, %v10714_v24 }
0x2789   : > { %v10748_v49 = vmul.f32 %v12751_v18, %v10721_v55  ;;  %vm10754_vm7 = vweird.f32 %v12751_v18 }
0x278a   : > { %12752 = vrsqrt.f32 %v10722_v0  ;;  %vm10755_vm10 = vmor %vm10753_vm9, %vm10754_vm7  ;;  %vm10763_vm12 = vweird.f32 %v10722_v0 }
0x278b   : > { %v10749_v21 = vmul.f32 %v12751_v18, %v10748_v49 }
0x278d   : > { %v10750_v34 = vmul.f32 0.5, %v10749_v21  ;;  %v10701_v8 = vpop.xlane.xlu0 %10700 }
0x278e   : > { %v10715_v44 = vmul.f32 %v10701_v8, %v16755_v54 }
0x278f   : > { %v10751_v28 = vsub.f32 1.5, %v10750_v34 }
0x2790   : > { %v12753_v60 = vpop.eup %12752  ;;  %v10723_v32 = vadd.f32 1e-05, %v10715_v44 }
0x2791   : > { %v10752_v47 = vmul.f32 %v12751_v18, %v10751_v28  ;;  %v10758_v30 = vmul.f32 %v12753_v60, %v10722_v0  ;;  %vm10764_vm11 = vweird.f32 %v12753_v60 }
0x2792   : > { %12754 = vrsqrt.f32 %v10723_v32  ;;  %vm10765_vm13 = vmor %vm10763_vm12, %vm10764_vm11  ;;  %vm10773_vm15 = vweird.f32 %v10723_v32 }
0x2793   : > { %v10756_v23 = vsel %vm10755_vm10, %v12751_v18, %v10752_v47  ;;  %v10759_v26 = vmul.f32 %v12753_v60, %v10758_v30 }
0x2794   : > { %v10809_v52 = vmul.f32 %v10756_v23, %v16280_v38 }
0x2795   : > { %v10760_v10 = vmul.f32 0.5, %v10759_v26 }
0x2796   : > { %v10818_v12 = vmul.f32 %v16316_v62, %v10809_v52 }
0x2797   : > { %v10761_v59 = vsub.f32 1.5, %v10760_v10 }
0x2798   : > { %v12755_v15 = vpop.eup %12754  ;;  %v10827_v58 = vadd.f32 %v16322_v56, %v10818_v12 }
0x2799   : > { %v10762_v37 = vmul.f32 %v12753_v60, %v10761_v59  ;;  %v10768_v41 = vmul.f32 %v12755_v15, %v10723_v32  ;;  %vm10774_vm14 = vweird.f32 %v12755_v15 }
0x279a   : > { %11840 = vmatmul.msk.f32.gmra.mxu2 %vm301_vm0, %v10827_v58  ;;  %vm10775_vm8 = vmor %vm10773_vm15, %vm10774_vm14  ;;  %vm10971_vm14 = vcmask 1044484   ;;  %vm10973_vm15 = vcmask 1045509  }
0x279b   : > { %v10766_v46 = vsel %vm10765_vm13, %v12753_v60, %v10762_v37  ;;  %v10769_v17 = vmul.f32 %v12755_v15, %v10768_v41  ;;  %vm10967_vm13 = vcmask 1042434  }
0x279c   : > { %v10810_v57 = vmul.f32 %v10766_v46, %v16295_v11  ;;  %v10704_v22 = vpop.xlane.xlu2 %10703 }
0x279d   : > { %v10770_v38 = vmul.f32 0.5, %v10769_v17  ;;  %v10716_v20 = vmul.f32 %v10704_v22, %v16755_v54 }
0x279e   : > { %v10819_v63 = vmul.f32 %v16316_v62, %v10810_v57 }
0x279f   : > { %v10771_v33 = vsub.f32 1.5, %v10770_v38  ;;  %v10724_v40 = vadd.f32 1e-05, %v10716_v20 }
0x27a0   : > { %v10828_v27 = vadd.f32 %v16322_v56, %v10819_v63 }
0x27a1   : > { %v10772_v29 = vmul.f32 %v12755_v15, %v10771_v33  ;;  %12756 = vrsqrt.f32 %v10724_v40  ;;  %vm10783_vm3 = vweird.f32 %v10724_v40 }
0x27a2   : > { %11841 = vmatmul.msk.f32.gmra.mxu2 %vm301_vm0, %v10828_v27 }
0x27a3   : > { %v10776_v9 = vsel %vm10775_vm8, %v12755_v15, %v10772_v29  ;;  %vm10975_vm8 = vcmask 1046534  }
0x27a4   : > { %v10811_v11 = vmul.f32 %v10776_v9, %v16305_v48 }
0x27a6   : > { %v10820_v51 = vmul.f32 %v16316_v62, %v10811_v11 }
0x27a7   : > { %v12757_v16 = vpop.eup %12756 }
0x27a8   : > { %v10778_v19 = vmul.f32 %v12757_v16, %v10724_v40  ;;  %v10829_v53 = vadd.f32 %v16322_v56, %v10820_v51  ;;  %vm10784_vm1 = vweird.f32 %v12757_v16 }
0x27a9   : > { %vm10785_vm5 = vmor %vm10783_vm3, %vm10784_vm1  ;;  %vm16621_vm1 = vcmask 1047559  }
0x27aa   : > { %v10779_v61 = vmul.f32 %v12757_v16, %v10778_v19  ;;  %11842 = vmatmul.msk.f32.gmra.mxu2 %vm301_vm0, %v10829_v53 }
0x27ac   : > { %v10780_v43 = vmul.f32 0.5, %v10779_v61 }
0x27ad   : > { %v10707_v6 = vpop.xlane.xlu1 %10706 }
0x27ae   : > { %v10781_v5 = vsub.f32 1.5, %v10780_v43  ;;  %v10717_v31 = vmul.f32 %v10707_v6, %v16755_v54 }
0x27b0   : > { %v10782_v48 = vmul.f32 %v12757_v16, %v10781_v5  ;;  %v10725_v1 = vadd.f32 1e-05, %v10717_v31 }
0x27b2   : > { %v10786_v35 = vsel %vm10785_vm5, %v12757_v16, %v10782_v48  ;;  %12758 = vrsqrt.f32 %v10725_v1  ;;  %v10881_v50 = vpop.f32.mrf.mxu2  ;;  %vm10793_vm7 = vweird.f32 %v10725_v1 }
0x27b3   : > { %v10812_v2 = vmul.f32 %v10786_v35, %v16311_v3  ;;  %v10882_v45 = vadd.f32 %v16367_v13, %v10881_v50 }
0x27b5   : > { %v10905_v7 = vmax.f32 %v10882_v45, 0.0  ;;  %v10821_v36 = vmul.f32 %v16316_v62, %v10812_v2 }
0x27b7   : > { %v10915_v42 = vmul.f32 %v16374_v39, %v10905_v7  ;;  %v10830_v55 = vadd.f32 %v16322_v56, %v10821_v36 }
0x27b8   : > { %v12759_v25 = vpop.eup %12758 }
0x27b9   : > { %v10788_v24 = vmul.f32 %v12759_v25, %v10725_v1  ;;  %v10923_v18 = vsel %vm4904_vm4, %v10915_v42, 0.0  ;;  %11843 = vmatmul.msk.f32.gmra.mxu2 %vm301_vm0, %v10830_v55  ;;  %vm10794_vm6 = vweird.f32 %v12759_v25 }
0x27ba   : > { %10924 = vadd.xlane.f32.xlu2 %v10923_v18  ;;  %vm10795_vm9 = vmor %vm10793_vm7, %vm10794_vm6 }
0x27bb   : > { %v10789_v3 = vmul.f32 %v12759_v25, %v10788_v24 }
0x27bd   : > { %v10790_v0 = vmul.f32 0.5, %v10789_v3 }
0x27bf   : > { %v10791_v49 = vsub.f32 1.5, %v10790_v0 }
0x27c1   : > { %v10792_v21 = vmul.f32 %v12759_v25, %v10791_v49 }
0x27c3   : > { %v10796_v34 = vsel %vm10795_vm9, %v12759_v25, %v10792_v21  ;;  %v10710_v8 = vpop.xlane.xlu0 %10709  ;;  %v10955_v25 = vlaneseq }
0x27c4   : > { %v10813_v44 = vmul.f32 %v10796_v34, %v16330_v14  ;;  %v10718_v28 = vmul.f32 %v10710_v8, %v16755_v54 }
0x27c5   : > { %v16411_v18 = vand.u32 127, %v10955_v25 }
0x27c6   : > { %v10726_v60 = vadd.f32 1e-05, %v10718_v28  ;;  %v10822_v32 = vmul.f32 %v16316_v62, %v10813_v44 }
0x27c8   : > { %12760 = vrsqrt.f32 %v10726_v60  ;;  %v10831_v47 = vadd.f32 %v16322_v56, %v10822_v32  ;;  %vm10803_vm11 = vweird.f32 %v10726_v60 }
0x27ca   : > { %11844 = vmatmul.msk.f32.gmra.mxu2 %vm301_vm0, %v10831_v47 }
0x27ce   : > { %v12761_v30 = vpop.eup %12760 }
0x27cf   : > { %v10798_v23 = vmul.f32 %v12761_v30, %v10726_v60  ;;  %vm10804_vm10 = vweird.f32 %v12761_v30 }
0x27d0   : > { %vm10805_vm12 = vmor %vm10803_vm11, %vm10804_vm10 }
0x27d1   : > { %v10799_v26 = vmul.f32 %v12761_v30, %v10798_v23 }
0x27d3   : > { %v10800_v52 = vmul.f32 0.5, %v10799_v26 }
0x27d5   : > { %v10801_v10 = vsub.f32 1.5, %v10800_v52 }
0x27d7   : > { %v10802_v12 = vmul.f32 %v12761_v30, %v10801_v10 }
0x27d9   : > { %v10806_v14 = vsel %vm10805_vm12, %v12761_v30, %v10802_v12 }
0x27da   : > { %v10814_v54 = vmul.f32 %v10806_v14, %v16337_v4 }
0x27dc   : > { %v10823_v59 = vmul.f32 %v16316_v62, %v10814_v54  ;;  %v12899_v54 = vmov 0  }
0x27dd   : > { %12177 = vset.pattern.permute.xlu0 %v12899_v54  ;;  %12176 = vset.pattern.permute.xlu1 %v12899_v54 }
0x27de   : > { %v10832_v15 = vadd.f32 %v16322_v56, %v10823_v59  ;;  %12175 = vset.pattern.permute.xlu2 %v12899_v54 }
0x27e0   : > { %11845 = vmatmul.msk.f32.gmra.mxu2 %vm301_vm0, %v10832_v15  ;;  %vm10965_vm0 = vcmask 1041409  }
0x27f3   : > { %v10884_v58 = vpop.f32.mrf.mxu2 }
0x27f4   : > { %v10885_v37 = vadd.f32 %v16367_v13, %v10884_v58 }
0x27f6   : > { %v10906_v41 = vmax.f32 %v10885_v37, 0.0 }
0x27f8   : > { %v10916_v46 = vmul.f32 %v16374_v39, %v10906_v41 }
0x27fa   : > { %v10926_v17 = vsel %vm4904_vm4, %v10916_v46, 0.0 }
0x27fb   : > { %10927 = vadd.xlane.f32.xlu1 %v10926_v17 }
0x281d   : > { %v10887_v57 = vpop.f32.mrf.mxu2 }
0x281e   : > { %v10888_v22 = vadd.f32 %v16367_v13, %v10887_v57 }
0x2820   : > { %v10907_v38 = vmax.f32 %v10888_v22, 0.0 }
0x2822   : > { %v10917_v4 = vmul.f32 %v16374_v39, %v10907_v38 }
0x2824   : > { %v10929_v62 = vsel %vm4904_vm4, %v10917_v4, 0.0 }
0x2825   : > { %v10890_v56 = vpop.f32.mrf.mxu2  ;;  %10930 = vadd.xlane.f32.xlu0 %v10929_v62 }
0x2826   : > { %v10891_v20 = vadd.f32 %v16367_v13, %v10890_v56 }
0x2828   : > { %v10908_v63 = vmax.f32 %v10891_v20, 0.0 }
0x282a   : > { %v10918_v33 = vmul.f32 %v16374_v39, %v10908_v63 }
0x282c   : > { %v10932_v40 = vsel %vm4904_vm4, %v10918_v33, 0.0 }
0x282d   : > { %10933 = vadd.xlane.f32.xlu2 %v10932_v40  ;;  %v10893_v27 = vpop.f32.mrf.mxu2  ;;  %v10925_v36 = vpop.xlane.xlu2 %10924 }
0x282e   : > { %v10894_v29 = vadd.f32 %v16367_v13, %v10893_v27  ;;  %v10957_v21 = vperm.slane %v10925_v36, %v16411_v18 }
0x2830   : > { %v10909_v9 = vmax.f32 %v10894_v29, 0.0 }
0x2832   : > { %v10919_v11 = vmul.f32 %v16374_v39, %v10909_v9 }
0x2834   : > { %v10935_v51 = vsel %vm4904_vm4, %v10919_v11, 0.0 }
0x2835   : > { %10936 = vadd.xlane.f32.xlu1 %v10935_v51 }
0x283c   : > { %v10896_v16 = vpop.f32.mrf.mxu2 }
0x283d   : > { %v10897_v19 = vadd.f32 %v16367_v13, %v10896_v16 }
0x283f   : > { %v10910_v53 = vmax.f32 %v10897_v19, 0.0 }
0x2841   : > { %v10920_v61 = vmul.f32 %v16374_v39, %v10910_v53 }
0x2843   : > { %v10938_v43 = vsel %vm4904_vm4, %v10920_v61, 0.0 }
0x2844   : > { %10939 = vadd.xlane.f32.xlu0 %v10938_v43 }
0x284d   : > { %v10899_v6 = vpop.f32.mrf.mxu2 }
0x284e   : > { %v10900_v5 = vadd.f32 %v16367_v13, %v10899_v6 }
0x2850   : > { %v10911_v31 = vmax.f32 %v10900_v5, 0.0 }
0x2852   : > { %v10921_v48 = vmul.f32 %v16374_v39, %v10911_v31 }
0x2854   : > { %v10941_v1 = vsel %vm4904_vm4, %v10921_v48, 0.0 }
0x2855   : > { %10942 = vadd.xlane.f32.xlu2 %v10941_v1 }
0x2863   : > { %v10902_v35 = vpop.f32.mrf.mxu2 }
0x2864   : > { %v10903_v50 = vadd.f32 %v16367_v13, %v10902_v35 }
0x2866   : > { %v10912_v2 = vmax.f32 %v10903_v50, 0.0 }
0x2868   : > { %v10922_v45 = vmul.f32 %v16374_v39, %v10912_v2 }
0x286a   : > { %v10944_v7 = vsel %vm4904_vm4, %v10922_v45, 0.0  ;;  %vm10969_vm4 = vcmask 1043459  }
0x286b   : > { %10945 = vadd.xlane.f32.xlu1 %v10944_v7 }
0x286e   : > { %v10928_v42 = vpop.xlane.xlu1 %10927 }
0x286f   : > { %v10958_v0 = vperm.slane %v10928_v42, %v16411_v18 }
0x2871   : > { %v10966_v44 = vsel %vm10965_vm0, %v10958_v0, %v10957_v21 }
0x2898   : > { %v10931_v55 = vpop.xlane.xlu0 %10930 }
0x2899   : > { %v10959_v49 = vperm.slane %v10931_v55, %v16411_v18 }
0x289b   : > { %v10968_v60 = vsel %vm10967_vm13, %v10959_v49, %v10966_v44 }
0x28a0   : > { %v10934_v24 = vpop.xlane.xlu2 %10933 }
0x28a1   : > { %v10960_v39 = vperm.slane %v10934_v24, %v16411_v18 }
0x28a3   : > { %v10970_v47 = vsel %vm10969_vm4, %v10960_v39, %v10968_v60 }
0x28a8   : > { %v10937_v3 = vpop.xlane.xlu1 %10936 }
0x28a9   : > { %v10961_v8 = vperm.slane %v10937_v3, %v16411_v18 }
0x28ab   : > { %v10972_v30 = vsel %vm10971_vm14, %v10961_v8, %v10970_v47 }
0x28b7   : > { %v10940_v13 = vpop.xlane.xlu0 %10939 }
0x28b8   : > { %v10962_v28 = vperm.slane %v10940_v13, %v16411_v18 }
0x28ba   : > { %v10974_v26 = vsel %vm10973_vm15, %v10962_v28, %v10972_v30 }
0x28c8   : > { %v10943_v34 = vpop.xlane.xlu2 %10942 }
0x28c9   : > { %v10963_v32 = vperm.slane %v10943_v34, %v16411_v18 }
0x28cb   : > { %v10976_v10 = vsel %vm10975_vm8, %v10963_v32, %v10974_v26 }
0x28de   : > { %v10946_v23 = vpop.xlane.xlu1 %10945 }
0x28df   : > { %v10964_v52 = vperm.slane %v10946_v23, %v16411_v18 }
0x28e1   : > { %v10978_v12 = vsel %vm16621_vm1, %v10964_v52, %v10976_v10 }
0x28e2   : > { %v10980_v14 = vsel %vm16620_vm2, %v10978_v12, -inf }
0x28e3   : > { %10981 = vmax.xlane.f32.xlu0 %v10980_v14 }
0x2956   : > { %v10982_v59 = vpop.xlane.xlu0 %10981 }
0x2957   : > { %v10984_v15 = vperm.slane %v10982_v59, 0  ;;  %v10985_v58 = vperm.slane %v10982_v59, 1  ;;  %v10986_v37 = vperm.slane %v10982_v59, 2  ;;  %v10987_v41 = vperm.slane %v10982_v59, 3 }
0x2958   : > { %v10988_v22 = vperm.slane %v10982_v59, 4  ;;  %v10989_v63 = vperm.slane %v10982_v59, 5  ;;  %v10990_v40 = vperm.slane %v10982_v59, 6  ;;  %v10991_v19 = vperm.slane %v10982_v59, 7 }
0x2959   : > { %v11000_v46 = vsub.f32 %v10925_v36, %v10984_v15  ;;  %v11001_v17 = vsub.f32 %v10928_v42, %v10985_v58  ;;  %v11002_v57 = vsub.f32 %v10931_v55, %v10986_v37  ;;  %v11003_v56 = vsub.f32 %v10934_v24, %v10987_v41 }
0x295a   : > { %v11004_v20 = vsub.f32 %v10937_v3, %v10988_v22  ;;  %v11005_v51 = vsub.f32 %v10940_v13, %v10989_v63  ;;  %v11006_v16 = vsub.f32 %v10943_v34, %v10990_v40  ;;  %v11007_v5 = vsub.f32 %v10946_v23, %v10991_v19 }
0x295b   : > { %v11008_v38 = vmul.f32 1.442695, %v11000_v46  ;;  %v11010_v4 = vmul.f32 1.442695, %v11001_v17  ;;  %v11012_v62 = vmul.f32 1.442695, %v11002_v57 }
0x295c   : > { %v11014_v33 = vmul.f32 1.442695, %v11003_v56  ;;  %v11016_v27 = vmul.f32 1.442695, %v11004_v20  ;;  %v11018_v53 = vmul.f32 1.442695, %v11005_v51 }
0x295d   : > { %12762 = vpow2.f32 %v11008_v38  ;;  %v11020_v61 = vmul.f32 1.442695, %v11006_v16  ;;  %v11022_v31 = vmul.f32 1.442695, %v11007_v5 }
0x295e   : > { %12764 = vpow2.f32 %v11010_v4 }
0x295f   : > { %12766 = vpow2.f32 %v11012_v62 }
0x2960   : > { %12768 = vpow2.f32 %v11014_v33 }
0x2961   : > { %12770 = vpow2.f32 %v11016_v27 }
0x2962   : > { %12772 = vpow2.f32 %v11018_v53 }
0x2963   : > { %v16429_v29 = vpop.eup %12762  ;;  %12774 = vpow2.f32 %v11020_v61 }
0x2964   : > { %v16431_v9 = vpop.eup %12764  ;;  %11033 = vperm.xlu2 %12175, %v16429_v29   ;;  %12776 = vpow2.f32 %v11022_v31 }
0x2965   : > { %v16434_v11 = vpop.eup %12766  ;;  %11036 = vperm.xlu1 %12176, %v16431_v9  }
0x2966   : > { %11039 = vperm.xlu0 %12177, %v16434_v11   ;;  %v16438_v43 = vpop.eup %12768 }
0x2967   : > { %v16440_v6 = vpop.eup %12770 }
0x2968   : > { %v16444_v48 = vpop.eup %12772 }
0x2969   : > { %v16446_v1 = vpop.eup %12774 }
0x296a   : > { %v16450_v35 = vpop.eup %12776 }
0x296c   : > { %11042 = vperm.xlu2 %12175, %v16438_v43  }
0x296d   : > { %11045 = vperm.xlu1 %12176, %v16440_v6  }
0x2974   : > { %11048 = vperm.xlu2 %12175, %v16444_v48  }
0x2975   : > { %11051 = vperm.xlu1 %12176, %v16446_v1  }
0x297c   : > { %11054 = vperm.xlu2 %12175, %v16450_v35  }
0x29be   : > { %v11034_v50 = vpop.permute.xlu2 %11033 }
0x29bf   : > { %v11056_v55 = vperm.slane %v11034_v50, %v16411_v18 }
0x29c6   : > { %v11043_v2 = vpop.permute.xlu2 %11042 }
0x29c7   : > { %v11059_v13 = vperm.slane %v11043_v2, %v16411_v18 }
0x29ce   : > { %v11049_v42 = vpop.permute.xlu2 %11048 }
0x29cf   : > { %v11061_v8 = vperm.slane %v11049_v42, %v16411_v18 }
0x29d6   : > { %v11055_v39 = vpop.permute.xlu2 %11054 }
0x29d7   : > { %v11037_v45 = vpop.permute.xlu1 %11036  ;;  %v11063_v60 = vperm.slane %v11055_v39, %v16411_v18 }
0x29d8   : > { %v11040_v7 = vpop.permute.xlu0 %11039  ;;  %v11057_v36 = vperm.slane %v11037_v45, %v16411_v18 }
0x29d9   : > { %v11058_v25 = vperm.slane %v11040_v7, %v16411_v18 }
0x29da   : > { %v11064_v24 = vsel %vm10965_vm0, %v11057_v36, %v11056_v55 }
0x29db   : > { %v11065_v0 = vsel %vm10967_vm13, %v11058_v25, %v11064_v24 }
0x29dc   : > { %v11066_v21 = vsel %vm10969_vm4, %v11059_v13, %v11065_v0 }
0x29df   : > { %v11046_v3 = vpop.permute.xlu1 %11045 }
0x29e0   : > { %v11060_v49 = vperm.slane %v11046_v3, %v16411_v18 }
0x29e2   : > { %v11067_v34 = vsel %vm10971_vm14, %v11060_v49, %v11066_v21 }
0x29e3   : > { %v11068_v32 = vsel %vm10973_vm15, %v11061_v8, %v11067_v34 }
0x29e7   : > { %v11052_v44 = vpop.permute.xlu1 %11051 }
0x29e8   : > { %v11062_v28 = vperm.slane %v11052_v44, %v16411_v18 }
0x29ea   : > { %v11069_v47 = vsel %vm10975_vm8, %v11062_v28, %v11068_v32 }
0x29eb   : > { %v11070_v30 = vsel %vm16621_vm1, %v11063_v60, %v11069_v47 }
0x29ec   : > { %v11072_v23 = vsel %vm16620_vm2, %v11070_v30, 0.0 }
0x29ed   : > { %11073 = vadd.xlane.f32.xlu0 %v11072_v23 }
0x2a60   : > { %v11074_v26 = vpop.xlane.xlu0 %11073 }
0x2a61   : > { %v11076_v52 = vperm.slane %v11074_v26, 0  ;;  %v11077_v10 = vperm.slane %v11074_v26, 1  ;;  %v16469_v12 = vperm.slane %v11074_v26, 2  ;;  %v16471_v14 = vperm.slane %v11074_v26, 3 }
0x2a62   : > { %v16473_v54 = vperm.slane %v11074_v26, 4  ;;  %v16475_v59 = vperm.slane %v11074_v26, 5  ;;  %v16481_v46 = vperm.slane %v11074_v26, 7  ;;  %v16483_v22 = vperm.slane %v11074_v26, 6 }
0x2a63   : > { %12778 = vrcp.f32 %v11076_v52  ;;  %v11116_v15 = vand.u32 2147483647, %v11077_v10  ;;  %v11118_v58 = vand.u32 2147483648, %v11077_v10  ;;  %v11101_v37 = vand.u32 2147483647, %v11076_v52 }
0x2a64   : > { %12780 = vrcp.f32 %v11077_v10  ;;  %v11103_v17 = vand.u32 2147483648, %v11076_v52  ;;  %vm11112_vm3 = vweird.f32 %v11077_v10  ;;  %vm11097_vm6 = vweird.f32 %v11076_v52 }
0x2a65   : > { %12782 = vrcp.f32 %v16469_v12  ;;  %vm16487_vm5 = vcmp.eq.f32.partialorder %v11116_v15, 8.507059e+37  ;;  %v11119_v63 = vor.u32 1.1754944e-38, %v11118_v58  ;;  %vm16493_vm7 = vcmp.eq.f32.partialorder %v11101_v37, 8.507059e+37 }
0x2a66   : > { %12784 = vrcp.f32 %v16471_v14  ;;  %v11104_v19 = vor.u32 1.1754944e-38, %v11103_v17  ;;  %v11148_v42 = vand.u32 2147483648, %v16471_v14  ;;  %v11133_v25 = vand.u32 2147483648, %v16469_v12 }
0x2a67   : > { %12786 = vrcp.f32 %v16473_v54  ;;  %v11131_v32 = vand.u32 2147483647, %v16469_v12  ;;  %v11146_v30 = vand.u32 2147483647, %v16471_v14  ;;  %v11178_v58 = vand.u32 2147483648, %v16475_v59 }
0x2a68   : > { %12788 = vrcp.f32 %v16475_v59  ;;  %v11161_v56 = vand.u32 2147483647, %v16473_v54 }
0x2a69   : > { %v12779_v41 = vpop.eup %12778  ;;  %12790 = vrcp.f32 %v16481_v46 }
0x2a6a   : > { %v12781_v57 = vpop.eup %12780  ;;  %v11093_v38 = vmul.f32 %v12779_v41, %v11076_v52  ;;  %vm11098_vm9 = vweird.f32 %v12779_v41  ;;  %12792 = vrcp.f32 %v16483_v22  ;;  %v11134_v52 = vor.u32 1.1754944e-38, %v11133_v25 }
0x2a6b   : > { %v16485_v4 = vpop.eup %12782  ;;  %v11108_v62 = vmul.f32 %v12781_v57, %v11077_v10  ;;  %vm11113_vm10 = vweird.f32 %v12781_v57  ;;  %vm11099_vm11 = vmor %vm11097_vm6, %vm11098_vm9  ;;  %vm11142_vm6 = vweird.f32 %v16471_v14  ;;  %vm11147_vm9 = vcmp.eq.f32.partialorder %v11146_v30, 8.507059e+37 }
0x2a6c   : > { %v16491_v20 = vpop.eup %12784  ;;  %v11094_v33 = vsub.f32 1.0, %v11093_v38  ;;  %v11123_v27 = vmul.f32 %v16485_v4, %v16469_v12  ;;  %vm11128_vm12 = vweird.f32 %v16485_v4  ;;  %vm11114_vm2 = vmor %vm11112_vm3, %vm11113_vm10  ;;  %vm11127_vm3 = vweird.f32 %v16469_v12 }
0x2a6d   : > { %v16499_v51 = vpop.eup %12786  ;;  %v11109_v16 = vsub.f32 1.0, %v11108_v62  ;;  %v11138_v53 = vmul.f32 %v16491_v20, %v16471_v14  ;;  %vm11143_vm1 = vweird.f32 %v16491_v20  ;;  %v11149_v14 = vor.u32 1.1754944e-38, %v11148_v42 }
0x2a6e   : > { %v16504_v61 = vpop.eup %12788  ;;  %v11095_v5 = vmul.f32 %v12779_v41, %v11094_v33  ;;  %v11124_v31 = vsub.f32 1.0, %v11123_v27  ;;  %v11153_v50 = vmul.f32 %v16499_v51, %v16473_v54  ;;  %v11163_v38 = vand.u32 2147483648, %v16473_v54 }
0x2a6f   : > { %v11110_v2 = vmul.f32 %v12781_v57, %v11109_v16  ;;  %v11139_v45 = vsub.f32 1.0, %v11138_v53  ;;  %v11168_v7 = vmul.f32 %v16504_v61, %v16475_v59  ;;  %v16520_v21 = vpop.eup %12790  ;;  %vm11173_vm10 = vweird.f32 %v16504_v61 }
0x2a70   : > { %v11096_v36 = vadd.f32 %v12779_v41, %v11095_v5  ;;  %v11125_v55 = vmul.f32 %v16485_v4, %v11124_v31  ;;  %v11154_v13 = vsub.f32 1.0, %v11153_v50  ;;  %v16539_v26 = vpop.eup %12792  ;;  %v11198_v12 = vmul.f32 %v16520_v21, %v16481_v46 }
0x2a71   : > { %v11111_v24 = vadd.f32 %v12781_v57, %v11110_v2  ;;  %v11140_v3 = vmul.f32 %v16491_v20, %v11139_v45  ;;  %v11169_v44 = vsub.f32 1.0, %v11168_v7  ;;  %v11183_v17 = vmul.f32 %v16539_v26, %v16483_v22 }
0x2a72   : > { %v11100_v0 = vsel %vm11099_vm11, %v12779_v41, %v11096_v36  ;;  %v11126_v49 = vadd.f32 %v16485_v4, %v11125_v55  ;;  %vm11157_vm11 = vweird.f32 %v16473_v54  ;;  %v11176_v33 = vand.u32 2147483647, %v16475_v59 }
0x2a73   : > { %v11115_v39 = vsel %vm11114_vm2, %v12781_v57, %v11111_v24  ;;  %v11105_v34 = vsel %vm16493_vm7, %v11104_v19, %v11100_v0  ;;  %v11141_v8 = vadd.f32 %v16491_v20, %v11140_v3  ;;  %vm11129_vm2 = vmor %vm11127_vm3, %vm11128_vm12  ;;  %v11170_v10 = vmul.f32 %v16504_v61, %v11169_v44 }
0x2a74   : > { %v11120_v28 = vsel %vm16487_vm5, %v11119_v63, %v11115_v39  ;;  %v11106_v60 = vmul.f32 %v16429_v29, %v11105_v34  ;;  %vm11144_vm7 = vmor %vm11142_vm6, %vm11143_vm1  ;;  %v11130_v23 = vsel %vm11129_vm2, %v16485_v4, %v11126_v49  ;;  %v11155_v29 = vmul.f32 %v16499_v51, %v11154_v13 }
0x2a75   : > { %v11121_v47 = vmul.f32 %v16431_v9, %v11120_v28  ;;  %v11145_v9 = vsel %vm11144_vm7, %v16491_v20, %v11141_v8  ;;  %vm11132_vm5 = vcmp.eq.f32.partialorder %v11131_v32, 8.507059e+37  ;;  %vm11158_vm1 = vweird.f32 %v16499_v51 }
0x2a76   : > { %11221 = vperm.xlu1 %12176, %v11106_v60   ;;  %v11135_v15 = vsel %vm11132_vm5, %v11134_v52, %v11130_v23  ;;  %v11150_v37 = vsel %vm11147_vm9, %v11149_v14, %v11145_v9  ;;  %v11156_v41 = vadd.f32 %v16499_v51, %v11155_v29  ;;  %v11171_v57 = vadd.f32 %v16504_v61, %v11170_v10  ;;  %vm11159_vm3 = vmor %vm11157_vm11, %vm11158_vm1 }
0x2a77   : > { %11224 = vperm.xlu2 %12175, %v11121_v47   ;;  %v11199_v4 = vsub.f32 1.0, %v11198_v12  ;;  %v11136_v62 = vmul.f32 %v16434_v11, %v11135_v15  ;;  %v11184_v20 = vsub.f32 1.0, %v11183_v17  ;;  %v11151_v63 = vmul.f32 %v16438_v43, %v11150_v37 }
0x2a78   : > { %vm11172_vm12 = vweird.f32 %v16475_v59  ;;  %v11160_v40 = vsel %vm11159_vm3, %v16499_v51, %v11156_v41  ;;  %v11164_v16 = vor.u32 1.1754944e-38, %v11163_v38  ;;  %v11179_v19 = vor.u32 1.1754944e-38, %v11178_v58 }
0x2a79   : > { %vm11174_vm6 = vmor %vm11172_vm12, %vm11173_vm10  ;;  %v11185_v27 = vmul.f32 %v16539_v26, %v11184_v20  ;;  %v11200_v54 = vmul.f32 %v16520_v21, %v11199_v4  ;;  %vm11162_vm2 = vcmp.eq.f32.partialorder %v11161_v56, 8.507059e+37  ;;  %vm11177_vm7 = vcmp.eq.f32.partialorder %v11176_v33, 8.507059e+37 }
0x2a7a   : > { %v11175_v11 = vsel %vm11174_vm6, %v16504_v61, %v11171_v57  ;;  %v11165_v43 = vsel %vm11162_vm2, %v11164_v16, %v11160_v40  ;;  %vm11188_vm5 = vweird.f32 %v16539_v26  ;;  %vm11203_vm9 = vweird.f32 %v16520_v21 }
0x2a7b   : > { %v11180_v53 = vsel %vm11177_vm7, %v11179_v19, %v11175_v11  ;;  %v11186_v59 = vadd.f32 %v16539_v26, %v11185_v27  ;;  %v11201_v5 = vadd.f32 %v16520_v21, %v11200_v54  ;;  %v11193_v51 = vand.u32 2147483648, %v16483_v22 }
0x2a7c   : > { %v11166_v61 = vmul.f32 %v16440_v6, %v11165_v43  ;;  %v11208_v31 = vand.u32 2147483648, %v16481_v46  ;;  %vm11187_vm1 = vweird.f32 %v16483_v22  ;;  %v11191_v50 = vand.u32 2147483647, %v16483_v22 }
0x2a7d   : > { %v11181_v2 = vmul.f32 %v16444_v48, %v11180_v53  ;;  %vm11202_vm10 = vweird.f32 %v16481_v46  ;;  %v11206_v45 = vand.u32 2147483647, %v16481_v46  ;;  %vm11189_vm11 = vmor %vm11187_vm1, %vm11188_vm5  ;;  %v11194_v36 = vor.u32 1.1754944e-38, %v11193_v51 }
0x2a7e   : > { %11227 = vperm.xlu1 %12176, %v11136_v62   ;;  %vm11204_vm12 = vmor %vm11202_vm10, %vm11203_vm9  ;;  %v11190_v7 = vsel %vm11189_vm11, %v16539_v26, %v11186_v59  ;;  %v11209_v42 = vor.u32 1.1754944e-38, %v11208_v31  ;;  %vm11192_vm3 = vcmp.eq.f32.partialorder %v11191_v50, 8.507059e+37 }
0x2a7f   : > { %11230 = vperm.xlu2 %12175, %v11151_v63   ;;  %v11205_v6 = vsel %vm11204_vm12, %v16520_v21, %v11201_v5  ;;  %vm11207_vm6 = vcmp.eq.f32.partialorder %v11206_v45, 8.507059e+37  ;;  %v11195_v22 = vsel %vm11192_vm3, %v11194_v36, %v11190_v7 }
0x2a80   : > { %v11210_v55 = vsel %vm11207_vm6, %v11209_v42, %v11205_v6  ;;  %v11196_v48 = vmul.f32 %v16446_v1, %v11195_v22 }
0x2a81   : > { %v11211_v25 = vmul.f32 %v16450_v35, %v11210_v55 }
0x2a86   : > { %11233 = vperm.xlu1 %12176, %v11166_v61  }
0x2a87   : > { %11236 = vperm.xlu2 %12175, %v11181_v2  }
0x2a8e   : > { %11239 = vperm.xlu1 %12176, %v11196_v48  }
0x2a8f   : > { %11242 = vperm.xlu2 %12175, %v11211_v25  }
0x2ad1   : > { %v11225_v46 = vpop.permute.xlu2 %11224 }
0x2ad2   : > { %v11245_v39 = vperm.slane %v11225_v46, %v16411_v18 }
0x2ad9   : > { %v11231_v3 = vpop.permute.xlu2 %11230 }
0x2ada   : > { %v11247_v44 = vperm.slane %v11231_v3, %v16411_v18 }
0x2ae1   : > { %v11237_v49 = vpop.permute.xlu2 %11236 }
0x2ae2   : > { %v11249_v47 = vperm.slane %v11237_v49, %v16411_v18 }
0x2ae8   : > { %v11222_v24 = vpop.permute.xlu1 %11221 }
0x2ae9   : > { %v11244_v13 = vperm.slane %v11222_v24, %v16411_v18  ;;  %v11243_v60 = vpop.permute.xlu2 %11242 }
0x2aea   : > { %v11251_v29 = vperm.slane %v11243_v60, %v16411_v18 }
0x2aeb   : > { %v11252_v1 = vsel %vm10965_vm0, %v11245_v39, %v11244_v13  ;;  %vm16765_vm0 = vcmask 1047559  }
0x2af0   : > { %v11228_v0 = vpop.permute.xlu1 %11227 }
0x2af1   : > { %v11246_v21 = vperm.slane %v11228_v0, %v16411_v18 }
0x2af3   : > { %v11253_v35 = vsel %vm10967_vm13, %v11246_v21, %v11252_v1  ;;  %vm16766_vm13 = vcmask 64512  }
0x2af4   : > { %v11254_v28 = vsel %vm10969_vm4, %v11247_v44, %v11253_v35 }
0x2af8   : > { %v11234_v34 = vpop.permute.xlu1 %11233 }
0x2af9   : > { %v11248_v8 = vperm.slane %v11234_v34, %v16411_v18 }
0x2afb   : > { %v11255_v32 = vsel %vm10971_vm14, %v11248_v8, %v11254_v28 }
0x2afc   : > { %v11256_v26 = vsel %vm10973_vm15, %v11249_v47, %v11255_v32 }
0x2b00   : > { %v11240_v30 = vpop.permute.xlu1 %11239 }
0x2b01   : > { %v11250_v23 = vperm.slane %v11240_v30, %v16411_v18 }
0x2b03   : > { %v11257_v9 = vsel %vm10975_vm8, %v11250_v23, %v11256_v26 }
0x2b04   : > { %v11258_v52 = vsel %vm16765_vm0, %v11251_v29, %v11257_v9 }
0x2b05   : > { %11260 = vst.msk [vmem:[%s285_s28] sm:$0xff] %vm16766_vm13, %v11258_v52 }
0x2b06 PF: > { %s18_s21 = sadd.s32 1, %s12878_s21  }
0x2b07   : > { %p15_p8 = scmp.ge.s32.totalorder %s18_s21, 4  }
0x2b09   :  { %17 = sbr.rel (!%p15_p8) target bundleno = 2 (0x2), region = 94 }
0x2b0e   :  { %11280 = vsyncpa [#allocation3], 1 }
0x2b0f   :  { %11282 = vsyncpa [#allocation3 + $0x1], 1 }
0x2b10   :  { %11283 = vsyncpa [#allocation5], 1 }

</bundles_post_ra>
